<compile_context>
chip_gen: v6e
topology: v6e:2x2x1
jax: 0.10.0
libtpu: 0.0.40
codegen_flags: <defaults>
</compile_context>

<pallas_src>
import functools
import math

import jax
import jax.numpy as jnp
from jax.experimental import pallas as pl
from jax.experimental.pallas import tpu as pltpu

# ---- hyperparameters implied by the module (nn.Transformer defaults) ----
D_MODEL = 512
NHEAD = 8
HEAD_DIM = D_MODEL // NHEAD
DIM_FF = 2048
NUM_ENC = 5
NUM_DEC = 5
LN_EPS = 1e-5
NEG = -1e30  # finite stand-in for float('-inf') in additive attention masks


def _round_up(x, m):
    return (x + m - 1) // m * m


def _row_tile(r):
    """Largest row tile that satisfies the (8,128) block rule for dim -2."""
    for t in (256, 128, 64, 32, 16, 8):
        if r % t == 0:
            return t
    return r  # block == full dim


def _ln(h, g, b):
    mean = jnp.mean(h, axis=-1, keepdims=True)
    cent = h - mean
    var = jnp.mean(cent * cent, axis=-1, keepdims=True)
    return cent * jax.lax.rsqrt(var + LN_EPS) * g + b


# ============================== Pallas kernels ==============================

def _linear_kernel(x_ref, w_ref, b_ref, o_ref, *, relu):
    acc = jnp.dot(x_ref[...].astype(jnp.bfloat16), w_ref[...],
                  preferred_element_type=jnp.float32)
    acc = acc + b_ref[...]
    if relu:
        acc = jnp.maximum(acc, 0.0)
    o_ref[...] = acc


def linear(x, w, b, *, relu=False):
    """y = x @ w + b (optionally ReLU). x:(R,K) f32, w:(K,N) bf16, b:(N,) f32."""
    R, K = x.shape
    N = w.shape[1]
    Np = _round_up(N, 128)
    if Np != N:  # pad lanes so every output block is 128-multiple wide
        w = jnp.pad(w, ((0, 0), (0, Np - N)))
        b = jnp.pad(b, (0, Np - N))
    tn = 512 if Np % 512 == 0 else (256 if Np % 256 == 0 else 128)
    tm = _row_tile(R)
    out = pl.pallas_call(
        functools.partial(_linear_kernel, relu=relu),
        out_shape=jax.ShapeDtypeStruct((R, Np), jnp.float32),
        grid=(R // tm, Np // tn),
        in_specs=[
            pl.BlockSpec((tm, K), lambda i, j: (i, 0)),
            pl.BlockSpec((K, tn), lambda i, j: (0, j)),
            pl.BlockSpec((1, tn), lambda i, j: (0, j)),
        ],
        out_specs=pl.BlockSpec((tm, tn), lambda i, j: (i, j)),
        compiler_params=pltpu.CompilerParams(
            dimension_semantics=("parallel", "parallel")),
    )(x, w, b.reshape(1, Np))
    return out if Np == N else out[:, :N]


def _linear_add_ln_kernel(x_ref, w_ref, b_ref, r_ref, g_ref, bt_ref, o_ref):
    h = jnp.dot(x_ref[...].astype(jnp.bfloat16), w_ref[...],
                preferred_element_type=jnp.float32)
    h = h + b_ref[...] + r_ref[...]
    o_ref[...] = _ln(h, g_ref[...], bt_ref[...])


def linear_add_layernorm(x, w, b, res, gamma, beta):
    """LayerNorm((x @ w + b) + res) over the last dim."""
    R, K = x.shape
    E = w.shape[1]
    tm = _row_tile(R)
    return pl.pallas_call(
        _linear_add_ln_kernel,
        out_shape=jax.ShapeDtypeStruct((R, E), jnp.float32),
        grid=(R // tm,),
        in_specs=[
            pl.BlockSpec((tm, K), lambda i: (i, 0)),
            pl.BlockSpec((K, E), lambda i: (0, 0)),
            pl.BlockSpec((1, E), lambda i: (0, 0)),
            pl.BlockSpec((tm, E), lambda i: (i, 0)),
            pl.BlockSpec((1, E), lambda i: (0, 0)),
            pl.BlockSpec((1, E), lambda i: (0, 0)),
        ],
        out_specs=pl.BlockSpec((tm, E), lambda i: (i, 0)),
        compiler_params=pltpu.CompilerParams(dimension_semantics=("parallel",)),
    )(x, w, b.reshape(1, E), res, gamma.reshape(1, E), beta.reshape(1, E))


def _ffn_ln_kernel(x_ref, w1_ref, b1_ref, w2_ref, b2_ref, g_ref, bt_ref, o_ref):
    x = x_ref[...]
    h = jnp.dot(x.astype(jnp.bfloat16), w1_ref[...],
                preferred_element_type=jnp.float32) + b1_ref[...]
    h = jnp.maximum(h, 0.0)
    y = jnp.dot(h.astype(jnp.bfloat16), w2_ref[...],
                preferred_element_type=jnp.float32) + b2_ref[...] + x
    o_ref[...] = _ln(y, g_ref[...], bt_ref[...])


def ffn_layernorm(x, w1, b1, w2, b2, gamma, beta):
    """LayerNorm(x + relu(x@w1+b1)@w2 + b2); the 2048-wide activation stays in VMEM."""
    R, E = x.shape
    F = w1.shape[1]
    tm = _row_tile(R)
    return pl.pallas_call(
        _ffn_ln_kernel,
        out_shape=jax.ShapeDtypeStruct((R, E), jnp.float32),
        grid=(R // tm,),
        in_specs=[
            pl.BlockSpec((tm, E), lambda i: (i, 0)),
            pl.BlockSpec((E, F), lambda i: (0, 0)),
            pl.BlockSpec((1, F), lambda i: (0, 0)),
            pl.BlockSpec((F, E), lambda i: (0, 0)),
            pl.BlockSpec((1, E), lambda i: (0, 0)),
            pl.BlockSpec((1, E), lambda i: (0, 0)),
            pl.BlockSpec((1, E), lambda i: (0, 0)),
        ],
        out_specs=pl.BlockSpec((tm, E), lambda i: (i, 0)),
        compiler_params=pltpu.CompilerParams(dimension_semantics=("parallel",)),
    )(x, w1, b1.reshape(1, F), w2, b2.reshape(1, E),
      gamma.reshape(1, E), beta.reshape(1, E))


def _ln_kernel(x_ref, g_ref, b_ref, o_ref):
    o_ref[...] = _ln(x_ref[...], g_ref[...], b_ref[...])


def layernorm(x, gamma, beta):
    R, E = x.shape
    tm = _row_tile(R)
    return pl.pallas_call(
        _ln_kernel,
        out_shape=jax.ShapeDtypeStruct((R, E), jnp.float32),
        grid=(R // tm,),
        in_specs=[
            pl.BlockSpec((tm, E), lambda i: (i, 0)),
            pl.BlockSpec((1, E), lambda i: (0, 0)),
            pl.BlockSpec((1, E), lambda i: (0, 0)),
        ],
        out_specs=pl.BlockSpec((tm, E), lambda i: (i, 0)),
        compiler_params=pltpu.CompilerParams(dimension_semantics=("parallel",)),
    )(x, gamma.reshape(1, E), beta.reshape(1, E))


def _attention_kernel(q_ref, k_ref, v_ref, m_ref, o_ref, *, causal, scale):
    q = (q_ref[0] * scale).astype(jnp.bfloat16)   # (H, Sq, D) — pre-scaled q
    k = k_ref[0].astype(jnp.bfloat16)             # (H, Sk, D)
    v = v_ref[0].astype(jnp.bfloat16)             # (H, Sk, D)
    # scores: batched over heads, f32 accumulation
    s = jax.lax.dot_general(q, k, (((2,), (2,)), ((0,), (0,))),
                            preferred_element_type=jnp.float32)   # (H, Sq, Sk)
    s = s + m_ref[...]                                            # (1,1,Sk) key-pad mask
    if causal:
        _, Sq, Sk = s.shape
        qi = jax.lax.broadcasted_iota(jnp.int32, (Sq, Sk), 0)
        ki = jax.lax.broadcasted_iota(jnp.int32, (Sq, Sk), 1)
        s = jnp.where((ki > qi)[None, :, :], NEG, s)
    s = s - jnp.max(s, axis=-1, keepdims=True)
    p = jnp.exp(s)
    p = p * pl.reciprocal(jnp.sum(p, axis=-1, keepdims=True), approx=True)
    o = jax.lax.dot_general(p.astype(jnp.bfloat16), v,
                            (((2,), (1,)), ((0,), (0,))),
                            preferred_element_type=jnp.float32)   # (H, Sq, D)
    # merge heads lane-dense: (Sq, H*D) single unmasked store
    o_ref[0] = jnp.concatenate([o[h] for h in range(o.shape[0])], axis=-1)


def attention(q, k, v, key_mask, *, causal):
    """q,k,v: (N,H,S,D) f32; key_mask: (N,1,Sk) additive f32 -> (N,Sq,H*D)."""
    N, H, Sq, D = q.shape
    Sk = k.shape[2]
    scale = 1.0 / math.sqrt(D)
    return pl.pallas_call(
        functools.partial(_attention_kernel, causal=causal, scale=scale),
        out_shape=jax.ShapeDtypeStruct((N, Sq, H * D), jnp.float32),
        grid=(N,),
        in_specs=[
            pl.BlockSpec((1, H, Sq, D), lambda i: (i, 0, 0, 0)),
            pl.BlockSpec((1, H, Sk, D), lambda i: (i, 0, 0, 0)),
            pl.BlockSpec((1, H, Sk, D), lambda i: (i, 0, 0, 0)),
            pl.BlockSpec((1, 1, Sk), lambda i: (i, 0, 0)),
        ],
        out_specs=pl.BlockSpec((1, Sq, H * D), lambda i: (i, 0, 0)),
        compiler_params=pltpu.CompilerParams(dimension_semantics=("parallel",)),
    )(q, k, v, key_mask)


# ============================ transformer glue ============================

def self_attention_block(x, p, key_mask, *, causal):
    """x:(S,N,E) -> (S*N,E) pre-out-proj multi-head attention output."""
    S, N, E = x.shape
    H, D = NHEAD, HEAD_DIM
    qkv = linear(x.reshape(S * N, E), p["w_qkv"], p["b_qkv"])        # (S*N, 3E)
    qkv = qkv.reshape(S, N, 3, H, D).transpose(2, 1, 3, 0, 4)        # (3,N,H,S,D)
    o = attention(qkv[0], qkv[1], qkv[2], key_mask, causal=causal)   # (N,S,E)
    return o.transpose(1, 0, 2).reshape(S * N, E)


def cross_attention_block(y, memory, p, key_mask):
    """y:(St,N,E) queries, memory:(Ss,N,E) keys/values -> (St*N,E)."""
    St, N, E = y.shape
    Ss = memory.shape[0]
    H, D = NHEAD, HEAD_DIM
    q = linear(y.reshape(St * N, E), p["w_q"], p["b_q"])             # (St*N, E)
    kv = linear(memory.reshape(Ss * N, E), p["w_kv"], p["b_kv"])     # (Ss*N, 2E)
    q = q.reshape(St, N, H, D).transpose(1, 2, 0, 3)                 # (N,H,St,D)
    kv = kv.reshape(Ss, N, 2, H, D).transpose(2, 1, 3, 0, 4)         # (2,N,H,Ss,D)
    o = attention(q, kv[0], kv[1], key_mask, causal=False)           # (N,St,E)
    return o.transpose(1, 0, 2).reshape(St * N, E)


def encoder_layer(x, p, src_key_mask):
    S, N, E = x.shape
    x_flat = x.reshape(S * N, E)
    sa = self_attention_block(x, p["self_attn"], src_key_mask, causal=False)
    x1 = linear_add_layernorm(sa, p["self_attn"]["w_o"], p["self_attn"]["b_o"],
                              x_flat, p["ln1_g"], p["ln1_b"])
    x2 = ffn_layernorm(x1, p["ff_w1"], p["ff_b1"], p["ff_w2"], p["ff_b2"],
                       p["ln2_g"], p["ln2_b"])
    return x2.reshape(S, N, E)


def decoder_layer(y, memory, p, tgt_key_mask, mem_key_mask):
    S, N, E = y.shape
    y_flat = y.reshape(S * N, E)
    sa = self_attention_block(y, p["self_attn"], tgt_key_mask, causal=True)
    y1 = linear_add_layernorm(sa, p["self_attn"]["w_o"], p["self_attn"]["b_o"],
                              y_flat, p["ln1_g"], p["ln1_b"])
    ca = cross_attention_block(y1.reshape(S, N, E), memory,
                               p["cross_attn"], mem_key_mask)
    y2 = linear_add_layernorm(ca, p["cross_attn"]["w_o"], p["cross_attn"]["b_o"],
                              y1, p["ln2_g"], p["ln2_b"])
    y3 = ffn_layernorm(y2, p["ff_w1"], p["ff_b1"], p["ff_w2"], p["ff_b2"],
                       p["ln3_g"], p["ln3_b"])
    return y3.reshape(S, N, E)


def positional_encoding(seq_len, embed_size):
    position = jnp.arange(seq_len, dtype=jnp.float32)[:, None]
    div_term = jnp.exp(jnp.arange(0, embed_size, 2, dtype=jnp.float32)
                       * (-math.log(10000.0) / embed_size))
    pe = jnp.zeros((seq_len, embed_size), dtype=jnp.float32)
    pe = pe.at[:, 0::2].set(jnp.sin(position * div_term))
    pe = pe.at[:, 1::2].set(jnp.cos(position * div_term))
    return pe[:, None, :]                                            # (S, 1, E)


def mt_forward(params, src, trg, pad_idx):
    """src:(S_src,N) int32, trg:(S_tgt,N) int32 -> logits (S_tgt, N, vocab)."""
    Ss, N = src.shape
    St = trg.shape[0]
    E = D_MODEL

    emb = params["embedding"]
    src_e = jnp.take(emb, src, axis=0)                               # (Ss, N, E)
    trg_e = jnp.take(emb, trg, axis=0)                               # (St, N, E)

    # faithful to `x += pos_encoder(x)`  =>  2*emb + pe
    # TODO(synk): original PositionalEncoding slices pe on the batch axis
    # (pe[:, :x.size(1), :]) which would not broadcast in PyTorch; the intended
    # pe[:seq_len] semantics is used here.
    src_e = 2.0 * src_e + positional_encoding(Ss, E)
    trg_e = 2.0 * trg_e + positional_encoding(St, E)

    # compact additive key-padding masks (N, 1, Sk); causal mask is built
    # inside the attention kernel from iota (never materialized in HBM).
    src_key_mask = jnp.where((src == pad_idx).T[:, None, :], NEG, 0.0).astype(jnp.float32)
    tgt_key_mask = jnp.where((trg == pad_idx).T[:, None, :], NEG, 0.0).astype(jnp.float32)

    # ---- encoder (5 layers, post-LN) + final norm ----
    x = src_e
    for lp in params["encoder_layers"]:
        x = encoder_layer(x, lp, src_key_mask)
    memory = layernorm(x.reshape(-1, E),
                       params["enc_norm_g"], params["enc_norm_b"]).reshape(Ss, N, E)

    # ---- decoder (5 layers, post-LN) + final norm ----
    y = trg_e
    for lp in params["decoder_layers"]:
        y = decoder_layer(y, memory, lp, tgt_key_mask, src_key_mask)
    y2 = layernorm(y.reshape(-1, E), params["dec_norm_g"], params["dec_norm_b"])

    # ---- classifier ----
    logits = linear(y2, params["cls_w"], params["cls_b"])
    vocab = params["cls_w"].shape[1]
    return logits.reshape(St, N, vocab)


# ============================ deterministic params ============================

def init_params(key, vocab):
    keys = iter(jax.random.split(key, 256))
    E, F = D_MODEL, DIM_FF

    def nrm(shape, scale=0.02):
        # weights pre-cast to bf16 once (MXU-native operand dtype)
        return (scale * jax.random.normal(next(keys), shape)).astype(jnp.bfloat16)

    def zeros(n):
        return jnp.zeros((n,), jnp.float32)

    def ones(n):
        return jnp.ones((n,), jnp.float32)

    def self_attn():
        return {"w_qkv": nrm((E, 3 * E)), "b_qkv": zeros(3 * E),
                "w_o": nrm((E, E)), "b_o": zeros(E)}

    def cross_attn():
        return {"w_q": nrm((E, E)), "b_q": zeros(E),
                "w_kv": nrm((E, 2 * E)), "b_kv": zeros(2 * E),
                "w_o": nrm((E, E)), "b_o": zeros(E)}

    def enc_layer():
        return {"self_attn": self_attn(),
                "ln1_g": ones(E), "ln1_b": zeros(E),
                "ff_w1": nrm((E, F)), "ff_b1": zeros(F),
                "ff_w2": nrm((F, E)), "ff_b2": zeros(E),
                "ln2_g": ones(E), "ln2_b": zeros(E)}

    def dec_layer():
        d = enc_layer()
        d["cross_attn"] = cross_attn()
        d["ln3_g"] = ones(E)
        d["ln3_b"] = zeros(E)
        return d

    return {
        "embedding": (0.02 * jax.random.normal(next(keys), (vocab, E))).astype(jnp.float32),
        "encoder_layers": [enc_layer() for _ in range(NUM_ENC)],
        "decoder_layers": [dec_layer() for _ in range(NUM_DEC)],
        "enc_norm_g": ones(E), "enc_norm_b": zeros(E),
        "dec_norm_g": ones(E), "dec_norm_b": zeros(E),
        "cls_w": nrm((E, vocab)),
        "cls_b": zeros(vocab),
    }


# ==================================== main ====================================

if __name__ == "__main__":
    VOCAB = 512          # small stand-in for len(tokenizer)
    PAD_IDX = 1
    S_SRC, S_TGT, N_BATCH = 8, 8, 2

    root = jax.random.PRNGKey(0)
    k_params, k_src, k_trg = jax.random.split(root, 3)
    params = init_params(k_params, VOCAB)

    src = jax.random.randint(k_src, (S_SRC, N_BATCH), 2, VOCAB, dtype=jnp.int32)
    trg = jax.random.randint(k_trg, (S_TGT, N_BATCH), 2, VOCAB, dtype=jnp.int32)
    src = src.at[-1, :].set(PAD_IDX)   # trailing padding tokens
    trg = trg.at[-1, :].set(PAD_IDX)

    fwd = jax.jit(functools.partial(mt_forward, pad_idx=PAD_IDX))
    out = fwd(params, src, trg)
    jax.block_until_ready(out)

    assert out.shape == (S_TGT, N_BATCH, VOCAB), out.shape
    assert bool(jnp.all(jnp.isfinite(out)))
    print("KERNEL_OK")
</pallas_src>

<mosaic_0001>
module attributes {stable_mosaic.version = 11 : i64} {
  func.func @_linear_add_ln_kernel(%arg0: i32, %arg1: memref<16x512xf32, #tpu.memory_space<vmem>>, %arg2: memref<512x512xbf16, #tpu.memory_space<vmem>>, %arg3: memref<1x512xf32, #tpu.memory_space<vmem>>, %arg4: memref<16x512xf32, #tpu.memory_space<vmem>>, %arg5: memref<1x512xf32, #tpu.memory_space<vmem>>, %arg6: memref<1x512xf32, #tpu.memory_space<vmem>>, %arg7: memref<16x512xf32, #tpu.memory_space<vmem>>) attributes {dimension_semantics = [#tpu.dimension_semantics<parallel>], iteration_bounds = array<i64: 1>, scalar_prefetch = 0 : i64, scratch_operands = 0 : i64, tpu.core_type = #tpu.core_type<tc>, window_params = [{transform_indices = @transform_0, window_bounds = array<i64: 16, 512>}, {pipeline_mode = #tpu.pipeline_mode<synchronous>, transform_indices = @transform_1, window_bounds = array<i64: 512, 512>}, {pipeline_mode = #tpu.pipeline_mode<synchronous>, transform_indices = @transform_2, window_bounds = array<i64: 1, 512>}, {transform_indices = @transform_3, window_bounds = array<i64: 16, 512>}, {pipeline_mode = #tpu.pipeline_mode<synchronous>, transform_indices = @transform_4, window_bounds = array<i64: 1, 512>}, {pipeline_mode = #tpu.pipeline_mode<synchronous>, transform_indices = @transform_5, window_bounds = array<i64: 1, 512>}, {transform_indices = @transform_6, window_bounds = array<i64: 16, 512>}]} {
    %c0 = arith.constant 0 : index
    %c0_0 = arith.constant 0 : index
    %0 = vector.load %arg1[%c0, %c0_0] : memref<16x512xf32, #tpu.memory_space<vmem>>, vector<16x512xf32>
    %1 = arith.truncf %0 : vector<16x512xf32> to vector<16x512xbf16>
    %c0_1 = arith.constant 0 : index
    %c0_2 = arith.constant 0 : index
    %2 = vector.load %arg2[%c0_1, %c0_2] : memref<512x512xbf16, #tpu.memory_space<vmem>>, vector<512x512xbf16>
    %cst = arith.constant dense<0.000000e+00> : vector<16x512xf32>
    %3 = tpu.matmul %1, %2, %cst {dimension_numbers = #tpu.dot_dimension_numbers<[1], [0], [0], [1], [0, 0, 1, 1], [], []>} : vector<16x512xbf16>, vector<512x512xbf16>, vector<16x512xf32> -> vector<16x512xf32>
    %c0_3 = arith.constant 0 : index
    %c0_4 = arith.constant 0 : index
    %4 = vector.load %arg3[%c0_3, %c0_4] : memref<1x512xf32, #tpu.memory_space<vmem>>, vector<1x512xf32>
    %5 = vector.broadcast %4 : vector<1x512xf32> to vector<16x512xf32>
    %6 = arith.addf %3, %5 : vector<16x512xf32>
    %c0_5 = arith.constant 0 : index
    %c0_6 = arith.constant 0 : index
    %7 = vector.load %arg4[%c0_5, %c0_6] : memref<16x512xf32, #tpu.memory_space<vmem>>, vector<16x512xf32>
    %8 = arith.addf %6, %7 : vector<16x512xf32>
    %c0_7 = arith.constant 0 : index
    %c0_8 = arith.constant 0 : index
    %9 = vector.load %arg5[%c0_7, %c0_8] : memref<1x512xf32, #tpu.memory_space<vmem>>, vector<1x512xf32>
    %c0_9 = arith.constant 0 : index
    %c0_10 = arith.constant 0 : index
    %10 = vector.load %arg6[%c0_9, %c0_10] : memref<1x512xf32, #tpu.memory_space<vmem>>, vector<1x512xf32>
    %cst_11 = arith.constant dense<0.000000e+00> : vector<16xf32>
    %11 = vector.multi_reduction <add>, %8, %cst_11 [1] : vector<16x512xf32> to vector<16xf32>
    %12 = vector.shape_cast %11 : vector<16xf32> to vector<16x1xf32>
    %cst_12 = arith.constant 5.120000e+02 : f32
    %13 = vector.broadcast %cst_12 : f32 to vector<16x1xf32>
    %14 = arith.divf %12, %13 : vector<16x1xf32>
    %15 = vector.broadcast %14 : vector<16x1xf32> to vector<16x512xf32>
    %16 = arith.subf %8, %15 : vector<16x512xf32>
    %17 = arith.mulf %16, %16 : vector<16x512xf32>
    %cst_13 = arith.constant dense<0.000000e+00> : vector<16xf32>
    %18 = vector.multi_reduction <add>, %17, %cst_13 [1] : vector<16x512xf32> to vector<16xf32>
    %19 = vector.shape_cast %18 : vector<16xf32> to vector<16x1xf32>
    %cst_14 = arith.constant 5.120000e+02 : f32
    %20 = vector.broadcast %cst_14 : f32 to vector<16x1xf32>
    %21 = arith.divf %19, %20 : vector<16x1xf32>
    %cst_15 = arith.constant 9.99999974E-6 : f32
    %22 = vector.broadcast %cst_15 : f32 to vector<16x1xf32>
    %23 = arith.addf %21, %22 : vector<16x1xf32>
    %24 = math.rsqrt %23 : vector<16x1xf32>
    %25 = vector.broadcast %24 : vector<16x1xf32> to vector<16x512xf32>
    %26 = arith.mulf %16, %25 : vector<16x512xf32>
    %27 = vector.broadcast %9 : vector<1x512xf32> to vector<16x512xf32>
    %28 = arith.mulf %26, %27 : vector<16x512xf32>
    %29 = vector.broadcast %10 : vector<1x512xf32> to vector<16x512xf32>
    %30 = arith.addf %28, %29 : vector<16x512xf32>
    %c0_16 = arith.constant 0 : index
    %c0_17 = arith.constant 0 : index
    %31 = vector.load %arg7[%c0_16, %c0_17] : memref<16x512xf32, #tpu.memory_space<vmem>>, vector<16x512xf32>
    tpu.vector_store %arg7[%c0_16, %c0_17], %30 {strides = array<i32>} : memref<16x512xf32, #tpu.memory_space<vmem>>, vector<16x512xf32>,
    return
  }
  func.func @transform_0(%arg0: i32) -> (i32, i32) {
    %c0_i32 = arith.constant 0 : i32
    %c0_i32_0 = arith.constant 0 : i32
    return %arg0, %c0_i32 : i32, i32
  }
  func.func @transform_1(%arg0: i32) -> (i32, i32) {
    %c0_i32 = arith.constant 0 : i32
    %c0_i32_0 = arith.constant 0 : i32
    %c0_i32_1 = arith.constant 0 : i32
    return %c0_i32, %c0_i32_0 : i32, i32
  }
  func.func @transform_2(%arg0: i32) -> (i32, i32) {
    %c0_i32 = arith.constant 0 : i32
    %c0_i32_0 = arith.constant 0 : i32
    %c0_i32_1 = arith.constant 0 : i32
    return %c0_i32, %c0_i32_0 : i32, i32
  }
  func.func @transform_3(%arg0: i32) -> (i32, i32) {
    %c0_i32 = arith.constant 0 : i32
    %c0_i32_0 = arith.constant 0 : i32
    return %arg0, %c0_i32 : i32, i32
  }
  func.func @transform_4(%arg0: i32) -> (i32, i32) {
    %c0_i32 = arith.constant 0 : i32
    %c0_i32_0 = arith.constant 0 : i32
    %c0_i32_1 = arith.constant 0 : i32
    return %c0_i32, %c0_i32_0 : i32, i32
  }
  func.func @transform_5(%arg0: i32) -> (i32, i32) {
    %c0_i32 = arith.constant 0 : i32
    %c0_i32_0 = arith.constant 0 : i32
    %c0_i32_1 = arith.constant 0 : i32
    return %c0_i32, %c0_i32_0 : i32, i32
  }
  func.func @transform_6(%arg0: i32) -> (i32, i32) {
    %c0_i32 = arith.constant 0 : i32
    %c0_i32_0 = arith.constant 0 : i32
    return %arg0, %c0_i32 : i32, i32
  }
}

module attributes {stable_mosaic.version = 11 : i64} {
  func.func @_attention_kernel(%arg0: i32, %arg1: memref<1x8x8x64xf32, #tpu.memory_space<vmem>>, %arg2: memref<1x8x8x64xf32, #tpu.memory_space<vmem>>, %arg3: memref<1x8x8x64xf32, #tpu.memory_space<vmem>>, %arg4: memref<1x1x8xf32, #tpu.memory_space<vmem>>, %arg5: memref<1x8x512xf32, #tpu.memory_space<vmem>>) attributes {dimension_semantics = [#tpu.dimension_semantics<parallel>], iteration_bounds = array<i64: 2>, scalar_prefetch = 0 : i64, scratch_operands = 0 : i64, tpu.core_type = #tpu.core_type<tc>, window_params = [{transform_indices = @transform_0, window_bounds = array<i64: 1, 8, 8, 64>}, {transform_indices = @transform_1, window_bounds = array<i64: 1, 8, 8, 64>}, {transform_indices = @transform_2, window_bounds = array<i64: 1, 8, 8, 64>}, {transform_indices = @transform_3, window_bounds = array<i64: 1, 1, 8>}, {transform_indices = @transform_4, window_bounds = array<i64: 1, 8, 512>}]} {
    %c0 = arith.constant 0 : index
    %c0_0 = arith.constant 0 : index
    %c0_1 = arith.constant 0 : index
    %c0_2 = arith.constant 0 : index
    %0 = vector.load %arg1[%c0, %c0_0, %c0_1, %c0_2] : memref<1x8x8x64xf32, #tpu.memory_space<vmem>>, vector<1x8x8x64xf32>
    %1 = vector.shape_cast %0 : vector<1x8x8x64xf32> to vector<8x8x64xf32>
    %cst = arith.constant 1.250000e-01 : f32
    %2 = vector.broadcast %cst : f32 to vector<8x8x64xf32>
    %3 = arith.mulf %1, %2 : vector<8x8x64xf32>
    %4 = arith.truncf %3 : vector<8x8x64xf32> to vector<8x8x64xbf16>
    %c0_3 = arith.constant 0 : index
    %c0_4 = arith.constant 0 : index
    %c0_5 = arith.constant 0 : index
    %c0_6 = arith.constant 0 : index
    %5 = vector.load %arg2[%c0_3, %c0_4, %c0_5, %c0_6] : memref<1x8x8x64xf32, #tpu.memory_space<vmem>>, vector<1x8x8x64xf32>
    %6 = vector.shape_cast %5 : vector<1x8x8x64xf32> to vector<8x8x64xf32>
    %7 = arith.truncf %6 : vector<8x8x64xf32> to vector<8x8x64xbf16>
    %c0_7 = arith.constant 0 : index
    %c0_8 = arith.constant 0 : index
    %c0_9 = arith.constant 0 : index
    %c0_10 = arith.constant 0 : index
    %8 = vector.load %arg3[%c0_7, %c0_8, %c0_9, %c0_10] : memref<1x8x8x64xf32, #tpu.memory_space<vmem>>, vector<1x8x8x64xf32>
    %9 = vector.shape_cast %8 : vector<1x8x8x64xf32> to vector<8x8x64xf32>
    %10 = arith.truncf %9 : vector<8x8x64xf32> to vector<8x8x64xbf16>
    %cst_11 = arith.constant dense<0.000000e+00> : vector<8x8x8xf32>
    %11 = tpu.matmul %4, %7, %cst_11 {dimension_numbers = #tpu.dot_dimension_numbers<[2], [2], [1], [1], [0, 0, 0, 1, 1, 1], [0], [0]>} : vector<8x8x64xbf16>, vector<8x8x64xbf16>, vector<8x8x8xf32> -> vector<8x8x8xf32>
    %c0_12 = arith.constant 0 : index
    %c0_13 = arith.constant 0 : index
    %c0_14 = arith.constant 0 : index
    %12 = vector.load %arg4[%c0_12, %c0_13, %c0_14] : memref<1x1x8xf32, #tpu.memory_space<vmem>>, vector<1x1x8xf32>
    %13 = vector.broadcast %12 : vector<1x1x8xf32> to vector<8x8x8xf32>
    %14 = arith.addf %11, %13 : vector<8x8x8xf32>
    %15 = tpu.iota {dimensions = array<i32: 0>} : vector<8x8xi32>
    %16 = tpu.iota {dimensions = array<i32: 1>} : vector<8x8xi32>
    %17 = arith.cmpi sgt, %16, %15 : vector<8x8xi32>
    %18 = vector.shape_cast %17 : vector<8x8xi1> to vector<1x8x8xi1>
    %cst_15 = arith.constant -1.000000e+30 : f32
    %19 = vector.shape_cast %18 : vector<1x8x8xi1> to vector<1x8x8xi1>
    %20 = vector.broadcast %19 : vector<1x8x8xi1> to vector<8x8x8xi1>
    %21 = vector.broadcast %cst_15 : f32 to vector<8x8x8xf32>
    %22 = arith.select %20, %21, %14 : vector<8x8x8xi1>, vector<8x8x8xf32>
    %cst_16 = arith.constant dense<0xFF800000> : vector<8x8xf32>
    %23 = vector.multi_reduction <maximumf>, %22, %cst_16 [2] : vector<8x8x8xf32> to vector<8x8xf32>
    %24 = vector.shape_cast %23 : vector<8x8xf32> to vector<8x8x1xf32>
    %25 = vector.broadcast %24 : vector<8x8x1xf32> to vector<8x8x8xf32>
    %26 = arith.subf %22, %25 : vector<8x8x8xf32>
    %27 = math.exp %26 : vector<8x8x8xf32>
    %cst_17 = arith.constant dense<0.000000e+00> : vector<8x8xf32>
    %28 = vector.multi_reduction <add>, %27, %cst_17 [2] : vector<8x8x8xf32> to vector<8x8xf32>
    %29 = vector.shape_cast %28 : vector<8x8xf32> to vector<8x8x1xf32>
    %30 = tpu.reciprocal %29 {approx = true} : vector<8x8x1xf32> -> vector<8x8x1xf32>
    %31 = vector.broadcast %30 : vector<8x8x1xf32> to vector<8x8x8xf32>
    %32 = arith.mulf %27, %31 : vector<8x8x8xf32>
    %33 = arith.truncf %32 : vector<8x8x8xf32> to vector<8x8x8xbf16>
    %cst_18 = arith.constant dense<0.000000e+00> : vector<8x8x64xf32>
    %34 = tpu.matmul %33, %10, %cst_18 {dimension_numbers = #tpu.dot_dimension_numbers<[2], [1], [1], [2], [0, 0, 0, 1, 1, 2], [0], [0]>} : vector<8x8x8xbf16>, vector<8x8x64xbf16>, vector<8x8x64xf32> -> vector<8x8x64xf32>
    %35 = vector.extract_strided_slice %34 {offsets = [0, 0, 0], sizes = [1, 8, 64], strides = [1, 1, 1]} : vector<8x8x64xf32> to vector<1x8x64xf32>
    %36 = vector.shape_cast %35 : vector<1x8x64xf32> to vector<8x64xf32>
    %37 = vector.extract_strided_slice %34 {offsets = [1, 0, 0], sizes = [1, 8, 64], strides = [1, 1, 1]} : vector<8x8x64xf32> to vector<1x8x64xf32>
    %38 = vector.shape_cast %37 : vector<1x8x64xf32> to vector<8x64xf32>
    %39 = vector.extract_strided_slice %34 {offsets = [2, 0, 0], sizes = [1, 8, 64], strides = [1, 1, 1]} : vector<8x8x64xf32> to vector<1x8x64xf32>
    %40 = vector.shape_cast %39 : vector<1x8x64xf32> to vector<8x64xf32>
    %41 = vector.extract_strided_slice %34 {offsets = [3, 0, 0], sizes = [1, 8, 64], strides = [1, 1, 1]} : vector<8x8x64xf32> to vector<1x8x64xf32>
    %42 = vector.shape_cast %41 : vector<1x8x64xf32> to vector<8x64xf32>
    %43 = vector.extract_strided_slice %34 {offsets = [4, 0, 0], sizes = [1, 8, 64], strides = [1, 1, 1]} : vector<8x8x64xf32> to vector<1x8x64xf32>
    %44 = vector.shape_cast %43 : vector<1x8x64xf32> to vector<8x64xf32>
    %45 = vector.extract_strided_slice %34 {offsets = [5, 0, 0], sizes = [1, 8, 64], strides = [1, 1, 1]} : vector<8x8x64xf32> to vector<1x8x64xf32>
    %46 = vector.shape_cast %45 : vector<1x8x64xf32> to vector<8x64xf32>
    %47 = vector.extract_strided_slice %34 {offsets = [6, 0, 0], sizes = [1, 8, 64], strides = [1, 1, 1]} : vector<8x8x64xf32> to vector<1x8x64xf32>
    %48 = vector.shape_cast %47 : vector<1x8x64xf32> to vector<8x64xf32>
    %49 = vector.extract_strided_slice %34 {offsets = [7, 0, 0], sizes = [1, 8, 64], strides = [1, 1, 1]} : vector<8x8x64xf32> to vector<1x8x64xf32>
    %50 = vector.shape_cast %49 : vector<1x8x64xf32> to vector<8x64xf32>
    %51 = tpu.concatenate %36, %38, %40, %42, %44, %46, %48, %50 in 1 : vector<8x64xf32>, vector<8x64xf32>, vector<8x64xf32>, vector<8x64xf32>, vector<8x64xf32>, vector<8x64xf32>, vector<8x64xf32>, vector<8x64xf32> -> vector<8x512xf32>
    %c0_19 = arith.constant 0 : index
    %c0_20 = arith.constant 0 : index
    %c0_21 = arith.constant 0 : index
    %52 = vector.load %arg5[%c0_19, %c0_20, %c0_21] : memref<1x8x512xf32, #tpu.memory_space<vmem>>, vector<1x8x512xf32>
    %53 = vector.shape_cast %52 : vector<1x8x512xf32> to vector<8x512xf32>
    %54 = vector.shape_cast %51 : vector<8x512xf32> to vector<1x8x512xf32>
    tpu.vector_store %arg5[%c0_19, %c0_20, %c0_21], %54 {strides = array<i32>} : memref<1x8x512xf32, #tpu.memory_space<vmem>>, vector<1x8x512xf32>,
    return
  }
  func.func @transform_0(%arg0: i32) -> (i32, i32, i32, i32) {
    %c0_i32 = arith.constant 0 : i32
    %c0_i32_0 = arith.constant 0 : i32
    %c0_i32_1 = arith.constant 0 : i32
    %c0_i32_2 = arith.constant 0 : i32
    return %arg0, %c0_i32, %c0_i32_0, %c0_i32_1 : i32, i32, i32, i32
  }
  func.func @transform_1(%arg0: i32) -> (i32, i32, i32, i32) {
    %c0_i32 = arith.constant 0 : i32
    %c0_i32_0 = arith.constant 0 : i32
    %c0_i32_1 = arith.constant 0 : i32
    %c0_i32_2 = arith.constant 0 : i32
    return %arg0, %c0_i32, %c0_i32_0, %c0_i32_1 : i32, i32, i32, i32
  }
  func.func @transform_2(%arg0: i32) -> (i32, i32, i32, i32) {
    %c0_i32 = arith.constant 0 : i32
    %c0_i32_0 = arith.constant 0 : i32
    %c0_i32_1 = arith.constant 0 : i32
    %c0_i32_2 = arith.constant 0 : i32
    return %arg0, %c0_i32, %c0_i32_0, %c0_i32_1 : i32, i32, i32, i32
  }
  func.func @transform_3(%arg0: i32) -> (i32, i32, i32) {
    %c0_i32 = arith.constant 0 : i32
    %c0_i32_0 = arith.constant 0 : i32
    %c0_i32_1 = arith.constant 0 : i32
    return %arg0, %c0_i32, %c0_i32_0 : i32, i32, i32
  }
  func.func @transform_4(%arg0: i32) -> (i32, i32, i32) {
    %c0_i32 = arith.constant 0 : i32
    %c0_i32_0 = arith.constant 0 : i32
    %c0_i32_1 = arith.constant 0 : i32
    return %arg0, %c0_i32, %c0_i32_0 : i32, i32, i32
  }
}

module attributes {stable_mosaic.version = 11 : i64} {
  func.func @_linear_kernel(%arg0: i32, %arg1: i32, %arg2: memref<16x512xf32, #tpu.memory_space<vmem>>, %arg3: memref<512x512xbf16, #tpu.memory_space<vmem>>, %arg4: memref<1x512xf32, #tpu.memory_space<vmem>>, %arg5: memref<16x512xf32, #tpu.memory_space<vmem>>) attributes {dimension_semantics = [#tpu.dimension_semantics<parallel>, #tpu.dimension_semantics<parallel>], iteration_bounds = array<i64: 1, 3>, scalar_prefetch = 0 : i64, scratch_operands = 0 : i64, tpu.core_type = #tpu.core_type<tc>, window_params = [{transform_indices = @transform_0, window_bounds = array<i64: 16, 512>}, {transform_indices = @transform_1, window_bounds = array<i64: 512, 512>}, {transform_indices = @transform_2, window_bounds = array<i64: 1, 512>}, {transform_indices = @transform_3, window_bounds = array<i64: 16, 512>}]} {
    %c0 = arith.constant 0 : index
    %c0_0 = arith.constant 0 : index
    %0 = vector.load %arg2[%c0, %c0_0] : memref<16x512xf32, #tpu.memory_space<vmem>>, vector<16x512xf32>
    %1 = arith.truncf %0 : vector<16x512xf32> to vector<16x512xbf16>
    %c0_1 = arith.constant 0 : index
    %c0_2 = arith.constant 0 : index
    %2 = vector.load %arg3[%c0_1, %c0_2] : memref<512x512xbf16, #tpu.memory_space<vmem>>, vector<512x512xbf16>
    %cst = arith.constant dense<0.000000e+00> : vector<16x512xf32>
    %3 = tpu.matmul %1, %2, %cst {dimension_numbers = #tpu.dot_dimension_numbers<[1], [0], [0], [1], [0, 0, 1, 1], [], []>} : vector<16x512xbf16>, vector<512x512xbf16>, vector<16x512xf32> -> vector<16x512xf32>
    %c0_3 = arith.constant 0 : index
    %c0_4 = arith.constant 0 : index
    %4 = vector.load %arg4[%c0_3, %c0_4] : memref<1x512xf32, #tpu.memory_space<vmem>>, vector<1x512xf32>
    %5 = vector.broadcast %4 : vector<1x512xf32> to vector<16x512xf32>
    %6 = arith.addf %3, %5 : vector<16x512xf32>
    %c0_5 = arith.constant 0 : index
    %c0_6 = arith.constant 0 : index
    %7 = vector.load %arg5[%c0_5, %c0_6] : memref<16x512xf32, #tpu.memory_space<vmem>>, vector<16x512xf32>
    tpu.vector_store %arg5[%c0_5, %c0_6], %6 {strides = array<i32>} : memref<16x512xf32, #tpu.memory_space<vmem>>, vector<16x512xf32>,
    return
  }
  func.func @transform_0(%arg0: i32, %arg1: i32) -> (i32, i32) {
    %c0_i32 = arith.constant 0 : i32
    %c0_i32_0 = arith.constant 0 : i32
    return %arg0, %c0_i32 : i32, i32
  }
  func.func @transform_1(%arg0: i32, %arg1: i32) -> (i32, i32) {
    %c0_i32 = arith.constant 0 : i32
    %c0_i32_0 = arith.constant 0 : i32
    return %c0_i32, %arg1 : i32, i32
  }
  func.func @transform_2(%arg0: i32, %arg1: i32) -> (i32, i32) {
    %c0_i32 = arith.constant 0 : i32
    %c0_i32_0 = arith.constant 0 : i32
    return %c0_i32, %arg1 : i32, i32
  }
  func.func @transform_3(%arg0: i32, %arg1: i32) -> (i32, i32) {
    %c0_i32 = arith.constant 0 : i32
    return %arg0, %arg1 : i32, i32
  }
}

module attributes {stable_mosaic.version = 11 : i64} {
  func.func @_linear_kernel(%arg0: i32, %arg1: i32, %arg2: memref<16x512xf32, #tpu.memory_space<vmem>>, %arg3: memref<512x512xbf16, #tpu.memory_space<vmem>>, %arg4: memref<1x512xf32, #tpu.memory_space<vmem>>, %arg5: memref<16x512xf32, #tpu.memory_space<vmem>>) attributes {dimension_semantics = [#tpu.dimension_semantics<parallel>, #tpu.dimension_semantics<parallel>], iteration_bounds = array<i64: 1, 1>, scalar_prefetch = 0 : i64, scratch_operands = 0 : i64, tpu.core_type = #tpu.core_type<tc>, window_params = [{transform_indices = @transform_0, window_bounds = array<i64: 16, 512>}, {transform_indices = @transform_1, window_bounds = array<i64: 512, 512>}, {transform_indices = @transform_2, window_bounds = array<i64: 1, 512>}, {transform_indices = @transform_3, window_bounds = array<i64: 16, 512>}]} {
    %c0 = arith.constant 0 : index
    %c0_0 = arith.constant 0 : index
    %0 = vector.load %arg2[%c0, %c0_0] : memref<16x512xf32, #tpu.memory_space<vmem>>, vector<16x512xf32>
    %1 = arith.truncf %0 : vector<16x512xf32> to vector<16x512xbf16>
    %c0_1 = arith.constant 0 : index
    %c0_2 = arith.constant 0 : index
    %2 = vector.load %arg3[%c0_1, %c0_2] : memref<512x512xbf16, #tpu.memory_space<vmem>>, vector<512x512xbf16>
    %cst = arith.constant dense<0.000000e+00> : vector<16x512xf32>
    %3 = tpu.matmul %1, %2, %cst {dimension_numbers = #tpu.dot_dimension_numbers<[1], [0], [0], [1], [0, 0, 1, 1], [], []>} : vector<16x512xbf16>, vector<512x512xbf16>, vector<16x512xf32> -> vector<16x512xf32>
    %c0_3 = arith.constant 0 : index
    %c0_4 = arith.constant 0 : index
    %4 = vector.load %arg4[%c0_3, %c0_4] : memref<1x512xf32, #tpu.memory_space<vmem>>, vector<1x512xf32>
    %5 = vector.broadcast %4 : vector<1x512xf32> to vector<16x512xf32>
    %6 = arith.addf %3, %5 : vector<16x512xf32>
    %c0_5 = arith.constant 0 : index
    %c0_6 = arith.constant 0 : index
    %7 = vector.load %arg5[%c0_5, %c0_6] : memref<16x512xf32, #tpu.memory_space<vmem>>, vector<16x512xf32>
    tpu.vector_store %arg5[%c0_5, %c0_6], %6 {strides = array<i32>} : memref<16x512xf32, #tpu.memory_space<vmem>>, vector<16x512xf32>,
    return
  }
  func.func @transform_0(%arg0: i32, %arg1: i32) -> (i32, i32) {
    %c0_i32 = arith.constant 0 : i32
    %c0_i32_0 = arith.constant 0 : i32
    return %arg0, %c0_i32 : i32, i32
  }
  func.func @transform_1(%arg0: i32, %arg1: i32) -> (i32, i32) {
    %c0_i32 = arith.constant 0 : i32
    %c0_i32_0 = arith.constant 0 : i32
    return %c0_i32, %arg1 : i32, i32
  }
  func.func @transform_2(%arg0: i32, %arg1: i32) -> (i32, i32) {
    %c0_i32 = arith.constant 0 : i32
    %c0_i32_0 = arith.constant 0 : i32
    return %c0_i32, %arg1 : i32, i32
  }
  func.func @transform_3(%arg0: i32, %arg1: i32) -> (i32, i32) {
    %c0_i32 = arith.constant 0 : i32
    return %arg0, %arg1 : i32, i32
  }
}

module attributes {stable_mosaic.version = 11 : i64} {
  func.func @_ln_kernel(%arg0: i32, %arg1: memref<16x512xf32, #tpu.memory_space<vmem>>, %arg2: memref<1x512xf32, #tpu.memory_space<vmem>>, %arg3: memref<1x512xf32, #tpu.memory_space<vmem>>, %arg4: memref<16x512xf32, #tpu.memory_space<vmem>>) attributes {dimension_semantics = [#tpu.dimension_semantics<parallel>], iteration_bounds = array<i64: 1>, scalar_prefetch = 0 : i64, scratch_operands = 0 : i64, tpu.core_type = #tpu.core_type<tc>, window_params = [{transform_indices = @transform_0, window_bounds = array<i64: 16, 512>}, {pipeline_mode = #tpu.pipeline_mode<synchronous>, transform_indices = @transform_1, window_bounds = array<i64: 1, 512>}, {pipeline_mode = #tpu.pipeline_mode<synchronous>, transform_indices = @transform_2, window_bounds = array<i64: 1, 512>}, {transform_indices = @transform_3, window_bounds = array<i64: 16, 512>}]} {
    %c0 = arith.constant 0 : index
    %c0_0 = arith.constant 0 : index
    %0 = vector.load %arg1[%c0, %c0_0] : memref<16x512xf32, #tpu.memory_space<vmem>>, vector<16x512xf32>
    %c0_1 = arith.constant 0 : index
    %c0_2 = arith.constant 0 : index
    %1 = vector.load %arg2[%c0_1, %c0_2] : memref<1x512xf32, #tpu.memory_space<vmem>>, vector<1x512xf32>
    %c0_3 = arith.constant 0 : index
    %c0_4 = arith.constant 0 : index
    %2 = vector.load %arg3[%c0_3, %c0_4] : memref<1x512xf32, #tpu.memory_space<vmem>>, vector<1x512xf32>
    %cst = arith.constant dense<0.000000e+00> : vector<16xf32>
    %3 = vector.multi_reduction <add>, %0, %cst [1] : vector<16x512xf32> to vector<16xf32>
    %4 = vector.shape_cast %3 : vector<16xf32> to vector<16x1xf32>
    %cst_5 = arith.constant 5.120000e+02 : f32
    %5 = vector.broadcast %cst_5 : f32 to vector<16x1xf32>
    %6 = arith.divf %4, %5 : vector<16x1xf32>
    %7 = vector.broadcast %6 : vector<16x1xf32> to vector<16x512xf32>
    %8 = arith.subf %0, %7 : vector<16x512xf32>
    %9 = arith.mulf %8, %8 : vector<16x512xf32>
    %cst_6 = arith.constant dense<0.000000e+00> : vector<16xf32>
    %10 = vector.multi_reduction <add>, %9, %cst_6 [1] : vector<16x512xf32> to vector<16xf32>
    %11 = vector.shape_cast %10 : vector<16xf32> to vector<16x1xf32>
    %cst_7 = arith.constant 5.120000e+02 : f32
    %12 = vector.broadcast %cst_7 : f32 to vector<16x1xf32>
    %13 = arith.divf %11, %12 : vector<16x1xf32>
    %cst_8 = arith.constant 9.99999974E-6 : f32
    %14 = vector.broadcast %cst_8 : f32 to vector<16x1xf32>
    %15 = arith.addf %13, %14 : vector<16x1xf32>
    %16 = math.rsqrt %15 : vector<16x1xf32>
    %17 = vector.broadcast %16 : vector<16x1xf32> to vector<16x512xf32>
    %18 = arith.mulf %8, %17 : vector<16x512xf32>
    %19 = vector.broadcast %1 : vector<1x512xf32> to vector<16x512xf32>
    %20 = arith.mulf %18, %19 : vector<16x512xf32>
    %21 = vector.broadcast %2 : vector<1x512xf32> to vector<16x512xf32>
    %22 = arith.addf %20, %21 : vector<16x512xf32>
    %c0_9 = arith.constant 0 : index
    %c0_10 = arith.constant 0 : index
    %23 = vector.load %arg4[%c0_9, %c0_10] : memref<16x512xf32, #tpu.memory_space<vmem>>, vector<16x512xf32>
    tpu.vector_store %arg4[%c0_9, %c0_10], %22 {strides = array<i32>} : memref<16x512xf32, #tpu.memory_space<vmem>>, vector<16x512xf32>,
    return
  }
  func.func @transform_0(%arg0: i32) -> (i32, i32) {
    %c0_i32 = arith.constant 0 : i32
    %c0_i32_0 = arith.constant 0 : i32
    return %arg0, %c0_i32 : i32, i32
  }
  func.func @transform_1(%arg0: i32) -> (i32, i32) {
    %c0_i32 = arith.constant 0 : i32
    %c0_i32_0 = arith.constant 0 : i32
    %c0_i32_1 = arith.constant 0 : i32
    return %c0_i32, %c0_i32_0 : i32, i32
  }
  func.func @transform_2(%arg0: i32) -> (i32, i32) {
    %c0_i32 = arith.constant 0 : i32
    %c0_i32_0 = arith.constant 0 : i32
    %c0_i32_1 = arith.constant 0 : i32
    return %c0_i32, %c0_i32_0 : i32, i32
  }
  func.func @transform_3(%arg0: i32) -> (i32, i32) {
    %c0_i32 = arith.constant 0 : i32
    %c0_i32_0 = arith.constant 0 : i32
    return %arg0, %c0_i32 : i32, i32
  }
}

module attributes {stable_mosaic.version = 11 : i64} {
  func.func @_attention_kernel(%arg0: i32, %arg1: memref<1x8x8x64xf32, #tpu.memory_space<vmem>>, %arg2: memref<1x8x8x64xf32, #tpu.memory_space<vmem>>, %arg3: memref<1x8x8x64xf32, #tpu.memory_space<vmem>>, %arg4: memref<1x1x8xf32, #tpu.memory_space<vmem>>, %arg5: memref<1x8x512xf32, #tpu.memory_space<vmem>>) attributes {dimension_semantics = [#tpu.dimension_semantics<parallel>], iteration_bounds = array<i64: 2>, scalar_prefetch = 0 : i64, scratch_operands = 0 : i64, tpu.core_type = #tpu.core_type<tc>, window_params = [{transform_indices = @transform_0, window_bounds = array<i64: 1, 8, 8, 64>}, {transform_indices = @transform_1, window_bounds = array<i64: 1, 8, 8, 64>}, {transform_indices = @transform_2, window_bounds = array<i64: 1, 8, 8, 64>}, {transform_indices = @transform_3, window_bounds = array<i64: 1, 1, 8>}, {transform_indices = @transform_4, window_bounds = array<i64: 1, 8, 512>}]} {
    %c0 = arith.constant 0 : index
    %c0_0 = arith.constant 0 : index
    %c0_1 = arith.constant 0 : index
    %c0_2 = arith.constant 0 : index
    %0 = vector.load %arg1[%c0, %c0_0, %c0_1, %c0_2] : memref<1x8x8x64xf32, #tpu.memory_space<vmem>>, vector<1x8x8x64xf32>
    %1 = vector.shape_cast %0 : vector<1x8x8x64xf32> to vector<8x8x64xf32>
    %cst = arith.constant 1.250000e-01 : f32
    %2 = vector.broadcast %cst : f32 to vector<8x8x64xf32>
    %3 = arith.mulf %1, %2 : vector<8x8x64xf32>
    %4 = arith.truncf %3 : vector<8x8x64xf32> to vector<8x8x64xbf16>
    %c0_3 = arith.constant 0 : index
    %c0_4 = arith.constant 0 : index
    %c0_5 = arith.constant 0 : index
    %c0_6 = arith.constant 0 : index
    %5 = vector.load %arg2[%c0_3, %c0_4, %c0_5, %c0_6] : memref<1x8x8x64xf32, #tpu.memory_space<vmem>>, vector<1x8x8x64xf32>
    %6 = vector.shape_cast %5 : vector<1x8x8x64xf32> to vector<8x8x64xf32>
    %7 = arith.truncf %6 : vector<8x8x64xf32> to vector<8x8x64xbf16>
    %c0_7 = arith.constant 0 : index
    %c0_8 = arith.constant 0 : index
    %c0_9 = arith.constant 0 : index
    %c0_10 = arith.constant 0 : index
    %8 = vector.load %arg3[%c0_7, %c0_8, %c0_9, %c0_10] : memref<1x8x8x64xf32, #tpu.memory_space<vmem>>, vector<1x8x8x64xf32>
    %9 = vector.shape_cast %8 : vector<1x8x8x64xf32> to vector<8x8x64xf32>
    %10 = arith.truncf %9 : vector<8x8x64xf32> to vector<8x8x64xbf16>
    %cst_11 = arith.constant dense<0.000000e+00> : vector<8x8x8xf32>
    %11 = tpu.matmul %4, %7, %cst_11 {dimension_numbers = #tpu.dot_dimension_numbers<[2], [2], [1], [1], [0, 0, 0, 1, 1, 1], [0], [0]>} : vector<8x8x64xbf16>, vector<8x8x64xbf16>, vector<8x8x8xf32> -> vector<8x8x8xf32>
    %c0_12 = arith.constant 0 : index
    %c0_13 = arith.constant 0 : index
    %c0_14 = arith.constant 0 : index
    %12 = vector.load %arg4[%c0_12, %c0_13, %c0_14] : memref<1x1x8xf32, #tpu.memory_space<vmem>>, vector<1x1x8xf32>
    %13 = vector.broadcast %12 : vector<1x1x8xf32> to vector<8x8x8xf32>
    %14 = arith.addf %11, %13 : vector<8x8x8xf32>
    %cst_15 = arith.constant dense<0xFF800000> : vector<8x8xf32>
    %15 = vector.multi_reduction <maximumf>, %14, %cst_15 [2] : vector<8x8x8xf32> to vector<8x8xf32>
    %16 = vector.shape_cast %15 : vector<8x8xf32> to vector<8x8x1xf32>
    %17 = vector.broadcast %16 : vector<8x8x1xf32> to vector<8x8x8xf32>
    %18 = arith.subf %14, %17 : vector<8x8x8xf32>
    %19 = math.exp %18 : vector<8x8x8xf32>
    %cst_16 = arith.constant dense<0.000000e+00> : vector<8x8xf32>
    %20 = vector.multi_reduction <add>, %19, %cst_16 [2] : vector<8x8x8xf32> to vector<8x8xf32>
    %21 = vector.shape_cast %20 : vector<8x8xf32> to vector<8x8x1xf32>
    %22 = tpu.reciprocal %21 {approx = true} : vector<8x8x1xf32> -> vector<8x8x1xf32>
    %23 = vector.broadcast %22 : vector<8x8x1xf32> to vector<8x8x8xf32>
    %24 = arith.mulf %19, %23 : vector<8x8x8xf32>
    %25 = arith.truncf %24 : vector<8x8x8xf32> to vector<8x8x8xbf16>
    %cst_17 = arith.constant dense<0.000000e+00> : vector<8x8x64xf32>
    %26 = tpu.matmul %25, %10, %cst_17 {dimension_numbers = #tpu.dot_dimension_numbers<[2], [1], [1], [2], [0, 0, 0, 1, 1, 2], [0], [0]>} : vector<8x8x8xbf16>, vector<8x8x64xbf16>, vector<8x8x64xf32> -> vector<8x8x64xf32>
    %27 = vector.extract_strided_slice %26 {offsets = [0, 0, 0], sizes = [1, 8, 64], strides = [1, 1, 1]} : vector<8x8x64xf32> to vector<1x8x64xf32>
    %28 = vector.shape_cast %27 : vector<1x8x64xf32> to vector<8x64xf32>
    %29 = vector.extract_strided_slice %26 {offsets = [1, 0, 0], sizes = [1, 8, 64], strides = [1, 1, 1]} : vector<8x8x64xf32> to vector<1x8x64xf32>
    %30 = vector.shape_cast %29 : vector<1x8x64xf32> to vector<8x64xf32>
    %31 = vector.extract_strided_slice %26 {offsets = [2, 0, 0], sizes = [1, 8, 64], strides = [1, 1, 1]} : vector<8x8x64xf32> to vector<1x8x64xf32>
    %32 = vector.shape_cast %31 : vector<1x8x64xf32> to vector<8x64xf32>
    %33 = vector.extract_strided_slice %26 {offsets = [3, 0, 0], sizes = [1, 8, 64], strides = [1, 1, 1]} : vector<8x8x64xf32> to vector<1x8x64xf32>
    %34 = vector.shape_cast %33 : vector<1x8x64xf32> to vector<8x64xf32>
    %35 = vector.extract_strided_slice %26 {offsets = [4, 0, 0], sizes = [1, 8, 64], strides = [1, 1, 1]} : vector<8x8x64xf32> to vector<1x8x64xf32>
    %36 = vector.shape_cast %35 : vector<1x8x64xf32> to vector<8x64xf32>
    %37 = vector.extract_strided_slice %26 {offsets = [5, 0, 0], sizes = [1, 8, 64], strides = [1, 1, 1]} : vector<8x8x64xf32> to vector<1x8x64xf32>
    %38 = vector.shape_cast %37 : vector<1x8x64xf32> to vector<8x64xf32>
    %39 = vector.extract_strided_slice %26 {offsets = [6, 0, 0], sizes = [1, 8, 64], strides = [1, 1, 1]} : vector<8x8x64xf32> to vector<1x8x64xf32>
    %40 = vector.shape_cast %39 : vector<1x8x64xf32> to vector<8x64xf32>
    %41 = vector.extract_strided_slice %26 {offsets = [7, 0, 0], sizes = [1, 8, 64], strides = [1, 1, 1]} : vector<8x8x64xf32> to vector<1x8x64xf32>
    %42 = vector.shape_cast %41 : vector<1x8x64xf32> to vector<8x64xf32>
    %43 = tpu.concatenate %28, %30, %32, %34, %36, %38, %40, %42 in 1 : vector<8x64xf32>, vector<8x64xf32>, vector<8x64xf32>, vector<8x64xf32>, vector<8x64xf32>, vector<8x64xf32>, vector<8x64xf32>, vector<8x64xf32> -> vector<8x512xf32>
    %c0_18 = arith.constant 0 : index
    %c0_19 = arith.constant 0 : index
    %c0_20 = arith.constant 0 : index
    %44 = vector.load %arg5[%c0_18, %c0_19, %c0_20] : memref<1x8x512xf32, #tpu.memory_space<vmem>>, vector<1x8x512xf32>
    %45 = vector.shape_cast %44 : vector<1x8x512xf32> to vector<8x512xf32>
    %46 = vector.shape_cast %43 : vector<8x512xf32> to vector<1x8x512xf32>
    tpu.vector_store %arg5[%c0_18, %c0_19, %c0_20], %46 {strides = array<i32>} : memref<1x8x512xf32, #tpu.memory_space<vmem>>, vector<1x8x512xf32>,
    return
  }
  func.func @transform_0(%arg0: i32) -> (i32, i32, i32, i32) {
    %c0_i32 = arith.constant 0 : i32
    %c0_i32_0 = arith.constant 0 : i32
    %c0_i32_1 = arith.constant 0 : i32
    %c0_i32_2 = arith.constant 0 : i32
    return %arg0, %c0_i32, %c0_i32_0, %c0_i32_1 : i32, i32, i32, i32
  }
  func.func @transform_1(%arg0: i32) -> (i32, i32, i32, i32) {
    %c0_i32 = arith.constant 0 : i32
    %c0_i32_0 = arith.constant 0 : i32
    %c0_i32_1 = arith.constant 0 : i32
    %c0_i32_2 = arith.constant 0 : i32
    return %arg0, %c0_i32, %c0_i32_0, %c0_i32_1 : i32, i32, i32, i32
  }
  func.func @transform_2(%arg0: i32) -> (i32, i32, i32, i32) {
    %c0_i32 = arith.constant 0 : i32
    %c0_i32_0 = arith.constant 0 : i32
    %c0_i32_1 = arith.constant 0 : i32
    %c0_i32_2 = arith.constant 0 : i32
    return %arg0, %c0_i32, %c0_i32_0, %c0_i32_1 : i32, i32, i32, i32
  }
  func.func @transform_3(%arg0: i32) -> (i32, i32, i32) {
    %c0_i32 = arith.constant 0 : i32
    %c0_i32_0 = arith.constant 0 : i32
    %c0_i32_1 = arith.constant 0 : i32
    return %arg0, %c0_i32, %c0_i32_0 : i32, i32, i32
  }
  func.func @transform_4(%arg0: i32) -> (i32, i32, i32) {
    %c0_i32 = arith.constant 0 : i32
    %c0_i32_0 = arith.constant 0 : i32
    %c0_i32_1 = arith.constant 0 : i32
    return %arg0, %c0_i32, %c0_i32_0 : i32, i32, i32
  }
}

module attributes {stable_mosaic.version = 11 : i64} {
  func.func @_ffn_ln_kernel(%arg0: i32, %arg1: memref<16x512xf32, #tpu.memory_space<vmem>>, %arg2: memref<512x2048xbf16, #tpu.memory_space<vmem>>, %arg3: memref<1x2048xf32, #tpu.memory_space<vmem>>, %arg4: memref<2048x512xbf16, #tpu.memory_space<vmem>>, %arg5: memref<1x512xf32, #tpu.memory_space<vmem>>, %arg6: memref<1x512xf32, #tpu.memory_space<vmem>>, %arg7: memref<1x512xf32, #tpu.memory_space<vmem>>, %arg8: memref<16x512xf32, #tpu.memory_space<vmem>>) attributes {dimension_semantics = [#tpu.dimension_semantics<parallel>], iteration_bounds = array<i64: 1>, scalar_prefetch = 0 : i64, scratch_operands = 0 : i64, tpu.core_type = #tpu.core_type<tc>, window_params = [{transform_indices = @transform_0, window_bounds = array<i64: 16, 512>}, {pipeline_mode = #tpu.pipeline_mode<synchronous>, transform_indices = @transform_1, window_bounds = array<i64: 512, 2048>}, {pipeline_mode = #tpu.pipeline_mode<synchronous>, transform_indices = @transform_2, window_bounds = array<i64: 1, 2048>}, {pipeline_mode = #tpu.pipeline_mode<synchronous>, transform_indices = @transform_3, window_bounds = array<i64: 2048, 512>}, {pipeline_mode = #tpu.pipeline_mode<synchronous>, transform_indices = @transform_4, window_bounds = array<i64: 1, 512>}, {pipeline_mode = #tpu.pipeline_mode<synchronous>, transform_indices = @transform_5, window_bounds = array<i64: 1, 512>}, {pipeline_mode = #tpu.pipeline_mode<synchronous>, transform_indices = @transform_6, window_bounds = array<i64: 1, 512>}, {transform_indices = @transform_7, window_bounds = array<i64: 16, 512>}]} {
    %c0 = arith.constant 0 : index
    %c0_0 = arith.constant 0 : index
    %0 = vector.load %arg1[%c0, %c0_0] : memref<16x512xf32, #tpu.memory_space<vmem>>, vector<16x512xf32>
    %1 = arith.truncf %0 : vector<16x512xf32> to vector<16x512xbf16>
    %c0_1 = arith.constant 0 : index
    %c0_2 = arith.constant 0 : index
    %2 = vector.load %arg2[%c0_1, %c0_2] : memref<512x2048xbf16, #tpu.memory_space<vmem>>, vector<512x2048xbf16>
    %cst = arith.constant dense<0.000000e+00> : vector<16x2048xf32>
    %3 = tpu.matmul %1, %2, %cst {dimension_numbers = #tpu.dot_dimension_numbers<[1], [0], [0], [1], [0, 0, 1, 1], [], []>} : vector<16x512xbf16>, vector<512x2048xbf16>, vector<16x2048xf32> -> vector<16x2048xf32>
    %c0_3 = arith.constant 0 : index
    %c0_4 = arith.constant 0 : index
    %4 = vector.load %arg3[%c0_3, %c0_4] : memref<1x2048xf32, #tpu.memory_space<vmem>>, vector<1x2048xf32>
    %5 = vector.broadcast %4 : vector<1x2048xf32> to vector<16x2048xf32>
    %6 = arith.addf %3, %5 : vector<16x2048xf32>
    %cst_5 = arith.constant 0.000000e+00 : f32
    %7 = vector.broadcast %cst_5 : f32 to vector<16x2048xf32>
    %8 = arith.maximumf %6, %7 : vector<16x2048xf32>
    %9 = arith.truncf %8 : vector<16x2048xf32> to vector<16x2048xbf16>
    %c0_6 = arith.constant 0 : index
    %c0_7 = arith.constant 0 : index
    %10 = vector.load %arg4[%c0_6, %c0_7] : memref<2048x512xbf16, #tpu.memory_space<vmem>>, vector<2048x512xbf16>
    %cst_8 = arith.constant dense<0.000000e+00> : vector<16x512xf32>
    %11 = tpu.matmul %9, %10, %cst_8 {dimension_numbers = #tpu.dot_dimension_numbers<[1], [0], [0], [1], [0, 0, 1, 1], [], []>} : vector<16x2048xbf16>, vector<2048x512xbf16>, vector<16x512xf32> -> vector<16x512xf32>
    %c0_9 = arith.constant 0 : index
    %c0_10 = arith.constant 0 : index
    %12 = vector.load %arg5[%c0_9, %c0_10] : memref<1x512xf32, #tpu.memory_space<vmem>>, vector<1x512xf32>
    %13 = vector.broadcast %12 : vector<1x512xf32> to vector<16x512xf32>
    %14 = arith.addf %11, %13 : vector<16x512xf32>
    %15 = arith.addf %14, %0 : vector<16x512xf32>
    %c0_11 = arith.constant 0 : index
    %c0_12 = arith.constant 0 : index
    %16 = vector.load %arg6[%c0_11, %c0_12] : memref<1x512xf32, #tpu.memory_space<vmem>>, vector<1x512xf32>
    %c0_13 = arith.constant 0 : index
    %c0_14 = arith.constant 0 : index
    %17 = vector.load %arg7[%c0_13, %c0_14] : memref<1x512xf32, #tpu.memory_space<vmem>>, vector<1x512xf32>
    %cst_15 = arith.constant dense<0.000000e+00> : vector<16xf32>
    %18 = vector.multi_reduction <add>, %15, %cst_15 [1] : vector<16x512xf32> to vector<16xf32>
    %19 = vector.shape_cast %18 : vector<16xf32> to vector<16x1xf32>
    %cst_16 = arith.constant 5.120000e+02 : f32
    %20 = vector.broadcast %cst_16 : f32 to vector<16x1xf32>
    %21 = arith.divf %19, %20 : vector<16x1xf32>
    %22 = vector.broadcast %21 : vector<16x1xf32> to vector<16x512xf32>
    %23 = arith.subf %15, %22 : vector<16x512xf32>
    %24 = arith.mulf %23, %23 : vector<16x512xf32>
    %cst_17 = arith.constant dense<0.000000e+00> : vector<16xf32>
    %25 = vector.multi_reduction <add>, %24, %cst_17 [1] : vector<16x512xf32> to vector<16xf32>
    %26 = vector.shape_cast %25 : vector<16xf32> to vector<16x1xf32>
    %cst_18 = arith.constant 5.120000e+02 : f32
    %27 = vector.broadcast %cst_18 : f32 to vector<16x1xf32>
    %28 = arith.divf %26, %27 : vector<16x1xf32>
    %cst_19 = arith.constant 9.99999974E-6 : f32
    %29 = vector.broadcast %cst_19 : f32 to vector<16x1xf32>
    %30 = arith.addf %28, %29 : vector<16x1xf32>
    %31 = math.rsqrt %30 : vector<16x1xf32>
    %32 = vector.broadcast %31 : vector<16x1xf32> to vector<16x512xf32>
    %33 = arith.mulf %23, %32 : vector<16x512xf32>
    %34 = vector.broadcast %16 : vector<1x512xf32> to vector<16x512xf32>
    %35 = arith.mulf %33, %34 : vector<16x512xf32>
    %36 = vector.broadcast %17 : vector<1x512xf32> to vector<16x512xf32>
    %37 = arith.addf %35, %36 : vector<16x512xf32>
    %c0_20 = arith.constant 0 : index
    %c0_21 = arith.constant 0 : index
    %38 = vector.load %arg8[%c0_20, %c0_21] : memref<16x512xf32, #tpu.memory_space<vmem>>, vector<16x512xf32>
    tpu.vector_store %arg8[%c0_20, %c0_21], %37 {strides = array<i32>} : memref<16x512xf32, #tpu.memory_space<vmem>>, vector<16x512xf32>,
    return
  }
  func.func @transform_0(%arg0: i32) -> (i32, i32) {
    %c0_i32 = arith.constant 0 : i32
    %c0_i32_0 = arith.constant 0 : i32
    return %arg0, %c0_i32 : i32, i32
  }
  func.func @transform_1(%arg0: i32) -> (i32, i32) {
    %c0_i32 = arith.constant 0 : i32
    %c0_i32_0 = arith.constant 0 : i32
    %c0_i32_1 = arith.constant 0 : i32
    return %c0_i32, %c0_i32_0 : i32, i32
  }
  func.func @transform_2(%arg0: i32) -> (i32, i32) {
    %c0_i32 = arith.constant 0 : i32
    %c0_i32_0 = arith.constant 0 : i32
    %c0_i32_1 = arith.constant 0 : i32
    return %c0_i32, %c0_i32_0 : i32, i32
  }
  func.func @transform_3(%arg0: i32) -> (i32, i32) {
    %c0_i32 = arith.constant 0 : i32
    %c0_i32_0 = arith.constant 0 : i32
    %c0_i32_1 = arith.constant 0 : i32
    return %c0_i32, %c0_i32_0 : i32, i32
  }
  func.func @transform_4(%arg0: i32) -> (i32, i32) {
    %c0_i32 = arith.constant 0 : i32
    %c0_i32_0 = arith.constant 0 : i32
    %c0_i32_1 = arith.constant 0 : i32
    return %c0_i32, %c0_i32_0 : i32, i32
  }
  func.func @transform_5(%arg0: i32) -> (i32, i32) {
    %c0_i32 = arith.constant 0 : i32
    %c0_i32_0 = arith.constant 0 : i32
    %c0_i32_1 = arith.constant 0 : i32
    return %c0_i32, %c0_i32_0 : i32, i32
  }
  func.func @transform_6(%arg0: i32) -> (i32, i32) {
    %c0_i32 = arith.constant 0 : i32
    %c0_i32_0 = arith.constant 0 : i32
    %c0_i32_1 = arith.constant 0 : i32
    return %c0_i32, %c0_i32_0 : i32, i32
  }
  func.func @transform_7(%arg0: i32) -> (i32, i32) {
    %c0_i32 = arith.constant 0 : i32
    %c0_i32_0 = arith.constant 0 : i32
    return %arg0, %c0_i32 : i32, i32
  }
}

module attributes {stable_mosaic.version = 11 : i64} {
  func.func @_linear_kernel(%arg0: i32, %arg1: i32, %arg2: memref<16x512xf32, #tpu.memory_space<vmem>>, %arg3: memref<512x512xbf16, #tpu.memory_space<vmem>>, %arg4: memref<1x512xf32, #tpu.memory_space<vmem>>, %arg5: memref<16x512xf32, #tpu.memory_space<vmem>>) attributes {dimension_semantics = [#tpu.dimension_semantics<parallel>, #tpu.dimension_semantics<parallel>], iteration_bounds = array<i64: 1, 2>, scalar_prefetch = 0 : i64, scratch_operands = 0 : i64, tpu.core_type = #tpu.core_type<tc>, window_params = [{transform_indices = @transform_0, window_bounds = array<i64: 16, 512>}, {transform_indices = @transform_1, window_bounds = array<i64: 512, 512>}, {transform_indices = @transform_2, window_bounds = array<i64: 1, 512>}, {transform_indices = @transform_3, window_bounds = array<i64: 16, 512>}]} {
    %c0 = arith.constant 0 : index
    %c0_0 = arith.constant 0 : index
    %0 = vector.load %arg2[%c0, %c0_0] : memref<16x512xf32, #tpu.memory_space<vmem>>, vector<16x512xf32>
    %1 = arith.truncf %0 : vector<16x512xf32> to vector<16x512xbf16>
    %c0_1 = arith.constant 0 : index
    %c0_2 = arith.constant 0 : index
    %2 = vector.load %arg3[%c0_1, %c0_2] : memref<512x512xbf16, #tpu.memory_space<vmem>>, vector<512x512xbf16>
    %cst = arith.constant dense<0.000000e+00> : vector<16x512xf32>
    %3 = tpu.matmul %1, %2, %cst {dimension_numbers = #tpu.dot_dimension_numbers<[1], [0], [0], [1], [0, 0, 1, 1], [], []>} : vector<16x512xbf16>, vector<512x512xbf16>, vector<16x512xf32> -> vector<16x512xf32>
    %c0_3 = arith.constant 0 : index
    %c0_4 = arith.constant 0 : index
    %4 = vector.load %arg4[%c0_3, %c0_4] : memref<1x512xf32, #tpu.memory_space<vmem>>, vector<1x512xf32>
    %5 = vector.broadcast %4 : vector<1x512xf32> to vector<16x512xf32>
    %6 = arith.addf %3, %5 : vector<16x512xf32>
    %c0_5 = arith.constant 0 : index
    %c0_6 = arith.constant 0 : index
    %7 = vector.load %arg5[%c0_5, %c0_6] : memref<16x512xf32, #tpu.memory_space<vmem>>, vector<16x512xf32>
    tpu.vector_store %arg5[%c0_5, %c0_6], %6 {strides = array<i32>} : memref<16x512xf32, #tpu.memory_space<vmem>>, vector<16x512xf32>,
    return
  }
  func.func @transform_0(%arg0: i32, %arg1: i32) -> (i32, i32) {
    %c0_i32 = arith.constant 0 : i32
    %c0_i32_0 = arith.constant 0 : i32
    return %arg0, %c0_i32 : i32, i32
  }
  func.func @transform_1(%arg0: i32, %arg1: i32) -> (i32, i32) {
    %c0_i32 = arith.constant 0 : i32
    %c0_i32_0 = arith.constant 0 : i32
    return %c0_i32, %arg1 : i32, i32
  }
  func.func @transform_2(%arg0: i32, %arg1: i32) -> (i32, i32) {
    %c0_i32 = arith.constant 0 : i32
    %c0_i32_0 = arith.constant 0 : i32
    return %c0_i32, %arg1 : i32, i32
  }
  func.func @transform_3(%arg0: i32, %arg1: i32) -> (i32, i32) {
    %c0_i32 = arith.constant 0 : i32
    return %arg0, %arg1 : i32, i32
  }
}

</mosaic_0001>

<bundles_post_ra>
// kernel: mt_forward.86
= control target key start
LH: loop header
LB: loop body
LE: loop exit
PB: predicated region body
PF: predicated region fallthrough
CT: control target
= control target key end

     0   :  { %s1990_s1 = inlined_call_operand.vmem [shape: bf16[512,512], index: 1, kind: input, shape index: {}]   ;;  %s1991_s0 = inlined_call_operand.vmem [shape: f32[16,512], index: 0, kind: input, shape index: {}]   ;;  %s1992_s2 = inlined_call_operand.vmem [shape: f32[1,512], index: 2, kind: input, shape index: {}]   ;;  %s1993_s3 = inlined_call_operand.vmem [shape: f32[16,512], index: 3, kind: input, shape index: {}]   ;;  %s1994_s4 = inlined_call_operand.vmem [shape: f32[1,512], index: 4, kind: input, shape index: {}]   ;;  %s1995_s5 = inlined_call_operand.vmem [shape: f32[1,512], index: 5, kind: input, shape index: {}]   ;;  %s1996_s6 = inlined_call_operand.vmem [shape: f32[16,512], index: 6, kind: output, shape index: {}]  }
   0x1   :  { %v1266_v0 = vld [vmem:[%s1990_s1 + $0xe4] ss:$16 sps:$4 sm:$0xff]   ;;  %v1270_v2 = vld [vmem:[%s1990_s1 + $0xe0] ss:$16 sps:$4 sm:$0xff]   ;;  %v24_v46 = vld [vmem:[%s1991_s0 + $0x8] sm:$0xff] }
   0x2   :  { %v1268_v1 = vld [vmem:[%s1990_s1 + $0x2e4] ss:$16 sps:$4 sm:$0xff]   ;;  %825 = vmatprep.subr.bf16.mxu0 %v1266_v0  ;;  %v1271_v3 = vld [vmem:[%s1990_s1 + $0x2e0] ss:$16 sps:$4 sm:$0xff]   ;;  %v28_v47 = vld [vmem:[%s1991_s0 + $0x28] sm:$0xff] }
   0x3   :  { %868 = vmatprep.subr.bf16.mxu1 %v1268_v1  ;;  %v1272_v4 = vld [vmem:[%s1990_s1 + $0xc4] ss:$16 sps:$4 sm:$0xff]   ;;  %826 = vmatpush1.bf16.msra.mxu0 %v1270_v2  ;;  %v1276_v6 = vld [vmem:[%s1990_s1 + $0xc0] ss:$16 sps:$4 sm:$0xff]   ;;  %v26_v48 = vld [vmem:[%s1991_s0 + $0x18] sm:$0xff]  ;;  %v32_v53 = vpack.c.bf16 %v28_v47, %v24_v46 }
   0x4   :  { %869 = vmatpush1.bf16.msra.mxu1 %v1271_v3  ;;  %v1274_v5 = vld [vmem:[%s1990_s1 + $0x2c4] ss:$16 sps:$4 sm:$0xff]   ;;  %827 = vmatprep.subr.bf16.mxu0 %v1272_v4  ;;  %v1277_v7 = vld [vmem:[%s1990_s1 + $0x2c0] ss:$16 sps:$4 sm:$0xff]   ;;  %v30_v49 = vld [vmem:[%s1991_s0 + $0x38] sm:$0xff] }
   0x5   :  { %870 = vmatprep.subr.bf16.mxu1 %v1274_v5  ;;  %v1278_v8 = vld [vmem:[%s1990_s1 + $0xa4] ss:$16 sps:$4 sm:$0xff]   ;;  %v1282_v10 = vld [vmem:[%s1990_s1 + $0xa0] ss:$16 sps:$4 sm:$0xff]   ;;  %v34_v54 = vpack.c.bf16 %v30_v49, %v26_v48  ;;  %857 = vmatprep.mubr.bf16.mxu0 %v32_v53  ;;  %v1410_v46 = vld [vmem:[%s1990_s1 + $0x1e8] ss:$16 sps:$4 sm:$0xff]  }
   0x6   :  { %v1280_v9 = vld [vmem:[%s1990_s1 + $0x2a4] ss:$16 sps:$4 sm:$0xff]   ;;  %v1283_v11 = vld [vmem:[%s1990_s1 + $0x2a0] ss:$16 sps:$4 sm:$0xff]   ;;  %v1413_v47 = vld [vmem:[%s1990_s1 + $0x3e8] ss:$16 sps:$4 sm:$0xff]  }
   0x7   :  { %828 = vmatpush1.bf16.msra.mxu0 %v1276_v6  ;;  %v1284_v12 = vld [vmem:[%s1990_s1 + $0x84] ss:$16 sps:$4 sm:$0xff]   ;;  %v1288_v14 = vld [vmem:[%s1990_s1 + $0x80] ss:$16 sps:$4 sm:$0xff]   ;;  %900 = vmatprep.mubr.bf16.mxu1 %v34_v54  ;;  %v1418_v48 = vld [vmem:[%s1990_s1 + $0x1cc] ss:$16 sps:$4 sm:$0xff]  }
   0x8   :  { %871 = vmatpush1.bf16.msra.mxu1 %v1277_v7  ;;  %829 = vmatprep.subr.bf16.mxu0 %v1278_v8  ;;  %v1286_v13 = vld [vmem:[%s1990_s1 + $0x284] ss:$16 sps:$4 sm:$0xff]   ;;  %v1289_v15 = vld [vmem:[%s1990_s1 + $0x280] ss:$16 sps:$4 sm:$0xff]   ;;  %v1421_v49 = vld [vmem:[%s1990_s1 + $0x3cc] ss:$16 sps:$4 sm:$0xff]  }
   0x9   :  { %872 = vmatprep.subr.bf16.mxu1 %v1280_v9  ;;  %v1290_v16 = vld [vmem:[%s1990_s1 + $0x64] ss:$16 sps:$4 sm:$0xff]   ;;  %v1294_v18 = vld [vmem:[%s1990_s1 + $0x60] ss:$16 sps:$4 sm:$0xff]  }
   0xa   :  { %v1292_v17 = vld [vmem:[%s1990_s1 + $0x264] ss:$16 sps:$4 sm:$0xff]   ;;  %v1295_v19 = vld [vmem:[%s1990_s1 + $0x260] ss:$16 sps:$4 sm:$0xff]  }
   0xb   :  { %830 = vmatpush1.bf16.msra.mxu0 %v1282_v10  ;;  %v1296_v20 = vld [vmem:[%s1990_s1 + $0x44] ss:$16 sps:$4 sm:$0xff]   ;;  %v1300_v22 = vld [vmem:[%s1990_s1 + $0x40] ss:$16 sps:$4 sm:$0xff]   ;;  %v1364_v10 = vld [vmem:[%s1990_s1 + $0xec] ss:$16 sps:$4 sm:$0xff]  }
   0xc   :  { %873 = vmatpush1.bf16.msra.mxu1 %v1283_v11  ;;  %831 = vmatprep.subr.bf16.mxu0 %v1284_v12  ;;  %v1298_v21 = vld [vmem:[%s1990_s1 + $0x244] ss:$16 sps:$4 sm:$0xff]   ;;  %v1301_v23 = vld [vmem:[%s1990_s1 + $0x240] ss:$16 sps:$4 sm:$0xff]   ;;  %v1367_v11 = vld [vmem:[%s1990_s1 + $0x2ec] ss:$16 sps:$4 sm:$0xff]  }
   0xd   :  { %874 = vmatprep.subr.bf16.mxu1 %v1286_v13  ;;  %v1302_v24 = vld [vmem:[%s1990_s1 + $0x24] ss:$16 sps:$4 sm:$0xff]   ;;  %v1306_v26 = vld [vmem:[%s1990_s1 + $0x20] ss:$16 sps:$4 sm:$0xff]  }
   0xe   :  { %v1304_v25 = vld [vmem:[%s1990_s1 + $0x224] ss:$16 sps:$4 sm:$0xff]   ;;  %v1307_v27 = vld [vmem:[%s1990_s1 + $0x220] ss:$16 sps:$4 sm:$0xff]  }
   0xf   :  { %832 = vmatpush1.bf16.msra.mxu0 %v1288_v14  ;;  %v1308_v28 = vld [vmem:[%s1990_s1 + $0x4] ss:$16 sps:$4 sm:$0xff]   ;;  %v1312_v30 = vld [vmem:[%s1990_s1] ss:$16 sps:$4 sm:$0xff]   ;;  %v1362_v14 = vld [vmem:[%s1990_s1 + $0xe8] ss:$16 sps:$4 sm:$0xff]  }
  0x10   :  { %875 = vmatpush1.bf16.msra.mxu1 %v1289_v15  ;;  %833 = vmatprep.subr.bf16.mxu0 %v1290_v16  ;;  %v1310_v29 = vld [vmem:[%s1990_s1 + $0x204] ss:$16 sps:$4 sm:$0xff]   ;;  %v1313_v31 = vld [vmem:[%s1990_s1 + $0x200] ss:$16 sps:$4 sm:$0xff]   ;;  %v1365_v15 = vld [vmem:[%s1990_s1 + $0x2e8] ss:$16 sps:$4 sm:$0xff]  }
  0x11   :  { %876 = vmatprep.subr.bf16.mxu1 %v1292_v17  ;;  %v1314_v32 = vld [vmem:[%s1990_s1 + $0x1e4] ss:$16 sps:$4 sm:$0xff]   ;;  %v1318_v34 = vld [vmem:[%s1990_s1 + $0x1e0] ss:$16 sps:$4 sm:$0xff]   ;;  %v1370_v16 = vld [vmem:[%s1990_s1 + $0xcc] ss:$16 sps:$4 sm:$0xff]  }
  0x12   :  { %v1316_v33 = vld [vmem:[%s1990_s1 + $0x3e4] ss:$16 sps:$4 sm:$0xff]   ;;  %v1319_v35 = vld [vmem:[%s1990_s1 + $0x3e0] ss:$16 sps:$4 sm:$0xff]   ;;  %v1373_v17 = vld [vmem:[%s1990_s1 + $0x2cc] ss:$16 sps:$4 sm:$0xff]  }
  0x13   :  { %834 = vmatpush1.bf16.msra.mxu0 %v1294_v18  ;;  %v1320_v36 = vld [vmem:[%s1990_s1 + $0x1c4] ss:$16 sps:$4 sm:$0xff]   ;;  %v1324_v38 = vld [vmem:[%s1990_s1 + $0x1c0] ss:$16 sps:$4 sm:$0xff]   ;;  %v1368_v18 = vld [vmem:[%s1990_s1 + $0xc8] ss:$16 sps:$4 sm:$0xff]  }
  0x14   :  { %877 = vmatpush1.bf16.msra.mxu1 %v1295_v19  ;;  %835 = vmatprep.subr.bf16.mxu0 %v1296_v20  ;;  %v1322_v37 = vld [vmem:[%s1990_s1 + $0x3c4] ss:$16 sps:$4 sm:$0xff]   ;;  %v1325_v39 = vld [vmem:[%s1990_s1 + $0x3c0] ss:$16 sps:$4 sm:$0xff]   ;;  %v1371_v19 = vld [vmem:[%s1990_s1 + $0x2c8] ss:$16 sps:$4 sm:$0xff]  }
  0x15   :  { %878 = vmatprep.subr.bf16.mxu1 %v1298_v21  ;;  %v1326_v40 = vld [vmem:[%s1990_s1 + $0x1a4] ss:$16 sps:$4 sm:$0xff]   ;;  %v1330_v42 = vld [vmem:[%s1990_s1 + $0x1a0] ss:$16 sps:$4 sm:$0xff]   ;;  %v1376_v20 = vld [vmem:[%s1990_s1 + $0xac] ss:$16 sps:$4 sm:$0xff]  }
  0x16   :  { %v1328_v41 = vld [vmem:[%s1990_s1 + $0x3a4] ss:$16 sps:$4 sm:$0xff]   ;;  %v1331_v43 = vld [vmem:[%s1990_s1 + $0x3a0] ss:$16 sps:$4 sm:$0xff]   ;;  %v1379_v21 = vld [vmem:[%s1990_s1 + $0x2ac] ss:$16 sps:$4 sm:$0xff]  }
  0x17   :  { %836 = vmatpush1.bf16.msra.mxu0 %v1300_v22  ;;  %v1332_v44 = vld [vmem:[%s1990_s1 + $0x184] ss:$16 sps:$4 sm:$0xff]   ;;  %v1336_v50 = vld [vmem:[%s1990_s1 + $0x180] ss:$16 sps:$4 sm:$0xff]   ;;  %v1374_v22 = vld [vmem:[%s1990_s1 + $0xa8] ss:$16 sps:$4 sm:$0xff]  }
  0x18   :  { %879 = vmatpush1.bf16.msra.mxu1 %v1301_v23  ;;  %837 = vmatprep.subr.bf16.mxu0 %v1302_v24  ;;  %v1334_v45 = vld [vmem:[%s1990_s1 + $0x384] ss:$16 sps:$4 sm:$0xff]   ;;  %v1337_v51 = vld [vmem:[%s1990_s1 + $0x380] ss:$16 sps:$4 sm:$0xff]   ;;  %v1377_v23 = vld [vmem:[%s1990_s1 + $0x2a8] ss:$16 sps:$4 sm:$0xff]  }
  0x19   :  { %880 = vmatprep.subr.bf16.mxu1 %v1304_v25  ;;  %v1338_v52 = vld [vmem:[%s1990_s1 + $0x164] ss:$16 sps:$4 sm:$0xff]   ;;  %v1342_v56 = vld [vmem:[%s1990_s1 + $0x160] ss:$16 sps:$4 sm:$0xff]   ;;  %v1382_v24 = vld [vmem:[%s1990_s1 + $0x8c] ss:$16 sps:$4 sm:$0xff]  }
  0x1a   :  { %v1340_v55 = vld [vmem:[%s1990_s1 + $0x364] ss:$16 sps:$4 sm:$0xff]   ;;  %v1343_v57 = vld [vmem:[%s1990_s1 + $0x360] ss:$16 sps:$4 sm:$0xff]   ;;  %v1385_v25 = vld [vmem:[%s1990_s1 + $0x28c] ss:$16 sps:$4 sm:$0xff]  }
  0x1b   :  { %838 = vmatpush1.bf16.msra.mxu0 %v1306_v26  ;;  %v1344_v58 = vld [vmem:[%s1990_s1 + $0x144] ss:$16 sps:$4 sm:$0xff]   ;;  %v1348_v60 = vld [vmem:[%s1990_s1 + $0x140] ss:$16 sps:$4 sm:$0xff]   ;;  %v1380_v26 = vld [vmem:[%s1990_s1 + $0x88] ss:$16 sps:$4 sm:$0xff]  }
  0x1c   :  { %881 = vmatpush1.bf16.msra.mxu1 %v1307_v27  ;;  %839 = vmatprep.subr.bf16.mxu0 %v1308_v28  ;;  %v1346_v59 = vld [vmem:[%s1990_s1 + $0x344] ss:$16 sps:$4 sm:$0xff]   ;;  %v1349_v61 = vld [vmem:[%s1990_s1 + $0x340] ss:$16 sps:$4 sm:$0xff]   ;;  %v1383_v27 = vld [vmem:[%s1990_s1 + $0x288] ss:$16 sps:$4 sm:$0xff]  }
  0x1d   :  { %882 = vmatprep.subr.bf16.mxu1 %v1310_v29  ;;  %v1350_v62 = vld [vmem:[%s1990_s1 + $0x124] ss:$16 sps:$4 sm:$0xff]   ;;  %v1354_v0 = vld [vmem:[%s1990_s1 + $0x120] ss:$16 sps:$4 sm:$0xff]   ;;  %v1388_v28 = vld [vmem:[%s1990_s1 + $0x6c] ss:$16 sps:$4 sm:$0xff]  }
  0x1e   :  { %v1352_v63 = vld [vmem:[%s1990_s1 + $0x324] ss:$16 sps:$4 sm:$0xff]   ;;  %v1355_v1 = vld [vmem:[%s1990_s1 + $0x320] ss:$16 sps:$4 sm:$0xff]   ;;  %v1391_v29 = vld [vmem:[%s1990_s1 + $0x26c] ss:$16 sps:$4 sm:$0xff]  }
  0x1f   :  { %840 = vmatpush1.bf16.msra.mxu0 %v1312_v30  ;;  %v1356_v2 = vld [vmem:[%s1990_s1 + $0x104] ss:$16 sps:$4 sm:$0xff]   ;;  %v1360_v4 = vld [vmem:[%s1990_s1 + $0x100] ss:$16 sps:$4 sm:$0xff]   ;;  %v1386_v30 = vld [vmem:[%s1990_s1 + $0x68] ss:$16 sps:$4 sm:$0xff]  }
  0x20   :  { %883 = vmatpush1.bf16.msra.mxu1 %v1313_v31  ;;  %841 = vmatprep.subr.bf16.mxu0 %v1314_v32  ;;  %v1358_v3 = vld [vmem:[%s1990_s1 + $0x304] ss:$16 sps:$4 sm:$0xff]   ;;  %v1361_v5 = vld [vmem:[%s1990_s1 + $0x300] ss:$16 sps:$4 sm:$0xff]   ;;  %v1389_v31 = vld [vmem:[%s1990_s1 + $0x268] ss:$16 sps:$4 sm:$0xff]  }
  0x21   :  { %884 = vmatprep.subr.bf16.mxu1 %v1316_v33  ;;  %v23_v6 = vld [vmem:[%s1991_s0] sm:$0xff]  ;;  %v25_v8 = vld [vmem:[%s1991_s0 + $0x10] sm:$0xff]  ;;  %v1394_v32 = vld [vmem:[%s1990_s1 + $0x4c] ss:$16 sps:$4 sm:$0xff]  }
  0x22   :  { %v27_v7 = vld [vmem:[%s1991_s0 + $0x20] sm:$0xff]  ;;  %v29_v9 = vld [vmem:[%s1991_s0 + $0x30] sm:$0xff]  ;;  %v1397_v33 = vld [vmem:[%s1990_s1 + $0x24c] ss:$16 sps:$4 sm:$0xff]  }
  0x23   :  { %842 = vmatpush2.bf16.msra.mxu0 %v1318_v34  ;;  %v1719_v12 = vpack.c.bf16 %v27_v7, %v23_v6  ;;  %v1721_v13 = vpack.c.bf16 %v29_v9, %v25_v8  ;;  %v1392_v34 = vld [vmem:[%s1990_s1 + $0x48] ss:$16 sps:$4 sm:$0xff]   ;;  %v1454_v8 = vld [vmem:[%s1990_s1 + $0x10c] ss:$16 sps:$4 sm:$0xff]  }
  0x24   :  { %885 = vmatpush2.bf16.msra.mxu1 %v1319_v35  ;;  %843 = vmatprep.subr.bf16.mxu0 %v1320_v36  ;;  %v1395_v35 = vld [vmem:[%s1990_s1 + $0x248] ss:$16 sps:$4 sm:$0xff]   ;;  %v1400_v36 = vld [vmem:[%s1990_s1 + $0x2c] ss:$16 sps:$4 sm:$0xff]  }
  0x25   :  { %886 = vmatprep.subr.bf16.mxu1 %v1322_v37  ;;  %v1403_v37 = vld [vmem:[%s1990_s1 + $0x22c] ss:$16 sps:$4 sm:$0xff]   ;;  %v1446_v6 = vld [vmem:[%s1990_s1 + $0x128] ss:$16 sps:$4 sm:$0xff]  }
  0x26   :  { %v1449_v7 = vld [vmem:[%s1990_s1 + $0x328] ss:$16 sps:$4 sm:$0xff]   ;;  %v1457_v9 = vld [vmem:[%s1990_s1 + $0x30c] ss:$16 sps:$4 sm:$0xff]  }
  0x27   :  { %844 = vmatpush2.bf16.msra.mxu0 %v1324_v38  ;;  %v1398_v38 = vld [vmem:[%s1990_s1 + $0x28] ss:$16 sps:$4 sm:$0xff]  }
  0x28   :  { %887 = vmatpush2.bf16.msra.mxu1 %v1325_v39  ;;  %845 = vmatprep.subr.bf16.mxu0 %v1326_v40  ;;  %v1401_v39 = vld [vmem:[%s1990_s1 + $0x228] ss:$16 sps:$4 sm:$0xff]   ;;  %v1406_v40 = vld [vmem:[%s1990_s1 + $0xc] ss:$16 sps:$4 sm:$0xff]  }
  0x29   :  { %888 = vmatprep.subr.bf16.mxu1 %v1328_v41  ;;  %v1409_v41 = vld [vmem:[%s1990_s1 + $0x20c] ss:$16 sps:$4 sm:$0xff]  }
  0x2b   :  { %846 = vmatpush2.bf16.msra.mxu0 %v1330_v42  ;;  %v1404_v42 = vld [vmem:[%s1990_s1 + $0x8] ss:$16 sps:$4 sm:$0xff]  }
  0x2c   :  { %889 = vmatpush2.bf16.msra.mxu1 %v1331_v43  ;;  %847 = vmatprep.subr.bf16.mxu0 %v1332_v44  ;;  %v1407_v43 = vld [vmem:[%s1990_s1 + $0x208] ss:$16 sps:$4 sm:$0xff]   ;;  %v1412_v44 = vld [vmem:[%s1990_s1 + $0x1ec] ss:$16 sps:$4 sm:$0xff]  }
  0x2d   :  { %890 = vmatprep.subr.bf16.mxu1 %v1334_v45  ;;  %v1415_v45 = vld [vmem:[%s1990_s1 + $0x3ec] ss:$16 sps:$4 sm:$0xff]  }
  0x2f   :  { %848 = vmatpush2.bf16.msra.mxu0 %v1336_v50  ;;  %v1416_v50 = vld [vmem:[%s1990_s1 + $0x1c8] ss:$16 sps:$4 sm:$0xff]  }
  0x30   :  { %891 = vmatpush2.bf16.msra.mxu1 %v1337_v51  ;;  %849 = vmatprep.subr.bf16.mxu0 %v1338_v52  ;;  %v1419_v51 = vld [vmem:[%s1990_s1 + $0x3c8] ss:$16 sps:$4 sm:$0xff]   ;;  %v1424_v52 = vld [vmem:[%s1990_s1 + $0x1ac] ss:$16 sps:$4 sm:$0xff]  }
  0x31   :  { %892 = vmatprep.subr.bf16.mxu1 %v1340_v55  ;;  %v1425_v55 = vld [vmem:[%s1990_s1 + $0x3a8] ss:$16 sps:$4 sm:$0xff]  }
  0x33   :  { %850 = vmatpush2.bf16.msra.mxu0 %v1342_v56  ;;  %v1430_v56 = vld [vmem:[%s1990_s1 + $0x18c] ss:$16 sps:$4 sm:$0xff]  }
  0x34   :  { %893 = vmatpush2.bf16.msra.mxu1 %v1343_v57  ;;  %851 = vmatprep.subr.bf16.mxu0 %v1344_v58  ;;  %v1433_v57 = vld [vmem:[%s1990_s1 + $0x38c] ss:$16 sps:$4 sm:$0xff]   ;;  %v1428_v58 = vld [vmem:[%s1990_s1 + $0x188] ss:$16 sps:$4 sm:$0xff]  }
  0x35   :  { %894 = vmatprep.subr.bf16.mxu1 %v1346_v59  ;;  %v1431_v59 = vld [vmem:[%s1990_s1 + $0x388] ss:$16 sps:$4 sm:$0xff]  }
  0x37   :  { %852 = vmatpush2.bf16.msra.mxu0 %v1348_v60  ;;  %v1436_v60 = vld [vmem:[%s1990_s1 + $0x16c] ss:$16 sps:$4 sm:$0xff]  }
  0x38   :  { %895 = vmatpush2.bf16.msra.mxu1 %v1349_v61  ;;  %853 = vmatprep.subr.bf16.mxu0 %v1350_v62  ;;  %v1439_v61 = vld [vmem:[%s1990_s1 + $0x36c] ss:$16 sps:$4 sm:$0xff]   ;;  %v1434_v62 = vld [vmem:[%s1990_s1 + $0x168] ss:$16 sps:$4 sm:$0xff]  }
  0x39   :  { %896 = vmatprep.subr.bf16.mxu1 %v1352_v63  ;;  %v1437_v63 = vld [vmem:[%s1990_s1 + $0x368] ss:$16 sps:$4 sm:$0xff]  }
  0x3b   :  { %854 = vmatpush2.bf16.msra.mxu0 %v1354_v0  ;;  %v1442_v0 = vld [vmem:[%s1990_s1 + $0x14c] ss:$16 sps:$4 sm:$0xff]  }
  0x3c   :  { %897 = vmatpush2.bf16.msra.mxu1 %v1355_v1  ;;  %855 = vmatprep.subr.bf16.mxu0 %v1356_v2  ;;  %v1445_v1 = vld [vmem:[%s1990_s1 + $0x34c] ss:$16 sps:$4 sm:$0xff]   ;;  %v1440_v2 = vld [vmem:[%s1990_s1 + $0x148] ss:$16 sps:$4 sm:$0xff]  }
  0x3d   :  { %898 = vmatprep.subr.bf16.mxu1 %v1358_v3  ;;  %v1443_v3 = vld [vmem:[%s1990_s1 + $0x348] ss:$16 sps:$4 sm:$0xff]  }
  0x3f   :  { %856 = vmatpush2.bf16.msra.mxu0 %v1360_v4  ;;  %v1448_v4 = vld [vmem:[%s1990_s1 + $0x12c] ss:$16 sps:$4 sm:$0xff]  }
  0x40   :  { %899 = vmatpush2.bf16.msra.mxu1 %v1361_v5  ;;  %911 = vmatprep.subr.bf16.mxu0 %v1364_v10  ;;  %v1451_v5 = vld [vmem:[%s1990_s1 + $0x32c] ss:$16 sps:$4 sm:$0xff]   ;;  %v1452_v10 = vld [vmem:[%s1990_s1 + $0x108] ss:$16 sps:$4 sm:$0xff]  }
  0x41   :  { %954 = vmatprep.subr.bf16.mxu1 %v1367_v11  ;;  %v1455_v11 = vld [vmem:[%s1990_s1 + $0x308] ss:$16 sps:$4 sm:$0xff]  }
  0x42   :  { %858 = vmatmul.mubr.bf16.vlgmr.msra.gmra.mxu0 %v1719_v12 }
  0x43   :  { %901 = vmatmul.mubr.bf16.vlgmr.msra.gmra.mxu1 %v1721_v13  ;;  %912 = vmatpush1.bf16.msra.mxu0 %v1362_v14  ;;  %v165_v14 = vlaneseq }
  0x44   :  { %955 = vmatpush1.bf16.msra.mxu1 %v1365_v15  ;;  %913 = vmatprep.subr.bf16.mxu0 %v1370_v16 }
  0x45   :  { %956 = vmatprep.subr.bf16.mxu1 %v1373_v17  ;;  %943 = vmatprep.mubr.bf16.mxu0 %v32_v53  ;;  %v1427_v53 = vld [vmem:[%s1990_s1 + $0x3ac] ss:$16 sps:$4 sm:$0xff]   ;;  %v166_v15 = vshrl.u32 %v165_v14, 7 }
  0x46   :  { %986 = vmatprep.mubr.bf16.mxu1 %v34_v54  ;;  %v1422_v54 = vld [vmem:[%s1990_s1 + $0x1a8] ss:$16 sps:$4 sm:$0xff]  }
  0x47   :  { %914 = vmatpush1.bf16.msra.mxu0 %v1368_v18  ;;  %v1913_v17 = vsub.s32 0, %v166_v15  ;;  %v1915_v18 = vsub.s32 1, %v166_v15 }
  0x48   :  { %957 = vmatpush1.bf16.msra.mxu1 %v1371_v19  ;;  %915 = vmatprep.subr.bf16.mxu0 %v1376_v20  ;;  %v163_v19 = vld [vmem:[%s1992_s2] sm:$0xf] }
  0x49   :  { %958 = vmatprep.subr.bf16.mxu1 %v1379_v21 }
  0x4b   :  { %916 = vmatpush1.bf16.msra.mxu0 %v1374_v22  ;;  %v168_v22 = vrot.slane %v163_v19, %v1913_v17 }
  0x4c   :  { %959 = vmatpush1.bf16.msra.mxu1 %v1377_v23  ;;  %917 = vmatprep.subr.bf16.mxu0 %v1382_v24  ;;  %v172_v23 = vrot.slane %v163_v19, %v1915_v18 }
  0x4d   :  { %960 = vmatprep.subr.bf16.mxu1 %v1385_v25 }
  0x4f   :  { %918 = vmatpush1.bf16.msra.mxu0 %v1380_v26  ;;  %v1922_v26 = vsub.s32 2, %v166_v15 }
  0x50   :  { %961 = vmatpush1.bf16.msra.mxu1 %v1383_v27  ;;  %919 = vmatprep.subr.bf16.mxu0 %v1388_v28 }
  0x51   :  { %962 = vmatprep.subr.bf16.mxu1 %v1391_v29  ;;  %v1924_v29 = vsub.s32 3, %v166_v15 }
  0x53   :  { %920 = vmatpush1.bf16.msra.mxu0 %v1386_v30 }
  0x54   :  { %963 = vmatpush1.bf16.msra.mxu1 %v1389_v31  ;;  %921 = vmatprep.subr.bf16.mxu0 %v1394_v32  ;;  %v997_v32 = vld [vmem:[%s1993_s3] sm:$0xff] }
  0x55   :  { %964 = vmatprep.subr.bf16.mxu1 %v1397_v33  ;;  %v998_v33 = vld [vmem:[%s1993_s3 + $0x8] sm:$0xff] }
  0x57   :  { %922 = vmatpush1.bf16.msra.mxu0 %v1392_v34 }
  0x58   :  { %965 = vmatpush1.bf16.msra.mxu1 %v1395_v35  ;;  %923 = vmatprep.subr.bf16.mxu0 %v1400_v36  ;;  %v176_v35 = vrot.slane %v163_v19, %v1922_v26 }
  0x59   :  { %966 = vmatprep.subr.bf16.mxu1 %v1403_v37 }
  0x5b   :  { %924 = vmatpush1.bf16.msra.mxu0 %v1398_v38  ;;  %v180_v38 = vrot.slane %v163_v19, %v1924_v29 }
  0x5c   :  { %967 = vmatpush1.bf16.msra.mxu1 %v1401_v39  ;;  %925 = vmatprep.subr.bf16.mxu0 %v1406_v40 }
  0x5d   :  { %968 = vmatprep.subr.bf16.mxu1 %v1409_v41 }
  0x5f   :  { %926 = vmatpush1.bf16.msra.mxu0 %v1404_v42 }
  0x60   :  { %969 = vmatpush1.bf16.msra.mxu1 %v1407_v43  ;;  %927 = vmatprep.subr.bf16.mxu0 %v1412_v44 }
  0x61   :  { %970 = vmatprep.subr.bf16.mxu1 %v1415_v45 }
  0x63   :  { %928 = vmatpush2.bf16.msra.mxu0 %v1410_v46  ;;  %v1002_v46 = vld [vmem:[%s1993_s3 + $0x28] sm:$0xff] }
  0x64   :  { %971 = vmatpush2.bf16.msra.mxu1 %v1413_v47  ;;  %929 = vmatprep.subr.bf16.mxu0 %v1418_v48  ;;  %v999_v47 = vld [vmem:[%s1993_s3 + $0x10] sm:$0xff] }
  0x65   :  { %972 = vmatprep.subr.bf16.mxu1 %v1421_v49 }
  0x67   :  { %930 = vmatpush2.bf16.msra.mxu0 %v1416_v50  ;;  %v1001_v50 = vld [vmem:[%s1993_s3 + $0x20] sm:$0xff] }
  0x68   :  { %973 = vmatpush2.bf16.msra.mxu1 %v1419_v51  ;;  %931 = vmatprep.subr.bf16.mxu0 %v1424_v52 }
  0x69   :  { %974 = vmatprep.subr.bf16.mxu1 %v1427_v53 }
  0x6b   :  { %932 = vmatpush2.bf16.msra.mxu0 %v1422_v54 }
  0x6c   :  { %975 = vmatpush2.bf16.msra.mxu1 %v1425_v55  ;;  %933 = vmatprep.subr.bf16.mxu0 %v1430_v56  ;;  %v1000_v55 = vld [vmem:[%s1993_s3 + $0x18] sm:$0xff] }
  0x6d   :  { %976 = vmatprep.subr.bf16.mxu1 %v1433_v57 }
  0x6f   :  { %934 = vmatpush2.bf16.msra.mxu0 %v1428_v58 }
  0x70   :  { %977 = vmatpush2.bf16.msra.mxu1 %v1431_v59  ;;  %935 = vmatprep.subr.bf16.mxu0 %v1436_v60 }
  0x71   :  { %978 = vmatprep.subr.bf16.mxu1 %v1439_v61 }
  0x73   :  { %936 = vmatpush2.bf16.msra.mxu0 %v1434_v62  ;;  %v1003_v62 = vld [vmem:[%s1993_s3 + $0x30] sm:$0xff] }
  0x74   :  { %979 = vmatpush2.bf16.msra.mxu1 %v1437_v63  ;;  %937 = vmatprep.subr.bf16.mxu0 %v1442_v0 }
  0x75   :  { %980 = vmatprep.subr.bf16.mxu1 %v1445_v1 }
  0x77   :  { %938 = vmatpush2.bf16.msra.mxu0 %v1440_v2 }
  0x78   :  { %981 = vmatpush2.bf16.msra.mxu1 %v1443_v3  ;;  %939 = vmatprep.subr.bf16.mxu0 %v1448_v4 }
  0x79   :  { %982 = vmatprep.subr.bf16.mxu1 %v1451_v5  ;;  %v1004_v5 = vld [vmem:[%s1993_s3 + $0x38] sm:$0xff] }
  0x7b   :  { %940 = vmatpush2.bf16.msra.mxu0 %v1446_v6 }
  0x7c   :  { %983 = vmatpush2.bf16.msra.mxu1 %v1449_v7  ;;  %941 = vmatprep.subr.bf16.mxu0 %v1454_v8 }
  0x7d   :  { %984 = vmatprep.subr.bf16.mxu1 %v1457_v9 }
  0x7f   :  { %942 = vmatpush2.bf16.msra.mxu0 %v1452_v10 }
  0x80   :  { %985 = vmatpush2.bf16.msra.mxu1 %v1455_v11 }
  0x82   :  { %944 = vmatmul.mubr.bf16.vlgmr.msra.gmra.mxu0 %v1719_v12 }
  0x83   :  { %987 = vmatmul.mubr.bf16.vlgmr.msra.gmra.mxu1 %v1721_v13 }
 0x102   :  { %v859_v16 = vpop.f32.mrf.mxu0 }
 0x103   :  { %v902_v20 = vpop.f32.mrf.mxu1  ;;  %v860_v13 = vadd.f32 %v859_v16, %v168_v22 }
 0x104   :  { %v861_v21 = vpop.f32.mrf.mxu0 }
 0x105   :  { %v904_v12 = vpop.f32.mrf.mxu1  ;;  %v862_v25 = vadd.f32 %v861_v21, %v172_v23  ;;  %v903_v30 = vadd.f32 %v902_v20, %v860_v13 }
 0x106   :  { %v863_v24 = vpop.f32.mrf.mxu0 }
 0x107   :  { %v906_v27 = vpop.f32.mrf.mxu1  ;;  %v905_v31 = vadd.f32 %v904_v12, %v862_v25  ;;  %v864_v36 = vadd.f32 %v863_v24, %v168_v22  ;;  %v1005_v39 = vadd.f32 %v997_v32, %v903_v30 }
 0x108   :  { %v865_v28 = vpop.f32.mrf.mxu0 }
 0x109   :  { %v866_v34 = vadd.f32 %v865_v28, %v172_v23  ;;  %v908_v37 = vpop.f32.mrf.mxu1  ;;  %v1006_v40 = vadd.f32 %v998_v33, %v905_v31  ;;  %v907_v45 = vadd.f32 %v906_v27, %v864_v36 }
 0x10b   :  { %v909_v43 = vadd.f32 %v908_v37, %v866_v34  ;;  %v1015_v56 = vadd.f32 %v1006_v40, %v1005_v39  ;;  %v1009_v61 = vadd.f32 %v1001_v50, %v907_v45  ;;  %v1014_v50 = vld [vmem:[%s1995_s5] sm:$0xf] }
 0x10d   :  { %v1010_v57 = vadd.f32 %v1002_v46, %v909_v43 }
 0x10f   :  { %v1020_v6 = vadd.f32 %v1010_v57, %v1009_v61 }
 0x142   :  { %v945_v41 = vpop.f32.mrf.mxu0 }
 0x143   :  { %v988_v42 = vpop.f32.mrf.mxu1  ;;  %v946_v44 = vadd.f32 %v945_v41, %v176_v35 }
 0x144   :  { %v947_v48 = vpop.f32.mrf.mxu0 }
 0x145   :  { %v990_v49 = vpop.f32.mrf.mxu1  ;;  %v989_v51 = vadd.f32 %v988_v42, %v946_v44  ;;  %v948_v52 = vadd.f32 %v947_v48, %v180_v38 }
 0x146   :  { %v949_v53 = vpop.f32.mrf.mxu0 }
 0x147   :  { %v992_v54 = vpop.f32.mrf.mxu1  ;;  %v1007_v58 = vadd.f32 %v999_v47, %v989_v51  ;;  %v991_v59 = vadd.f32 %v990_v49, %v948_v52  ;;  %v950_v60 = vadd.f32 %v949_v53, %v176_v35  ;;  %v1013_v49 = vld [vmem:[%s1994_s4] sm:$0xf] }
 0x148   :  { %v951_v63 = vpop.f32.mrf.mxu0  ;;  %v1072_v51 = vrot.slane %v1013_v49, %v1913_v17  ;;  %v1076_v52 = vrot.slane %v1013_v49, %v1915_v18  ;;  %v1080_v53 = vrot.slane %v1013_v49, %v1922_v26 }
 0x149   :  { %v993_v0 = vadd.f32 %v992_v54, %v950_v60  ;;  %v952_v1 = vadd.f32 %v951_v63, %v180_v38  ;;  %v1008_v2 = vadd.f32 %v1000_v55, %v991_v59  ;;  %v1016_v3 = vadd.f32 %v1015_v56, %v1007_v58  ;;  %v994_v4 = vpop.f32.mrf.mxu1 }
 0x14a   :  { %v1084_v54 = vrot.slane %v1013_v49, %v1924_v29  ;;  %v1101_v56 = vrot.slane %v1014_v50, %v1913_v17  ;;  %v1113_v59 = vrot.slane %v1014_v50, %v1924_v29 }
 0x14b   :  { %v1011_v7 = vadd.f32 %v1003_v62, %v993_v0  ;;  %v995_v8 = vadd.f32 %v994_v4, %v952_v1  ;;  %v1017_v9 = vadd.f32 %v1016_v3, %v1008_v2 }
 0x14d   :  { %v1012_v10 = vadd.f32 %v1004_v5, %v995_v8  ;;  %1018 = vadd.xlane.f32.xlu0 %v1017_v9  ;;  %v1021_v11 = vadd.f32 %v1020_v6, %v1011_v7 }
 0x14f   :  { %v1022_v14 = vadd.f32 %v1021_v11, %v1012_v10 }
 0x151   :  { %1023 = vadd.xlane.f32.xlu0 %v1022_v14 }
 0x1d6   :  { %v1019_v15 = vpop.xlane.xlu0 %1018 }
 0x1d7   :  { %v1026_v16 = vmul.f32 0.001953125, %v1019_v15 }
 0x1d9   :  { %v1028_v19 = vsub.f32 %v1005_v39, %v1026_v16  ;;  %v1029_v20 = vsub.f32 %v1006_v40, %v1026_v16  ;;  %v1030_v21 = vsub.f32 %v1007_v58, %v1026_v16  ;;  %v1031_v23 = vsub.f32 %v1008_v2, %v1026_v16 }
 0x1da   :  { %v1024_v22 = vpop.xlane.xlu0 %1023  ;;  %v1109_v58 = vrot.slane %v1014_v50, %v1922_v26 }
 0x1db   :  { %v1027_v12 = vmul.f32 0.001953125, %v1024_v22  ;;  %v1036_v24 = vmul.f32 %v1028_v19, %v1028_v19  ;;  %v1037_v13 = vmul.f32 %v1029_v20, %v1029_v20  ;;  %v1038_v25 = vmul.f32 %v1030_v21, %v1030_v21 }
 0x1dc   :  { %v1039_v32 = vmul.f32 %v1031_v23, %v1031_v23 }
 0x1dd   :  { %v1032_v27 = vsub.f32 %v1009_v61, %v1027_v12  ;;  %v1033_v28 = vsub.f32 %v1010_v57, %v1027_v12  ;;  %v1044_v30 = vadd.f32 %v1037_v13, %v1036_v24  ;;  %v1034_v31 = vsub.f32 %v1011_v7, %v1027_v12 }
 0x1de   :  { %v1035_v34 = vsub.f32 %v1012_v10, %v1027_v12  ;;  %v1105_v57 = vrot.slane %v1014_v50, %v1915_v18 }
 0x1df   :  { %v1045_v33 = vadd.f32 %v1044_v30, %v1038_v25  ;;  %v1040_v35 = vmul.f32 %v1032_v27, %v1032_v27  ;;  %v1041_v36 = vmul.f32 %v1033_v28, %v1033_v28  ;;  %v1042_v38 = vmul.f32 %v1034_v31, %v1034_v31 }
 0x1e0   :  { %v1043_v40 = vmul.f32 %v1035_v34, %v1035_v34 }
 0x1e1   :  { %v1046_v37 = vadd.f32 %v1045_v33, %v1039_v32  ;;  %v1049_v39 = vadd.f32 %v1041_v36, %v1040_v35 }
 0x1e3   :  { %1047 = vadd.xlane.f32.xlu1 %v1046_v37  ;;  %v1050_v41 = vadd.f32 %v1049_v39, %v1042_v38 }
 0x1e5   :  { %v1051_v42 = vadd.f32 %v1050_v41, %v1043_v40 }
 0x1e7   :  { %1052 = vadd.xlane.f32.xlu1 %v1051_v42 }
 0x26c   :  { %v1048_v43 = vpop.xlane.xlu1 %1047 }
 0x26d   :  { %v1054_v44 = vmul.f32 0.001953125, %v1048_v43 }
 0x26f   :  { %v1056_v45 = vadd.f32 1e-05, %v1054_v44 }
 0x270   :  { %v1053_v46 = vpop.xlane.xlu1 %1052 }
 0x271   :  { %1458 = vrsqrt.f32 %v1056_v45  ;;  %v1055_v47 = vmul.f32 0.001953125, %v1053_v46 }
 0x273   :  { %v1057_v48 = vadd.f32 1e-05, %v1055_v47 }
 0x275   :  { %1460 = vrsqrt.f32 %v1057_v48 }
 0x27e   :  { %v1459_v55 = vpop.eup %1458 }
 0x27f   :  { %v1060_v60 = vmul.f32 %v1459_v55, %v1028_v19  ;;  %v1061_v61 = vmul.f32 %v1459_v55, %v1029_v20  ;;  %v1062_v62 = vmul.f32 %v1459_v55, %v1030_v21  ;;  %v1063_v63 = vmul.f32 %v1459_v55, %v1031_v23 }
 0x281   :  { %v1089_v0 = vmul.f32 %v1072_v51, %v1060_v60  ;;  %v1090_v1 = vmul.f32 %v1076_v52, %v1061_v61  ;;  %v1091_v2 = vmul.f32 %v1080_v53, %v1062_v62  ;;  %v1092_v3 = vmul.f32 %v1084_v54, %v1063_v63 }
 0x282   :  { %v1461_v4 = vpop.eup %1460 }
 0x283   :  { %v1118_v5 = vadd.f32 %v1101_v56, %v1089_v0  ;;  %v1119_v6 = vadd.f32 %v1105_v57, %v1090_v1  ;;  %v1120_v7 = vadd.f32 %v1109_v58, %v1091_v2  ;;  %v1121_v8 = vadd.f32 %v1113_v59, %v1092_v3 }
 0x284   :  { %v1064_v17 = vmul.f32 %v1461_v4, %v1032_v27  ;;  %v1065_v9 = vmul.f32 %v1461_v4, %v1033_v28  ;;  %v1066_v18 = vmul.f32 %v1461_v4, %v1034_v31  ;;  %v1067_v10 = vmul.f32 %v1461_v4, %v1035_v34 }
 0x285   :  { %1126 = vst [vmem:[%s1996_s6] sm:$0xff] %v1118_v5  ;;  %1127 = vst [vmem:[%s1996_s6 + $0x8] sm:$0xff] %v1119_v6 }
 0x286   :  { %1128 = vst [vmem:[%s1996_s6 + $0x10] sm:$0xff] %v1120_v7  ;;  %1129 = vst [vmem:[%s1996_s6 + $0x18] sm:$0xff] %v1121_v8  ;;  %v1093_v26 = vmul.f32 %v1072_v51, %v1064_v17  ;;  %v1094_v29 = vmul.f32 %v1076_v52, %v1065_v9  ;;  %v1095_v11 = vmul.f32 %v1080_v53, %v1066_v18 }
 0x287   :  { %v1096_v14 = vmul.f32 %v1084_v54, %v1067_v10 }
 0x288   :  { %v1122_v15 = vadd.f32 %v1101_v56, %v1093_v26  ;;  %v1123_v16 = vadd.f32 %v1105_v57, %v1094_v29  ;;  %v1124_v19 = vadd.f32 %v1109_v58, %v1095_v11 }
 0x289   :  { %v1125_v20 = vadd.f32 %v1113_v59, %v1096_v14 }
 0x28a   :  { %1130 = vst [vmem:[%s1996_s6 + $0x20] sm:$0xff] %v1122_v15  ;;  %1131 = vst [vmem:[%s1996_s6 + $0x28] sm:$0xff] %v1123_v16 }
 0x28b   :  { %1132 = vst [vmem:[%s1996_s6 + $0x30] sm:$0xff] %v1124_v19  ;;  %1133 = vst [vmem:[%s1996_s6 + $0x38] sm:$0xff] %v1125_v20 }

// kernel: mt_forward.85
= control target key start
LH: loop header
LB: loop body
LE: loop exit
PB: predicated region body
PF: predicated region fallthrough
CT: control target
= control target key end

     0   :  { %s1521_s15 = smov 0   ;;  %s1739_s0 = inlined_call_operand.vmem [shape: f32[2,8,8,64], index: 0, kind: input, shape index: {}]   ;;  %s1740_s1 = inlined_call_operand.vmem [shape: f32[2,8,8,64], index: 1, kind: input, shape index: {}]   ;;  %s1741_s2 = inlined_call_operand.vmem [shape: f32[2,8,8,64], index: 2, kind: input, shape index: {}]   ;;  %s1742_s3 = inlined_call_operand.vmem [shape: f32[2,1,8], index: 3, kind: input, shape index: {}]   ;;  %s1743_s4 = inlined_call_operand.vmem [shape: f32[2,8,512], index: 4, kind: output, shape index: {}]  }
   0x1 LB: > { %s1278_s16 = sadd.s32 4294967295, %s1491_s15   ;;  %p1282_p0 = scmp.ge.s32.totalorder %s1491_s15, 1  ;;  %s1491_s15 = sphi %s1521_s15, %s14_s15  }
   0x2   : > { %p190_p1 = scmp.lt.s32.totalorder %s1491_s15, 3 }
   0x4   : > { %p191_p2 = pnand %p1282_p0, %p190_p1 }
   0x5   : > { %p229_p3 = scmp.lt.s32.totalorder (!%p191_p2), %s1278_s16, 1  ;;  %s1495_s30 = smov (!%p191_p2), 64  }
   0x6   : > { %194 = sbr.rel (%p191_p2) target bundleno = 869 (0x365), region = 36 }
   0xb   : > { %v1493_v0 = vmov 0.0   ;;  %s1747_s16 = smov (!%p229_p3, %s1278_s16), 1  ;;  %vm1494_vm0 = vmmov 0   ;;  %vm316_vm1 = vcmask 523264   ;;  %v685_v49 = vlaneseq }
   0xc   : > { %1346 = vmatprep.subr.bf16.mxu0 %v1493_v0  ;;  %1352 = vmatprep.subr.bf16.mxu1 %v1493_v0  ;;  %s1538_s17 = sshll.u32 %s1747_s16, 6  ;;  %s246_s26 = scalar_lea.vmem %s1742_s3, %s1747_s16  ;;  %vm700_vm3 = vcmask 64512   ;;  %vm800_vm4 = vcmask 1043456  }
   0xd   : > { %1348 = vmatprep.mubr.msk.bf16.mxu0 %vm1494_vm0, %v1493_v0  ;;  %1354 = vmatprep.mubr.msk.bf16.mxu1 %vm1494_vm0, %v1493_v0  ;;  %s1544_s20 = scalar_lea.vmem %s1739_s0, %s1538_s17  ;;  %s1550_s23 = scalar_lea.vmem %s1740_s1, %s1538_s17  ;;  %v686_v50 = vshrl.u32 %v685_v49, 7  ;;  %v688_v51 = vand.u32 127, %v685_v49  ;;  %v1291_v52 = vld [vmem:[%s246_s26] ss:$0 sm:$0xff] }
   0xe   : > { %v277_v1 = vld [vmem:[%s1550_s23] sm:$0xff]  ;;  %v278_v2 = vld [vmem:[%s1550_s23 + $0x8] sm:$0xff]  ;;  %v279_v7 = vld [vmem:[%s1550_s23 + $0x10] sm:$0xff]  ;;  %s1658_s29 = scalar_lea.vmem %s1741_s2, %s1538_s17  ;;  %s1313_s5 = sshll.u32 %s1747_s16, 5 }
   0xf   : > { %v253_v3 = vld [vmem:[%s1544_s20] sm:$0xff]  ;;  %v285_v4 = vpack.c.bf16 %v277_v1, %v277_v1  ;;  %v286_v5 = vpack.c.bf16 %v278_v2, %v278_v2  ;;  %v254_v6 = vld [vmem:[%s1544_s20 + $0x8] sm:$0xff]  ;;  %v280_v8 = vld [vmem:[%s1550_s23 + $0x18] sm:$0xff]  ;;  %v287_v13 = vpack.c.bf16 %v279_v7, %v279_v7  ;;  %vm1612_vm2 = vcmp.gt.s32.totalorder %v688_v51, %v686_v50  ;;  %s251_s8 = scalar_lea.vmem %s1743_s4, %s1313_s5 }
  0x10   : > { %v261_v11 = vmul.f32 0.125, %v253_v3  ;;  %v262_v12 = vmul.f32 0.125, %v254_v6  ;;  %v288_v14 = vpack.c.bf16 %v280_v8, %v280_v8  ;;  %v255_v17 = vld [vmem:[%s1544_s20 + $0x10] sm:$0xff]  ;;  %v256_v18 = vld [vmem:[%s1544_s20 + $0x18] sm:$0xff]  ;;  %v281_v21 = vld [vmem:[%s1550_s23 + $0x20] sm:$0xff] }
  0x11   : > { %v321_v9 = vsel %vm316_vm1, %v285_v4, 0  ;;  %v367_v10 = vsel %vm316_vm1, %v286_v5, 0  ;;  %v413_v19 = vsel %vm316_vm1, %v287_v13, 0  ;;  %v282_v22 = vld [vmem:[%s1550_s23 + $0x28] sm:$0xff]  ;;  %v263_v23 = vmul.f32 0.125, %v255_v17  ;;  %v257_v29 = vld [vmem:[%s1544_s20 + $0x20] sm:$0xff] }
  0x12   : > { %1347 = vmatpush3.bf16.xpose.msra.mxu0 %v321_v9  ;;  %1353 = vmatpush3.bf16.xpose.msra.mxu1 %v367_v10  ;;  %v269_v15 = vpack.c.bf16 %v261_v11, %v261_v11  ;;  %v270_v16 = vpack.c.bf16 %v262_v12, %v262_v12  ;;  %v459_v20 = vsel %vm316_vm1, %v288_v14, 0  ;;  %v264_v24 = vmul.f32 0.125, %v256_v18  ;;  %v258_v30 = vld [vmem:[%s1544_s20 + $0x28] sm:$0xff]  ;;  %v284_v33 = vld [vmem:[%s1550_s23 + $0x38] sm:$0xff]  ;;  %v283_v36 = vld [vmem:[%s1550_s23 + $0x30] sm:$0xff] }
  0x13   : > { %1358 = vmatprep.subr.bf16.mxu0 %v1493_v0  ;;  %1364 = vmatprep.subr.bf16.mxu1 %v1493_v0  ;;  %v289_v25 = vpack.c.bf16 %v281_v21, %v281_v21  ;;  %v290_v26 = vpack.c.bf16 %v282_v22, %v282_v22  ;;  %v271_v27 = vpack.c.bf16 %v263_v23, %v263_v23  ;;  %v265_v34 = vmul.f32 0.125, %v257_v29  ;;  %v260_v41 = vld [vmem:[%s1544_s20 + $0x38] sm:$0xff]  ;;  %v259_v43 = vld [vmem:[%s1544_s20 + $0x30] sm:$0xff] }
  0x14   : > { %v272_v28 = vpack.c.bf16 %v264_v24, %v264_v24  ;;  %v266_v35 = vmul.f32 0.125, %v258_v30  ;;  %v292_v37 = vpack.c.bf16 %v284_v33, %v284_v33  ;;  %v291_v38 = vpack.c.bf16 %v283_v36, %v283_v36 }
  0x15   : > { %v505_v31 = vsel %vm316_vm1, %v289_v25, 0  ;;  %v551_v32 = vsel %vm316_vm1, %v290_v26, 0  ;;  %v273_v39 = vpack.c.bf16 %v265_v34, %v265_v34  ;;  %v268_v45 = vmul.f32 0.125, %v260_v41 }
  0x16   : > { %v274_v40 = vpack.c.bf16 %v266_v35, %v266_v35  ;;  %v643_v42 = vsel %vm316_vm1, %v292_v37, 0  ;;  %v597_v44 = vsel %vm316_vm1, %v291_v38, 0  ;;  %v267_v46 = vmul.f32 0.125, %v259_v43 }
  0x17   : > { %v276_v47 = vpack.c.bf16 %v268_v45, %v268_v45 }
  0x18   : > { %v275_v48 = vpack.c.bf16 %v267_v46, %v267_v46 }
  0x19   : > { %1349 = vmatmul.mubr.msk.bf16.vlgmr.msra.gmra.mxu0 %vm316_vm1, %v269_v15  ;;  %1355 = vmatmul.mubr.msk.bf16.vlgmr.msra.gmra.mxu1 %vm316_vm1, %v270_v16 }
  0x1a   : > { %1359 = vmatpush3.bf16.xpose.msra.mxu0 %v413_v19  ;;  %1365 = vmatpush3.bf16.xpose.msra.mxu1 %v459_v20 }
  0x1b   : > { %1360 = vmatprep.mubr.msk.bf16.mxu0 %vm1494_vm0, %v1493_v0  ;;  %1366 = vmatprep.mubr.msk.bf16.mxu1 %vm1494_vm0, %v1493_v0 }
  0x1c   : > { %1370 = vmatprep.subr.bf16.mxu0 %v1493_v0  ;;  %1376 = vmatprep.subr.bf16.mxu1 %v1493_v0 }
  0x21   : > { %1361 = vmatmul.mubr.msk.bf16.vlgmr.msra.gmra.mxu0 %vm316_vm1, %v271_v27  ;;  %1367 = vmatmul.mubr.msk.bf16.vlgmr.msra.gmra.mxu1 %vm316_vm1, %v272_v28 }
  0x22   : > { %1371 = vmatpush3.bf16.xpose.msra.mxu0 %v505_v31  ;;  %1377 = vmatpush3.bf16.xpose.msra.mxu1 %v551_v32 }
  0x23   : > { %1372 = vmatprep.mubr.msk.bf16.mxu0 %vm1494_vm0, %v1493_v0  ;;  %1378 = vmatprep.mubr.msk.bf16.mxu1 %vm1494_vm0, %v1493_v0 }
  0x24   : > { %1388 = vmatprep.subr.bf16.mxu1 %v1493_v0  ;;  %1382 = vmatprep.subr.bf16.mxu0 %v1493_v0 }
  0x29   : > { %1373 = vmatmul.mubr.msk.bf16.vlgmr.msra.gmra.mxu0 %vm316_vm1, %v273_v39  ;;  %1379 = vmatmul.mubr.msk.bf16.vlgmr.msra.gmra.mxu1 %vm316_vm1, %v274_v40 }
  0x2a   : > { %1389 = vmatpush3.bf16.xpose.msra.mxu1 %v643_v42  ;;  %1390 = vmatprep.mubr.msk.bf16.mxu1 %vm1494_vm0, %v1493_v0 }
  0x2b   : > { %1383 = vmatpush3.bf16.xpose.msra.mxu0 %v597_v44  ;;  %1384 = vmatprep.mubr.msk.bf16.mxu0 %vm1494_vm0, %v1493_v0 }
  0x2c   : > { %1400 = vmatprep.subr.bf16.mxu1 %v1493_v0  ;;  %1394 = vmatprep.subr.bf16.mxu0 %v1493_v0 }
  0x31   : > { %1391 = vmatmul.mubr.msk.bf16.vlgmr.msra.gmra.mxu1 %vm316_vm1, %v276_v47 }
  0x32   : > { %1385 = vmatmul.mubr.msk.bf16.vlgmr.msra.gmra.mxu0 %vm316_vm1, %v275_v48  ;;  %1402 = vmatprep.mubr.msk.bf16.mxu1 %vm1494_vm0, %v1493_v0 }
  0x33   : > { %1396 = vmatprep.mubr.msk.bf16.mxu0 %vm1494_vm0, %v1493_v0 }
  0xd9   : > { %v357_v53 = vpop.f32.mrf.mxu0  ;;  %v403_v54 = vpop.f32.mrf.mxu1 }
  0xda   : > { %v404_v56 = vadd.f32 %v1291_v52, %v403_v54  ;;  %v358_v2 = vadd.f32 %v1291_v52, %v357_v53 }
  0xdb   : > { %v1350_v57 = vpop.f32.mrf.mxu0  ;;  %v1356_v58 = vpop.f32.mrf.mxu1 }
  0xdc   : > { %v693_v59 = vsel %vm1612_vm2, -1e+30, %v404_v56  ;;  %v692_v9 = vsel %vm1612_vm2, -1e+30, %v358_v2 }
  0xdd   : > { %v360_v60 = vpop.f32.mrf.mxu0  ;;  %v406_v61 = vpop.f32.mrf.mxu1  ;;  %v704_v62 = vsel %vm700_vm3, %v693_v59, -inf  ;;  %v701_v15 = vsel %vm700_vm3, %v692_v9, -inf }
  0xde   : > { %705 = vmax.xlane.f32.xlu0 %v704_v62 }
  0xdf   : > { %v1351_v63 = vpop.f32.mrf.mxu0  ;;  %v1357_v1 = vpop.f32.mrf.mxu1 }
  0xe1   : > { %v449_v3 = vpop.f32.mrf.mxu0  ;;  %v495_v4 = vpop.f32.mrf.mxu1 }
  0xe2   : > { %v496_v5 = vadd.f32 %v1291_v52, %v495_v4  ;;  %v450_v30 = vadd.f32 %v1291_v52, %v449_v3 }
  0xe3   : > { %v1362_v6 = vpop.f32.mrf.mxu0  ;;  %v1368_v7 = vpop.f32.mrf.mxu1 }
  0xe4   : > { %v695_v8 = vsel %vm1612_vm2, -1e+30, %v496_v5  ;;  %v694_v37 = vsel %vm1612_vm2, -1e+30, %v450_v30  ;;  %v298_v30 = vld [vmem:[%s1658_s29 + $0x28] sm:$0xff] }
  0xe5   : > { %v452_v10 = vpop.f32.mrf.mxu0  ;;  %v498_v11 = vpop.f32.mrf.mxu1  ;;  %v710_v12 = vsel %vm700_vm3, %v695_v8, -inf  ;;  %v707_v43 = vsel %vm700_vm3, %v694_v37, -inf }
  0xe6   : > { %711 = vmax.xlane.f32.xlu0 %v710_v12 }
  0xe7   : > { %v1363_v13 = vpop.f32.mrf.mxu0  ;;  %v1369_v14 = vpop.f32.mrf.mxu1 }
  0xe9   : > { %v541_v16 = vpop.f32.mrf.mxu0  ;;  %v587_v17 = vpop.f32.mrf.mxu1 }
  0xea   : > { %v542_v18 = vadd.f32 %v1291_v52, %v541_v16  ;;  %v588_v19 = vadd.f32 %v1291_v52, %v587_v17  ;;  %702 = vmax.xlane.f32.xlu0 %v701_v15  ;;  %v294_v16 = vld [vmem:[%s1658_s29 + $0x8] sm:$0xff] }
  0xeb   : > { %v1380_v20 = vpop.f32.mrf.mxu1  ;;  %v1374_v21 = vpop.f32.mrf.mxu0 }
  0xec   : > { %v697_v22 = vsel %vm1612_vm2, -1e+30, %v588_v19  ;;  %v696_v23 = vsel %vm1612_vm2, -1e+30, %v542_v18  ;;  %v302_v18 = vpack.c.bf16 %v294_v16, %v294_v16 }
  0xed   : > { %v590_v24 = vpop.f32.mrf.mxu1  ;;  %v716_v25 = vsel %vm700_vm3, %v697_v22, -inf  ;;  %v713_v26 = vsel %vm700_vm3, %v696_v23, -inf  ;;  %v544_v27 = vpop.f32.mrf.mxu0 }
  0xee   : > { %717 = vmax.xlane.f32.xlu1 %v716_v25  ;;  %714 = vmax.xlane.f32.xlu0 %v713_v26  ;;  %v848_v20 = vsel %vm800_vm4, %v302_v18, 0  ;;  %v296_v25 = vld [vmem:[%s1658_s29 + $0x18] sm:$0xff] }
  0xef   : > { %v1381_v28 = vpop.f32.mrf.mxu1  ;;  %v1375_v29 = vpop.f32.mrf.mxu0  ;;  %1401 = vmatpush3.bf16.msra.mxu1 %v848_v20  ;;  %v304_v26 = vpack.c.bf16 %v296_v25, %v296_v25 }
  0xf0   : > { %1412 = vmatprep.subr.bf16.mxu1 %v1493_v0 }
  0xf1   : > { %v679_v31 = vpop.f32.mrf.mxu1  ;;  %v940_v29 = vsel %vm800_vm4, %v304_v26, 0 }
  0xf2   : > { %v680_v32 = vadd.f32 %v1291_v52, %v679_v31  ;;  %v633_v33 = vpop.f32.mrf.mxu0  ;;  %v306_v31 = vpack.c.bf16 %v298_v30, %v298_v30 }
  0xf3   : > { %v1392_v34 = vpop.f32.mrf.mxu1  ;;  %v634_v36 = vadd.f32 %v1291_v52, %v633_v33  ;;  %v293_v33 = vld [vmem:[%s1658_s29] sm:$0xff] }
  0xf4   : > { %v699_v35 = vsel %vm1612_vm2, -1e+30, %v680_v32  ;;  %v1386_v38 = vpop.f32.mrf.mxu0  ;;  %v1032_v32 = vsel %vm800_vm4, %v306_v31, 0  ;;  %v301_v34 = vpack.c.bf16 %v293_v33, %v293_v33 }
  0xf5   : > { %v682_v39 = vpop.f32.mrf.mxu1  ;;  %v722_v40 = vsel %vm700_vm3, %v699_v35, -inf  ;;  %v698_v44 = vsel %vm1612_vm2, -1e+30, %v634_v36 }
  0xf6   : > { %723 = vmax.xlane.f32.xlu1 %v722_v40  ;;  %v636_v41 = vpop.f32.mrf.mxu0  ;;  %v719_v46 = vsel %vm700_vm3, %v698_v44, -inf  ;;  %v802_v36 = vsel %vm800_vm4, %v301_v34, 0  ;;  %v295_v39 = vld [vmem:[%s1658_s29 + $0x10] sm:$0xff] }
  0xf7   : > { %v1393_v42 = vpop.f32.mrf.mxu1  ;;  %1395 = vmatpush3.bf16.msra.mxu0 %v802_v36  ;;  %v303_v40 = vpack.c.bf16 %v295_v39, %v295_v39 }
  0xf8   : > { %v1387_v45 = vpop.f32.mrf.mxu0  ;;  %1406 = vmatprep.subr.bf16.mxu0 %v1493_v0  ;;  %v297_v42 = vld [vmem:[%s1658_s29 + $0x20] sm:$0xff] }
  0xf9   : > { %v894_v41 = vsel %vm800_vm4, %v303_v40, 0  ;;  %v299_v45 = vld [vmem:[%s1658_s29 + $0x30] sm:$0xff] }
  0xfa   : > { %708 = vmax.xlane.f32.xlu1 %v707_v43  ;;  %v305_v43 = vpack.c.bf16 %v297_v42, %v297_v42 }
  0xfe   : > { %720 = vmax.xlane.f32.xlu1 %v719_v46  ;;  %v307_v46 = vpack.c.bf16 %v299_v45, %v299_v45 }
 0x167   : > { %v706_v47 = vpop.xlane.xlu0 %705 }
 0x168   : > { %v726_v48 = vsub.f32 %v693_v59, %v706_v47  ;;  %v1078_v47 = vsel %vm800_vm4, %v307_v46, 0 }
 0x16a   : > { %v735_v49 = vmul.f32 1.442695, %v726_v48 }
 0x16c   : > { %1453 = vpow2.f32 %v735_v49 }
 0x16f   : > { %v712_v50 = vpop.xlane.xlu0 %711 }
 0x170   : > { %v728_v51 = vsub.f32 %v695_v8, %v712_v50 }
 0x172   : > { %v739_v52 = vmul.f32 1.442695, %v728_v51 }
 0x173   : > { %v703_v53 = vpop.xlane.xlu0 %702 }
 0x174   : > { %1455 = vpow2.f32 %v739_v52  ;;  %v725_v54 = vsub.f32 %v692_v9, %v703_v53 }
 0x176   : > { %v733_v60 = vmul.f32 1.442695, %v725_v54 }
 0x177   : > { %v718_v56 = vpop.xlane.xlu1 %717  ;;  %v715_v57 = vpop.xlane.xlu0 %714 }
 0x178   : > { %v730_v58 = vsub.f32 %v697_v22, %v718_v56  ;;  %v729_v62 = vsub.f32 %v696_v23, %v715_v57 }
 0x179   : > { %v1640_v55 = vpop.eup %1453 }
 0x17a   : > { %v743_v61 = vmul.f32 1.442695, %v730_v58  ;;  %v752_v63 = vsel %vm700_vm3, %v1640_v55, 0.0  ;;  %v741_v59 = vmul.f32 1.442695, %v729_v62 }
 0x17b   : > { %753 = vadd.xlane.f32.xlu0 %v752_v63 }
 0x17c   : > { %1457 = vpow2.f32 %v743_v61 }
 0x17d   : > { %1459 = vpow2.f32 %v733_v60 }
 0x17e   : > { %1461 = vpow2.f32 %v741_v59 }
 0x17f   : > { %v724_v1 = vpop.xlane.xlu1 %723 }
 0x180   : > { %v732_v2 = vsub.f32 %v699_v35, %v724_v1  ;;  %v300_v35 = vld [vmem:[%s1658_s29 + $0x38] sm:$0xff] }
 0x181   : > { %v1644_v3 = vpop.eup %1455 }
 0x182   : > { %v747_v4 = vmul.f32 1.442695, %v732_v2  ;;  %v758_v5 = vsel %vm700_vm3, %v1644_v3, 0.0 }
 0x183   : > { %v709_v6 = vpop.xlane.xlu1 %708  ;;  %759 = vadd.xlane.f32.xlu1 %v758_v5 }
 0x184   : > { %1463 = vpow2.f32 %v747_v4  ;;  %v727_v7 = vsub.f32 %v694_v37, %v709_v6  ;;  %v308_v37 = vpack.c.bf16 %v300_v35, %v300_v35 }
 0x186   : > { %v737_v8 = vmul.f32 1.442695, %v727_v7  ;;  %v1124_v38 = vsel %vm800_vm4, %v308_v37, 0 }
 0x187   : > { %v721_v9 = vpop.xlane.xlu1 %720 }
 0x188   : > { %1465 = vpow2.f32 %v737_v8  ;;  %v731_v10 = vsub.f32 %v698_v44, %v721_v9  ;;  %v986_v44 = vsel %vm800_vm4, %v305_v43, 0 }
 0x189   : > { %v1648_v11 = vpop.eup %1457 }
 0x18a   : > { %v745_v12 = vmul.f32 1.442695, %v731_v10  ;;  %v764_v13 = vsel %vm700_vm3, %v1648_v11, 0.0  ;;  %v1652_v14 = vpop.eup %1459 }
 0x18b   : > { %765 = vadd.xlane.f32.xlu0 %v764_v13  ;;  %v749_v15 = vsel %vm700_vm3, %v1652_v14, 0.0  ;;  %v1663_v17 = vpop.eup %1461 }
 0x18c   : > { %1467 = vpow2.f32 %v745_v12  ;;  %v761_v21 = vsel %vm700_vm3, %v1663_v17, 0.0 }
 0x18f   : > { %750 = vadd.xlane.f32.xlu0 %v749_v15 }
 0x191   : > { %v1665_v19 = vpop.eup %1463 }
 0x192   : > { %v770_v22 = vsel %vm700_vm3, %v1665_v19, 0.0 }
 0x193   : > { %762 = vadd.xlane.f32.xlu0 %v761_v21  ;;  %771 = vadd.xlane.f32.xlu1 %v770_v22 }
 0x195   : > { %v1673_v23 = vpop.eup %1465 }
 0x196   : > { %v755_v24 = vsel %vm700_vm3, %v1673_v23, 0.0 }
 0x197   : > { %756 = vadd.xlane.f32.xlu1 %v755_v24 }
 0x199   : > { %v1678_v27 = vpop.eup %1467 }
 0x19a   : > { %v767_v28 = vsel %vm700_vm3, %v1678_v27, 0.0 }
 0x19b   : > { %768 = vadd.xlane.f32.xlu1 %v767_v28 }
 0x204   : > { %v754_v48 = vpop.xlane.xlu0 %753 }
 0x205   : > { %1469 = vrcp.f32 %v754_v48 }
 0x20c   : > { %v760_v49 = vpop.xlane.xlu1 %759 }
 0x20d   : > { %1471 = vrcp.f32 %v760_v49 }
 0x212   : > { %v1470_v50 = vpop.eup %1469 }
 0x213   : > { %v782_v51 = vmul.f32 %v1470_v50, %v1640_v55 }
 0x214   : > { %v766_v52 = vpop.xlane.xlu0 %765 }
 0x215   : > { %1473 = vrcp.f32 %v766_v52  ;;  %v790_v53 = vpack.c.bf16 %v782_v51, %v782_v51 }
 0x217   : > { %1403 = vmatmul.mubr.msk.bf16.vlgmr.msra.gmra.mxu1 %vm700_vm3, %v790_v53 }
 0x218   : > { %1413 = vmatpush3.bf16.msra.mxu1 %v940_v29  ;;  %v751_v54 = vpop.xlane.xlu0 %750  ;;  %1414 = vmatprep.mubr.msk.bf16.mxu1 %vm1494_vm0, %v1493_v0 }
 0x219   : > { %1475 = vrcp.f32 %v751_v54  ;;  %1424 = vmatprep.subr.bf16.mxu1 %v1493_v0 }
 0x21a   : > { %v1472_v56 = vpop.eup %1471 }
 0x21b   : > { %v784_v57 = vmul.f32 %v1472_v56, %v1644_v3 }
 0x21c   : > { %v772_v58 = vpop.xlane.xlu1 %771  ;;  %v763_v62 = vpop.xlane.xlu0 %762 }
 0x21d   : > { %v792_v60 = vpack.c.bf16 %v784_v57, %v784_v57  ;;  %1477 = vrcp.f32 %v772_v58 }
 0x21f   : > { %1415 = vmatmul.mubr.msk.bf16.vlgmr.msra.gmra.mxu1 %vm700_vm3, %v792_v60 }
 0x220   : > { %1425 = vmatpush3.bf16.msra.mxu1 %v1032_v32  ;;  %v757_v55 = vpop.xlane.xlu1 %756  ;;  %1426 = vmatprep.mubr.msk.bf16.mxu1 %vm1494_vm0, %v1493_v0 }
 0x221   : > { %1479 = vrcp.f32 %v757_v55  ;;  %1436 = vmatprep.subr.bf16.mxu1 %v1493_v0 }
 0x222   : > { %v1474_v61 = vpop.eup %1473  ;;  %1481 = vrcp.f32 %v763_v62 }
 0x223   : > { %v786_v63 = vmul.f32 %v1474_v61, %v1648_v11 }
 0x224   : > { %v769_v4 = vpop.xlane.xlu1 %768 }
 0x225   : > { %v794_v59 = vpack.c.bf16 %v786_v63, %v786_v63  ;;  %1483 = vrcp.f32 %v769_v4 }
 0x226   : > { %v1476_v1 = vpop.eup %1475 }
 0x227   : > { %1427 = vmatmul.mubr.msk.bf16.vlgmr.msra.gmra.mxu1 %vm700_vm3, %v794_v59  ;;  %v781_v2 = vmul.f32 %v1476_v1, %v1652_v14 }
 0x228   : > { %1437 = vmatpush3.bf16.msra.mxu1 %v1124_v38  ;;  %1438 = vmatprep.mubr.msk.bf16.mxu1 %vm1494_vm0, %v1493_v0 }
 0x229   : > { %v789_v3 = vpack.c.bf16 %v781_v2, %v781_v2 }
 0x22a   : > { %v1478_v5 = vpop.eup %1477 }
 0x22b   : > { %1397 = vmatmul.mubr.msk.bf16.vlgmr.msra.gmra.mxu0 %vm700_vm3, %v789_v3  ;;  %v788_v6 = vmul.f32 %v1478_v5, %v1665_v19 }
 0x22c   : > { %1407 = vmatpush3.bf16.msra.mxu0 %v894_v41  ;;  %1408 = vmatprep.mubr.msk.bf16.mxu0 %vm1494_vm0, %v1493_v0 }
 0x22d   : > { %1418 = vmatprep.subr.bf16.mxu0 %v1493_v0  ;;  %v796_v8 = vpack.c.bf16 %v788_v6, %v788_v6 }
 0x22e   : > { %v1480_v7 = vpop.eup %1479 }
 0x22f   : > { %v783_v9 = vmul.f32 %v1480_v7, %v1673_v23  ;;  %1439 = vmatmul.mubr.msk.bf16.vlgmr.msra.gmra.mxu1 %vm700_vm3, %v796_v8  ;;  %v1482_v11 = vpop.eup %1481 }
 0x230   : > { %v785_v12 = vmul.f32 %v1482_v11, %v1663_v17 }
 0x231   : > { %v791_v10 = vpack.c.bf16 %v783_v9, %v783_v9 }
 0x232   : > { %v793_v13 = vpack.c.bf16 %v785_v12, %v785_v12  ;;  %v1484_v14 = vpop.eup %1483 }
 0x233   : > { %1409 = vmatmul.mubr.msk.bf16.vlgmr.msra.gmra.mxu0 %vm700_vm3, %v791_v10  ;;  %v787_v15 = vmul.f32 %v1484_v14, %v1678_v27 }
 0x234   : > { %1419 = vmatpush3.bf16.msra.mxu0 %v986_v44  ;;  %1420 = vmatprep.mubr.msk.bf16.mxu0 %vm1494_vm0, %v1493_v0 }
 0x235   : > { %1430 = vmatprep.subr.bf16.mxu0 %v1493_v0  ;;  %v795_v16 = vpack.c.bf16 %v787_v15, %v787_v15 }
 0x23b   : > { %1421 = vmatmul.mubr.msk.bf16.vlgmr.msra.gmra.mxu0 %vm700_vm3, %v793_v13 }
 0x23c   : > { %1431 = vmatpush3.bf16.msra.mxu0 %v1078_v47  ;;  %1432 = vmatprep.mubr.msk.bf16.mxu0 %vm1494_vm0, %v1493_v0 }
 0x243   : > { %1433 = vmatmul.mubr.msk.bf16.vlgmr.msra.gmra.mxu0 %vm700_vm3, %v795_v16 }
 0x2d7   : > { %v884_v18 = vpop.f32.mrf.mxu1 }
 0x2d8   : > { %1167 = vrot.lane.b32.xlu0 %v884_v18, %s1495_s30 }
 0x2d9   : > { %v1404_v19 = vpop.f32.mrf.mxu1 }
 0x2db   : > { %v887_v17 = vpop.f32.mrf.mxu1 }
 0x2dd   : > { %v1405_v20 = vpop.f32.mrf.mxu1 }
 0x2df   : > { %v976_v21 = vpop.f32.mrf.mxu1 }
 0x2e0   : > { %1171 = vrot.lane.b32.xlu1 %v976_v21, %s1495_s30 }
 0x2e1   : > { %v1416_v22 = vpop.f32.mrf.mxu1 }
 0x2e3   : > { %v979_v23 = vpop.f32.mrf.mxu1 }
 0x2e5   : > { %v1417_v24 = vpop.f32.mrf.mxu1 }
 0x2e7   : > { %v1068_v25 = vpop.f32.mrf.mxu1 }
 0x2e8   : > { %1175 = vrot.lane.b32.xlu1 %v1068_v25, %s1495_s30 }
 0x2e9   : > { %v1428_v26 = vpop.f32.mrf.mxu1 }
 0x2eb   : > { %v838_v0 = vpop.f32.mrf.mxu0  ;;  %v1071_v28 = vpop.f32.mrf.mxu1 }
 0x2ed   : > { %v1398_v27 = vpop.f32.mrf.mxu0  ;;  %v1429_v29 = vpop.f32.mrf.mxu1 }
 0x2ef   : > { %v841_v30 = vpop.f32.mrf.mxu0  ;;  %v1160_v31 = vpop.f32.mrf.mxu1 }
 0x2f0   : > { %1179 = vrot.lane.b32.xlu1 %v1160_v31, %s1495_s30 }
 0x2f1   : > { %v1399_v32 = vpop.f32.mrf.mxu0  ;;  %v1440_v33 = vpop.f32.mrf.mxu1 }
 0x2f3   : > { %v930_v34 = vpop.f32.mrf.mxu0  ;;  %v1163_v35 = vpop.f32.mrf.mxu1 }
 0x2f5   : > { %v1410_v36 = vpop.f32.mrf.mxu0  ;;  %v1441_v37 = vpop.f32.mrf.mxu1 }
 0x2f7   : > { %v933_v38 = vpop.f32.mrf.mxu0 }
 0x2f9   : > { %v1411_v39 = vpop.f32.mrf.mxu0 }
 0x2fb   : > { %v1022_v40 = vpop.f32.mrf.mxu0 }
 0x2fd   : > { %v1422_v41 = vpop.f32.mrf.mxu0 }
 0x2ff   : > { %v1025_v42 = vpop.f32.mrf.mxu0 }
 0x301   : > { %v1423_v43 = vpop.f32.mrf.mxu0 }
 0x303   : > { %v1114_v44 = vpop.f32.mrf.mxu0 }
 0x305   : > { %v1434_v45 = vpop.f32.mrf.mxu0 }
 0x307   : > { %v1117_v46 = vpop.f32.mrf.mxu0 }
 0x309   : > { %v1435_v47 = vpop.f32.mrf.mxu0 }
 0x34a   : > { %v1168_v48 = vpop.permute.xlu0 %1167 }
 0x34b   : > { %v1182_v49 = vsel %vm316_vm1, %v838_v0, %v1168_v48 }
 0x34c   : > { %1186 = vst [vmem:[%s251_s8] sm:$0xff] %v1182_v49 }
 0x352   : > { %v1172_v50 = vpop.permute.xlu1 %1171 }
 0x353   : > { %v1183_v51 = vsel %vm316_vm1, %v930_v34, %v1172_v50 }
 0x354   : > { %1187 = vst [vmem:[%s251_s8 + $0x8] sm:$0xff] %v1183_v51 }
 0x35a   : > { %v1176_v52 = vpop.permute.xlu1 %1175 }
 0x35b   : > { %v1184_v53 = vsel %vm316_vm1, %v1022_v40, %v1176_v52 }
 0x35c   : > { %1188 = vst [vmem:[%s251_s8 + $0x10] sm:$0xff] %v1184_v53 }
 0x362   : > { %v1180_v54 = vpop.permute.xlu1 %1179 }
 0x363   : > { %v1185_v56 = vsel %vm316_vm1, %v1114_v44, %v1180_v54 }
 0x364   : > { %1189 = vst [vmem:[%s251_s8 + $0x18] sm:$0xff] %v1185_v56 }
 0x365 PF: > { %s14_s15 = sadd.s32 1, %s1491_s15  }
 0x366   : > { %p11_p4 = scmp.ge.s32.totalorder %s14_s15, 4  }
 0x368   :  { %13 = sbr.rel (!%p11_p4) target bundleno = 1 (0x1), region = 75 }

// kernel: mt_forward.84
= control target key start
LH: loop header
LB: loop body
LE: loop exit
PB: predicated region body
PF: predicated region fallthrough
CT: control target
= control target key end

     0   :  { %s2057_s12 = smov 0   ;;  %s2059_s13 = smov 0   ;;  %s2585_s0 = inlined_call_operand.vmem [shape: f32[16,512], index: 0, kind: input, shape index: {}]   ;;  %s2586_s1 = inlined_call_operand.vmem [shape: bf16[512,1536], index: 1, kind: input, shape index: {}]   ;;  %s2587_s2 = inlined_call_operand.vmem [shape: f32[1,1536], index: 2, kind: input, shape index: {}]   ;;  %s2588_s3 = inlined_call_operand.vmem [shape: f32[16,1536], index: 3, kind: output, shape index: {}]  }
   0x1   :  { %s2061_s14 = smov 0   ;;  %s2063_s15 = smov 0  }
   0x2   :  { %s2065_s16 = smov 0  }
   0x3 LB: > { %s22_s17 = sadd.s32 1, %s2031_s15  ;;  %s1618_s18 = sadd.s32 4294967295, %s2035_s16   ;;  %s2035_s16 = sphi %s2065_s16, %s13_s16   ;;  %s2031_s15 = sphi %s2063_s15, %s2593_s15   ;;  %s2027_s14 = sphi %s2061_s14, %s2592_s14   ;;  %s2023_s13 = sphi %s2059_s13, %s2591_s13   ;;  %s2019_s12 = sphi %s2057_s12, %s2590_s12  }
   0x4   : > { %p23_p0 = scmp.ge.s32.totalorder %s22_s17, 3  ;;  %p65_p1 = scmp.ne.s32.totalorder %s2023_s13, %s2019_s12 }
   0x5   : > { %p66_p2 = scmp.eq.s32.totalorder %s2035_s16, 0  ;;  %p123_p4 = scmp.eq.s32.totalorder %s1618_s18, 2 }
   0x6   : > { %s2595_s17 = smov (%p23_p0, %s22_s17), 0  ;;  %s58_s20 = sadd.s32 1, %s2023_s13 }
   0x7   : > { %p67_p3 = por %p66_p2, %p65_p1  ;;  %s55_s19 = ssub.s32 %s2031_s15, %s2595_s17 }
   0x8   : > { %p56_p5 = scmp.eq.s32.totalorder %s55_s19, 0  ;;  %p2092_p6 = por %p123_p4, %p65_p1 }
   0x9   : > { %p1622_p7 = scmp.ge.s32.totalorder %s2035_s16, 3 }
   0xa   : > { %s2097_s22 = scalar_select %p56_p5, %s2023_s13, %s58_s20  }
   0xb   : > { %155 = sbr.rel (%p1622_p7) target bundleno = 84 (0x54), region = 20 }
  0x10   : > { %158 = sbr.rel (!%p67_p3) target bundleno = 84 (0x54), region = 24  ;;  %s160_s23 = sand.u32 (%p67_p3), 1, %s2023_s13  }
  0x11   : > { %s1763_s24 = sshll.u32 (%p67_p3), %s2031_s15, 4  ;;  %s1623_s25 = sshll.u32 (%p67_p3), %s160_s23, 10 }
  0x12   : > { %s2105_s28 = scalar_lea.vmem (%p67_p3), %s2586_s1, %s1763_s24  ;;  %s2110_s29 = scalar_lea.vmem (%p67_p3), [#allocation2], %s1623_s25 }
  0x13   : > { %v178_v0 = vld [vmem:[%s2105_s28] sm:$0xff] (%p67_p3)  ;;  %v180_v1 = vld [vmem:[%s2105_s28 + $0x8] sm:$0xff] (%p67_p3)  ;;  %v182_v2 = vld [vmem:[%s2105_s28 + $0x30] sm:$0xff] (%p67_p3) }
  0x14   : > { %179 = vst [vmem:[%s2110_s29] sm:$0xff] (%p67_p3), %v178_v0  ;;  %181 = vst [vmem:[%s2110_s29 + $0x8] sm:$0xff] (%p67_p3), %v180_v1  ;;  %v184_v3 = vld [vmem:[%s2105_s28 + $0x38] sm:$0xff] (%p67_p3)  ;;  %v186_v4 = vld [vmem:[%s2105_s28 + $0x60] sm:$0xff] (%p67_p3) }
  0x15   : > { %183 = vst [vmem:[%s2110_s29 + $0x10] sm:$0xff] %v182_v2  ;;  %v188_v5 = vld [vmem:[%s2105_s28 + $0x68] sm:$0xff]  ;;  %185 = vst [vmem:[%s2110_s29 + $0x18] sm:$0xff] %v184_v3  ;;  %v190_v6 = vld [vmem:[%s2105_s28 + $0x90] sm:$0xff] }
  0x16   : > { %187 = vst [vmem:[%s2110_s29 + $0x20] sm:$0xff] %v186_v4  ;;  %189 = vst [vmem:[%s2110_s29 + $0x28] sm:$0xff] %v188_v5  ;;  %v192_v7 = vld [vmem:[%s2105_s28 + $0x98] sm:$0xff]  ;;  %v194_v8 = vld [vmem:[%s2105_s28 + $0xc0] sm:$0xff] }
  0x17   : > { %191 = vst [vmem:[%s2110_s29 + $0x30] sm:$0xff] %v190_v6  ;;  %193 = vst [vmem:[%s2110_s29 + $0x38] sm:$0xff] %v192_v7  ;;  %v196_v9 = vld [vmem:[%s2105_s28 + $0xc8] sm:$0xff]  ;;  %v198_v10 = vld [vmem:[%s2105_s28 + $0xf0] sm:$0xff] }
  0x18   : > { %195 = vst [vmem:[%s2110_s29 + $0x40] sm:$0xff] %v194_v8  ;;  %v200_v11 = vld [vmem:[%s2105_s28 + $0xf8] sm:$0xff]  ;;  %197 = vst [vmem:[%s2110_s29 + $0x48] sm:$0xff] %v196_v9  ;;  %v202_v12 = vld [vmem:[%s2105_s28 + $0x120] sm:$0xff] }
  0x19   : > { %199 = vst [vmem:[%s2110_s29 + $0x50] sm:$0xff] %v198_v10  ;;  %201 = vst [vmem:[%s2110_s29 + $0x58] sm:$0xff] %v200_v11  ;;  %v204_v13 = vld [vmem:[%s2105_s28 + $0x128] sm:$0xff]  ;;  %v206_v14 = vld [vmem:[%s2105_s28 + $0x150] sm:$0xff] }
  0x1a   : > { %203 = vst [vmem:[%s2110_s29 + $0x60] sm:$0xff] %v202_v12  ;;  %205 = vst [vmem:[%s2110_s29 + $0x68] sm:$0xff] %v204_v13  ;;  %v208_v15 = vld [vmem:[%s2105_s28 + $0x158] sm:$0xff]  ;;  %v210_v16 = vld [vmem:[%s2105_s28 + $0x180] sm:$0xff] }
  0x1b   : > { %207 = vst [vmem:[%s2110_s29 + $0x70] sm:$0xff] %v206_v14  ;;  %v212_v17 = vld [vmem:[%s2105_s28 + $0x188] sm:$0xff]  ;;  %209 = vst [vmem:[%s2110_s29 + $0x78] sm:$0xff] %v208_v15  ;;  %v214_v18 = vld [vmem:[%s2105_s28 + $0x1b0] sm:$0xff] }
  0x1c   : > { %211 = vst [vmem:[%s2110_s29 + $0x80] sm:$0xff] %v210_v16  ;;  %213 = vst [vmem:[%s2110_s29 + $0x88] sm:$0xff] %v212_v17  ;;  %v216_v19 = vld [vmem:[%s2105_s28 + $0x1b8] sm:$0xff]  ;;  %v218_v20 = vld [vmem:[%s2105_s28 + $0x1e0] sm:$0xff] }
  0x1d   : > { %215 = vst [vmem:[%s2110_s29 + $0x90] sm:$0xff] %v214_v18  ;;  %217 = vst [vmem:[%s2110_s29 + $0x98] sm:$0xff] %v216_v19  ;;  %v220_v21 = vld [vmem:[%s2105_s28 + $0x1e8] sm:$0xff]  ;;  %v222_v22 = vld [vmem:[%s2105_s28 + $0x210] sm:$0xff] }
  0x1e   : > { %219 = vst [vmem:[%s2110_s29 + $0xa0] sm:$0xff] %v218_v20  ;;  %v224_v23 = vld [vmem:[%s2105_s28 + $0x218] sm:$0xff]  ;;  %221 = vst [vmem:[%s2110_s29 + $0xa8] sm:$0xff] %v220_v21  ;;  %v226_v24 = vld [vmem:[%s2105_s28 + $0x240] sm:$0xff] }
  0x1f   : > { %223 = vst [vmem:[%s2110_s29 + $0xb0] sm:$0xff] %v222_v22  ;;  %225 = vst [vmem:[%s2110_s29 + $0xb8] sm:$0xff] %v224_v23  ;;  %v228_v25 = vld [vmem:[%s2105_s28 + $0x248] sm:$0xff]  ;;  %v230_v26 = vld [vmem:[%s2105_s28 + $0x270] sm:$0xff] }
  0x20   : > { %227 = vst [vmem:[%s2110_s29 + $0xc0] sm:$0xff] %v226_v24  ;;  %229 = vst [vmem:[%s2110_s29 + $0xc8] sm:$0xff] %v228_v25  ;;  %v232_v27 = vld [vmem:[%s2105_s28 + $0x278] sm:$0xff]  ;;  %v234_v28 = vld [vmem:[%s2105_s28 + $0x2a0] sm:$0xff] }
  0x21   : > { %231 = vst [vmem:[%s2110_s29 + $0xd0] sm:$0xff] %v230_v26  ;;  %v236_v29 = vld [vmem:[%s2105_s28 + $0x2a8] sm:$0xff]  ;;  %233 = vst [vmem:[%s2110_s29 + $0xd8] sm:$0xff] %v232_v27  ;;  %v238_v30 = vld [vmem:[%s2105_s28 + $0x2d0] sm:$0xff] }
  0x22   : > { %235 = vst [vmem:[%s2110_s29 + $0xe0] sm:$0xff] %v234_v28  ;;  %237 = vst [vmem:[%s2110_s29 + $0xe8] sm:$0xff] %v236_v29  ;;  %v240_v31 = vld [vmem:[%s2105_s28 + $0x2d8] sm:$0xff]  ;;  %v242_v32 = vld [vmem:[%s2105_s28 + $0x300] sm:$0xff] }
  0x23   : > { %239 = vst [vmem:[%s2110_s29 + $0xf0] sm:$0xff] %v238_v30  ;;  %241 = vst [vmem:[%s2110_s29 + $0xf8] sm:$0xff] %v240_v31  ;;  %v244_v33 = vld [vmem:[%s2105_s28 + $0x308] sm:$0xff]  ;;  %v246_v34 = vld [vmem:[%s2105_s28 + $0x330] sm:$0xff] }
  0x24   : > { %243 = vst [vmem:[%s2110_s29 + $0x100] sm:$0xff] %v242_v32  ;;  %v248_v35 = vld [vmem:[%s2105_s28 + $0x338] sm:$0xff]  ;;  %245 = vst [vmem:[%s2110_s29 + $0x108] sm:$0xff] %v244_v33  ;;  %v250_v36 = vld [vmem:[%s2105_s28 + $0x360] sm:$0xff] }
  0x25   : > { %247 = vst [vmem:[%s2110_s29 + $0x110] sm:$0xff] %v246_v34  ;;  %249 = vst [vmem:[%s2110_s29 + $0x118] sm:$0xff] %v248_v35  ;;  %v252_v37 = vld [vmem:[%s2105_s28 + $0x368] sm:$0xff]  ;;  %v254_v38 = vld [vmem:[%s2105_s28 + $0x390] sm:$0xff] }
  0x26   : > { %251 = vst [vmem:[%s2110_s29 + $0x120] sm:$0xff] %v250_v36  ;;  %253 = vst [vmem:[%s2110_s29 + $0x128] sm:$0xff] %v252_v37  ;;  %v256_v39 = vld [vmem:[%s2105_s28 + $0x398] sm:$0xff]  ;;  %v258_v40 = vld [vmem:[%s2105_s28 + $0x3c0] sm:$0xff] }
  0x27   : > { %255 = vst [vmem:[%s2110_s29 + $0x130] sm:$0xff] %v254_v38  ;;  %v260_v41 = vld [vmem:[%s2105_s28 + $0x3c8] sm:$0xff]  ;;  %257 = vst [vmem:[%s2110_s29 + $0x138] sm:$0xff] %v256_v39  ;;  %v262_v42 = vld [vmem:[%s2105_s28 + $0x3f0] sm:$0xff] }
  0x28   : > { %259 = vst [vmem:[%s2110_s29 + $0x140] sm:$0xff] %v258_v40  ;;  %261 = vst [vmem:[%s2110_s29 + $0x148] sm:$0xff] %v260_v41  ;;  %v264_v43 = vld [vmem:[%s2105_s28 + $0x3f8] sm:$0xff]  ;;  %v266_v44 = vld [vmem:[%s2105_s28 + $0x420] sm:$0xff] }
  0x29   : > { %263 = vst [vmem:[%s2110_s29 + $0x150] sm:$0xff] %v262_v42  ;;  %265 = vst [vmem:[%s2110_s29 + $0x158] sm:$0xff] %v264_v43  ;;  %v268_v45 = vld [vmem:[%s2105_s28 + $0x428] sm:$0xff]  ;;  %v270_v46 = vld [vmem:[%s2105_s28 + $0x450] sm:$0xff] }
  0x2a   : > { %267 = vst [vmem:[%s2110_s29 + $0x160] sm:$0xff] %v266_v44  ;;  %v272_v47 = vld [vmem:[%s2105_s28 + $0x458] sm:$0xff]  ;;  %269 = vst [vmem:[%s2110_s29 + $0x168] sm:$0xff] %v268_v45  ;;  %v274_v48 = vld [vmem:[%s2105_s28 + $0x480] sm:$0xff] }
  0x2b   : > { %271 = vst [vmem:[%s2110_s29 + $0x170] sm:$0xff] %v270_v46  ;;  %273 = vst [vmem:[%s2110_s29 + $0x178] sm:$0xff] %v272_v47  ;;  %v276_v49 = vld [vmem:[%s2105_s28 + $0x488] sm:$0xff]  ;;  %v278_v50 = vld [vmem:[%s2105_s28 + $0x4b0] sm:$0xff] }
  0x2c   : > { %275 = vst [vmem:[%s2110_s29 + $0x180] sm:$0xff] %v274_v48  ;;  %277 = vst [vmem:[%s2110_s29 + $0x188] sm:$0xff] %v276_v49  ;;  %v280_v51 = vld [vmem:[%s2105_s28 + $0x4b8] sm:$0xff]  ;;  %v282_v52 = vld [vmem:[%s2105_s28 + $0x4e0] sm:$0xff] }
  0x2d   : > { %279 = vst [vmem:[%s2110_s29 + $0x190] sm:$0xff] %v278_v50  ;;  %v284_v53 = vld [vmem:[%s2105_s28 + $0x4e8] sm:$0xff]  ;;  %281 = vst [vmem:[%s2110_s29 + $0x198] sm:$0xff] %v280_v51  ;;  %v286_v54 = vld [vmem:[%s2105_s28 + $0x510] sm:$0xff] }
  0x2e   : > { %283 = vst [vmem:[%s2110_s29 + $0x1a0] sm:$0xff] %v282_v52  ;;  %285 = vst [vmem:[%s2110_s29 + $0x1a8] sm:$0xff] %v284_v53  ;;  %v288_v55 = vld [vmem:[%s2105_s28 + $0x518] sm:$0xff]  ;;  %v290_v56 = vld [vmem:[%s2105_s28 + $0x540] sm:$0xff] }
  0x2f   : > { %287 = vst [vmem:[%s2110_s29 + $0x1b0] sm:$0xff] %v286_v54  ;;  %289 = vst [vmem:[%s2110_s29 + $0x1b8] sm:$0xff] %v288_v55  ;;  %v292_v57 = vld [vmem:[%s2105_s28 + $0x548] sm:$0xff]  ;;  %v294_v58 = vld [vmem:[%s2105_s28 + $0x570] sm:$0xff] }
  0x30   : > { %291 = vst [vmem:[%s2110_s29 + $0x1c0] sm:$0xff] %v290_v56  ;;  %v296_v59 = vld [vmem:[%s2105_s28 + $0x578] sm:$0xff]  ;;  %293 = vst [vmem:[%s2110_s29 + $0x1c8] sm:$0xff] %v292_v57  ;;  %v298_v60 = vld [vmem:[%s2105_s28 + $0x5a0] sm:$0xff] }
  0x31   : > { %295 = vst [vmem:[%s2110_s29 + $0x1d0] sm:$0xff] %v294_v58  ;;  %297 = vst [vmem:[%s2110_s29 + $0x1d8] sm:$0xff] %v296_v59  ;;  %v300_v61 = vld [vmem:[%s2105_s28 + $0x5a8] sm:$0xff]  ;;  %v302_v62 = vld [vmem:[%s2105_s28 + $0x5d0] sm:$0xff] }
  0x32   : > { %299 = vst [vmem:[%s2110_s29 + $0x1e0] sm:$0xff] %v298_v60  ;;  %301 = vst [vmem:[%s2110_s29 + $0x1e8] sm:$0xff] %v300_v61  ;;  %v304_v63 = vld [vmem:[%s2105_s28 + $0x5d8] sm:$0xff]  ;;  %v306_v0 = vld [vmem:[%s2105_s28 + $0x600] sm:$0xff] }
  0x33   : > { %303 = vst [vmem:[%s2110_s29 + $0x1f0] sm:$0xff] %v302_v62  ;;  %v308_v1 = vld [vmem:[%s2105_s28 + $0x608] sm:$0xff]  ;;  %305 = vst [vmem:[%s2110_s29 + $0x1f8] sm:$0xff] %v304_v63  ;;  %v310_v2 = vld [vmem:[%s2105_s28 + $0x630] sm:$0xff] }
  0x34   : > { %307 = vst [vmem:[%s2110_s29 + $0x200] sm:$0xff] %v306_v0  ;;  %309 = vst [vmem:[%s2110_s29 + $0x208] sm:$0xff] %v308_v1  ;;  %v312_v3 = vld [vmem:[%s2105_s28 + $0x638] sm:$0xff]  ;;  %v314_v4 = vld [vmem:[%s2105_s28 + $0x660] sm:$0xff] }
  0x35   : > { %311 = vst [vmem:[%s2110_s29 + $0x210] sm:$0xff] %v310_v2  ;;  %313 = vst [vmem:[%s2110_s29 + $0x218] sm:$0xff] %v312_v3  ;;  %v316_v5 = vld [vmem:[%s2105_s28 + $0x668] sm:$0xff]  ;;  %v318_v6 = vld [vmem:[%s2105_s28 + $0x690] sm:$0xff] }
  0x36   : > { %315 = vst [vmem:[%s2110_s29 + $0x220] sm:$0xff] %v314_v4  ;;  %v320_v7 = vld [vmem:[%s2105_s28 + $0x698] sm:$0xff]  ;;  %317 = vst [vmem:[%s2110_s29 + $0x228] sm:$0xff] %v316_v5  ;;  %v322_v8 = vld [vmem:[%s2105_s28 + $0x6c0] sm:$0xff] }
  0x37   : > { %319 = vst [vmem:[%s2110_s29 + $0x230] sm:$0xff] %v318_v6  ;;  %321 = vst [vmem:[%s2110_s29 + $0x238] sm:$0xff] %v320_v7  ;;  %v324_v9 = vld [vmem:[%s2105_s28 + $0x6c8] sm:$0xff]  ;;  %v326_v10 = vld [vmem:[%s2105_s28 + $0x6f0] sm:$0xff] }
  0x38   : > { %323 = vst [vmem:[%s2110_s29 + $0x240] sm:$0xff] %v322_v8  ;;  %325 = vst [vmem:[%s2110_s29 + $0x248] sm:$0xff] %v324_v9  ;;  %v328_v11 = vld [vmem:[%s2105_s28 + $0x6f8] sm:$0xff]  ;;  %v330_v12 = vld [vmem:[%s2105_s28 + $0x720] sm:$0xff] }
  0x39   : > { %327 = vst [vmem:[%s2110_s29 + $0x250] sm:$0xff] %v326_v10  ;;  %v332_v13 = vld [vmem:[%s2105_s28 + $0x728] sm:$0xff]  ;;  %329 = vst [vmem:[%s2110_s29 + $0x258] sm:$0xff] %v328_v11  ;;  %v334_v14 = vld [vmem:[%s2105_s28 + $0x750] sm:$0xff] }
  0x3a   : > { %331 = vst [vmem:[%s2110_s29 + $0x260] sm:$0xff] %v330_v12  ;;  %333 = vst [vmem:[%s2110_s29 + $0x268] sm:$0xff] %v332_v13  ;;  %v336_v15 = vld [vmem:[%s2105_s28 + $0x758] sm:$0xff]  ;;  %v338_v16 = vld [vmem:[%s2105_s28 + $0x780] sm:$0xff] }
  0x3b   : > { %335 = vst [vmem:[%s2110_s29 + $0x270] sm:$0xff] %v334_v14  ;;  %337 = vst [vmem:[%s2110_s29 + $0x278] sm:$0xff] %v336_v15  ;;  %v340_v17 = vld [vmem:[%s2105_s28 + $0x788] sm:$0xff]  ;;  %v342_v18 = vld [vmem:[%s2105_s28 + $0x7b0] sm:$0xff] }
  0x3c   : > { %339 = vst [vmem:[%s2110_s29 + $0x280] sm:$0xff] %v338_v16  ;;  %v344_v19 = vld [vmem:[%s2105_s28 + $0x7b8] sm:$0xff]  ;;  %341 = vst [vmem:[%s2110_s29 + $0x288] sm:$0xff] %v340_v17  ;;  %v346_v20 = vld [vmem:[%s2105_s28 + $0x7e0] sm:$0xff] }
  0x3d   : > { %343 = vst [vmem:[%s2110_s29 + $0x290] sm:$0xff] %v342_v18  ;;  %345 = vst [vmem:[%s2110_s29 + $0x298] sm:$0xff] %v344_v19  ;;  %v348_v21 = vld [vmem:[%s2105_s28 + $0x7e8] sm:$0xff]  ;;  %v350_v22 = vld [vmem:[%s2105_s28 + $0x810] sm:$0xff] }
  0x3e   : > { %347 = vst [vmem:[%s2110_s29 + $0x2a0] sm:$0xff] %v346_v20  ;;  %349 = vst [vmem:[%s2110_s29 + $0x2a8] sm:$0xff] %v348_v21  ;;  %v352_v23 = vld [vmem:[%s2105_s28 + $0x818] sm:$0xff]  ;;  %v354_v24 = vld [vmem:[%s2105_s28 + $0x840] sm:$0xff] }
  0x3f   : > { %351 = vst [vmem:[%s2110_s29 + $0x2b0] sm:$0xff] %v350_v22  ;;  %v356_v25 = vld [vmem:[%s2105_s28 + $0x848] sm:$0xff]  ;;  %353 = vst [vmem:[%s2110_s29 + $0x2b8] sm:$0xff] %v352_v23  ;;  %v358_v26 = vld [vmem:[%s2105_s28 + $0x870] sm:$0xff] }
  0x40   : > { %355 = vst [vmem:[%s2110_s29 + $0x2c0] sm:$0xff] %v354_v24  ;;  %357 = vst [vmem:[%s2110_s29 + $0x2c8] sm:$0xff] %v356_v25  ;;  %v360_v27 = vld [vmem:[%s2105_s28 + $0x878] sm:$0xff]  ;;  %v362_v28 = vld [vmem:[%s2105_s28 + $0x8a0] sm:$0xff] }
  0x41   : > { %359 = vst [vmem:[%s2110_s29 + $0x2d0] sm:$0xff] %v358_v26  ;;  %361 = vst [vmem:[%s2110_s29 + $0x2d8] sm:$0xff] %v360_v27  ;;  %v364_v29 = vld [vmem:[%s2105_s28 + $0x8a8] sm:$0xff]  ;;  %v366_v30 = vld [vmem:[%s2105_s28 + $0x8d0] sm:$0xff] }
  0x42   : > { %363 = vst [vmem:[%s2110_s29 + $0x2e0] sm:$0xff] %v362_v28  ;;  %v368_v31 = vld [vmem:[%s2105_s28 + $0x8d8] sm:$0xff]  ;;  %365 = vst [vmem:[%s2110_s29 + $0x2e8] sm:$0xff] %v364_v29  ;;  %v370_v32 = vld [vmem:[%s2105_s28 + $0x900] sm:$0xff] }
  0x43   : > { %367 = vst [vmem:[%s2110_s29 + $0x2f0] sm:$0xff] %v366_v30  ;;  %369 = vst [vmem:[%s2110_s29 + $0x2f8] sm:$0xff] %v368_v31  ;;  %v372_v33 = vld [vmem:[%s2105_s28 + $0x908] sm:$0xff]  ;;  %v374_v34 = vld [vmem:[%s2105_s28 + $0x930] sm:$0xff] }
  0x44   : > { %371 = vst [vmem:[%s2110_s29 + $0x300] sm:$0xff] %v370_v32  ;;  %373 = vst [vmem:[%s2110_s29 + $0x308] sm:$0xff] %v372_v33  ;;  %v376_v35 = vld [vmem:[%s2105_s28 + $0x938] sm:$0xff]  ;;  %v378_v36 = vld [vmem:[%s2105_s28 + $0x960] sm:$0xff] }
  0x45   : > { %375 = vst [vmem:[%s2110_s29 + $0x310] sm:$0xff] %v374_v34  ;;  %v380_v37 = vld [vmem:[%s2105_s28 + $0x968] sm:$0xff]  ;;  %377 = vst [vmem:[%s2110_s29 + $0x318] sm:$0xff] %v376_v35  ;;  %v382_v38 = vld [vmem:[%s2105_s28 + $0x990] sm:$0xff] }
  0x46   : > { %379 = vst [vmem:[%s2110_s29 + $0x320] sm:$0xff] %v378_v36  ;;  %381 = vst [vmem:[%s2110_s29 + $0x328] sm:$0xff] %v380_v37  ;;  %v384_v39 = vld [vmem:[%s2105_s28 + $0x998] sm:$0xff]  ;;  %v386_v40 = vld [vmem:[%s2105_s28 + $0x9c0] sm:$0xff] }
  0x47   : > { %383 = vst [vmem:[%s2110_s29 + $0x330] sm:$0xff] %v382_v38  ;;  %385 = vst [vmem:[%s2110_s29 + $0x338] sm:$0xff] %v384_v39  ;;  %v388_v41 = vld [vmem:[%s2105_s28 + $0x9c8] sm:$0xff]  ;;  %v390_v42 = vld [vmem:[%s2105_s28 + $0x9f0] sm:$0xff] }
  0x48   : > { %387 = vst [vmem:[%s2110_s29 + $0x340] sm:$0xff] %v386_v40  ;;  %v392_v43 = vld [vmem:[%s2105_s28 + $0x9f8] sm:$0xff]  ;;  %389 = vst [vmem:[%s2110_s29 + $0x348] sm:$0xff] %v388_v41  ;;  %v394_v44 = vld [vmem:[%s2105_s28 + $0xa20] sm:$0xff] }
  0x49   : > { %391 = vst [vmem:[%s2110_s29 + $0x350] sm:$0xff] %v390_v42  ;;  %393 = vst [vmem:[%s2110_s29 + $0x358] sm:$0xff] %v392_v43  ;;  %v396_v45 = vld [vmem:[%s2105_s28 + $0xa28] sm:$0xff]  ;;  %v398_v46 = vld [vmem:[%s2105_s28 + $0xa50] sm:$0xff] }
  0x4a   : > { %395 = vst [vmem:[%s2110_s29 + $0x360] sm:$0xff] %v394_v44  ;;  %397 = vst [vmem:[%s2110_s29 + $0x368] sm:$0xff] %v396_v45  ;;  %v400_v47 = vld [vmem:[%s2105_s28 + $0xa58] sm:$0xff]  ;;  %v402_v48 = vld [vmem:[%s2105_s28 + $0xa80] sm:$0xff] }
  0x4b   : > { %399 = vst [vmem:[%s2110_s29 + $0x370] sm:$0xff] %v398_v46  ;;  %v404_v49 = vld [vmem:[%s2105_s28 + $0xa88] sm:$0xff]  ;;  %401 = vst [vmem:[%s2110_s29 + $0x378] sm:$0xff] %v400_v47  ;;  %v406_v50 = vld [vmem:[%s2105_s28 + $0xab0] sm:$0xff] }
  0x4c   : > { %403 = vst [vmem:[%s2110_s29 + $0x380] sm:$0xff] %v402_v48  ;;  %405 = vst [vmem:[%s2110_s29 + $0x388] sm:$0xff] %v404_v49  ;;  %v408_v51 = vld [vmem:[%s2105_s28 + $0xab8] sm:$0xff]  ;;  %v410_v52 = vld [vmem:[%s2105_s28 + $0xae0] sm:$0xff] }
  0x4d   : > { %407 = vst [vmem:[%s2110_s29 + $0x390] sm:$0xff] %v406_v50  ;;  %409 = vst [vmem:[%s2110_s29 + $0x398] sm:$0xff] %v408_v51  ;;  %v412_v53 = vld [vmem:[%s2105_s28 + $0xae8] sm:$0xff]  ;;  %v414_v54 = vld [vmem:[%s2105_s28 + $0xb10] sm:$0xff] }
  0x4e   : > { %411 = vst [vmem:[%s2110_s29 + $0x3a0] sm:$0xff] %v410_v52  ;;  %v416_v55 = vld [vmem:[%s2105_s28 + $0xb18] sm:$0xff]  ;;  %413 = vst [vmem:[%s2110_s29 + $0x3a8] sm:$0xff] %v412_v53  ;;  %v418_v56 = vld [vmem:[%s2105_s28 + $0xb40] sm:$0xff] }
  0x4f   : > { %415 = vst [vmem:[%s2110_s29 + $0x3b0] sm:$0xff] %v414_v54  ;;  %417 = vst [vmem:[%s2110_s29 + $0x3b8] sm:$0xff] %v416_v55  ;;  %v420_v57 = vld [vmem:[%s2105_s28 + $0xb48] sm:$0xff]  ;;  %v422_v58 = vld [vmem:[%s2105_s28 + $0xb70] sm:$0xff] }
  0x50   : > { %419 = vst [vmem:[%s2110_s29 + $0x3c0] sm:$0xff] %v418_v56  ;;  %421 = vst [vmem:[%s2110_s29 + $0x3c8] sm:$0xff] %v420_v57  ;;  %v424_v59 = vld [vmem:[%s2105_s28 + $0xb78] sm:$0xff]  ;;  %v426_v60 = vld [vmem:[%s2105_s28 + $0xba0] sm:$0xff] }
  0x51   : > { %423 = vst [vmem:[%s2110_s29 + $0x3d0] sm:$0xff] %v422_v58  ;;  %v428_v61 = vld [vmem:[%s2105_s28 + $0xba8] sm:$0xff]  ;;  %425 = vst [vmem:[%s2110_s29 + $0x3d8] sm:$0xff] %v424_v59  ;;  %v430_v62 = vld [vmem:[%s2105_s28 + $0xbd0] sm:$0xff] }
  0x52   : > { %427 = vst [vmem:[%s2110_s29 + $0x3e0] sm:$0xff] %v426_v60  ;;  %429 = vst [vmem:[%s2110_s29 + $0x3e8] sm:$0xff] %v428_v61  ;;  %v432_v63 = vld [vmem:[%s2105_s28 + $0xbd8] sm:$0xff] }
  0x53   : > { %431 = vst [vmem:[%s2110_s29 + $0x3f0] sm:$0xff] %v430_v62  ;;  %433 = vst [vmem:[%s2110_s29 + $0x3f8] sm:$0xff] %v432_v63 }
  0x54 PF: > { %p1626_p8 = scmp.ge.s32.totalorder %s2035_s16, 1  ;;  %p446_p9 = scmp.lt.s32.totalorder %s2035_s16, 4 }
  0x56   : > { %p447_p10 = pnand %p1626_p8, %p446_p9 }
  0x57   : > { %s453_s30 = sand.u32 (!%p447_p10), 1, %s2019_s12   ;;  %s1629_s4 = sshll.u32 (!%p447_p10), %s2027_s14, 2 }
  0x58   : > { %450 = sbr.rel (%p447_p10) target bundleno = 435 (0x1b3), region = 51  ;;  %s1627_s10 = sshll.u32 (!%p447_p10), %s453_s30, 10 }
  0x59   : > { %s2386_s19 = scalar_lea.vmem (!%p447_p10), [#allocation2], %s1627_s10  ;;  %p494_p11 = scmp.lt.s32.totalorder (!%p447_p10), %s1629_s4, 11 }
  0x5a   : > { %s1628_s8 = sshll.u32 (!%p447_p10), %s453_s30, 6 }
  0x5b   : > { %s2546_s9 = scalar_lea.vmem (!%p447_p10), [#allocation3], %s1628_s8 }
  0x5d   : > { %v501_v0 = vld [vmem:[%s2585_s0 + $0x8] sm:$0xff]  ;;  %v503_v2 = vld [vmem:[%s2585_s0 + $0x18] sm:$0xff]  ;;  %v1805_v6 = vld [vmem:[%s2386_s19 + $0xe4] ss:$16 sps:$4 sm:$0xff]   ;;  %s2597_s4 = smov (!%p494_p11, %s1629_s4), 11  ;;  %s1764_s12 = sshll.u32 (%p2092_p6), %s2027_s14, 5 }
  0x5e   : > { %v505_v1 = vld [vmem:[%s2585_s0 + $0x28] sm:$0xff]  ;;  %v507_v4 = vld [vmem:[%s2585_s0 + $0x38] sm:$0xff]  ;;  %v1807_v7 = vld [vmem:[%s2386_s19 + $0x2e4] ss:$16 sps:$4 sm:$0xff]   ;;  %1302 = vmatprep.subr.bf16.mxu0 %v1805_v6  ;;  %s496_s7 = scalar_lea.vmem %s2587_s2, %s2597_s4  ;;  %s1494_s11 = scalar_lea.vmem (%p2092_p6), %s2588_s3, %s1764_s12 }
  0x5f   : > { %v2379_v3 = vpack.c.bf16 %v505_v1, %v501_v0  ;;  %v2384_v5 = vpack.c.bf16 %v507_v4, %v503_v2  ;;  %v1809_v8 = vld [vmem:[%s2386_s19 + $0xe0] ss:$16 sps:$4 sm:$0xff]   ;;  %1345 = vmatprep.subr.bf16.mxu1 %v1807_v7  ;;  %v1811_v10 = vld [vmem:[%s2386_s19 + $0xc4] ss:$16 sps:$4 sm:$0xff]  }
  0x60   : > { %v1810_v9 = vld [vmem:[%s2386_s19 + $0x2e0] ss:$16 sps:$4 sm:$0xff]   ;;  %1303 = vmatpush1.bf16.msra.mxu0 %v1809_v8  ;;  %v1813_v11 = vld [vmem:[%s2386_s19 + $0x2c4] ss:$16 sps:$4 sm:$0xff]  }
  0x61   : > { %1334 = vmatprep.mubr.bf16.mxu0 %v2379_v3  ;;  %1377 = vmatprep.mubr.bf16.mxu1 %v2384_v5  ;;  %v1815_v12 = vld [vmem:[%s2386_s19 + $0xc0] ss:$16 sps:$4 sm:$0xff]   ;;  %v1817_v14 = vld [vmem:[%s2386_s19 + $0xa4] ss:$16 sps:$4 sm:$0xff]  }
  0x62   : > { %1346 = vmatpush1.bf16.msra.mxu1 %v1810_v9  ;;  %1304 = vmatprep.subr.bf16.mxu0 %v1811_v10  ;;  %v1816_v13 = vld [vmem:[%s2386_s19 + $0x2c0] ss:$16 sps:$4 sm:$0xff]   ;;  %v1819_v15 = vld [vmem:[%s2386_s19 + $0x2a4] ss:$16 sps:$4 sm:$0xff]  }
  0x63   : > { %1347 = vmatprep.subr.bf16.mxu1 %v1813_v11  ;;  %v1821_v16 = vld [vmem:[%s2386_s19 + $0xa0] ss:$16 sps:$4 sm:$0xff]   ;;  %v1823_v18 = vld [vmem:[%s2386_s19 + $0x84] ss:$16 sps:$4 sm:$0xff]  }
  0x64   : > { %v1822_v17 = vld [vmem:[%s2386_s19 + $0x2a0] ss:$16 sps:$4 sm:$0xff]   ;;  %1305 = vmatpush1.bf16.msra.mxu0 %v1815_v12  ;;  %v1825_v19 = vld [vmem:[%s2386_s19 + $0x284] ss:$16 sps:$4 sm:$0xff]   ;;  %v1903_v12 = vld [vmem:[%s2386_s19 + $0xec] ss:$16 sps:$4 sm:$0xff]  }
  0x65   : > { %1306 = vmatprep.subr.bf16.mxu0 %v1817_v14  ;;  %v1827_v20 = vld [vmem:[%s2386_s19 + $0x80] ss:$16 sps:$4 sm:$0xff]   ;;  %v1829_v22 = vld [vmem:[%s2386_s19 + $0x64] ss:$16 sps:$4 sm:$0xff]  }
  0x66   : > { %1348 = vmatpush1.bf16.msra.mxu1 %v1816_v13  ;;  %v1828_v21 = vld [vmem:[%s2386_s19 + $0x280] ss:$16 sps:$4 sm:$0xff]   ;;  %v1831_v23 = vld [vmem:[%s2386_s19 + $0x264] ss:$16 sps:$4 sm:$0xff]   ;;  %v1906_v13 = vld [vmem:[%s2386_s19 + $0x2ec] ss:$16 sps:$4 sm:$0xff]  }
  0x67   : > { %1349 = vmatprep.subr.bf16.mxu1 %v1819_v15  ;;  %v1833_v24 = vld [vmem:[%s2386_s19 + $0x60] ss:$16 sps:$4 sm:$0xff]   ;;  %v1835_v26 = vld [vmem:[%s2386_s19 + $0x44] ss:$16 sps:$4 sm:$0xff]  }
  0x68   : > { %1307 = vmatpush1.bf16.msra.mxu0 %v1821_v16  ;;  %v1834_v25 = vld [vmem:[%s2386_s19 + $0x260] ss:$16 sps:$4 sm:$0xff]   ;;  %v1837_v27 = vld [vmem:[%s2386_s19 + $0x244] ss:$16 sps:$4 sm:$0xff]   ;;  %v1901_v16 = vld [vmem:[%s2386_s19 + $0xe8] ss:$16 sps:$4 sm:$0xff]  }
  0x69   : > { %1308 = vmatprep.subr.bf16.mxu0 %v1823_v18  ;;  %v1839_v28 = vld [vmem:[%s2386_s19 + $0x40] ss:$16 sps:$4 sm:$0xff]   ;;  %v1841_v30 = vld [vmem:[%s2386_s19 + $0x24] ss:$16 sps:$4 sm:$0xff]   ;;  %v1909_v18 = vld [vmem:[%s2386_s19 + $0xcc] ss:$16 sps:$4 sm:$0xff]  }
  0x6a   : > { %1350 = vmatpush1.bf16.msra.mxu1 %v1822_v17  ;;  %v1840_v29 = vld [vmem:[%s2386_s19 + $0x240] ss:$16 sps:$4 sm:$0xff]   ;;  %v1843_v31 = vld [vmem:[%s2386_s19 + $0x224] ss:$16 sps:$4 sm:$0xff]   ;;  %v1904_v17 = vld [vmem:[%s2386_s19 + $0x2e8] ss:$16 sps:$4 sm:$0xff]  }
  0x6b   : > { %1351 = vmatprep.subr.bf16.mxu1 %v1825_v19  ;;  %v1845_v32 = vld [vmem:[%s2386_s19 + $0x20] ss:$16 sps:$4 sm:$0xff]   ;;  %v1847_v34 = vld [vmem:[%s2386_s19 + $0x4] ss:$16 sps:$4 sm:$0xff]   ;;  %v1912_v19 = vld [vmem:[%s2386_s19 + $0x2cc] ss:$16 sps:$4 sm:$0xff]  }
  0x6c   : > { %1309 = vmatpush1.bf16.msra.mxu0 %v1827_v20  ;;  %v1846_v33 = vld [vmem:[%s2386_s19 + $0x220] ss:$16 sps:$4 sm:$0xff]   ;;  %v1849_v35 = vld [vmem:[%s2386_s19 + $0x204] ss:$16 sps:$4 sm:$0xff]   ;;  %v1907_v20 = vld [vmem:[%s2386_s19 + $0xc8] ss:$16 sps:$4 sm:$0xff]  }
  0x6d   : > { %1310 = vmatprep.subr.bf16.mxu0 %v1829_v22  ;;  %v1851_v36 = vld [vmem:[%s2386_s19] ss:$16 sps:$4 sm:$0xff]   ;;  %v1853_v38 = vld [vmem:[%s2386_s19 + $0x1e4] ss:$16 sps:$4 sm:$0xff]   ;;  %v1915_v22 = vld [vmem:[%s2386_s19 + $0xac] ss:$16 sps:$4 sm:$0xff]  }
  0x6e   : > { %1352 = vmatpush1.bf16.msra.mxu1 %v1828_v21  ;;  %v1852_v37 = vld [vmem:[%s2386_s19 + $0x200] ss:$16 sps:$4 sm:$0xff]   ;;  %v1855_v39 = vld [vmem:[%s2386_s19 + $0x3e4] ss:$16 sps:$4 sm:$0xff]   ;;  %v1910_v21 = vld [vmem:[%s2386_s19 + $0x2c8] ss:$16 sps:$4 sm:$0xff]  }
  0x6f   : > { %1353 = vmatprep.subr.bf16.mxu1 %v1831_v23  ;;  %v1857_v40 = vld [vmem:[%s2386_s19 + $0x1e0] ss:$16 sps:$4 sm:$0xff]   ;;  %v1859_v42 = vld [vmem:[%s2386_s19 + $0x1c4] ss:$16 sps:$4 sm:$0xff]   ;;  %v1918_v23 = vld [vmem:[%s2386_s19 + $0x2ac] ss:$16 sps:$4 sm:$0xff]  }
  0x70   : > { %1311 = vmatpush1.bf16.msra.mxu0 %v1833_v24  ;;  %v1858_v41 = vld [vmem:[%s2386_s19 + $0x3e0] ss:$16 sps:$4 sm:$0xff]   ;;  %v1861_v43 = vld [vmem:[%s2386_s19 + $0x3c4] ss:$16 sps:$4 sm:$0xff]   ;;  %v1913_v24 = vld [vmem:[%s2386_s19 + $0xa8] ss:$16 sps:$4 sm:$0xff]  }
  0x71   : > { %1312 = vmatprep.subr.bf16.mxu0 %v1835_v26  ;;  %v1863_v44 = vld [vmem:[%s2386_s19 + $0x1c0] ss:$16 sps:$4 sm:$0xff]   ;;  %v1865_v46 = vld [vmem:[%s2386_s19 + $0x1a4] ss:$16 sps:$4 sm:$0xff]   ;;  %v1921_v26 = vld [vmem:[%s2386_s19 + $0x8c] ss:$16 sps:$4 sm:$0xff]  }
  0x72   : > { %1354 = vmatpush1.bf16.msra.mxu1 %v1834_v25  ;;  %v1864_v45 = vld [vmem:[%s2386_s19 + $0x3c0] ss:$16 sps:$4 sm:$0xff]   ;;  %v1867_v47 = vld [vmem:[%s2386_s19 + $0x3a4] ss:$16 sps:$4 sm:$0xff]   ;;  %v1916_v25 = vld [vmem:[%s2386_s19 + $0x2a8] ss:$16 sps:$4 sm:$0xff]  }
  0x73   : > { %1355 = vmatprep.subr.bf16.mxu1 %v1837_v27  ;;  %v1869_v48 = vld [vmem:[%s2386_s19 + $0x1a0] ss:$16 sps:$4 sm:$0xff]   ;;  %v1871_v50 = vld [vmem:[%s2386_s19 + $0x184] ss:$16 sps:$4 sm:$0xff]   ;;  %v1924_v27 = vld [vmem:[%s2386_s19 + $0x28c] ss:$16 sps:$4 sm:$0xff]  }
  0x74   : > { %1313 = vmatpush1.bf16.msra.mxu0 %v1839_v28  ;;  %v1870_v49 = vld [vmem:[%s2386_s19 + $0x3a0] ss:$16 sps:$4 sm:$0xff]   ;;  %v1873_v51 = vld [vmem:[%s2386_s19 + $0x384] ss:$16 sps:$4 sm:$0xff]   ;;  %v1919_v28 = vld [vmem:[%s2386_s19 + $0x88] ss:$16 sps:$4 sm:$0xff]  }
  0x75   : > { %1314 = vmatprep.subr.bf16.mxu0 %v1841_v30  ;;  %v1875_v52 = vld [vmem:[%s2386_s19 + $0x180] ss:$16 sps:$4 sm:$0xff]   ;;  %v1877_v54 = vld [vmem:[%s2386_s19 + $0x164] ss:$16 sps:$4 sm:$0xff]   ;;  %v1925_v30 = vld [vmem:[%s2386_s19 + $0x68] ss:$16 sps:$4 sm:$0xff]  }
  0x76   : > { %1356 = vmatpush1.bf16.msra.mxu1 %v1840_v29  ;;  %v1876_v53 = vld [vmem:[%s2386_s19 + $0x380] ss:$16 sps:$4 sm:$0xff]   ;;  %v1879_v55 = vld [vmem:[%s2386_s19 + $0x364] ss:$16 sps:$4 sm:$0xff]   ;;  %v1922_v29 = vld [vmem:[%s2386_s19 + $0x288] ss:$16 sps:$4 sm:$0xff]  }
  0x77   : > { %1357 = vmatprep.subr.bf16.mxu1 %v1843_v31  ;;  %v1881_v56 = vld [vmem:[%s2386_s19 + $0x160] ss:$16 sps:$4 sm:$0xff]   ;;  %v1883_v58 = vld [vmem:[%s2386_s19 + $0x144] ss:$16 sps:$4 sm:$0xff]   ;;  %v1928_v31 = vld [vmem:[%s2386_s19 + $0x268] ss:$16 sps:$4 sm:$0xff]  }
  0x78   : > { %1315 = vmatpush1.bf16.msra.mxu0 %v1845_v32  ;;  %v1882_v57 = vld [vmem:[%s2386_s19 + $0x360] ss:$16 sps:$4 sm:$0xff]   ;;  %v1885_v59 = vld [vmem:[%s2386_s19 + $0x344] ss:$16 sps:$4 sm:$0xff]   ;;  %v1933_v32 = vld [vmem:[%s2386_s19 + $0x4c] ss:$16 sps:$4 sm:$0xff]  }
  0x79   : > { %1316 = vmatprep.subr.bf16.mxu0 %v1847_v34  ;;  %v1887_v60 = vld [vmem:[%s2386_s19 + $0x140] ss:$16 sps:$4 sm:$0xff]   ;;  %v1889_v62 = vld [vmem:[%s2386_s19 + $0x124] ss:$16 sps:$4 sm:$0xff]   ;;  %v1931_v34 = vld [vmem:[%s2386_s19 + $0x48] ss:$16 sps:$4 sm:$0xff]  }
  0x7a   : > { %1358 = vmatpush1.bf16.msra.mxu1 %v1846_v33  ;;  %v1888_v61 = vld [vmem:[%s2386_s19 + $0x340] ss:$16 sps:$4 sm:$0xff]   ;;  %v1891_v63 = vld [vmem:[%s2386_s19 + $0x324] ss:$16 sps:$4 sm:$0xff]   ;;  %v1936_v33 = vld [vmem:[%s2386_s19 + $0x24c] ss:$16 sps:$4 sm:$0xff]  }
  0x7b   : > { %1359 = vmatprep.subr.bf16.mxu1 %v1849_v35  ;;  %v1893_v0 = vld [vmem:[%s2386_s19 + $0x120] ss:$16 sps:$4 sm:$0xff]   ;;  %v1895_v2 = vld [vmem:[%s2386_s19 + $0x104] ss:$16 sps:$4 sm:$0xff]   ;;  %v1934_v35 = vld [vmem:[%s2386_s19 + $0x248] ss:$16 sps:$4 sm:$0xff]  }
  0x7c   : > { %1317 = vmatpush1.bf16.msra.mxu0 %v1851_v36  ;;  %v1894_v1 = vld [vmem:[%s2386_s19 + $0x320] ss:$16 sps:$4 sm:$0xff]   ;;  %v1897_v4 = vld [vmem:[%s2386_s19 + $0x304] ss:$16 sps:$4 sm:$0xff]   ;;  %v1939_v36 = vld [vmem:[%s2386_s19 + $0x2c] ss:$16 sps:$4 sm:$0xff]  }
  0x7d   : > { %1318 = vmatprep.subr.bf16.mxu0 %v1853_v38  ;;  %v500_v6 = vld [vmem:[%s2585_s0] sm:$0xff]  ;;  %v502_v8 = vld [vmem:[%s2585_s0 + $0x10] sm:$0xff]  ;;  %v1937_v38 = vld [vmem:[%s2386_s19 + $0x28] ss:$16 sps:$4 sm:$0xff]  }
  0x7e   : > { %1360 = vmatpush1.bf16.msra.mxu1 %v1852_v37  ;;  %v504_v7 = vld [vmem:[%s2585_s0 + $0x20] sm:$0xff]  ;;  %v506_v9 = vld [vmem:[%s2585_s0 + $0x30] sm:$0xff]  ;;  %v1942_v37 = vld [vmem:[%s2386_s19 + $0x22c] ss:$16 sps:$4 sm:$0xff]  }
  0x7f   : > { %1361 = vmatprep.subr.bf16.mxu1 %v1855_v39  ;;  %v1899_v10 = vld [vmem:[%s2386_s19 + $0x100] ss:$16 sps:$4 sm:$0xff]   ;;  %v2468_v14 = vpack.c.bf16 %v504_v7, %v500_v6  ;;  %v2470_v15 = vpack.c.bf16 %v506_v9, %v502_v8  ;;  %v1940_v39 = vld [vmem:[%s2386_s19 + $0x228] ss:$16 sps:$4 sm:$0xff]   ;;  %v1987_v6 = vld [vmem:[%s2386_s19 + $0x12c] ss:$16 sps:$4 sm:$0xff]  }
  0x80   : > { %1319 = vmatpush2.bf16.msra.mxu0 %v1857_v40  ;;  %v1900_v11 = vld [vmem:[%s2386_s19 + $0x300] ss:$16 sps:$4 sm:$0xff]   ;;  %v1945_v40 = vld [vmem:[%s2386_s19 + $0xc] ss:$16 sps:$4 sm:$0xff]   ;;  %v1985_v8 = vld [vmem:[%s2386_s19 + $0x128] ss:$16 sps:$4 sm:$0xff]  }
  0x81   : > { %1320 = vmatprep.subr.bf16.mxu0 %v1859_v42  ;;  %v1943_v42 = vld [vmem:[%s2386_s19 + $0x8] ss:$16 sps:$4 sm:$0xff]   ;;  %v1990_v7 = vld [vmem:[%s2386_s19 + $0x32c] ss:$16 sps:$4 sm:$0xff]  }
  0x82   : > { %1362 = vmatpush2.bf16.msra.mxu1 %v1858_v41  ;;  %v1948_v41 = vld [vmem:[%s2386_s19 + $0x20c] ss:$16 sps:$4 sm:$0xff]   ;;  %v1988_v9 = vld [vmem:[%s2386_s19 + $0x328] ss:$16 sps:$4 sm:$0xff]  }
  0x83   : > { %1363 = vmatprep.subr.bf16.mxu1 %v1861_v43  ;;  %v1946_v43 = vld [vmem:[%s2386_s19 + $0x208] ss:$16 sps:$4 sm:$0xff]  }
  0x84   : > { %1321 = vmatpush2.bf16.msra.mxu0 %v1863_v44  ;;  %v1951_v44 = vld [vmem:[%s2386_s19 + $0x1ec] ss:$16 sps:$4 sm:$0xff]  }
  0x85   : > { %1322 = vmatprep.subr.bf16.mxu0 %v1865_v46  ;;  %v1949_v46 = vld [vmem:[%s2386_s19 + $0x1e8] ss:$16 sps:$4 sm:$0xff]  }
  0x86   : > { %1364 = vmatpush2.bf16.msra.mxu1 %v1864_v45  ;;  %v1954_v45 = vld [vmem:[%s2386_s19 + $0x3ec] ss:$16 sps:$4 sm:$0xff]  }
  0x87   : > { %1365 = vmatprep.subr.bf16.mxu1 %v1867_v47  ;;  %v1952_v47 = vld [vmem:[%s2386_s19 + $0x3e8] ss:$16 sps:$4 sm:$0xff]  }
  0x88   : > { %1323 = vmatpush2.bf16.msra.mxu0 %v1869_v48  ;;  %v1957_v48 = vld [vmem:[%s2386_s19 + $0x1cc] ss:$16 sps:$4 sm:$0xff]  }
  0x89   : > { %1324 = vmatprep.subr.bf16.mxu0 %v1871_v50  ;;  %v1955_v50 = vld [vmem:[%s2386_s19 + $0x1c8] ss:$16 sps:$4 sm:$0xff]  }
  0x8a   : > { %1366 = vmatpush2.bf16.msra.mxu1 %v1870_v49  ;;  %v1960_v49 = vld [vmem:[%s2386_s19 + $0x3cc] ss:$16 sps:$4 sm:$0xff]  }
  0x8b   : > { %1367 = vmatprep.subr.bf16.mxu1 %v1873_v51  ;;  %v1958_v51 = vld [vmem:[%s2386_s19 + $0x3c8] ss:$16 sps:$4 sm:$0xff]  }
  0x8c   : > { %1325 = vmatpush2.bf16.msra.mxu0 %v1875_v52  ;;  %v1963_v52 = vld [vmem:[%s2386_s19 + $0x1ac] ss:$16 sps:$4 sm:$0xff]  }
  0x8d   : > { %1326 = vmatprep.subr.bf16.mxu0 %v1877_v54  ;;  %v1961_v54 = vld [vmem:[%s2386_s19 + $0x1a8] ss:$16 sps:$4 sm:$0xff]  }
  0x8e   : > { %1368 = vmatpush2.bf16.msra.mxu1 %v1876_v53  ;;  %v1966_v53 = vld [vmem:[%s2386_s19 + $0x3ac] ss:$16 sps:$4 sm:$0xff]  }
  0x8f   : > { %1369 = vmatprep.subr.bf16.mxu1 %v1879_v55  ;;  %v1964_v55 = vld [vmem:[%s2386_s19 + $0x3a8] ss:$16 sps:$4 sm:$0xff]  }
  0x90   : > { %1327 = vmatpush2.bf16.msra.mxu0 %v1881_v56  ;;  %v1969_v56 = vld [vmem:[%s2386_s19 + $0x18c] ss:$16 sps:$4 sm:$0xff]  }
  0x91   : > { %1328 = vmatprep.subr.bf16.mxu0 %v1883_v58  ;;  %v1967_v58 = vld [vmem:[%s2386_s19 + $0x188] ss:$16 sps:$4 sm:$0xff]  }
  0x92   : > { %1370 = vmatpush2.bf16.msra.mxu1 %v1882_v57  ;;  %v1972_v57 = vld [vmem:[%s2386_s19 + $0x38c] ss:$16 sps:$4 sm:$0xff]  }
  0x93   : > { %1371 = vmatprep.subr.bf16.mxu1 %v1885_v59  ;;  %v1970_v59 = vld [vmem:[%s2386_s19 + $0x388] ss:$16 sps:$4 sm:$0xff]  }
  0x94   : > { %1329 = vmatpush2.bf16.msra.mxu0 %v1887_v60  ;;  %v1975_v60 = vld [vmem:[%s2386_s19 + $0x16c] ss:$16 sps:$4 sm:$0xff]  }
  0x95   : > { %1330 = vmatprep.subr.bf16.mxu0 %v1889_v62  ;;  %v1973_v62 = vld [vmem:[%s2386_s19 + $0x168] ss:$16 sps:$4 sm:$0xff]  }
  0x96   : > { %1372 = vmatpush2.bf16.msra.mxu1 %v1888_v61  ;;  %v1978_v61 = vld [vmem:[%s2386_s19 + $0x36c] ss:$16 sps:$4 sm:$0xff]  }
  0x97   : > { %1373 = vmatprep.subr.bf16.mxu1 %v1891_v63  ;;  %v1976_v63 = vld [vmem:[%s2386_s19 + $0x368] ss:$16 sps:$4 sm:$0xff]  }
  0x98   : > { %1331 = vmatpush2.bf16.msra.mxu0 %v1893_v0  ;;  %v1981_v0 = vld [vmem:[%s2386_s19 + $0x14c] ss:$16 sps:$4 sm:$0xff]  }
  0x99   : > { %1332 = vmatprep.subr.bf16.mxu0 %v1895_v2  ;;  %v1979_v2 = vld [vmem:[%s2386_s19 + $0x148] ss:$16 sps:$4 sm:$0xff]  }
  0x9a   : > { %1374 = vmatpush2.bf16.msra.mxu1 %v1894_v1  ;;  %v1984_v1 = vld [vmem:[%s2386_s19 + $0x34c] ss:$16 sps:$4 sm:$0xff]  }
  0x9b   : > { %1375 = vmatprep.subr.bf16.mxu1 %v1897_v4  ;;  %v1982_v4 = vld [vmem:[%s2386_s19 + $0x348] ss:$16 sps:$4 sm:$0xff]  }
  0x9c   : > { %1333 = vmatpush2.bf16.msra.mxu0 %v1899_v10  ;;  %v1993_v10 = vld [vmem:[%s2386_s19 + $0x10c] ss:$16 sps:$4 sm:$0xff]  }
  0x9d   : > { %1388 = vmatprep.subr.bf16.mxu0 %v1903_v12  ;;  %v1991_v12 = vld [vmem:[%s2386_s19 + $0x108] ss:$16 sps:$4 sm:$0xff]  }
  0x9e   : > { %1376 = vmatpush2.bf16.msra.mxu1 %v1900_v11  ;;  %v1996_v11 = vld [vmem:[%s2386_s19 + $0x30c] ss:$16 sps:$4 sm:$0xff]  }
  0x9f   : > { %1431 = vmatprep.subr.bf16.mxu1 %v1906_v13  ;;  %1335 = vmatmul.mubr.bf16.vlgmr.msra.gmra.mxu0 %v2468_v14  ;;  %v1994_v13 = vld [vmem:[%s2386_s19 + $0x308] ss:$16 sps:$4 sm:$0xff]  }
  0xa0   : > { %1389 = vmatpush1.bf16.msra.mxu0 %v1901_v16  ;;  %1420 = vmatprep.mubr.bf16.mxu0 %v2379_v3  ;;  %v1927_v3 = vld [vmem:[%s2386_s19 + $0x6c] ss:$16 sps:$4 sm:$0xff]   ;;  %v642_v16 = vlaneseq }
  0xa1   : > { %1378 = vmatmul.mubr.bf16.vlgmr.msra.gmra.mxu1 %v2470_v15  ;;  %1390 = vmatprep.subr.bf16.mxu0 %v1909_v18 }
  0xa2   : > { %1432 = vmatpush1.bf16.msra.mxu1 %v1904_v17  ;;  %1463 = vmatprep.mubr.bf16.mxu1 %v2384_v5  ;;  %v1930_v5 = vld [vmem:[%s2386_s19 + $0x26c] ss:$16 sps:$4 sm:$0xff]   ;;  %v643_v17 = vshrl.u32 %v642_v16, 7 }
  0xa3   : > { %1433 = vmatprep.subr.bf16.mxu1 %v1912_v19  ;;  %v640_v19 = vld [vmem:[%s496_s7] sm:$0xf] }
  0xa4   : > { %1391 = vmatpush1.bf16.msra.mxu0 %v1907_v20  ;;  %v644_v18 = vsub.s32 0, %v643_v17  ;;  %v648_v20 = vsub.s32 1, %v643_v17 }
  0xa5   : > { %1392 = vmatprep.subr.bf16.mxu0 %v1915_v22 }
  0xa6   : > { %1434 = vmatpush1.bf16.msra.mxu1 %v1910_v21  ;;  %v645_v21 = vrot.slane %v640_v19, %v644_v18  ;;  %v649_v22 = vrot.slane %v640_v19, %v648_v20 }
  0xa7   : > { %1435 = vmatprep.subr.bf16.mxu1 %v1918_v23 }
  0xa8   : > { %1393 = vmatpush1.bf16.msra.mxu0 %v1913_v24 }
  0xa9   : > { %1394 = vmatprep.subr.bf16.mxu0 %v1921_v26 }
  0xaa   : > { %1436 = vmatpush1.bf16.msra.mxu1 %v1916_v25 }
  0xab   : > { %1437 = vmatprep.subr.bf16.mxu1 %v1924_v27 }
  0xac   : > { %1395 = vmatpush1.bf16.msra.mxu0 %v1919_v28 }
  0xad   : > { %1396 = vmatprep.subr.bf16.mxu0 %v1927_v3 }
  0xae   : > { %1438 = vmatpush1.bf16.msra.mxu1 %v1922_v29 }
  0xaf   : > { %1439 = vmatprep.subr.bf16.mxu1 %v1930_v5 }
  0xb0   : > { %1397 = vmatpush1.bf16.msra.mxu0 %v1925_v30 }
  0xb1   : > { %1398 = vmatprep.subr.bf16.mxu0 %v1933_v32 }
  0xb2   : > { %1440 = vmatpush1.bf16.msra.mxu1 %v1928_v31 }
  0xb3   : > { %1441 = vmatprep.subr.bf16.mxu1 %v1936_v33 }
  0xb4   : > { %1399 = vmatpush1.bf16.msra.mxu0 %v1931_v34 }
  0xb5   : > { %1400 = vmatprep.subr.bf16.mxu0 %v1939_v36  ;;  %v656_v36 = vsub.s32 3, %v643_v17 }
  0xb6   : > { %1442 = vmatpush1.bf16.msra.mxu1 %v1934_v35  ;;  %v652_v35 = vsub.s32 2, %v643_v17 }
  0xb7   : > { %1443 = vmatprep.subr.bf16.mxu1 %v1942_v37 }
  0xb8   : > { %1401 = vmatpush1.bf16.msra.mxu0 %v1937_v38  ;;  %v653_v37 = vrot.slane %v640_v19, %v652_v35  ;;  %v657_v38 = vrot.slane %v640_v19, %v656_v36 }
  0xb9   : > { %1402 = vmatprep.subr.bf16.mxu0 %v1945_v40 }
  0xba   : > { %1444 = vmatpush1.bf16.msra.mxu1 %v1940_v39 }
  0xbb   : > { %1445 = vmatprep.subr.bf16.mxu1 %v1948_v41 }
  0xbc   : > { %1403 = vmatpush1.bf16.msra.mxu0 %v1943_v42 }
  0xbd   : > { %1404 = vmatprep.subr.bf16.mxu0 %v1951_v44 }
  0xbe   : > { %1446 = vmatpush1.bf16.msra.mxu1 %v1946_v43 }
  0xbf   : > { %1447 = vmatprep.subr.bf16.mxu1 %v1954_v45 }
  0xc0   : > { %1405 = vmatpush2.bf16.msra.mxu0 %v1949_v46 }
  0xc1   : > { %1406 = vmatprep.subr.bf16.mxu0 %v1957_v48 }
  0xc2   : > { %1448 = vmatpush2.bf16.msra.mxu1 %v1952_v47 }
  0xc3   : > { %1449 = vmatprep.subr.bf16.mxu1 %v1960_v49 }
  0xc4   : > { %1407 = vmatpush2.bf16.msra.mxu0 %v1955_v50 }
  0xc5   : > { %1408 = vmatprep.subr.bf16.mxu0 %v1963_v52 }
  0xc6   : > { %1450 = vmatpush2.bf16.msra.mxu1 %v1958_v51 }
  0xc7   : > { %1451 = vmatprep.subr.bf16.mxu1 %v1966_v53 }
  0xc8   : > { %1409 = vmatpush2.bf16.msra.mxu0 %v1961_v54 }
  0xc9   : > { %1410 = vmatprep.subr.bf16.mxu0 %v1969_v56 }
  0xca   : > { %1452 = vmatpush2.bf16.msra.mxu1 %v1964_v55 }
  0xcb   : > { %1453 = vmatprep.subr.bf16.mxu1 %v1972_v57 }
  0xcc   : > { %1411 = vmatpush2.bf16.msra.mxu0 %v1967_v58 }
  0xcd   : > { %1412 = vmatprep.subr.bf16.mxu0 %v1975_v60 }
  0xce   : > { %1454 = vmatpush2.bf16.msra.mxu1 %v1970_v59 }
  0xcf   : > { %1455 = vmatprep.subr.bf16.mxu1 %v1978_v61 }
  0xd0   : > { %1413 = vmatpush2.bf16.msra.mxu0 %v1973_v62 }
  0xd1   : > { %1414 = vmatprep.subr.bf16.mxu0 %v1981_v0 }
  0xd2   : > { %1456 = vmatpush2.bf16.msra.mxu1 %v1976_v63 }
  0xd3   : > { %1457 = vmatprep.subr.bf16.mxu1 %v1984_v1 }
  0xd4   : > { %1415 = vmatpush2.bf16.msra.mxu0 %v1979_v2 }
  0xd5   : > { %1416 = vmatprep.subr.bf16.mxu0 %v1987_v6 }
  0xd6   : > { %1458 = vmatpush2.bf16.msra.mxu1 %v1982_v4 }
  0xd7   : > { %1459 = vmatprep.subr.bf16.mxu1 %v1990_v7 }
  0xd8   : > { %1417 = vmatpush2.bf16.msra.mxu0 %v1985_v8 }
  0xd9   : > { %1418 = vmatprep.subr.bf16.mxu0 %v1993_v10 }
  0xda   : > { %1460 = vmatpush2.bf16.msra.mxu1 %v1988_v9 }
  0xdb   : > { %1461 = vmatprep.subr.bf16.mxu1 %v1996_v11 }
  0xdc   : > { %1419 = vmatpush2.bf16.msra.mxu0 %v1991_v12 }
  0xde   : > { %1462 = vmatpush2.bf16.msra.mxu1 %v1994_v13 }
  0xdf   : > { %1421 = vmatmul.mubr.bf16.vlgmr.msra.gmra.mxu0 %v2468_v14 }
  0xe1   : > { %1464 = vmatmul.mubr.bf16.vlgmr.msra.gmra.mxu1 %v2470_v15 }
 0x15f   : > { %v1336_v23 = vpop.f32.mrf.mxu0 }
 0x160   : > { %v1337_v24 = vadd.f32 %v1336_v23, %v645_v21 }
 0x161   : > { %v1379_v14 = vpop.f32.mrf.mxu1  ;;  %v1338_v15 = vpop.f32.mrf.mxu0 }
 0x162   : > { %v1380_v26 = vadd.f32 %v1379_v14, %v1337_v24  ;;  %v1339_v27 = vadd.f32 %v1338_v15, %v649_v22 }
 0x163   : > { %v1381_v25 = vpop.f32.mrf.mxu1  ;;  %v1340_v28 = vpop.f32.mrf.mxu0 }
 0x164   : > { %1474 = vst [vmem:[%s2546_s9] sm:$0xff] %v1380_v26  ;;  %v1382_v3 = vadd.f32 %v1381_v25, %v1339_v27  ;;  %v1341_v5 = vadd.f32 %v1340_v28, %v645_v21 }
 0x165   : > { %v1383_v29 = vpop.f32.mrf.mxu1  ;;  %v1342_v30 = vpop.f32.mrf.mxu0 }
 0x166   : > { %1475 = vst [vmem:[%s2546_s9 + $0x8] sm:$0xff] %v1382_v3  ;;  %v1384_v31 = vadd.f32 %v1383_v29, %v1341_v5  ;;  %v1343_v32 = vadd.f32 %v1342_v30, %v649_v22 }
 0x167   : > { %v1385_v33 = vpop.f32.mrf.mxu1 }
 0x168   : > { %1478 = vst [vmem:[%s2546_s9 + $0x20] sm:$0xff] %v1384_v31  ;;  %v1386_v34 = vadd.f32 %v1385_v33, %v1343_v32 }
 0x16a   : > { %1479 = vst [vmem:[%s2546_s9 + $0x28] sm:$0xff] %v1386_v34 }
 0x16b   : > { %v1507_v55 = vld [vmem:[%s2546_s9] sm:$0xff] (%p2092_p6) }
 0x16c   : > { %1508 = vst [vmem:[%s1494_s11] sm:$0xff] (%p2092_p6), %v1507_v55 }
 0x16d   : > { %v1509_v56 = vld [vmem:[%s2546_s9 + $0x8] sm:$0xff] (%p2092_p6) }
 0x16e   : > { %1510 = vst [vmem:[%s1494_s11 + $0x8] sm:$0xff] (%p2092_p6), %v1509_v56 }
 0x16f   : > { %v1515_v59 = vld [vmem:[%s2546_s9 + $0x20] sm:$0xff] (%p2092_p6) }
 0x170   : > { %1516 = vst [vmem:[%s1494_s11 + $0x60] sm:$0xff] (%p2092_p6), %v1515_v59 }
 0x171   : > { %v1517_v60 = vld [vmem:[%s2546_s9 + $0x28] sm:$0xff] (%p2092_p6) }
 0x172   : > { %1518 = vst [vmem:[%s1494_s11 + $0x68] sm:$0xff] (%p2092_p6), %v1517_v60 }
 0x19f   : > { %v1422_v39 = vpop.f32.mrf.mxu0 }
 0x1a0   : > { %v1423_v41 = vadd.f32 %v1422_v39, %v653_v37 }
 0x1a1   : > { %v1465_v40 = vpop.f32.mrf.mxu1  ;;  %v1424_v42 = vpop.f32.mrf.mxu0 }
 0x1a2   : > { %v1466_v44 = vadd.f32 %v1465_v40, %v1423_v41  ;;  %v1425_v45 = vadd.f32 %v1424_v42, %v657_v38 }
 0x1a3   : > { %v1467_v43 = vpop.f32.mrf.mxu1  ;;  %v1426_v46 = vpop.f32.mrf.mxu0 }
 0x1a4   : > { %1476 = vst [vmem:[%s2546_s9 + $0x10] sm:$0xff] %v1466_v44  ;;  %v1468_v48 = vadd.f32 %v1467_v43, %v1425_v45  ;;  %v1427_v49 = vadd.f32 %v1426_v46, %v653_v37 }
 0x1a5   : > { %v1469_v47 = vpop.f32.mrf.mxu1  ;;  %v1428_v50 = vpop.f32.mrf.mxu0 }
 0x1a6   : > { %1477 = vst [vmem:[%s2546_s9 + $0x18] sm:$0xff] %v1468_v48  ;;  %v1470_v51 = vadd.f32 %v1469_v47, %v1427_v49  ;;  %v1429_v52 = vadd.f32 %v1428_v50, %v657_v38  ;;  %1488 = sbr.rel (!%p2092_p6) target bundleno = 435 (0x1b3), region = 59 }
 0x1a7   : > { %v1471_v53 = vpop.f32.mrf.mxu1 }
 0x1a8   : > { %1480 = vst [vmem:[%s2546_s9 + $0x30] sm:$0xff] %v1470_v51  ;;  %v1472_v54 = vadd.f32 %v1471_v53, %v1429_v52 }
 0x1aa   : > { %1481 = vst [vmem:[%s2546_s9 + $0x38] sm:$0xff] %v1472_v54 }
 0x1ab   : > { %v1511_v57 = vld [vmem:[%s2546_s9 + $0x10] sm:$0xff] }
 0x1ac   : > { %1512 = vst [vmem:[%s1494_s11 + $0x10] sm:$0xff] %v1511_v57 }
 0x1ad   : > { %v1513_v58 = vld [vmem:[%s2546_s9 + $0x18] sm:$0xff] }
 0x1ae   : > { %1514 = vst [vmem:[%s1494_s11 + $0x18] sm:$0xff] %v1513_v58 }
 0x1af   : > { %v1519_v61 = vld [vmem:[%s2546_s9 + $0x30] sm:$0xff] }
 0x1b0   : > { %1520 = vst [vmem:[%s1494_s11 + $0x70] sm:$0xff] %v1519_v61 }
 0x1b1   : > { %v1521_v62 = vld [vmem:[%s2546_s9 + $0x38] sm:$0xff] }
 0x1b2   : > { %1522 = vst [vmem:[%s1494_s11 + $0x78] sm:$0xff] %v1521_v62 }
 0x1b3 PF: > { %s13_s16 = sadd.s32 1, %s2035_s16   ;;  %s2590_s12 = smov %s2023_s13 }
 0x1b4   : > { %p10_p12 = scmp.ge.s32.totalorder %s13_s16, 5   ;;  %s2591_s13 = smov %s2097_s22 }
 0x1b5   : > { %s2592_s14 = smov %s2031_s15  ;;  %s2593_s15 = smov %s2595_s17 }
 0x1b6   :  { %12 = sbr.rel (!%p10_p12) target bundleno = 3 (0x3), region = 119 }

// kernel: mt_forward.87
= control target key start
LH: loop header
LB: loop body
LE: loop exit
PB: predicated region body
PF: predicated region fallthrough
CT: control target
= control target key end

     0   :  { %s1783_s1 = inlined_call_operand.vmem [shape: bf16[512,512], index: 1, kind: input, shape index: {}]   ;;  %s1784_s0 = inlined_call_operand.vmem [shape: f32[16,512], index: 0, kind: input, shape index: {}]   ;;  %s1785_s2 = inlined_call_operand.vmem [shape: f32[1,512], index: 2, kind: input, shape index: {}]   ;;  %s1786_s3 = inlined_call_operand.vmem [shape: f32[16,512], index: 3, kind: output, shape index: {}]  }
   0x1   :  { %v1128_v0 = vld [vmem:[%s1783_s1 + $0xe4] ss:$16 sps:$4 sm:$0xff]   ;;  %v1132_v2 = vld [vmem:[%s1783_s1 + $0xe0] ss:$16 sps:$4 sm:$0xff]   ;;  %v15_v46 = vld [vmem:[%s1784_s0 + $0x8] sm:$0xff] }
   0x2   :  { %v1130_v1 = vld [vmem:[%s1783_s1 + $0x2e4] ss:$16 sps:$4 sm:$0xff]   ;;  %816 = vmatprep.subr.bf16.mxu0 %v1128_v0  ;;  %v1133_v3 = vld [vmem:[%s1783_s1 + $0x2e0] ss:$16 sps:$4 sm:$0xff]   ;;  %v19_v47 = vld [vmem:[%s1784_s0 + $0x28] sm:$0xff] }
   0x3   :  { %859 = vmatprep.subr.bf16.mxu1 %v1130_v1  ;;  %v1134_v4 = vld [vmem:[%s1783_s1 + $0xc4] ss:$16 sps:$4 sm:$0xff]   ;;  %817 = vmatpush1.bf16.msra.mxu0 %v1132_v2  ;;  %v1138_v6 = vld [vmem:[%s1783_s1 + $0xc0] ss:$16 sps:$4 sm:$0xff]   ;;  %v17_v48 = vld [vmem:[%s1784_s0 + $0x18] sm:$0xff]  ;;  %v23_v53 = vpack.c.bf16 %v19_v47, %v15_v46 }
   0x4   :  { %860 = vmatpush1.bf16.msra.mxu1 %v1133_v3  ;;  %v1136_v5 = vld [vmem:[%s1783_s1 + $0x2c4] ss:$16 sps:$4 sm:$0xff]   ;;  %818 = vmatprep.subr.bf16.mxu0 %v1134_v4  ;;  %v1139_v7 = vld [vmem:[%s1783_s1 + $0x2c0] ss:$16 sps:$4 sm:$0xff]   ;;  %v21_v49 = vld [vmem:[%s1784_s0 + $0x38] sm:$0xff] }
   0x5   :  { %861 = vmatprep.subr.bf16.mxu1 %v1136_v5  ;;  %v1140_v8 = vld [vmem:[%s1783_s1 + $0xa4] ss:$16 sps:$4 sm:$0xff]   ;;  %v1144_v10 = vld [vmem:[%s1783_s1 + $0xa0] ss:$16 sps:$4 sm:$0xff]   ;;  %v25_v54 = vpack.c.bf16 %v21_v49, %v17_v48  ;;  %848 = vmatprep.mubr.bf16.mxu0 %v23_v53  ;;  %v1272_v46 = vld [vmem:[%s1783_s1 + $0x1e8] ss:$16 sps:$4 sm:$0xff]  }
   0x6   :  { %v1142_v9 = vld [vmem:[%s1783_s1 + $0x2a4] ss:$16 sps:$4 sm:$0xff]   ;;  %v1145_v11 = vld [vmem:[%s1783_s1 + $0x2a0] ss:$16 sps:$4 sm:$0xff]   ;;  %v1275_v47 = vld [vmem:[%s1783_s1 + $0x3e8] ss:$16 sps:$4 sm:$0xff]  }
   0x7   :  { %819 = vmatpush1.bf16.msra.mxu0 %v1138_v6  ;;  %v1146_v12 = vld [vmem:[%s1783_s1 + $0x84] ss:$16 sps:$4 sm:$0xff]   ;;  %v1150_v14 = vld [vmem:[%s1783_s1 + $0x80] ss:$16 sps:$4 sm:$0xff]   ;;  %891 = vmatprep.mubr.bf16.mxu1 %v25_v54  ;;  %v1280_v48 = vld [vmem:[%s1783_s1 + $0x1cc] ss:$16 sps:$4 sm:$0xff]  }
   0x8   :  { %862 = vmatpush1.bf16.msra.mxu1 %v1139_v7  ;;  %820 = vmatprep.subr.bf16.mxu0 %v1140_v8  ;;  %v1148_v13 = vld [vmem:[%s1783_s1 + $0x284] ss:$16 sps:$4 sm:$0xff]   ;;  %v1151_v15 = vld [vmem:[%s1783_s1 + $0x280] ss:$16 sps:$4 sm:$0xff]   ;;  %v1283_v49 = vld [vmem:[%s1783_s1 + $0x3cc] ss:$16 sps:$4 sm:$0xff]  }
   0x9   :  { %863 = vmatprep.subr.bf16.mxu1 %v1142_v9  ;;  %v1152_v16 = vld [vmem:[%s1783_s1 + $0x64] ss:$16 sps:$4 sm:$0xff]   ;;  %v1156_v18 = vld [vmem:[%s1783_s1 + $0x60] ss:$16 sps:$4 sm:$0xff]  }
   0xa   :  { %v1154_v17 = vld [vmem:[%s1783_s1 + $0x264] ss:$16 sps:$4 sm:$0xff]   ;;  %v1157_v19 = vld [vmem:[%s1783_s1 + $0x260] ss:$16 sps:$4 sm:$0xff]  }
   0xb   :  { %821 = vmatpush1.bf16.msra.mxu0 %v1144_v10  ;;  %v1158_v20 = vld [vmem:[%s1783_s1 + $0x44] ss:$16 sps:$4 sm:$0xff]   ;;  %v1162_v22 = vld [vmem:[%s1783_s1 + $0x40] ss:$16 sps:$4 sm:$0xff]   ;;  %v1226_v10 = vld [vmem:[%s1783_s1 + $0xec] ss:$16 sps:$4 sm:$0xff]  }
   0xc   :  { %864 = vmatpush1.bf16.msra.mxu1 %v1145_v11  ;;  %822 = vmatprep.subr.bf16.mxu0 %v1146_v12  ;;  %v1160_v21 = vld [vmem:[%s1783_s1 + $0x244] ss:$16 sps:$4 sm:$0xff]   ;;  %v1163_v23 = vld [vmem:[%s1783_s1 + $0x240] ss:$16 sps:$4 sm:$0xff]   ;;  %v1229_v11 = vld [vmem:[%s1783_s1 + $0x2ec] ss:$16 sps:$4 sm:$0xff]  }
   0xd   :  { %865 = vmatprep.subr.bf16.mxu1 %v1148_v13  ;;  %v1164_v24 = vld [vmem:[%s1783_s1 + $0x24] ss:$16 sps:$4 sm:$0xff]   ;;  %v1168_v26 = vld [vmem:[%s1783_s1 + $0x20] ss:$16 sps:$4 sm:$0xff]  }
   0xe   :  { %v1166_v25 = vld [vmem:[%s1783_s1 + $0x224] ss:$16 sps:$4 sm:$0xff]   ;;  %v1169_v27 = vld [vmem:[%s1783_s1 + $0x220] ss:$16 sps:$4 sm:$0xff]  }
   0xf   :  { %823 = vmatpush1.bf16.msra.mxu0 %v1150_v14  ;;  %v1170_v28 = vld [vmem:[%s1783_s1 + $0x4] ss:$16 sps:$4 sm:$0xff]   ;;  %v1174_v30 = vld [vmem:[%s1783_s1] ss:$16 sps:$4 sm:$0xff]   ;;  %v1224_v14 = vld [vmem:[%s1783_s1 + $0xe8] ss:$16 sps:$4 sm:$0xff]  }
  0x10   :  { %866 = vmatpush1.bf16.msra.mxu1 %v1151_v15  ;;  %824 = vmatprep.subr.bf16.mxu0 %v1152_v16  ;;  %v1172_v29 = vld [vmem:[%s1783_s1 + $0x204] ss:$16 sps:$4 sm:$0xff]   ;;  %v1175_v31 = vld [vmem:[%s1783_s1 + $0x200] ss:$16 sps:$4 sm:$0xff]   ;;  %v1227_v15 = vld [vmem:[%s1783_s1 + $0x2e8] ss:$16 sps:$4 sm:$0xff]  }
  0x11   :  { %867 = vmatprep.subr.bf16.mxu1 %v1154_v17  ;;  %v1176_v32 = vld [vmem:[%s1783_s1 + $0x1e4] ss:$16 sps:$4 sm:$0xff]   ;;  %v1180_v34 = vld [vmem:[%s1783_s1 + $0x1e0] ss:$16 sps:$4 sm:$0xff]   ;;  %v1232_v16 = vld [vmem:[%s1783_s1 + $0xcc] ss:$16 sps:$4 sm:$0xff]  }
  0x12   :  { %v1178_v33 = vld [vmem:[%s1783_s1 + $0x3e4] ss:$16 sps:$4 sm:$0xff]   ;;  %v1181_v35 = vld [vmem:[%s1783_s1 + $0x3e0] ss:$16 sps:$4 sm:$0xff]   ;;  %v1235_v17 = vld [vmem:[%s1783_s1 + $0x2cc] ss:$16 sps:$4 sm:$0xff]  }
  0x13   :  { %825 = vmatpush1.bf16.msra.mxu0 %v1156_v18  ;;  %v1182_v36 = vld [vmem:[%s1783_s1 + $0x1c4] ss:$16 sps:$4 sm:$0xff]   ;;  %v1186_v38 = vld [vmem:[%s1783_s1 + $0x1c0] ss:$16 sps:$4 sm:$0xff]   ;;  %v1230_v18 = vld [vmem:[%s1783_s1 + $0xc8] ss:$16 sps:$4 sm:$0xff]  }
  0x14   :  { %868 = vmatpush1.bf16.msra.mxu1 %v1157_v19  ;;  %826 = vmatprep.subr.bf16.mxu0 %v1158_v20  ;;  %v1184_v37 = vld [vmem:[%s1783_s1 + $0x3c4] ss:$16 sps:$4 sm:$0xff]   ;;  %v1187_v39 = vld [vmem:[%s1783_s1 + $0x3c0] ss:$16 sps:$4 sm:$0xff]   ;;  %v1233_v19 = vld [vmem:[%s1783_s1 + $0x2c8] ss:$16 sps:$4 sm:$0xff]  }
  0x15   :  { %869 = vmatprep.subr.bf16.mxu1 %v1160_v21  ;;  %v1188_v40 = vld [vmem:[%s1783_s1 + $0x1a4] ss:$16 sps:$4 sm:$0xff]   ;;  %v1192_v42 = vld [vmem:[%s1783_s1 + $0x1a0] ss:$16 sps:$4 sm:$0xff]   ;;  %v1238_v20 = vld [vmem:[%s1783_s1 + $0xac] ss:$16 sps:$4 sm:$0xff]  }
  0x16   :  { %v1190_v41 = vld [vmem:[%s1783_s1 + $0x3a4] ss:$16 sps:$4 sm:$0xff]   ;;  %v1193_v43 = vld [vmem:[%s1783_s1 + $0x3a0] ss:$16 sps:$4 sm:$0xff]   ;;  %v1241_v21 = vld [vmem:[%s1783_s1 + $0x2ac] ss:$16 sps:$4 sm:$0xff]  }
  0x17   :  { %827 = vmatpush1.bf16.msra.mxu0 %v1162_v22  ;;  %v1194_v44 = vld [vmem:[%s1783_s1 + $0x184] ss:$16 sps:$4 sm:$0xff]   ;;  %v1198_v50 = vld [vmem:[%s1783_s1 + $0x180] ss:$16 sps:$4 sm:$0xff]   ;;  %v1236_v22 = vld [vmem:[%s1783_s1 + $0xa8] ss:$16 sps:$4 sm:$0xff]  }
  0x18   :  { %870 = vmatpush1.bf16.msra.mxu1 %v1163_v23  ;;  %828 = vmatprep.subr.bf16.mxu0 %v1164_v24  ;;  %v1196_v45 = vld [vmem:[%s1783_s1 + $0x384] ss:$16 sps:$4 sm:$0xff]   ;;  %v1199_v51 = vld [vmem:[%s1783_s1 + $0x380] ss:$16 sps:$4 sm:$0xff]   ;;  %v1239_v23 = vld [vmem:[%s1783_s1 + $0x2a8] ss:$16 sps:$4 sm:$0xff]  }
  0x19   :  { %871 = vmatprep.subr.bf16.mxu1 %v1166_v25  ;;  %v1200_v52 = vld [vmem:[%s1783_s1 + $0x164] ss:$16 sps:$4 sm:$0xff]   ;;  %v1204_v56 = vld [vmem:[%s1783_s1 + $0x160] ss:$16 sps:$4 sm:$0xff]   ;;  %v1244_v24 = vld [vmem:[%s1783_s1 + $0x8c] ss:$16 sps:$4 sm:$0xff]  }
  0x1a   :  { %v1202_v55 = vld [vmem:[%s1783_s1 + $0x364] ss:$16 sps:$4 sm:$0xff]   ;;  %v1205_v57 = vld [vmem:[%s1783_s1 + $0x360] ss:$16 sps:$4 sm:$0xff]   ;;  %v1247_v25 = vld [vmem:[%s1783_s1 + $0x28c] ss:$16 sps:$4 sm:$0xff]  }
  0x1b   :  { %829 = vmatpush1.bf16.msra.mxu0 %v1168_v26  ;;  %v1206_v58 = vld [vmem:[%s1783_s1 + $0x144] ss:$16 sps:$4 sm:$0xff]   ;;  %v1210_v60 = vld [vmem:[%s1783_s1 + $0x140] ss:$16 sps:$4 sm:$0xff]   ;;  %v1242_v26 = vld [vmem:[%s1783_s1 + $0x88] ss:$16 sps:$4 sm:$0xff]  }
  0x1c   :  { %872 = vmatpush1.bf16.msra.mxu1 %v1169_v27  ;;  %830 = vmatprep.subr.bf16.mxu0 %v1170_v28  ;;  %v1208_v59 = vld [vmem:[%s1783_s1 + $0x344] ss:$16 sps:$4 sm:$0xff]   ;;  %v1211_v61 = vld [vmem:[%s1783_s1 + $0x340] ss:$16 sps:$4 sm:$0xff]   ;;  %v1245_v27 = vld [vmem:[%s1783_s1 + $0x288] ss:$16 sps:$4 sm:$0xff]  }
  0x1d   :  { %873 = vmatprep.subr.bf16.mxu1 %v1172_v29  ;;  %v1212_v62 = vld [vmem:[%s1783_s1 + $0x124] ss:$16 sps:$4 sm:$0xff]   ;;  %v1216_v0 = vld [vmem:[%s1783_s1 + $0x120] ss:$16 sps:$4 sm:$0xff]   ;;  %v1250_v28 = vld [vmem:[%s1783_s1 + $0x6c] ss:$16 sps:$4 sm:$0xff]  }
  0x1e   :  { %v1214_v63 = vld [vmem:[%s1783_s1 + $0x324] ss:$16 sps:$4 sm:$0xff]   ;;  %v1217_v1 = vld [vmem:[%s1783_s1 + $0x320] ss:$16 sps:$4 sm:$0xff]   ;;  %v1253_v29 = vld [vmem:[%s1783_s1 + $0x26c] ss:$16 sps:$4 sm:$0xff]  }
  0x1f   :  { %831 = vmatpush1.bf16.msra.mxu0 %v1174_v30  ;;  %v1218_v2 = vld [vmem:[%s1783_s1 + $0x104] ss:$16 sps:$4 sm:$0xff]   ;;  %v1222_v4 = vld [vmem:[%s1783_s1 + $0x100] ss:$16 sps:$4 sm:$0xff]   ;;  %v1248_v30 = vld [vmem:[%s1783_s1 + $0x68] ss:$16 sps:$4 sm:$0xff]  }
  0x20   :  { %874 = vmatpush1.bf16.msra.mxu1 %v1175_v31  ;;  %832 = vmatprep.subr.bf16.mxu0 %v1176_v32  ;;  %v1220_v3 = vld [vmem:[%s1783_s1 + $0x304] ss:$16 sps:$4 sm:$0xff]   ;;  %v1223_v5 = vld [vmem:[%s1783_s1 + $0x300] ss:$16 sps:$4 sm:$0xff]   ;;  %v1251_v31 = vld [vmem:[%s1783_s1 + $0x268] ss:$16 sps:$4 sm:$0xff]  }
  0x21   :  { %875 = vmatprep.subr.bf16.mxu1 %v1178_v33  ;;  %v14_v6 = vld [vmem:[%s1784_s0] sm:$0xff]  ;;  %v16_v8 = vld [vmem:[%s1784_s0 + $0x10] sm:$0xff]  ;;  %v1256_v32 = vld [vmem:[%s1783_s1 + $0x4c] ss:$16 sps:$4 sm:$0xff]  }
  0x22   :  { %v18_v7 = vld [vmem:[%s1784_s0 + $0x20] sm:$0xff]  ;;  %v20_v9 = vld [vmem:[%s1784_s0 + $0x30] sm:$0xff]  ;;  %v1259_v33 = vld [vmem:[%s1783_s1 + $0x24c] ss:$16 sps:$4 sm:$0xff]  }
  0x23   :  { %833 = vmatpush2.bf16.msra.mxu0 %v1180_v34  ;;  %v1562_v12 = vpack.c.bf16 %v18_v7, %v14_v6  ;;  %v1564_v13 = vpack.c.bf16 %v20_v9, %v16_v8  ;;  %v1254_v34 = vld [vmem:[%s1783_s1 + $0x48] ss:$16 sps:$4 sm:$0xff]   ;;  %v1316_v8 = vld [vmem:[%s1783_s1 + $0x10c] ss:$16 sps:$4 sm:$0xff]  }
  0x24   :  { %876 = vmatpush2.bf16.msra.mxu1 %v1181_v35  ;;  %834 = vmatprep.subr.bf16.mxu0 %v1182_v36  ;;  %v1257_v35 = vld [vmem:[%s1783_s1 + $0x248] ss:$16 sps:$4 sm:$0xff]   ;;  %v1262_v36 = vld [vmem:[%s1783_s1 + $0x2c] ss:$16 sps:$4 sm:$0xff]  }
  0x25   :  { %877 = vmatprep.subr.bf16.mxu1 %v1184_v37  ;;  %v1265_v37 = vld [vmem:[%s1783_s1 + $0x22c] ss:$16 sps:$4 sm:$0xff]   ;;  %v1308_v6 = vld [vmem:[%s1783_s1 + $0x128] ss:$16 sps:$4 sm:$0xff]  }
  0x26   :  { %v1311_v7 = vld [vmem:[%s1783_s1 + $0x328] ss:$16 sps:$4 sm:$0xff]   ;;  %v1319_v9 = vld [vmem:[%s1783_s1 + $0x30c] ss:$16 sps:$4 sm:$0xff]  }
  0x27   :  { %835 = vmatpush2.bf16.msra.mxu0 %v1186_v38  ;;  %v1260_v38 = vld [vmem:[%s1783_s1 + $0x28] ss:$16 sps:$4 sm:$0xff]  }
  0x28   :  { %878 = vmatpush2.bf16.msra.mxu1 %v1187_v39  ;;  %836 = vmatprep.subr.bf16.mxu0 %v1188_v40  ;;  %v1263_v39 = vld [vmem:[%s1783_s1 + $0x228] ss:$16 sps:$4 sm:$0xff]   ;;  %v1268_v40 = vld [vmem:[%s1783_s1 + $0xc] ss:$16 sps:$4 sm:$0xff]  }
  0x29   :  { %879 = vmatprep.subr.bf16.mxu1 %v1190_v41  ;;  %v1271_v41 = vld [vmem:[%s1783_s1 + $0x20c] ss:$16 sps:$4 sm:$0xff]  }
  0x2b   :  { %837 = vmatpush2.bf16.msra.mxu0 %v1192_v42  ;;  %v1266_v42 = vld [vmem:[%s1783_s1 + $0x8] ss:$16 sps:$4 sm:$0xff]  }
  0x2c   :  { %880 = vmatpush2.bf16.msra.mxu1 %v1193_v43  ;;  %838 = vmatprep.subr.bf16.mxu0 %v1194_v44  ;;  %v1269_v43 = vld [vmem:[%s1783_s1 + $0x208] ss:$16 sps:$4 sm:$0xff]   ;;  %v1274_v44 = vld [vmem:[%s1783_s1 + $0x1ec] ss:$16 sps:$4 sm:$0xff]  }
  0x2d   :  { %881 = vmatprep.subr.bf16.mxu1 %v1196_v45  ;;  %v1277_v45 = vld [vmem:[%s1783_s1 + $0x3ec] ss:$16 sps:$4 sm:$0xff]  }
  0x2f   :  { %839 = vmatpush2.bf16.msra.mxu0 %v1198_v50  ;;  %v1278_v50 = vld [vmem:[%s1783_s1 + $0x1c8] ss:$16 sps:$4 sm:$0xff]  }
  0x30   :  { %882 = vmatpush2.bf16.msra.mxu1 %v1199_v51  ;;  %840 = vmatprep.subr.bf16.mxu0 %v1200_v52  ;;  %v1281_v51 = vld [vmem:[%s1783_s1 + $0x3c8] ss:$16 sps:$4 sm:$0xff]   ;;  %v1286_v52 = vld [vmem:[%s1783_s1 + $0x1ac] ss:$16 sps:$4 sm:$0xff]  }
  0x31   :  { %883 = vmatprep.subr.bf16.mxu1 %v1202_v55  ;;  %v1287_v55 = vld [vmem:[%s1783_s1 + $0x3a8] ss:$16 sps:$4 sm:$0xff]  }
  0x33   :  { %841 = vmatpush2.bf16.msra.mxu0 %v1204_v56  ;;  %v1292_v56 = vld [vmem:[%s1783_s1 + $0x18c] ss:$16 sps:$4 sm:$0xff]  }
  0x34   :  { %884 = vmatpush2.bf16.msra.mxu1 %v1205_v57  ;;  %842 = vmatprep.subr.bf16.mxu0 %v1206_v58  ;;  %v1295_v57 = vld [vmem:[%s1783_s1 + $0x38c] ss:$16 sps:$4 sm:$0xff]   ;;  %v1290_v58 = vld [vmem:[%s1783_s1 + $0x188] ss:$16 sps:$4 sm:$0xff]  }
  0x35   :  { %885 = vmatprep.subr.bf16.mxu1 %v1208_v59  ;;  %v1293_v59 = vld [vmem:[%s1783_s1 + $0x388] ss:$16 sps:$4 sm:$0xff]  }
  0x37   :  { %843 = vmatpush2.bf16.msra.mxu0 %v1210_v60  ;;  %v1298_v60 = vld [vmem:[%s1783_s1 + $0x16c] ss:$16 sps:$4 sm:$0xff]  }
  0x38   :  { %886 = vmatpush2.bf16.msra.mxu1 %v1211_v61  ;;  %844 = vmatprep.subr.bf16.mxu0 %v1212_v62  ;;  %v1301_v61 = vld [vmem:[%s1783_s1 + $0x36c] ss:$16 sps:$4 sm:$0xff]   ;;  %v1296_v62 = vld [vmem:[%s1783_s1 + $0x168] ss:$16 sps:$4 sm:$0xff]  }
  0x39   :  { %887 = vmatprep.subr.bf16.mxu1 %v1214_v63  ;;  %v1299_v63 = vld [vmem:[%s1783_s1 + $0x368] ss:$16 sps:$4 sm:$0xff]  }
  0x3b   :  { %845 = vmatpush2.bf16.msra.mxu0 %v1216_v0  ;;  %v1304_v0 = vld [vmem:[%s1783_s1 + $0x14c] ss:$16 sps:$4 sm:$0xff]  }
  0x3c   :  { %888 = vmatpush2.bf16.msra.mxu1 %v1217_v1  ;;  %846 = vmatprep.subr.bf16.mxu0 %v1218_v2  ;;  %v1307_v1 = vld [vmem:[%s1783_s1 + $0x34c] ss:$16 sps:$4 sm:$0xff]   ;;  %v1302_v2 = vld [vmem:[%s1783_s1 + $0x148] ss:$16 sps:$4 sm:$0xff]  }
  0x3d   :  { %889 = vmatprep.subr.bf16.mxu1 %v1220_v3  ;;  %v1305_v3 = vld [vmem:[%s1783_s1 + $0x348] ss:$16 sps:$4 sm:$0xff]  }
  0x3f   :  { %847 = vmatpush2.bf16.msra.mxu0 %v1222_v4  ;;  %v1310_v4 = vld [vmem:[%s1783_s1 + $0x12c] ss:$16 sps:$4 sm:$0xff]  }
  0x40   :  { %890 = vmatpush2.bf16.msra.mxu1 %v1223_v5  ;;  %902 = vmatprep.subr.bf16.mxu0 %v1226_v10  ;;  %v1313_v5 = vld [vmem:[%s1783_s1 + $0x32c] ss:$16 sps:$4 sm:$0xff]   ;;  %v1314_v10 = vld [vmem:[%s1783_s1 + $0x108] ss:$16 sps:$4 sm:$0xff]  }
  0x41   :  { %945 = vmatprep.subr.bf16.mxu1 %v1229_v11  ;;  %v1317_v11 = vld [vmem:[%s1783_s1 + $0x308] ss:$16 sps:$4 sm:$0xff]  }
  0x42   :  { %849 = vmatmul.mubr.bf16.vlgmr.msra.gmra.mxu0 %v1562_v12 }
  0x43   :  { %892 = vmatmul.mubr.bf16.vlgmr.msra.gmra.mxu1 %v1564_v13  ;;  %903 = vmatpush1.bf16.msra.mxu0 %v1224_v14  ;;  %v156_v14 = vlaneseq }
  0x44   :  { %946 = vmatpush1.bf16.msra.mxu1 %v1227_v15  ;;  %904 = vmatprep.subr.bf16.mxu0 %v1232_v16 }
  0x45   :  { %947 = vmatprep.subr.bf16.mxu1 %v1235_v17  ;;  %934 = vmatprep.mubr.bf16.mxu0 %v23_v53  ;;  %v1289_v53 = vld [vmem:[%s1783_s1 + $0x3ac] ss:$16 sps:$4 sm:$0xff]   ;;  %v157_v15 = vshrl.u32 %v156_v14, 7  ;;  %v154_v17 = vld [vmem:[%s1785_s2] sm:$0xf] }
  0x46   :  { %977 = vmatprep.mubr.bf16.mxu1 %v25_v54  ;;  %v1284_v54 = vld [vmem:[%s1783_s1 + $0x1a8] ss:$16 sps:$4 sm:$0xff]  }
  0x47   :  { %905 = vmatpush1.bf16.msra.mxu0 %v1230_v18  ;;  %v158_v16 = vsub.s32 0, %v157_v15  ;;  %v162_v18 = vsub.s32 1, %v157_v15 }
  0x48   :  { %948 = vmatpush1.bf16.msra.mxu1 %v1233_v19  ;;  %906 = vmatprep.subr.bf16.mxu0 %v1238_v20 }
  0x49   :  { %949 = vmatprep.subr.bf16.mxu1 %v1241_v21  ;;  %v159_v19 = vrot.slane %v154_v17, %v158_v16  ;;  %v163_v20 = vrot.slane %v154_v17, %v162_v18 }
  0x4b   :  { %907 = vmatpush1.bf16.msra.mxu0 %v1236_v22 }
  0x4c   :  { %950 = vmatpush1.bf16.msra.mxu1 %v1239_v23  ;;  %908 = vmatprep.subr.bf16.mxu0 %v1244_v24 }
  0x4d   :  { %951 = vmatprep.subr.bf16.mxu1 %v1247_v25 }
  0x4f   :  { %909 = vmatpush1.bf16.msra.mxu0 %v1242_v26 }
  0x50   :  { %952 = vmatpush1.bf16.msra.mxu1 %v1245_v27  ;;  %910 = vmatprep.subr.bf16.mxu0 %v1250_v28 }
  0x51   :  { %953 = vmatprep.subr.bf16.mxu1 %v1253_v29 }
  0x53   :  { %911 = vmatpush1.bf16.msra.mxu0 %v1248_v30 }
  0x54   :  { %954 = vmatpush1.bf16.msra.mxu1 %v1251_v31  ;;  %912 = vmatprep.subr.bf16.mxu0 %v1256_v32 }
  0x55   :  { %955 = vmatprep.subr.bf16.mxu1 %v1259_v33 }
  0x57   :  { %913 = vmatpush1.bf16.msra.mxu0 %v1254_v34 }
  0x58   :  { %956 = vmatpush1.bf16.msra.mxu1 %v1257_v35  ;;  %914 = vmatprep.subr.bf16.mxu0 %v1262_v36  ;;  %v166_v35 = vsub.s32 2, %v157_v15  ;;  %v170_v36 = vsub.s32 3, %v157_v15 }
  0x59   :  { %957 = vmatprep.subr.bf16.mxu1 %v1265_v37 }
  0x5a   :  { %v167_v37 = vrot.slane %v154_v17, %v166_v35 }
  0x5b   :  { %915 = vmatpush1.bf16.msra.mxu0 %v1260_v38  ;;  %v171_v38 = vrot.slane %v154_v17, %v170_v36 }
  0x5c   :  { %958 = vmatpush1.bf16.msra.mxu1 %v1263_v39  ;;  %916 = vmatprep.subr.bf16.mxu0 %v1268_v40 }
  0x5d   :  { %959 = vmatprep.subr.bf16.mxu1 %v1271_v41 }
  0x5f   :  { %917 = vmatpush1.bf16.msra.mxu0 %v1266_v42 }
  0x60   :  { %960 = vmatpush1.bf16.msra.mxu1 %v1269_v43  ;;  %918 = vmatprep.subr.bf16.mxu0 %v1274_v44 }
  0x61   :  { %961 = vmatprep.subr.bf16.mxu1 %v1277_v45 }
  0x63   :  { %919 = vmatpush2.bf16.msra.mxu0 %v1272_v46 }
  0x64   :  { %962 = vmatpush2.bf16.msra.mxu1 %v1275_v47  ;;  %920 = vmatprep.subr.bf16.mxu0 %v1280_v48 }
  0x65   :  { %963 = vmatprep.subr.bf16.mxu1 %v1283_v49 }
  0x67   :  { %921 = vmatpush2.bf16.msra.mxu0 %v1278_v50 }
  0x68   :  { %964 = vmatpush2.bf16.msra.mxu1 %v1281_v51  ;;  %922 = vmatprep.subr.bf16.mxu0 %v1286_v52 }
  0x69   :  { %965 = vmatprep.subr.bf16.mxu1 %v1289_v53 }
  0x6b   :  { %923 = vmatpush2.bf16.msra.mxu0 %v1284_v54 }
  0x6c   :  { %966 = vmatpush2.bf16.msra.mxu1 %v1287_v55  ;;  %924 = vmatprep.subr.bf16.mxu0 %v1292_v56 }
  0x6d   :  { %967 = vmatprep.subr.bf16.mxu1 %v1295_v57 }
  0x6f   :  { %925 = vmatpush2.bf16.msra.mxu0 %v1290_v58 }
  0x70   :  { %968 = vmatpush2.bf16.msra.mxu1 %v1293_v59  ;;  %926 = vmatprep.subr.bf16.mxu0 %v1298_v60 }
  0x71   :  { %969 = vmatprep.subr.bf16.mxu1 %v1301_v61 }
  0x73   :  { %927 = vmatpush2.bf16.msra.mxu0 %v1296_v62 }
  0x74   :  { %970 = vmatpush2.bf16.msra.mxu1 %v1299_v63  ;;  %928 = vmatprep.subr.bf16.mxu0 %v1304_v0 }
  0x75   :  { %971 = vmatprep.subr.bf16.mxu1 %v1307_v1 }
  0x77   :  { %929 = vmatpush2.bf16.msra.mxu0 %v1302_v2 }
  0x78   :  { %972 = vmatpush2.bf16.msra.mxu1 %v1305_v3  ;;  %930 = vmatprep.subr.bf16.mxu0 %v1310_v4 }
  0x79   :  { %973 = vmatprep.subr.bf16.mxu1 %v1313_v5 }
  0x7b   :  { %931 = vmatpush2.bf16.msra.mxu0 %v1308_v6 }
  0x7c   :  { %974 = vmatpush2.bf16.msra.mxu1 %v1311_v7  ;;  %932 = vmatprep.subr.bf16.mxu0 %v1316_v8 }
  0x7d   :  { %975 = vmatprep.subr.bf16.mxu1 %v1319_v9 }
  0x7f   :  { %933 = vmatpush2.bf16.msra.mxu0 %v1314_v10 }
  0x80   :  { %976 = vmatpush2.bf16.msra.mxu1 %v1317_v11 }
  0x82   :  { %935 = vmatmul.mubr.bf16.vlgmr.msra.gmra.mxu0 %v1562_v12 }
  0x83   :  { %978 = vmatmul.mubr.bf16.vlgmr.msra.gmra.mxu1 %v1564_v13 }
 0x102   :  { %v850_v21 = vpop.f32.mrf.mxu0 }
 0x103   :  { %v893_v22 = vpop.f32.mrf.mxu1  ;;  %v851_v23 = vadd.f32 %v850_v21, %v159_v19 }
 0x104   :  { %v852_v24 = vpop.f32.mrf.mxu0 }
 0x105   :  { %v895_v25 = vpop.f32.mrf.mxu1  ;;  %v894_v26 = vadd.f32 %v893_v22, %v851_v23  ;;  %v853_v27 = vadd.f32 %v852_v24, %v163_v20 }
 0x106   :  { %v854_v12 = vpop.f32.mrf.mxu0 }
 0x107   :  { %v897_v28 = vpop.f32.mrf.mxu1  ;;  %988 = vst [vmem:[%s1786_s3] sm:$0xff] %v894_v26  ;;  %v896_v13 = vadd.f32 %v895_v25, %v853_v27  ;;  %v855_v29 = vadd.f32 %v854_v12, %v159_v19 }
 0x108   :  { %v856_v30 = vpop.f32.mrf.mxu0 }
 0x109   :  { %989 = vst [vmem:[%s1786_s3 + $0x8] sm:$0xff] %v896_v13  ;;  %v898_v31 = vadd.f32 %v897_v28, %v855_v29  ;;  %v857_v32 = vadd.f32 %v856_v30, %v163_v20  ;;  %v899_v33 = vpop.f32.mrf.mxu1 }
 0x10b   :  { %992 = vst [vmem:[%s1786_s3 + $0x20] sm:$0xff] %v898_v31  ;;  %v900_v34 = vadd.f32 %v899_v33, %v857_v32 }
 0x10d   :  { %993 = vst [vmem:[%s1786_s3 + $0x28] sm:$0xff] %v900_v34 }
 0x142   :  { %v936_v39 = vpop.f32.mrf.mxu0 }
 0x143   :  { %v979_v40 = vpop.f32.mrf.mxu1  ;;  %v937_v41 = vadd.f32 %v936_v39, %v167_v37 }
 0x144   :  { %v938_v42 = vpop.f32.mrf.mxu0 }
 0x145   :  { %v981_v43 = vpop.f32.mrf.mxu1  ;;  %v980_v44 = vadd.f32 %v979_v40, %v937_v41  ;;  %v939_v45 = vadd.f32 %v938_v42, %v171_v38 }
 0x146   :  { %v940_v46 = vpop.f32.mrf.mxu0 }
 0x147   :  { %v983_v47 = vpop.f32.mrf.mxu1  ;;  %990 = vst [vmem:[%s1786_s3 + $0x10] sm:$0xff] %v980_v44  ;;  %v982_v48 = vadd.f32 %v981_v43, %v939_v45  ;;  %v941_v49 = vadd.f32 %v940_v46, %v167_v37 }
 0x148   :  { %v942_v50 = vpop.f32.mrf.mxu0 }
 0x149   :  { %991 = vst [vmem:[%s1786_s3 + $0x18] sm:$0xff] %v982_v48  ;;  %v984_v51 = vadd.f32 %v983_v47, %v941_v49  ;;  %v943_v52 = vadd.f32 %v942_v50, %v171_v38  ;;  %v985_v53 = vpop.f32.mrf.mxu1 }
 0x14b   :  { %994 = vst [vmem:[%s1786_s3 + $0x30] sm:$0xff] %v984_v51  ;;  %v986_v54 = vadd.f32 %v985_v53, %v943_v52 }
 0x14d   :  { %995 = vst [vmem:[%s1786_s3 + $0x38] sm:$0xff] %v986_v54 }

// kernel: mt_forward.83
= control target key start
LH: loop header
LB: loop body
LE: loop exit
PB: predicated region body
PF: predicated region fallthrough
CT: control target
= control target key end

     0   :  { %v78_v44 = vlaneseq  ;;  %s225_s0 = inlined_call_operand.vmem [shape: f32[16,512], index: 0, kind: input, shape index: {}]   ;;  %s226_s1 = inlined_call_operand.vmem [shape: f32[1,512], index: 1, kind: input, shape index: {}]   ;;  %s227_s2 = inlined_call_operand.vmem [shape: f32[1,512], index: 2, kind: input, shape index: {}]   ;;  %s228_s3 = inlined_call_operand.vmem [shape: f32[16,512], index: 3, kind: output, shape index: {}]  }
   0x1   :  { %v14_v0 = vld [vmem:[%s225_s0] sm:$0xff]  ;;  %v15_v1 = vld [vmem:[%s225_s0 + $0x8] sm:$0xff]  ;;  %v16_v2 = vld [vmem:[%s225_s0 + $0x10] sm:$0xff] }
   0x2   :  { %v24_v3 = vadd.f32 %v15_v1, %v14_v0  ;;  %v18_v4 = vld [vmem:[%s225_s0 + $0x20] sm:$0xff]  ;;  %v19_v5 = vld [vmem:[%s225_s0 + $0x28] sm:$0xff]  ;;  %v17_v6 = vld [vmem:[%s225_s0 + $0x18] sm:$0xff]  ;;  %v79_v47 = vshrl.u32 %v78_v44, 7 }
   0x3   :  { %v20_v7 = vld [vmem:[%s225_s0 + $0x30] sm:$0xff]  ;;  %v29_v8 = vadd.f32 %v19_v5, %v18_v4  ;;  %v21_v10 = vld [vmem:[%s225_s0 + $0x38] sm:$0xff]  ;;  %v22_v52 = vld [vmem:[%s226_s1] sm:$0xf] }
   0x4   :  { %v25_v9 = vadd.f32 %v24_v3, %v16_v2  ;;  %v80_v48 = vsub.s32 0, %v79_v47  ;;  %v84_v49 = vsub.s32 1, %v79_v47  ;;  %v88_v50 = vsub.s32 2, %v79_v47  ;;  %v23_v53 = vld [vmem:[%s227_s2] sm:$0xf] }
   0x5   :  { %v30_v11 = vadd.f32 %v29_v8, %v20_v7  ;;  %v92_v51 = vsub.s32 3, %v79_v47 }
   0x6   :  { %v26_v12 = vadd.f32 %v25_v9, %v17_v6  ;;  %v81_v54 = vrot.slane %v22_v52, %v80_v48  ;;  %v85_v55 = vrot.slane %v22_v52, %v84_v49  ;;  %v89_v56 = vrot.slane %v22_v52, %v88_v50 }
   0x7   :  { %v31_v13 = vadd.f32 %v30_v11, %v21_v10  ;;  %v93_v57 = vrot.slane %v22_v52, %v92_v51  ;;  %v110_v59 = vrot.slane %v23_v53, %v80_v48  ;;  %v114_v60 = vrot.slane %v23_v53, %v84_v49 }
   0x8   :  { %27 = vadd.xlane.f32.xlu0 %v26_v12  ;;  %v118_v61 = vrot.slane %v23_v53, %v88_v50  ;;  %v122_v62 = vrot.slane %v23_v53, %v92_v51 }
   0xc   :  { %32 = vadd.xlane.f32.xlu0 %v31_v13 }
  0x91   :  { %v28_v14 = vpop.xlane.xlu0 %27 }
  0x92   :  { %v35_v15 = vmul.f32 0.001953125, %v28_v14 }
  0x94   :  { %v37_v16 = vsub.f32 %v14_v0, %v35_v15  ;;  %v38_v17 = vsub.f32 %v15_v1, %v35_v15  ;;  %v39_v18 = vsub.f32 %v16_v2, %v35_v15  ;;  %v40_v20 = vsub.f32 %v17_v6, %v35_v15 }
  0x95   :  { %v33_v19 = vpop.xlane.xlu0 %32 }
  0x96   :  { %v36_v21 = vmul.f32 0.001953125, %v33_v19  ;;  %v45_v22 = vmul.f32 %v37_v16, %v37_v16  ;;  %v46_v23 = vmul.f32 %v38_v17, %v38_v17  ;;  %v47_v24 = vmul.f32 %v39_v18, %v39_v18 }
  0x97   :  { %v48_v29 = vmul.f32 %v40_v20, %v40_v20 }
  0x98   :  { %v41_v25 = vsub.f32 %v18_v4, %v36_v21  ;;  %v42_v26 = vsub.f32 %v19_v5, %v36_v21  ;;  %v53_v27 = vadd.f32 %v46_v23, %v45_v22  ;;  %v43_v28 = vsub.f32 %v20_v7, %v36_v21 }
  0x99   :  { %v44_v31 = vsub.f32 %v21_v10, %v36_v21 }
  0x9a   :  { %v54_v30 = vadd.f32 %v53_v27, %v47_v24  ;;  %v49_v32 = vmul.f32 %v41_v25, %v41_v25  ;;  %v50_v33 = vmul.f32 %v42_v26, %v42_v26  ;;  %v51_v35 = vmul.f32 %v43_v28, %v43_v28 }
  0x9b   :  { %v52_v37 = vmul.f32 %v44_v31, %v44_v31 }
  0x9c   :  { %v55_v34 = vadd.f32 %v54_v30, %v48_v29  ;;  %v58_v36 = vadd.f32 %v50_v33, %v49_v32 }
  0x9e   :  { %56 = vadd.xlane.f32.xlu1 %v55_v34  ;;  %v59_v38 = vadd.f32 %v58_v36, %v51_v35 }
  0xa0   :  { %v60_v39 = vadd.f32 %v59_v38, %v52_v37 }
  0xa2   :  { %61 = vadd.xlane.f32.xlu1 %v60_v39 }
 0x127   :  { %v57_v40 = vpop.xlane.xlu1 %56 }
 0x128   :  { %v63_v41 = vmul.f32 0.001953125, %v57_v40 }
 0x12a   :  { %v65_v42 = vadd.f32 1e-05, %v63_v41 }
 0x12b   :  { %v62_v43 = vpop.xlane.xlu1 %61 }
 0x12c   :  { %147 = vrsqrt.f32 %v65_v42  ;;  %v64_v45 = vmul.f32 0.001953125, %v62_v43 }
 0x12e   :  { %v66_v46 = vadd.f32 1e-05, %v64_v45 }
 0x130   :  { %149 = vrsqrt.f32 %v66_v46 }
 0x139   :  { %v148_v58 = vpop.eup %147 }
 0x13a   :  { %v69_v63 = vmul.f32 %v148_v58, %v37_v16  ;;  %v70_v0 = vmul.f32 %v148_v58, %v38_v17  ;;  %v71_v1 = vmul.f32 %v148_v58, %v39_v18  ;;  %v72_v2 = vmul.f32 %v148_v58, %v40_v20 }
 0x13c   :  { %v98_v3 = vmul.f32 %v81_v54, %v69_v63  ;;  %v99_v4 = vmul.f32 %v85_v55, %v70_v0  ;;  %v100_v5 = vmul.f32 %v89_v56, %v71_v1  ;;  %v101_v6 = vmul.f32 %v93_v57, %v72_v2 }
 0x13d   :  { %v150_v7 = vpop.eup %149 }
 0x13e   :  { %v127_v8 = vadd.f32 %v110_v59, %v98_v3  ;;  %v128_v9 = vadd.f32 %v114_v60, %v99_v4  ;;  %v129_v10 = vadd.f32 %v118_v61, %v100_v5  ;;  %v130_v11 = vadd.f32 %v122_v62, %v101_v6 }
 0x13f   :  { %v73_v12 = vmul.f32 %v150_v7, %v41_v25  ;;  %v74_v13 = vmul.f32 %v150_v7, %v42_v26  ;;  %v75_v14 = vmul.f32 %v150_v7, %v43_v28  ;;  %v76_v15 = vmul.f32 %v150_v7, %v44_v31 }
 0x140   :  { %135 = vst [vmem:[%s228_s3] sm:$0xff] %v127_v8  ;;  %136 = vst [vmem:[%s228_s3 + $0x8] sm:$0xff] %v128_v9 }
 0x141   :  { %137 = vst [vmem:[%s228_s3 + $0x10] sm:$0xff] %v129_v10  ;;  %138 = vst [vmem:[%s228_s3 + $0x18] sm:$0xff] %v130_v11  ;;  %v102_v16 = vmul.f32 %v81_v54, %v73_v12  ;;  %v103_v17 = vmul.f32 %v85_v55, %v74_v13  ;;  %v104_v18 = vmul.f32 %v89_v56, %v75_v14 }
 0x142   :  { %v105_v19 = vmul.f32 %v93_v57, %v76_v15 }
 0x143   :  { %v131_v20 = vadd.f32 %v110_v59, %v102_v16  ;;  %v132_v21 = vadd.f32 %v114_v60, %v103_v17  ;;  %v133_v22 = vadd.f32 %v118_v61, %v104_v18 }
 0x144   :  { %v134_v23 = vadd.f32 %v122_v62, %v105_v19 }
 0x145   :  { %139 = vst [vmem:[%s228_s3 + $0x20] sm:$0xff] %v131_v20  ;;  %140 = vst [vmem:[%s228_s3 + $0x28] sm:$0xff] %v132_v21 }
 0x146   :  { %141 = vst [vmem:[%s228_s3 + $0x30] sm:$0xff] %v133_v22  ;;  %142 = vst [vmem:[%s228_s3 + $0x38] sm:$0xff] %v134_v23 }

// kernel: mt_forward.64
= control target key start
LH: loop header
LB: loop body
LE: loop exit
PB: predicated region body
PF: predicated region fallthrough
CT: control target
= control target key end

     0   :  { %s1506_s15 = smov 0   ;;  %s1704_s0 = inlined_call_operand.vmem [shape: f32[2,8,8,64], index: 0, kind: input, shape index: {}]   ;;  %s1705_s1 = inlined_call_operand.vmem [shape: f32[2,8,8,64], index: 1, kind: input, shape index: {}]   ;;  %s1706_s2 = inlined_call_operand.vmem [shape: f32[2,8,8,64], index: 2, kind: input, shape index: {}]   ;;  %s1707_s3 = inlined_call_operand.vmem [shape: f32[2,1,8], index: 3, kind: input, shape index: {}]   ;;  %s1708_s4 = inlined_call_operand.vmem [shape: f32[2,8,512], index: 4, kind: output, shape index: {}]  }
   0x1 LB: > { %s1263_s16 = sadd.s32 4294967295, %s1476_s15   ;;  %p1267_p0 = scmp.ge.s32.totalorder %s1476_s15, 1  ;;  %s1476_s15 = sphi %s1506_s15, %s14_s15  }
   0x2   : > { %p190_p1 = scmp.lt.s32.totalorder %s1476_s15, 3 }
   0x4   : > { %p191_p2 = pnand %p1267_p0, %p190_p1 }
   0x5   : > { %p229_p3 = scmp.lt.s32.totalorder (!%p191_p2), %s1263_s16, 1  ;;  %s1480_s30 = smov (!%p191_p2), 64  }
   0x6   : > { %194 = sbr.rel (%p191_p2) target bundleno = 868 (0x364), region = 36 }
   0xb   : > { %v1478_v0 = vmov 0.0   ;;  %s1710_s16 = smov (!%p229_p3, %s1263_s16), 1  ;;  %vm1479_vm0 = vmmov 0   ;;  %vm316_vm1 = vcmask 523264   ;;  %vm685_vm2 = vcmask 64512  }
   0xc   : > { %1331 = vmatprep.subr.bf16.mxu0 %v1478_v0  ;;  %1337 = vmatprep.subr.bf16.mxu1 %v1478_v0  ;;  %s1523_s17 = sshll.u32 %s1710_s16, 6  ;;  %s246_s26 = scalar_lea.vmem %s1707_s3, %s1710_s16  ;;  %vm785_vm3 = vcmask 1043456  }
   0xd   : > { %1333 = vmatprep.mubr.msk.bf16.mxu0 %vm1479_vm0, %v1478_v0  ;;  %1339 = vmatprep.mubr.msk.bf16.mxu1 %vm1479_vm0, %v1478_v0  ;;  %s1529_s20 = scalar_lea.vmem %s1704_s0, %s1523_s17  ;;  %s1535_s23 = scalar_lea.vmem %s1705_s1, %s1523_s17  ;;  %v1276_v49 = vld [vmem:[%s246_s26] ss:$0 sm:$0xff] }
   0xe   : > { %v277_v1 = vld [vmem:[%s1535_s23] sm:$0xff]  ;;  %v278_v2 = vld [vmem:[%s1535_s23 + $0x8] sm:$0xff]  ;;  %v279_v7 = vld [vmem:[%s1535_s23 + $0x10] sm:$0xff]  ;;  %s1623_s29 = scalar_lea.vmem %s1706_s2, %s1523_s17  ;;  %s1298_s5 = sshll.u32 %s1710_s16, 5 }
   0xf   : > { %v253_v3 = vld [vmem:[%s1529_s20] sm:$0xff]  ;;  %v285_v4 = vpack.c.bf16 %v277_v1, %v277_v1  ;;  %v286_v5 = vpack.c.bf16 %v278_v2, %v278_v2  ;;  %v254_v6 = vld [vmem:[%s1529_s20 + $0x8] sm:$0xff]  ;;  %v280_v8 = vld [vmem:[%s1535_s23 + $0x18] sm:$0xff]  ;;  %v287_v13 = vpack.c.bf16 %v279_v7, %v279_v7  ;;  %s251_s8 = scalar_lea.vmem %s1708_s4, %s1298_s5 }
  0x10   : > { %v261_v11 = vmul.f32 0.125, %v253_v3  ;;  %v262_v12 = vmul.f32 0.125, %v254_v6  ;;  %v288_v14 = vpack.c.bf16 %v280_v8, %v280_v8  ;;  %v255_v17 = vld [vmem:[%s1529_s20 + $0x10] sm:$0xff]  ;;  %v256_v18 = vld [vmem:[%s1529_s20 + $0x18] sm:$0xff]  ;;  %v281_v21 = vld [vmem:[%s1535_s23 + $0x20] sm:$0xff] }
  0x11   : > { %v321_v9 = vsel %vm316_vm1, %v285_v4, 0  ;;  %v367_v10 = vsel %vm316_vm1, %v286_v5, 0  ;;  %v413_v19 = vsel %vm316_vm1, %v287_v13, 0  ;;  %v282_v22 = vld [vmem:[%s1535_s23 + $0x28] sm:$0xff]  ;;  %v263_v23 = vmul.f32 0.125, %v255_v17  ;;  %v257_v29 = vld [vmem:[%s1529_s20 + $0x20] sm:$0xff] }
  0x12   : > { %1332 = vmatpush3.bf16.xpose.msra.mxu0 %v321_v9  ;;  %1338 = vmatpush3.bf16.xpose.msra.mxu1 %v367_v10  ;;  %v269_v15 = vpack.c.bf16 %v261_v11, %v261_v11  ;;  %v270_v16 = vpack.c.bf16 %v262_v12, %v262_v12  ;;  %v459_v20 = vsel %vm316_vm1, %v288_v14, 0  ;;  %v264_v24 = vmul.f32 0.125, %v256_v18  ;;  %v258_v30 = vld [vmem:[%s1529_s20 + $0x28] sm:$0xff]  ;;  %v284_v33 = vld [vmem:[%s1535_s23 + $0x38] sm:$0xff]  ;;  %v283_v36 = vld [vmem:[%s1535_s23 + $0x30] sm:$0xff] }
  0x13   : > { %1343 = vmatprep.subr.bf16.mxu0 %v1478_v0  ;;  %1349 = vmatprep.subr.bf16.mxu1 %v1478_v0  ;;  %v289_v25 = vpack.c.bf16 %v281_v21, %v281_v21  ;;  %v290_v26 = vpack.c.bf16 %v282_v22, %v282_v22  ;;  %v271_v27 = vpack.c.bf16 %v263_v23, %v263_v23  ;;  %v265_v34 = vmul.f32 0.125, %v257_v29  ;;  %v260_v41 = vld [vmem:[%s1529_s20 + $0x38] sm:$0xff]  ;;  %v259_v43 = vld [vmem:[%s1529_s20 + $0x30] sm:$0xff] }
  0x14   : > { %v272_v28 = vpack.c.bf16 %v264_v24, %v264_v24  ;;  %v266_v35 = vmul.f32 0.125, %v258_v30  ;;  %v292_v37 = vpack.c.bf16 %v284_v33, %v284_v33  ;;  %v291_v38 = vpack.c.bf16 %v283_v36, %v283_v36 }
  0x15   : > { %v505_v31 = vsel %vm316_vm1, %v289_v25, 0  ;;  %v551_v32 = vsel %vm316_vm1, %v290_v26, 0  ;;  %v273_v39 = vpack.c.bf16 %v265_v34, %v265_v34  ;;  %v268_v45 = vmul.f32 0.125, %v260_v41 }
  0x16   : > { %v274_v40 = vpack.c.bf16 %v266_v35, %v266_v35  ;;  %v643_v42 = vsel %vm316_vm1, %v292_v37, 0  ;;  %v597_v44 = vsel %vm316_vm1, %v291_v38, 0  ;;  %v267_v46 = vmul.f32 0.125, %v259_v43 }
  0x17   : > { %v276_v47 = vpack.c.bf16 %v268_v45, %v268_v45 }
  0x18   : > { %v275_v48 = vpack.c.bf16 %v267_v46, %v267_v46 }
  0x19   : > { %1334 = vmatmul.mubr.msk.bf16.vlgmr.msra.gmra.mxu0 %vm316_vm1, %v269_v15  ;;  %1340 = vmatmul.mubr.msk.bf16.vlgmr.msra.gmra.mxu1 %vm316_vm1, %v270_v16 }
  0x1a   : > { %1344 = vmatpush3.bf16.xpose.msra.mxu0 %v413_v19  ;;  %1350 = vmatpush3.bf16.xpose.msra.mxu1 %v459_v20 }
  0x1b   : > { %1345 = vmatprep.mubr.msk.bf16.mxu0 %vm1479_vm0, %v1478_v0  ;;  %1351 = vmatprep.mubr.msk.bf16.mxu1 %vm1479_vm0, %v1478_v0 }
  0x1c   : > { %1355 = vmatprep.subr.bf16.mxu0 %v1478_v0  ;;  %1361 = vmatprep.subr.bf16.mxu1 %v1478_v0 }
  0x21   : > { %1346 = vmatmul.mubr.msk.bf16.vlgmr.msra.gmra.mxu0 %vm316_vm1, %v271_v27  ;;  %1352 = vmatmul.mubr.msk.bf16.vlgmr.msra.gmra.mxu1 %vm316_vm1, %v272_v28 }
  0x22   : > { %1356 = vmatpush3.bf16.xpose.msra.mxu0 %v505_v31  ;;  %1362 = vmatpush3.bf16.xpose.msra.mxu1 %v551_v32 }
  0x23   : > { %1357 = vmatprep.mubr.msk.bf16.mxu0 %vm1479_vm0, %v1478_v0  ;;  %1363 = vmatprep.mubr.msk.bf16.mxu1 %vm1479_vm0, %v1478_v0 }
  0x24   : > { %1373 = vmatprep.subr.bf16.mxu1 %v1478_v0  ;;  %1367 = vmatprep.subr.bf16.mxu0 %v1478_v0 }
  0x29   : > { %1358 = vmatmul.mubr.msk.bf16.vlgmr.msra.gmra.mxu0 %vm316_vm1, %v273_v39  ;;  %1364 = vmatmul.mubr.msk.bf16.vlgmr.msra.gmra.mxu1 %vm316_vm1, %v274_v40 }
  0x2a   : > { %1374 = vmatpush3.bf16.xpose.msra.mxu1 %v643_v42  ;;  %1375 = vmatprep.mubr.msk.bf16.mxu1 %vm1479_vm0, %v1478_v0 }
  0x2b   : > { %1368 = vmatpush3.bf16.xpose.msra.mxu0 %v597_v44  ;;  %1369 = vmatprep.mubr.msk.bf16.mxu0 %vm1479_vm0, %v1478_v0 }
  0x2c   : > { %1385 = vmatprep.subr.bf16.mxu1 %v1478_v0  ;;  %1379 = vmatprep.subr.bf16.mxu0 %v1478_v0 }
  0x31   : > { %1376 = vmatmul.mubr.msk.bf16.vlgmr.msra.gmra.mxu1 %vm316_vm1, %v276_v47 }
  0x32   : > { %1370 = vmatmul.mubr.msk.bf16.vlgmr.msra.gmra.mxu0 %vm316_vm1, %v275_v48  ;;  %1387 = vmatprep.mubr.msk.bf16.mxu1 %vm1479_vm0, %v1478_v0 }
  0x33   : > { %1381 = vmatprep.mubr.msk.bf16.mxu0 %vm1479_vm0, %v1478_v0 }
  0xd9   : > { %v357_v50 = vpop.f32.mrf.mxu0  ;;  %v403_v51 = vpop.f32.mrf.mxu1 }
  0xda   : > { %v404_v52 = vadd.f32 %v1276_v49, %v403_v51  ;;  %v358_v62 = vadd.f32 %v1276_v49, %v357_v50 }
  0xdb   : > { %v1335_v53 = vpop.f32.mrf.mxu0  ;;  %v1341_v54 = vpop.f32.mrf.mxu1 }
  0xdc   : > { %v689_v55 = vsel %vm685_vm2, %v404_v52, -inf  ;;  %v686_v6 = vsel %vm685_vm2, %v358_v62, -inf }
  0xdd   : > { %690 = vmax.xlane.f32.xlu0 %v689_v55  ;;  %v360_v56 = vpop.f32.mrf.mxu0  ;;  %v406_v57 = vpop.f32.mrf.mxu1 }
  0xdf   : > { %v1336_v58 = vpop.f32.mrf.mxu0  ;;  %v1342_v59 = vpop.f32.mrf.mxu1 }
  0xe1   : > { %v449_v60 = vpop.f32.mrf.mxu0  ;;  %v495_v61 = vpop.f32.mrf.mxu1 }
  0xe2   : > { %v496_v63 = vadd.f32 %v1276_v49, %v495_v61  ;;  %v450_v22 = vadd.f32 %v1276_v49, %v449_v60 }
  0xe3   : > { %v1347_v1 = vpop.f32.mrf.mxu0  ;;  %v1353_v2 = vpop.f32.mrf.mxu1 }
  0xe4   : > { %v695_v3 = vsel %vm685_vm2, %v496_v63, -inf  ;;  %v692_v29 = vsel %vm685_vm2, %v450_v22, -inf }
  0xe5   : > { %696 = vmax.xlane.f32.xlu0 %v695_v3  ;;  %v452_v4 = vpop.f32.mrf.mxu0  ;;  %v498_v5 = vpop.f32.mrf.mxu1 }
  0xe6   : > { %v294_v4 = vld [vmem:[%s1623_s29 + $0x8] sm:$0xff] }
  0xe7   : > { %v1348_v7 = vpop.f32.mrf.mxu0  ;;  %v1354_v8 = vpop.f32.mrf.mxu1 }
  0xe9   : > { %v587_v9 = vpop.f32.mrf.mxu1  ;;  %687 = vmax.xlane.f32.xlu0 %v686_v6  ;;  %v541_v10 = vpop.f32.mrf.mxu0  ;;  %v302_v6 = vpack.c.bf16 %v294_v4, %v294_v4 }
  0xea   : > { %v588_v11 = vadd.f32 %v1276_v49, %v587_v9  ;;  %v542_v12 = vadd.f32 %v1276_v49, %v541_v10 }
  0xeb   : > { %v1365_v13 = vpop.f32.mrf.mxu1  ;;  %v1359_v14 = vpop.f32.mrf.mxu0  ;;  %v833_v8 = vsel %vm785_vm3, %v302_v6, 0 }
  0xec   : > { %v701_v15 = vsel %vm685_vm2, %v588_v11, -inf  ;;  %v698_v16 = vsel %vm685_vm2, %v542_v12, -inf  ;;  %1386 = vmatpush3.bf16.msra.mxu1 %v833_v8  ;;  %v296_v13 = vld [vmem:[%s1623_s29 + $0x18] sm:$0xff] }
  0xed   : > { %702 = vmax.xlane.f32.xlu1 %v701_v15  ;;  %v590_v17 = vpop.f32.mrf.mxu1  ;;  %699 = vmax.xlane.f32.xlu0 %v698_v16  ;;  %v544_v18 = vpop.f32.mrf.mxu0  ;;  %v304_v14 = vpack.c.bf16 %v296_v13, %v296_v13 }
  0xee   : > { %1397 = vmatprep.subr.bf16.mxu1 %v1478_v0  ;;  %v298_v18 = vld [vmem:[%s1623_s29 + $0x28] sm:$0xff] }
  0xef   : > { %v1366_v19 = vpop.f32.mrf.mxu1  ;;  %v1360_v20 = vpop.f32.mrf.mxu0  ;;  %v925_v17 = vsel %vm785_vm3, %v304_v14, 0 }
  0xf0   : > { %v306_v19 = vpack.c.bf16 %v298_v18, %v298_v18 }
  0xf1   : > { %v679_v21 = vpop.f32.mrf.mxu1 }
  0xf2   : > { %v680_v23 = vadd.f32 %v1276_v49, %v679_v21  ;;  %v633_v24 = vpop.f32.mrf.mxu0  ;;  %v1017_v20 = vsel %vm785_vm3, %v306_v19, 0  ;;  %v293_v21 = vld [vmem:[%s1623_s29] sm:$0xff] }
  0xf3   : > { %v1377_v25 = vpop.f32.mrf.mxu1  ;;  %v634_v30 = vadd.f32 %v1276_v49, %v633_v24 }
  0xf4   : > { %v707_v26 = vsel %vm685_vm2, %v680_v23, -inf  ;;  %v1371_v27 = vpop.f32.mrf.mxu0 }
  0xf5   : > { %708 = vmax.xlane.f32.xlu1 %v707_v26  ;;  %v682_v28 = vpop.f32.mrf.mxu1  ;;  %v704_v34 = vsel %vm685_vm2, %v634_v30, -inf  ;;  %v295_v27 = vld [vmem:[%s1623_s29 + $0x10] sm:$0xff] }
  0xf6   : > { %v636_v31 = vpop.f32.mrf.mxu0  ;;  %v303_v28 = vpack.c.bf16 %v295_v27, %v295_v27 }
  0xf7   : > { %v1378_v32 = vpop.f32.mrf.mxu1 }
  0xf8   : > { %v1372_v33 = vpop.f32.mrf.mxu0 }
  0xf9   : > { %693 = vmax.xlane.f32.xlu1 %v692_v29  ;;  %v879_v29 = vsel %vm785_vm3, %v303_v28, 0  ;;  %v299_v33 = vld [vmem:[%s1623_s29 + $0x30] sm:$0xff] }
  0xfd   : > { %705 = vmax.xlane.f32.xlu1 %v704_v34  ;;  %v307_v34 = vpack.c.bf16 %v299_v33, %v299_v33 }
 0x166   : > { %v691_v35 = vpop.xlane.xlu0 %690 }
 0x167   : > { %v711_v36 = vsub.f32 %v404_v52, %v691_v35  ;;  %v1063_v35 = vsel %vm785_vm3, %v307_v34, 0 }
 0x169   : > { %v720_v37 = vmul.f32 1.442695, %v711_v36 }
 0x16b   : > { %1438 = vpow2.f32 %v720_v37 }
 0x16e   : > { %v697_v38 = vpop.xlane.xlu0 %696 }
 0x16f   : > { %v713_v39 = vsub.f32 %v496_v63, %v697_v38 }
 0x171   : > { %v724_v40 = vmul.f32 1.442695, %v713_v39 }
 0x172   : > { %v688_v41 = vpop.xlane.xlu0 %687 }
 0x173   : > { %1440 = vpow2.f32 %v724_v40  ;;  %v710_v42 = vsub.f32 %v358_v62, %v688_v41 }
 0x175   : > { %v718_v47 = vmul.f32 1.442695, %v710_v42 }
 0x176   : > { %v703_v43 = vpop.xlane.xlu1 %702  ;;  %v700_v44 = vpop.xlane.xlu0 %699 }
 0x177   : > { %v715_v45 = vsub.f32 %v588_v11, %v703_v43  ;;  %v714_v49 = vsub.f32 %v542_v12, %v700_v44 }
 0x178   : > { %v1605_v46 = vpop.eup %1438 }
 0x179   : > { %v728_v48 = vmul.f32 1.442695, %v715_v45  ;;  %v737_v50 = vsel %vm685_vm2, %v1605_v46, 0.0  ;;  %v726_v51 = vmul.f32 1.442695, %v714_v49 }
 0x17a   : > { %738 = vadd.xlane.f32.xlu0 %v737_v50 }
 0x17b   : > { %1442 = vpow2.f32 %v728_v48 }
 0x17c   : > { %1444 = vpow2.f32 %v718_v47 }
 0x17d   : > { %1446 = vpow2.f32 %v726_v51 }
 0x17e   : > { %v709_v52 = vpop.xlane.xlu1 %708 }
 0x17f   : > { %v717_v53 = vsub.f32 %v680_v23, %v709_v52  ;;  %v300_v23 = vld [vmem:[%s1623_s29 + $0x38] sm:$0xff] }
 0x180   : > { %v1609_v54 = vpop.eup %1440  ;;  %v308_v25 = vpack.c.bf16 %v300_v23, %v300_v23 }
 0x181   : > { %v732_v55 = vmul.f32 1.442695, %v717_v53  ;;  %v743_v56 = vsel %vm685_vm2, %v1609_v54, 0.0 }
 0x182   : > { %v694_v57 = vpop.xlane.xlu1 %693  ;;  %744 = vadd.xlane.f32.xlu1 %v743_v56  ;;  %v1109_v26 = vsel %vm785_vm3, %v308_v25, 0 }
 0x183   : > { %1448 = vpow2.f32 %v732_v55  ;;  %v712_v58 = vsub.f32 %v450_v22, %v694_v57  ;;  %v301_v22 = vpack.c.bf16 %v293_v21, %v293_v21 }
 0x185   : > { %v722_v59 = vmul.f32 1.442695, %v712_v58  ;;  %v787_v24 = vsel %vm785_vm3, %v301_v22, 0 }
 0x186   : > { %v706_v60 = vpop.xlane.xlu1 %705  ;;  %1380 = vmatpush3.bf16.msra.mxu0 %v787_v24 }
 0x187   : > { %1450 = vpow2.f32 %v722_v59  ;;  %v716_v61 = vsub.f32 %v634_v30, %v706_v60  ;;  %1391 = vmatprep.subr.bf16.mxu0 %v1478_v0  ;;  %v297_v30 = vld [vmem:[%s1623_s29 + $0x20] sm:$0xff] }
 0x188   : > { %v1613_v62 = vpop.eup %1442  ;;  %v305_v31 = vpack.c.bf16 %v297_v30, %v297_v30 }
 0x189   : > { %v730_v63 = vmul.f32 1.442695, %v716_v61  ;;  %v749_v1 = vsel %vm685_vm2, %v1613_v62, 0.0  ;;  %v1617_v2 = vpop.eup %1444 }
 0x18a   : > { %750 = vadd.xlane.f32.xlu0 %v749_v1  ;;  %v734_v3 = vsel %vm685_vm2, %v1617_v2, 0.0  ;;  %v1628_v5 = vpop.eup %1446  ;;  %v971_v32 = vsel %vm785_vm3, %v305_v31, 0 }
 0x18b   : > { %1452 = vpow2.f32 %v730_v63  ;;  %v746_v9 = vsel %vm685_vm2, %v1628_v5, 0.0 }
 0x18e   : > { %735 = vadd.xlane.f32.xlu0 %v734_v3 }
 0x190   : > { %v1630_v7 = vpop.eup %1448 }
 0x191   : > { %v755_v10 = vsel %vm685_vm2, %v1630_v7, 0.0 }
 0x192   : > { %747 = vadd.xlane.f32.xlu0 %v746_v9  ;;  %756 = vadd.xlane.f32.xlu1 %v755_v10 }
 0x194   : > { %v1638_v11 = vpop.eup %1450 }
 0x195   : > { %v740_v12 = vsel %vm685_vm2, %v1638_v11, 0.0 }
 0x196   : > { %741 = vadd.xlane.f32.xlu1 %v740_v12 }
 0x198   : > { %v1643_v15 = vpop.eup %1452 }
 0x199   : > { %v752_v16 = vsel %vm685_vm2, %v1643_v15, 0.0 }
 0x19a   : > { %753 = vadd.xlane.f32.xlu1 %v752_v16 }
 0x203   : > { %v739_v36 = vpop.xlane.xlu0 %738 }
 0x204   : > { %1454 = vrcp.f32 %v739_v36 }
 0x20b   : > { %v745_v37 = vpop.xlane.xlu1 %744 }
 0x20c   : > { %1456 = vrcp.f32 %v745_v37 }
 0x211   : > { %v1455_v38 = vpop.eup %1454 }
 0x212   : > { %v767_v39 = vmul.f32 %v1455_v38, %v1605_v46 }
 0x213   : > { %v751_v40 = vpop.xlane.xlu0 %750 }
 0x214   : > { %1458 = vrcp.f32 %v751_v40  ;;  %v775_v41 = vpack.c.bf16 %v767_v39, %v767_v39 }
 0x216   : > { %1388 = vmatmul.mubr.msk.bf16.vlgmr.msra.gmra.mxu1 %vm685_vm2, %v775_v41 }
 0x217   : > { %1398 = vmatpush3.bf16.msra.mxu1 %v925_v17  ;;  %v736_v42 = vpop.xlane.xlu0 %735  ;;  %1399 = vmatprep.mubr.msk.bf16.mxu1 %vm1479_vm0, %v1478_v0 }
 0x218   : > { %1460 = vrcp.f32 %v736_v42  ;;  %1409 = vmatprep.subr.bf16.mxu1 %v1478_v0 }
 0x219   : > { %v1457_v43 = vpop.eup %1456 }
 0x21a   : > { %v769_v44 = vmul.f32 %v1457_v43, %v1609_v54 }
 0x21b   : > { %v757_v45 = vpop.xlane.xlu1 %756  ;;  %v748_v49 = vpop.xlane.xlu0 %747 }
 0x21c   : > { %v777_v47 = vpack.c.bf16 %v769_v44, %v769_v44  ;;  %1462 = vrcp.f32 %v757_v45 }
 0x21e   : > { %1400 = vmatmul.mubr.msk.bf16.vlgmr.msra.gmra.mxu1 %vm685_vm2, %v777_v47 }
 0x21f   : > { %1410 = vmatpush3.bf16.msra.mxu1 %v1017_v20  ;;  %v742_v46 = vpop.xlane.xlu1 %741  ;;  %1411 = vmatprep.mubr.msk.bf16.mxu1 %vm1479_vm0, %v1478_v0 }
 0x220   : > { %1464 = vrcp.f32 %v742_v46  ;;  %1421 = vmatprep.subr.bf16.mxu1 %v1478_v0 }
 0x221   : > { %v1459_v48 = vpop.eup %1458  ;;  %1466 = vrcp.f32 %v748_v49 }
 0x222   : > { %v771_v50 = vmul.f32 %v1459_v48, %v1613_v62 }
 0x223   : > { %v754_v55 = vpop.xlane.xlu1 %753 }
 0x224   : > { %v779_v51 = vpack.c.bf16 %v771_v50, %v771_v50  ;;  %1468 = vrcp.f32 %v754_v55 }
 0x225   : > { %v1461_v52 = vpop.eup %1460 }
 0x226   : > { %1412 = vmatmul.mubr.msk.bf16.vlgmr.msra.gmra.mxu1 %vm685_vm2, %v779_v51  ;;  %v766_v53 = vmul.f32 %v1461_v52, %v1617_v2 }
 0x227   : > { %1422 = vmatpush3.bf16.msra.mxu1 %v1109_v26  ;;  %1423 = vmatprep.mubr.msk.bf16.mxu1 %vm1479_vm0, %v1478_v0 }
 0x228   : > { %v774_v54 = vpack.c.bf16 %v766_v53, %v766_v53 }
 0x229   : > { %v1463_v56 = vpop.eup %1462 }
 0x22a   : > { %1382 = vmatmul.mubr.msk.bf16.vlgmr.msra.gmra.mxu0 %vm685_vm2, %v774_v54  ;;  %v773_v57 = vmul.f32 %v1463_v56, %v1630_v7 }
 0x22b   : > { %1392 = vmatpush3.bf16.msra.mxu0 %v879_v29  ;;  %1393 = vmatprep.mubr.msk.bf16.mxu0 %vm1479_vm0, %v1478_v0 }
 0x22c   : > { %1403 = vmatprep.subr.bf16.mxu0 %v1478_v0  ;;  %v781_v59 = vpack.c.bf16 %v773_v57, %v773_v57 }
 0x22d   : > { %v1465_v58 = vpop.eup %1464 }
 0x22e   : > { %v768_v60 = vmul.f32 %v1465_v58, %v1638_v11  ;;  %1424 = vmatmul.mubr.msk.bf16.vlgmr.msra.gmra.mxu1 %vm685_vm2, %v781_v59  ;;  %v1467_v62 = vpop.eup %1466 }
 0x22f   : > { %v770_v63 = vmul.f32 %v1467_v62, %v1628_v5 }
 0x230   : > { %v776_v61 = vpack.c.bf16 %v768_v60, %v768_v60 }
 0x231   : > { %v778_v1 = vpack.c.bf16 %v770_v63, %v770_v63  ;;  %v1469_v2 = vpop.eup %1468 }
 0x232   : > { %1394 = vmatmul.mubr.msk.bf16.vlgmr.msra.gmra.mxu0 %vm685_vm2, %v776_v61  ;;  %v772_v3 = vmul.f32 %v1469_v2, %v1643_v15 }
 0x233   : > { %1404 = vmatpush3.bf16.msra.mxu0 %v971_v32  ;;  %1405 = vmatprep.mubr.msk.bf16.mxu0 %vm1479_vm0, %v1478_v0 }
 0x234   : > { %1415 = vmatprep.subr.bf16.mxu0 %v1478_v0  ;;  %v780_v4 = vpack.c.bf16 %v772_v3, %v772_v3 }
 0x23a   : > { %1406 = vmatmul.mubr.msk.bf16.vlgmr.msra.gmra.mxu0 %vm685_vm2, %v778_v1 }
 0x23b   : > { %1416 = vmatpush3.bf16.msra.mxu0 %v1063_v35  ;;  %1417 = vmatprep.mubr.msk.bf16.mxu0 %vm1479_vm0, %v1478_v0 }
 0x242   : > { %1418 = vmatmul.mubr.msk.bf16.vlgmr.msra.gmra.mxu0 %vm685_vm2, %v780_v4 }
 0x2d6   : > { %v869_v6 = vpop.f32.mrf.mxu1 }
 0x2d7   : > { %1152 = vrot.lane.b32.xlu0 %v869_v6, %s1480_s30 }
 0x2d8   : > { %v1389_v7 = vpop.f32.mrf.mxu1 }
 0x2da   : > { %v872_v5 = vpop.f32.mrf.mxu1 }
 0x2dc   : > { %v1390_v8 = vpop.f32.mrf.mxu1 }
 0x2de   : > { %v961_v9 = vpop.f32.mrf.mxu1 }
 0x2df   : > { %1156 = vrot.lane.b32.xlu1 %v961_v9, %s1480_s30 }
 0x2e0   : > { %v1401_v10 = vpop.f32.mrf.mxu1 }
 0x2e2   : > { %v964_v11 = vpop.f32.mrf.mxu1 }
 0x2e4   : > { %v1402_v12 = vpop.f32.mrf.mxu1 }
 0x2e6   : > { %v1053_v13 = vpop.f32.mrf.mxu1 }
 0x2e7   : > { %1160 = vrot.lane.b32.xlu1 %v1053_v13, %s1480_s30 }
 0x2e8   : > { %v1413_v14 = vpop.f32.mrf.mxu1 }
 0x2ea   : > { %v823_v0 = vpop.f32.mrf.mxu0  ;;  %v1056_v16 = vpop.f32.mrf.mxu1 }
 0x2ec   : > { %v1383_v15 = vpop.f32.mrf.mxu0  ;;  %v1414_v17 = vpop.f32.mrf.mxu1 }
 0x2ee   : > { %v826_v18 = vpop.f32.mrf.mxu0  ;;  %v1145_v19 = vpop.f32.mrf.mxu1 }
 0x2ef   : > { %1164 = vrot.lane.b32.xlu1 %v1145_v19, %s1480_s30 }
 0x2f0   : > { %v1384_v20 = vpop.f32.mrf.mxu0  ;;  %v1425_v21 = vpop.f32.mrf.mxu1 }
 0x2f2   : > { %v915_v22 = vpop.f32.mrf.mxu0  ;;  %v1148_v23 = vpop.f32.mrf.mxu1 }
 0x2f4   : > { %v1395_v24 = vpop.f32.mrf.mxu0  ;;  %v1426_v25 = vpop.f32.mrf.mxu1 }
 0x2f6   : > { %v918_v26 = vpop.f32.mrf.mxu0 }
 0x2f8   : > { %v1396_v27 = vpop.f32.mrf.mxu0 }
 0x2fa   : > { %v1007_v28 = vpop.f32.mrf.mxu0 }
 0x2fc   : > { %v1407_v29 = vpop.f32.mrf.mxu0 }
 0x2fe   : > { %v1010_v30 = vpop.f32.mrf.mxu0 }
 0x300   : > { %v1408_v31 = vpop.f32.mrf.mxu0 }
 0x302   : > { %v1099_v32 = vpop.f32.mrf.mxu0 }
 0x304   : > { %v1419_v33 = vpop.f32.mrf.mxu0 }
 0x306   : > { %v1102_v34 = vpop.f32.mrf.mxu0 }
 0x308   : > { %v1420_v35 = vpop.f32.mrf.mxu0 }
 0x349   : > { %v1153_v36 = vpop.permute.xlu0 %1152 }
 0x34a   : > { %v1167_v37 = vsel %vm316_vm1, %v823_v0, %v1153_v36 }
 0x34b   : > { %1171 = vst [vmem:[%s251_s8] sm:$0xff] %v1167_v37 }
 0x351   : > { %v1157_v38 = vpop.permute.xlu1 %1156 }
 0x352   : > { %v1168_v39 = vsel %vm316_vm1, %v915_v22, %v1157_v38 }
 0x353   : > { %1172 = vst [vmem:[%s251_s8 + $0x8] sm:$0xff] %v1168_v39 }
 0x359   : > { %v1161_v40 = vpop.permute.xlu1 %1160 }
 0x35a   : > { %v1169_v41 = vsel %vm316_vm1, %v1007_v28, %v1161_v40 }
 0x35b   : > { %1173 = vst [vmem:[%s251_s8 + $0x10] sm:$0xff] %v1169_v41 }
 0x361   : > { %v1165_v42 = vpop.permute.xlu1 %1164 }
 0x362   : > { %v1170_v43 = vsel %vm316_vm1, %v1099_v32, %v1165_v42 }
 0x363   : > { %1174 = vst [vmem:[%s251_s8 + $0x18] sm:$0xff] %v1170_v43 }
 0x364 PF: > { %s14_s15 = sadd.s32 1, %s1476_s15  }
 0x365   : > { %p11_p4 = scmp.ge.s32.totalorder %s14_s15, 4  }
 0x367   :  { %13 = sbr.rel (!%p11_p4) target bundleno = 1 (0x1), region = 75 }

// kernel: mt_forward.88
= control target key start
LH: loop header
LB: loop body
LE: loop exit
PB: predicated region body
PF: predicated region fallthrough
CT: control target
= control target key end

     0   :  { %s2057_s12 = smov 0   ;;  %s2059_s13 = smov 0   ;;  %s2585_s0 = inlined_call_operand.vmem [shape: f32[16,512], index: 0, kind: input, shape index: {}]   ;;  %s2586_s1 = inlined_call_operand.vmem [shape: bf16[512,1024], index: 1, kind: input, shape index: {}]   ;;  %s2587_s2 = inlined_call_operand.vmem [shape: f32[1,1024], index: 2, kind: input, shape index: {}]   ;;  %s2588_s3 = inlined_call_operand.vmem [shape: f32[16,1024], index: 3, kind: output, shape index: {}]  }
   0x1   :  { %s2061_s14 = smov 0   ;;  %s2063_s15 = smov 0  }
   0x2   :  { %s2065_s16 = smov 0  }
   0x3 LB: > { %s22_s17 = sadd.s32 1, %s2031_s15  ;;  %s1618_s18 = sadd.s32 4294967295, %s2035_s16   ;;  %s2035_s16 = sphi %s2065_s16, %s13_s16   ;;  %s2031_s15 = sphi %s2063_s15, %s2593_s15   ;;  %s2027_s14 = sphi %s2061_s14, %s2592_s14   ;;  %s2023_s13 = sphi %s2059_s13, %s2591_s13   ;;  %s2019_s12 = sphi %s2057_s12, %s2590_s12  }
   0x4   : > { %p23_p0 = scmp.ge.s32.totalorder %s22_s17, 2  ;;  %p65_p1 = scmp.ne.s32.totalorder %s2023_s13, %s2019_s12 }
   0x5   : > { %p66_p2 = scmp.eq.s32.totalorder %s2035_s16, 0  ;;  %p123_p4 = scmp.eq.s32.totalorder %s1618_s18, 1 }
   0x6   : > { %s2595_s17 = smov (%p23_p0, %s22_s17), 0  ;;  %s58_s20 = sadd.s32 1, %s2023_s13 }
   0x7   : > { %p67_p3 = por %p66_p2, %p65_p1  ;;  %s55_s19 = ssub.s32 %s2031_s15, %s2595_s17 }
   0x8   : > { %p56_p5 = scmp.eq.s32.totalorder %s55_s19, 0  ;;  %p2092_p6 = por %p123_p4, %p65_p1 }
   0x9   : > { %p1622_p7 = scmp.ge.s32.totalorder %s2035_s16, 2 }
   0xa   : > { %s2097_s22 = scalar_select %p56_p5, %s2023_s13, %s58_s20  }
   0xb   : > { %155 = sbr.rel (%p1622_p7) target bundleno = 84 (0x54), region = 20 }
  0x10   : > { %158 = sbr.rel (!%p67_p3) target bundleno = 84 (0x54), region = 24  ;;  %s160_s23 = sand.u32 (%p67_p3), 1, %s2023_s13  }
  0x11   : > { %s1763_s24 = sshll.u32 (%p67_p3), %s2031_s15, 4  ;;  %s1623_s25 = sshll.u32 (%p67_p3), %s160_s23, 10 }
  0x12   : > { %s2105_s28 = scalar_lea.vmem (%p67_p3), %s2586_s1, %s1763_s24  ;;  %s2110_s29 = scalar_lea.vmem (%p67_p3), [#allocation2], %s1623_s25 }
  0x13   : > { %v178_v0 = vld [vmem:[%s2105_s28] sm:$0xff] (%p67_p3)  ;;  %v180_v1 = vld [vmem:[%s2105_s28 + $0x8] sm:$0xff] (%p67_p3) }
  0x14   : > { %v182_v2 = vld [vmem:[%s2105_s28 + $0x20] sm:$0xff] (%p67_p3)  ;;  %179 = vst [vmem:[%s2110_s29] sm:$0xff] (%p67_p3), %v178_v0  ;;  %181 = vst [vmem:[%s2110_s29 + $0x8] sm:$0xff] (%p67_p3), %v180_v1  ;;  %v184_v3 = vld [vmem:[%s2105_s28 + $0x28] sm:$0xff] (%p67_p3) }
  0x15   : > { %183 = vst [vmem:[%s2110_s29 + $0x10] sm:$0xff] %v182_v2  ;;  %v186_v4 = vld [vmem:[%s2105_s28 + $0x40] sm:$0xff]  ;;  %v188_v5 = vld [vmem:[%s2105_s28 + $0x48] sm:$0xff]  ;;  %185 = vst [vmem:[%s2110_s29 + $0x18] sm:$0xff] %v184_v3 }
  0x16   : > { %187 = vst [vmem:[%s2110_s29 + $0x20] sm:$0xff] %v186_v4  ;;  %189 = vst [vmem:[%s2110_s29 + $0x28] sm:$0xff] %v188_v5  ;;  %v190_v6 = vld [vmem:[%s2105_s28 + $0x60] sm:$0xff]  ;;  %v192_v7 = vld [vmem:[%s2105_s28 + $0x68] sm:$0xff] }
  0x17   : > { %v194_v8 = vld [vmem:[%s2105_s28 + $0x80] sm:$0xff]  ;;  %191 = vst [vmem:[%s2110_s29 + $0x30] sm:$0xff] %v190_v6  ;;  %193 = vst [vmem:[%s2110_s29 + $0x38] sm:$0xff] %v192_v7  ;;  %v196_v9 = vld [vmem:[%s2105_s28 + $0x88] sm:$0xff] }
  0x18   : > { %195 = vst [vmem:[%s2110_s29 + $0x40] sm:$0xff] %v194_v8  ;;  %v198_v10 = vld [vmem:[%s2105_s28 + $0xa0] sm:$0xff]  ;;  %v200_v11 = vld [vmem:[%s2105_s28 + $0xa8] sm:$0xff]  ;;  %197 = vst [vmem:[%s2110_s29 + $0x48] sm:$0xff] %v196_v9 }
  0x19   : > { %199 = vst [vmem:[%s2110_s29 + $0x50] sm:$0xff] %v198_v10  ;;  %201 = vst [vmem:[%s2110_s29 + $0x58] sm:$0xff] %v200_v11  ;;  %v202_v12 = vld [vmem:[%s2105_s28 + $0xc0] sm:$0xff]  ;;  %v204_v13 = vld [vmem:[%s2105_s28 + $0xc8] sm:$0xff] }
  0x1a   : > { %v206_v14 = vld [vmem:[%s2105_s28 + $0xe0] sm:$0xff]  ;;  %203 = vst [vmem:[%s2110_s29 + $0x60] sm:$0xff] %v202_v12  ;;  %205 = vst [vmem:[%s2110_s29 + $0x68] sm:$0xff] %v204_v13  ;;  %v208_v15 = vld [vmem:[%s2105_s28 + $0xe8] sm:$0xff] }
  0x1b   : > { %207 = vst [vmem:[%s2110_s29 + $0x70] sm:$0xff] %v206_v14  ;;  %v210_v16 = vld [vmem:[%s2105_s28 + $0x100] sm:$0xff]  ;;  %v212_v17 = vld [vmem:[%s2105_s28 + $0x108] sm:$0xff]  ;;  %209 = vst [vmem:[%s2110_s29 + $0x78] sm:$0xff] %v208_v15 }
  0x1c   : > { %211 = vst [vmem:[%s2110_s29 + $0x80] sm:$0xff] %v210_v16  ;;  %213 = vst [vmem:[%s2110_s29 + $0x88] sm:$0xff] %v212_v17  ;;  %v214_v18 = vld [vmem:[%s2105_s28 + $0x120] sm:$0xff]  ;;  %v216_v19 = vld [vmem:[%s2105_s28 + $0x128] sm:$0xff] }
  0x1d   : > { %v218_v20 = vld [vmem:[%s2105_s28 + $0x140] sm:$0xff]  ;;  %215 = vst [vmem:[%s2110_s29 + $0x90] sm:$0xff] %v214_v18  ;;  %217 = vst [vmem:[%s2110_s29 + $0x98] sm:$0xff] %v216_v19  ;;  %v220_v21 = vld [vmem:[%s2105_s28 + $0x148] sm:$0xff] }
  0x1e   : > { %219 = vst [vmem:[%s2110_s29 + $0xa0] sm:$0xff] %v218_v20  ;;  %v222_v22 = vld [vmem:[%s2105_s28 + $0x160] sm:$0xff]  ;;  %v224_v23 = vld [vmem:[%s2105_s28 + $0x168] sm:$0xff]  ;;  %221 = vst [vmem:[%s2110_s29 + $0xa8] sm:$0xff] %v220_v21 }
  0x1f   : > { %223 = vst [vmem:[%s2110_s29 + $0xb0] sm:$0xff] %v222_v22  ;;  %225 = vst [vmem:[%s2110_s29 + $0xb8] sm:$0xff] %v224_v23  ;;  %v226_v24 = vld [vmem:[%s2105_s28 + $0x180] sm:$0xff]  ;;  %v228_v25 = vld [vmem:[%s2105_s28 + $0x188] sm:$0xff] }
  0x20   : > { %v230_v26 = vld [vmem:[%s2105_s28 + $0x1a0] sm:$0xff]  ;;  %227 = vst [vmem:[%s2110_s29 + $0xc0] sm:$0xff] %v226_v24  ;;  %229 = vst [vmem:[%s2110_s29 + $0xc8] sm:$0xff] %v228_v25  ;;  %v232_v27 = vld [vmem:[%s2105_s28 + $0x1a8] sm:$0xff] }
  0x21   : > { %231 = vst [vmem:[%s2110_s29 + $0xd0] sm:$0xff] %v230_v26  ;;  %v234_v28 = vld [vmem:[%s2105_s28 + $0x1c0] sm:$0xff]  ;;  %v236_v29 = vld [vmem:[%s2105_s28 + $0x1c8] sm:$0xff]  ;;  %233 = vst [vmem:[%s2110_s29 + $0xd8] sm:$0xff] %v232_v27 }
  0x22   : > { %235 = vst [vmem:[%s2110_s29 + $0xe0] sm:$0xff] %v234_v28  ;;  %237 = vst [vmem:[%s2110_s29 + $0xe8] sm:$0xff] %v236_v29  ;;  %v238_v30 = vld [vmem:[%s2105_s28 + $0x1e0] sm:$0xff]  ;;  %v240_v31 = vld [vmem:[%s2105_s28 + $0x1e8] sm:$0xff] }
  0x23   : > { %v242_v32 = vld [vmem:[%s2105_s28 + $0x200] sm:$0xff]  ;;  %239 = vst [vmem:[%s2110_s29 + $0xf0] sm:$0xff] %v238_v30  ;;  %241 = vst [vmem:[%s2110_s29 + $0xf8] sm:$0xff] %v240_v31  ;;  %v244_v33 = vld [vmem:[%s2105_s28 + $0x208] sm:$0xff] }
  0x24   : > { %243 = vst [vmem:[%s2110_s29 + $0x100] sm:$0xff] %v242_v32  ;;  %v246_v34 = vld [vmem:[%s2105_s28 + $0x220] sm:$0xff]  ;;  %v248_v35 = vld [vmem:[%s2105_s28 + $0x228] sm:$0xff]  ;;  %245 = vst [vmem:[%s2110_s29 + $0x108] sm:$0xff] %v244_v33 }
  0x25   : > { %247 = vst [vmem:[%s2110_s29 + $0x110] sm:$0xff] %v246_v34  ;;  %249 = vst [vmem:[%s2110_s29 + $0x118] sm:$0xff] %v248_v35  ;;  %v250_v36 = vld [vmem:[%s2105_s28 + $0x240] sm:$0xff]  ;;  %v252_v37 = vld [vmem:[%s2105_s28 + $0x248] sm:$0xff] }
  0x26   : > { %v254_v38 = vld [vmem:[%s2105_s28 + $0x260] sm:$0xff]  ;;  %251 = vst [vmem:[%s2110_s29 + $0x120] sm:$0xff] %v250_v36  ;;  %253 = vst [vmem:[%s2110_s29 + $0x128] sm:$0xff] %v252_v37  ;;  %v256_v39 = vld [vmem:[%s2105_s28 + $0x268] sm:$0xff] }
  0x27   : > { %255 = vst [vmem:[%s2110_s29 + $0x130] sm:$0xff] %v254_v38  ;;  %v258_v40 = vld [vmem:[%s2105_s28 + $0x280] sm:$0xff]  ;;  %v260_v41 = vld [vmem:[%s2105_s28 + $0x288] sm:$0xff]  ;;  %257 = vst [vmem:[%s2110_s29 + $0x138] sm:$0xff] %v256_v39 }
  0x28   : > { %259 = vst [vmem:[%s2110_s29 + $0x140] sm:$0xff] %v258_v40  ;;  %261 = vst [vmem:[%s2110_s29 + $0x148] sm:$0xff] %v260_v41  ;;  %v262_v42 = vld [vmem:[%s2105_s28 + $0x2a0] sm:$0xff]  ;;  %v264_v43 = vld [vmem:[%s2105_s28 + $0x2a8] sm:$0xff] }
  0x29   : > { %v266_v44 = vld [vmem:[%s2105_s28 + $0x2c0] sm:$0xff]  ;;  %263 = vst [vmem:[%s2110_s29 + $0x150] sm:$0xff] %v262_v42  ;;  %265 = vst [vmem:[%s2110_s29 + $0x158] sm:$0xff] %v264_v43  ;;  %v268_v45 = vld [vmem:[%s2105_s28 + $0x2c8] sm:$0xff] }
  0x2a   : > { %267 = vst [vmem:[%s2110_s29 + $0x160] sm:$0xff] %v266_v44  ;;  %v270_v46 = vld [vmem:[%s2105_s28 + $0x2e0] sm:$0xff]  ;;  %v272_v47 = vld [vmem:[%s2105_s28 + $0x2e8] sm:$0xff]  ;;  %269 = vst [vmem:[%s2110_s29 + $0x168] sm:$0xff] %v268_v45 }
  0x2b   : > { %271 = vst [vmem:[%s2110_s29 + $0x170] sm:$0xff] %v270_v46  ;;  %273 = vst [vmem:[%s2110_s29 + $0x178] sm:$0xff] %v272_v47  ;;  %v274_v48 = vld [vmem:[%s2105_s28 + $0x300] sm:$0xff]  ;;  %v276_v49 = vld [vmem:[%s2105_s28 + $0x308] sm:$0xff] }
  0x2c   : > { %v278_v50 = vld [vmem:[%s2105_s28 + $0x320] sm:$0xff]  ;;  %275 = vst [vmem:[%s2110_s29 + $0x180] sm:$0xff] %v274_v48  ;;  %277 = vst [vmem:[%s2110_s29 + $0x188] sm:$0xff] %v276_v49  ;;  %v280_v51 = vld [vmem:[%s2105_s28 + $0x328] sm:$0xff] }
  0x2d   : > { %279 = vst [vmem:[%s2110_s29 + $0x190] sm:$0xff] %v278_v50  ;;  %v282_v52 = vld [vmem:[%s2105_s28 + $0x340] sm:$0xff]  ;;  %v284_v53 = vld [vmem:[%s2105_s28 + $0x348] sm:$0xff]  ;;  %281 = vst [vmem:[%s2110_s29 + $0x198] sm:$0xff] %v280_v51 }
  0x2e   : > { %283 = vst [vmem:[%s2110_s29 + $0x1a0] sm:$0xff] %v282_v52  ;;  %285 = vst [vmem:[%s2110_s29 + $0x1a8] sm:$0xff] %v284_v53  ;;  %v286_v54 = vld [vmem:[%s2105_s28 + $0x360] sm:$0xff]  ;;  %v288_v55 = vld [vmem:[%s2105_s28 + $0x368] sm:$0xff] }
  0x2f   : > { %v290_v56 = vld [vmem:[%s2105_s28 + $0x380] sm:$0xff]  ;;  %287 = vst [vmem:[%s2110_s29 + $0x1b0] sm:$0xff] %v286_v54  ;;  %289 = vst [vmem:[%s2110_s29 + $0x1b8] sm:$0xff] %v288_v55  ;;  %v292_v57 = vld [vmem:[%s2105_s28 + $0x388] sm:$0xff] }
  0x30   : > { %291 = vst [vmem:[%s2110_s29 + $0x1c0] sm:$0xff] %v290_v56  ;;  %v294_v58 = vld [vmem:[%s2105_s28 + $0x3a0] sm:$0xff]  ;;  %v296_v59 = vld [vmem:[%s2105_s28 + $0x3a8] sm:$0xff]  ;;  %293 = vst [vmem:[%s2110_s29 + $0x1c8] sm:$0xff] %v292_v57 }
  0x31   : > { %295 = vst [vmem:[%s2110_s29 + $0x1d0] sm:$0xff] %v294_v58  ;;  %297 = vst [vmem:[%s2110_s29 + $0x1d8] sm:$0xff] %v296_v59  ;;  %v298_v60 = vld [vmem:[%s2105_s28 + $0x3c0] sm:$0xff]  ;;  %v300_v61 = vld [vmem:[%s2105_s28 + $0x3c8] sm:$0xff] }
  0x32   : > { %v302_v62 = vld [vmem:[%s2105_s28 + $0x3e0] sm:$0xff]  ;;  %299 = vst [vmem:[%s2110_s29 + $0x1e0] sm:$0xff] %v298_v60  ;;  %301 = vst [vmem:[%s2110_s29 + $0x1e8] sm:$0xff] %v300_v61  ;;  %v304_v63 = vld [vmem:[%s2105_s28 + $0x3e8] sm:$0xff] }
  0x33   : > { %303 = vst [vmem:[%s2110_s29 + $0x1f0] sm:$0xff] %v302_v62  ;;  %v306_v0 = vld [vmem:[%s2105_s28 + $0x400] sm:$0xff]  ;;  %v308_v1 = vld [vmem:[%s2105_s28 + $0x408] sm:$0xff]  ;;  %305 = vst [vmem:[%s2110_s29 + $0x1f8] sm:$0xff] %v304_v63 }
  0x34   : > { %307 = vst [vmem:[%s2110_s29 + $0x200] sm:$0xff] %v306_v0  ;;  %309 = vst [vmem:[%s2110_s29 + $0x208] sm:$0xff] %v308_v1  ;;  %v310_v2 = vld [vmem:[%s2105_s28 + $0x420] sm:$0xff]  ;;  %v312_v3 = vld [vmem:[%s2105_s28 + $0x428] sm:$0xff] }
  0x35   : > { %v314_v4 = vld [vmem:[%s2105_s28 + $0x440] sm:$0xff]  ;;  %311 = vst [vmem:[%s2110_s29 + $0x210] sm:$0xff] %v310_v2  ;;  %313 = vst [vmem:[%s2110_s29 + $0x218] sm:$0xff] %v312_v3  ;;  %v316_v5 = vld [vmem:[%s2105_s28 + $0x448] sm:$0xff] }
  0x36   : > { %315 = vst [vmem:[%s2110_s29 + $0x220] sm:$0xff] %v314_v4  ;;  %v318_v6 = vld [vmem:[%s2105_s28 + $0x460] sm:$0xff]  ;;  %v320_v7 = vld [vmem:[%s2105_s28 + $0x468] sm:$0xff]  ;;  %317 = vst [vmem:[%s2110_s29 + $0x228] sm:$0xff] %v316_v5 }
  0x37   : > { %319 = vst [vmem:[%s2110_s29 + $0x230] sm:$0xff] %v318_v6  ;;  %321 = vst [vmem:[%s2110_s29 + $0x238] sm:$0xff] %v320_v7  ;;  %v322_v8 = vld [vmem:[%s2105_s28 + $0x480] sm:$0xff]  ;;  %v324_v9 = vld [vmem:[%s2105_s28 + $0x488] sm:$0xff] }
  0x38   : > { %v326_v10 = vld [vmem:[%s2105_s28 + $0x4a0] sm:$0xff]  ;;  %323 = vst [vmem:[%s2110_s29 + $0x240] sm:$0xff] %v322_v8  ;;  %325 = vst [vmem:[%s2110_s29 + $0x248] sm:$0xff] %v324_v9  ;;  %v328_v11 = vld [vmem:[%s2105_s28 + $0x4a8] sm:$0xff] }
  0x39   : > { %327 = vst [vmem:[%s2110_s29 + $0x250] sm:$0xff] %v326_v10  ;;  %v330_v12 = vld [vmem:[%s2105_s28 + $0x4c0] sm:$0xff]  ;;  %v332_v13 = vld [vmem:[%s2105_s28 + $0x4c8] sm:$0xff]  ;;  %329 = vst [vmem:[%s2110_s29 + $0x258] sm:$0xff] %v328_v11 }
  0x3a   : > { %331 = vst [vmem:[%s2110_s29 + $0x260] sm:$0xff] %v330_v12  ;;  %333 = vst [vmem:[%s2110_s29 + $0x268] sm:$0xff] %v332_v13  ;;  %v334_v14 = vld [vmem:[%s2105_s28 + $0x4e0] sm:$0xff]  ;;  %v336_v15 = vld [vmem:[%s2105_s28 + $0x4e8] sm:$0xff] }
  0x3b   : > { %v338_v16 = vld [vmem:[%s2105_s28 + $0x500] sm:$0xff]  ;;  %335 = vst [vmem:[%s2110_s29 + $0x270] sm:$0xff] %v334_v14  ;;  %337 = vst [vmem:[%s2110_s29 + $0x278] sm:$0xff] %v336_v15  ;;  %v340_v17 = vld [vmem:[%s2105_s28 + $0x508] sm:$0xff] }
  0x3c   : > { %339 = vst [vmem:[%s2110_s29 + $0x280] sm:$0xff] %v338_v16  ;;  %v342_v18 = vld [vmem:[%s2105_s28 + $0x520] sm:$0xff]  ;;  %v344_v19 = vld [vmem:[%s2105_s28 + $0x528] sm:$0xff]  ;;  %341 = vst [vmem:[%s2110_s29 + $0x288] sm:$0xff] %v340_v17 }
  0x3d   : > { %343 = vst [vmem:[%s2110_s29 + $0x290] sm:$0xff] %v342_v18  ;;  %345 = vst [vmem:[%s2110_s29 + $0x298] sm:$0xff] %v344_v19  ;;  %v346_v20 = vld [vmem:[%s2105_s28 + $0x540] sm:$0xff]  ;;  %v348_v21 = vld [vmem:[%s2105_s28 + $0x548] sm:$0xff] }
  0x3e   : > { %v350_v22 = vld [vmem:[%s2105_s28 + $0x560] sm:$0xff]  ;;  %347 = vst [vmem:[%s2110_s29 + $0x2a0] sm:$0xff] %v346_v20  ;;  %349 = vst [vmem:[%s2110_s29 + $0x2a8] sm:$0xff] %v348_v21  ;;  %v352_v23 = vld [vmem:[%s2105_s28 + $0x568] sm:$0xff] }
  0x3f   : > { %351 = vst [vmem:[%s2110_s29 + $0x2b0] sm:$0xff] %v350_v22  ;;  %v354_v24 = vld [vmem:[%s2105_s28 + $0x580] sm:$0xff]  ;;  %v356_v25 = vld [vmem:[%s2105_s28 + $0x588] sm:$0xff]  ;;  %353 = vst [vmem:[%s2110_s29 + $0x2b8] sm:$0xff] %v352_v23 }
  0x40   : > { %355 = vst [vmem:[%s2110_s29 + $0x2c0] sm:$0xff] %v354_v24  ;;  %357 = vst [vmem:[%s2110_s29 + $0x2c8] sm:$0xff] %v356_v25  ;;  %v358_v26 = vld [vmem:[%s2105_s28 + $0x5a0] sm:$0xff]  ;;  %v360_v27 = vld [vmem:[%s2105_s28 + $0x5a8] sm:$0xff] }
  0x41   : > { %v362_v28 = vld [vmem:[%s2105_s28 + $0x5c0] sm:$0xff]  ;;  %359 = vst [vmem:[%s2110_s29 + $0x2d0] sm:$0xff] %v358_v26  ;;  %361 = vst [vmem:[%s2110_s29 + $0x2d8] sm:$0xff] %v360_v27  ;;  %v364_v29 = vld [vmem:[%s2105_s28 + $0x5c8] sm:$0xff] }
  0x42   : > { %363 = vst [vmem:[%s2110_s29 + $0x2e0] sm:$0xff] %v362_v28  ;;  %v366_v30 = vld [vmem:[%s2105_s28 + $0x5e0] sm:$0xff]  ;;  %v368_v31 = vld [vmem:[%s2105_s28 + $0x5e8] sm:$0xff]  ;;  %365 = vst [vmem:[%s2110_s29 + $0x2e8] sm:$0xff] %v364_v29 }
  0x43   : > { %367 = vst [vmem:[%s2110_s29 + $0x2f0] sm:$0xff] %v366_v30  ;;  %369 = vst [vmem:[%s2110_s29 + $0x2f8] sm:$0xff] %v368_v31  ;;  %v370_v32 = vld [vmem:[%s2105_s28 + $0x600] sm:$0xff]  ;;  %v372_v33 = vld [vmem:[%s2105_s28 + $0x608] sm:$0xff] }
  0x44   : > { %v374_v34 = vld [vmem:[%s2105_s28 + $0x620] sm:$0xff]  ;;  %371 = vst [vmem:[%s2110_s29 + $0x300] sm:$0xff] %v370_v32  ;;  %373 = vst [vmem:[%s2110_s29 + $0x308] sm:$0xff] %v372_v33  ;;  %v376_v35 = vld [vmem:[%s2105_s28 + $0x628] sm:$0xff] }
  0x45   : > { %375 = vst [vmem:[%s2110_s29 + $0x310] sm:$0xff] %v374_v34  ;;  %v378_v36 = vld [vmem:[%s2105_s28 + $0x640] sm:$0xff]  ;;  %v380_v37 = vld [vmem:[%s2105_s28 + $0x648] sm:$0xff]  ;;  %377 = vst [vmem:[%s2110_s29 + $0x318] sm:$0xff] %v376_v35 }
  0x46   : > { %379 = vst [vmem:[%s2110_s29 + $0x320] sm:$0xff] %v378_v36  ;;  %381 = vst [vmem:[%s2110_s29 + $0x328] sm:$0xff] %v380_v37  ;;  %v382_v38 = vld [vmem:[%s2105_s28 + $0x660] sm:$0xff]  ;;  %v384_v39 = vld [vmem:[%s2105_s28 + $0x668] sm:$0xff] }
  0x47   : > { %v386_v40 = vld [vmem:[%s2105_s28 + $0x680] sm:$0xff]  ;;  %383 = vst [vmem:[%s2110_s29 + $0x330] sm:$0xff] %v382_v38  ;;  %385 = vst [vmem:[%s2110_s29 + $0x338] sm:$0xff] %v384_v39  ;;  %v388_v41 = vld [vmem:[%s2105_s28 + $0x688] sm:$0xff] }
  0x48   : > { %387 = vst [vmem:[%s2110_s29 + $0x340] sm:$0xff] %v386_v40  ;;  %v390_v42 = vld [vmem:[%s2105_s28 + $0x6a0] sm:$0xff]  ;;  %v392_v43 = vld [vmem:[%s2105_s28 + $0x6a8] sm:$0xff]  ;;  %389 = vst [vmem:[%s2110_s29 + $0x348] sm:$0xff] %v388_v41 }
  0x49   : > { %391 = vst [vmem:[%s2110_s29 + $0x350] sm:$0xff] %v390_v42  ;;  %393 = vst [vmem:[%s2110_s29 + $0x358] sm:$0xff] %v392_v43  ;;  %v394_v44 = vld [vmem:[%s2105_s28 + $0x6c0] sm:$0xff]  ;;  %v396_v45 = vld [vmem:[%s2105_s28 + $0x6c8] sm:$0xff] }
  0x4a   : > { %v398_v46 = vld [vmem:[%s2105_s28 + $0x6e0] sm:$0xff]  ;;  %395 = vst [vmem:[%s2110_s29 + $0x360] sm:$0xff] %v394_v44  ;;  %397 = vst [vmem:[%s2110_s29 + $0x368] sm:$0xff] %v396_v45  ;;  %v400_v47 = vld [vmem:[%s2105_s28 + $0x6e8] sm:$0xff] }
  0x4b   : > { %399 = vst [vmem:[%s2110_s29 + $0x370] sm:$0xff] %v398_v46  ;;  %v402_v48 = vld [vmem:[%s2105_s28 + $0x700] sm:$0xff]  ;;  %v404_v49 = vld [vmem:[%s2105_s28 + $0x708] sm:$0xff]  ;;  %401 = vst [vmem:[%s2110_s29 + $0x378] sm:$0xff] %v400_v47 }
  0x4c   : > { %403 = vst [vmem:[%s2110_s29 + $0x380] sm:$0xff] %v402_v48  ;;  %405 = vst [vmem:[%s2110_s29 + $0x388] sm:$0xff] %v404_v49  ;;  %v406_v50 = vld [vmem:[%s2105_s28 + $0x720] sm:$0xff]  ;;  %v408_v51 = vld [vmem:[%s2105_s28 + $0x728] sm:$0xff] }
  0x4d   : > { %v410_v52 = vld [vmem:[%s2105_s28 + $0x740] sm:$0xff]  ;;  %407 = vst [vmem:[%s2110_s29 + $0x390] sm:$0xff] %v406_v50  ;;  %409 = vst [vmem:[%s2110_s29 + $0x398] sm:$0xff] %v408_v51  ;;  %v412_v53 = vld [vmem:[%s2105_s28 + $0x748] sm:$0xff] }
  0x4e   : > { %411 = vst [vmem:[%s2110_s29 + $0x3a0] sm:$0xff] %v410_v52  ;;  %v414_v54 = vld [vmem:[%s2105_s28 + $0x760] sm:$0xff]  ;;  %v416_v55 = vld [vmem:[%s2105_s28 + $0x768] sm:$0xff]  ;;  %413 = vst [vmem:[%s2110_s29 + $0x3a8] sm:$0xff] %v412_v53 }
  0x4f   : > { %415 = vst [vmem:[%s2110_s29 + $0x3b0] sm:$0xff] %v414_v54  ;;  %417 = vst [vmem:[%s2110_s29 + $0x3b8] sm:$0xff] %v416_v55  ;;  %v418_v56 = vld [vmem:[%s2105_s28 + $0x780] sm:$0xff]  ;;  %v420_v57 = vld [vmem:[%s2105_s28 + $0x788] sm:$0xff] }
  0x50   : > { %v422_v58 = vld [vmem:[%s2105_s28 + $0x7a0] sm:$0xff]  ;;  %419 = vst [vmem:[%s2110_s29 + $0x3c0] sm:$0xff] %v418_v56  ;;  %421 = vst [vmem:[%s2110_s29 + $0x3c8] sm:$0xff] %v420_v57  ;;  %v424_v59 = vld [vmem:[%s2105_s28 + $0x7a8] sm:$0xff] }
  0x51   : > { %423 = vst [vmem:[%s2110_s29 + $0x3d0] sm:$0xff] %v422_v58  ;;  %v426_v60 = vld [vmem:[%s2105_s28 + $0x7c0] sm:$0xff]  ;;  %v428_v61 = vld [vmem:[%s2105_s28 + $0x7c8] sm:$0xff]  ;;  %425 = vst [vmem:[%s2110_s29 + $0x3d8] sm:$0xff] %v424_v59 }
  0x52   : > { %427 = vst [vmem:[%s2110_s29 + $0x3e0] sm:$0xff] %v426_v60  ;;  %429 = vst [vmem:[%s2110_s29 + $0x3e8] sm:$0xff] %v428_v61  ;;  %v430_v62 = vld [vmem:[%s2105_s28 + $0x7e0] sm:$0xff]  ;;  %v432_v63 = vld [vmem:[%s2105_s28 + $0x7e8] sm:$0xff] }
  0x53   : > { %431 = vst [vmem:[%s2110_s29 + $0x3f0] sm:$0xff] %v430_v62  ;;  %433 = vst [vmem:[%s2110_s29 + $0x3f8] sm:$0xff] %v432_v63 }
  0x54 PF: > { %p1626_p8 = scmp.ge.s32.totalorder %s2035_s16, 1  ;;  %p446_p9 = scmp.lt.s32.totalorder %s2035_s16, 3 }
  0x56   : > { %p447_p10 = pnand %p1626_p8, %p446_p9 }
  0x57   : > { %s453_s30 = sand.u32 (!%p447_p10), 1, %s2019_s12   ;;  %s1629_s4 = sshll.u32 (!%p447_p10), %s2027_s14, 2 }
  0x58   : > { %450 = sbr.rel (%p447_p10) target bundleno = 435 (0x1b3), region = 51  ;;  %s1627_s10 = sshll.u32 (!%p447_p10), %s453_s30, 10 }
  0x59   : > { %s2386_s19 = scalar_lea.vmem (!%p447_p10), [#allocation2], %s1627_s10  ;;  %p494_p11 = scmp.lt.s32.totalorder (!%p447_p10), %s1629_s4, 7 }
  0x5a   : > { %s1628_s8 = sshll.u32 (!%p447_p10), %s453_s30, 6 }
  0x5b   : > { %s2546_s9 = scalar_lea.vmem (!%p447_p10), [#allocation3], %s1628_s8 }
  0x5d   : > { %v501_v0 = vld [vmem:[%s2585_s0 + $0x8] sm:$0xff]  ;;  %v503_v2 = vld [vmem:[%s2585_s0 + $0x18] sm:$0xff]  ;;  %v1805_v6 = vld [vmem:[%s2386_s19 + $0xe4] ss:$16 sps:$4 sm:$0xff]   ;;  %s2597_s4 = smov (!%p494_p11, %s1629_s4), 7  ;;  %s1764_s12 = sshll.u32 (%p2092_p6), %s2027_s14, 5 }
  0x5e   : > { %v505_v1 = vld [vmem:[%s2585_s0 + $0x28] sm:$0xff]  ;;  %v507_v4 = vld [vmem:[%s2585_s0 + $0x38] sm:$0xff]  ;;  %v1807_v7 = vld [vmem:[%s2386_s19 + $0x2e4] ss:$16 sps:$4 sm:$0xff]   ;;  %1302 = vmatprep.subr.bf16.mxu0 %v1805_v6  ;;  %s496_s7 = scalar_lea.vmem %s2587_s2, %s2597_s4  ;;  %s1494_s11 = scalar_lea.vmem (%p2092_p6), %s2588_s3, %s1764_s12 }
  0x5f   : > { %v2379_v3 = vpack.c.bf16 %v505_v1, %v501_v0  ;;  %v2384_v5 = vpack.c.bf16 %v507_v4, %v503_v2  ;;  %v1809_v8 = vld [vmem:[%s2386_s19 + $0xe0] ss:$16 sps:$4 sm:$0xff]   ;;  %1345 = vmatprep.subr.bf16.mxu1 %v1807_v7  ;;  %v1811_v10 = vld [vmem:[%s2386_s19 + $0xc4] ss:$16 sps:$4 sm:$0xff]  }
  0x60   : > { %v1810_v9 = vld [vmem:[%s2386_s19 + $0x2e0] ss:$16 sps:$4 sm:$0xff]   ;;  %1303 = vmatpush1.bf16.msra.mxu0 %v1809_v8  ;;  %v1813_v11 = vld [vmem:[%s2386_s19 + $0x2c4] ss:$16 sps:$4 sm:$0xff]  }
  0x61   : > { %1334 = vmatprep.mubr.bf16.mxu0 %v2379_v3  ;;  %1377 = vmatprep.mubr.bf16.mxu1 %v2384_v5  ;;  %v1815_v12 = vld [vmem:[%s2386_s19 + $0xc0] ss:$16 sps:$4 sm:$0xff]   ;;  %v1817_v14 = vld [vmem:[%s2386_s19 + $0xa4] ss:$16 sps:$4 sm:$0xff]  }
  0x62   : > { %1346 = vmatpush1.bf16.msra.mxu1 %v1810_v9  ;;  %1304 = vmatprep.subr.bf16.mxu0 %v1811_v10  ;;  %v1816_v13 = vld [vmem:[%s2386_s19 + $0x2c0] ss:$16 sps:$4 sm:$0xff]   ;;  %v1819_v15 = vld [vmem:[%s2386_s19 + $0x2a4] ss:$16 sps:$4 sm:$0xff]  }
  0x63   : > { %1347 = vmatprep.subr.bf16.mxu1 %v1813_v11  ;;  %v1821_v16 = vld [vmem:[%s2386_s19 + $0xa0] ss:$16 sps:$4 sm:$0xff]   ;;  %v1823_v18 = vld [vmem:[%s2386_s19 + $0x84] ss:$16 sps:$4 sm:$0xff]  }
  0x64   : > { %v1822_v17 = vld [vmem:[%s2386_s19 + $0x2a0] ss:$16 sps:$4 sm:$0xff]   ;;  %1305 = vmatpush1.bf16.msra.mxu0 %v1815_v12  ;;  %v1825_v19 = vld [vmem:[%s2386_s19 + $0x284] ss:$16 sps:$4 sm:$0xff]   ;;  %v1903_v12 = vld [vmem:[%s2386_s19 + $0xec] ss:$16 sps:$4 sm:$0xff]  }
  0x65   : > { %1306 = vmatprep.subr.bf16.mxu0 %v1817_v14  ;;  %v1827_v20 = vld [vmem:[%s2386_s19 + $0x80] ss:$16 sps:$4 sm:$0xff]   ;;  %v1829_v22 = vld [vmem:[%s2386_s19 + $0x64] ss:$16 sps:$4 sm:$0xff]  }
  0x66   : > { %1348 = vmatpush1.bf16.msra.mxu1 %v1816_v13  ;;  %v1828_v21 = vld [vmem:[%s2386_s19 + $0x280] ss:$16 sps:$4 sm:$0xff]   ;;  %v1831_v23 = vld [vmem:[%s2386_s19 + $0x264] ss:$16 sps:$4 sm:$0xff]   ;;  %v1906_v13 = vld [vmem:[%s2386_s19 + $0x2ec] ss:$16 sps:$4 sm:$0xff]  }
  0x67   : > { %1349 = vmatprep.subr.bf16.mxu1 %v1819_v15  ;;  %v1833_v24 = vld [vmem:[%s2386_s19 + $0x60] ss:$16 sps:$4 sm:$0xff]   ;;  %v1835_v26 = vld [vmem:[%s2386_s19 + $0x44] ss:$16 sps:$4 sm:$0xff]  }
  0x68   : > { %1307 = vmatpush1.bf16.msra.mxu0 %v1821_v16  ;;  %v1834_v25 = vld [vmem:[%s2386_s19 + $0x260] ss:$16 sps:$4 sm:$0xff]   ;;  %v1837_v27 = vld [vmem:[%s2386_s19 + $0x244] ss:$16 sps:$4 sm:$0xff]   ;;  %v1901_v16 = vld [vmem:[%s2386_s19 + $0xe8] ss:$16 sps:$4 sm:$0xff]  }
  0x69   : > { %1308 = vmatprep.subr.bf16.mxu0 %v1823_v18  ;;  %v1839_v28 = vld [vmem:[%s2386_s19 + $0x40] ss:$16 sps:$4 sm:$0xff]   ;;  %v1841_v30 = vld [vmem:[%s2386_s19 + $0x24] ss:$16 sps:$4 sm:$0xff]   ;;  %v1909_v18 = vld [vmem:[%s2386_s19 + $0xcc] ss:$16 sps:$4 sm:$0xff]  }
  0x6a   : > { %1350 = vmatpush1.bf16.msra.mxu1 %v1822_v17  ;;  %v1840_v29 = vld [vmem:[%s2386_s19 + $0x240] ss:$16 sps:$4 sm:$0xff]   ;;  %v1843_v31 = vld [vmem:[%s2386_s19 + $0x224] ss:$16 sps:$4 sm:$0xff]   ;;  %v1904_v17 = vld [vmem:[%s2386_s19 + $0x2e8] ss:$16 sps:$4 sm:$0xff]  }
  0x6b   : > { %1351 = vmatprep.subr.bf16.mxu1 %v1825_v19  ;;  %v1845_v32 = vld [vmem:[%s2386_s19 + $0x20] ss:$16 sps:$4 sm:$0xff]   ;;  %v1847_v34 = vld [vmem:[%s2386_s19 + $0x4] ss:$16 sps:$4 sm:$0xff]   ;;  %v1912_v19 = vld [vmem:[%s2386_s19 + $0x2cc] ss:$16 sps:$4 sm:$0xff]  }
  0x6c   : > { %1309 = vmatpush1.bf16.msra.mxu0 %v1827_v20  ;;  %v1846_v33 = vld [vmem:[%s2386_s19 + $0x220] ss:$16 sps:$4 sm:$0xff]   ;;  %v1849_v35 = vld [vmem:[%s2386_s19 + $0x204] ss:$16 sps:$4 sm:$0xff]   ;;  %v1907_v20 = vld [vmem:[%s2386_s19 + $0xc8] ss:$16 sps:$4 sm:$0xff]  }
  0x6d   : > { %1310 = vmatprep.subr.bf16.mxu0 %v1829_v22  ;;  %v1851_v36 = vld [vmem:[%s2386_s19] ss:$16 sps:$4 sm:$0xff]   ;;  %v1853_v38 = vld [vmem:[%s2386_s19 + $0x1e4] ss:$16 sps:$4 sm:$0xff]   ;;  %v1915_v22 = vld [vmem:[%s2386_s19 + $0xac] ss:$16 sps:$4 sm:$0xff]  }
  0x6e   : > { %1352 = vmatpush1.bf16.msra.mxu1 %v1828_v21  ;;  %v1852_v37 = vld [vmem:[%s2386_s19 + $0x200] ss:$16 sps:$4 sm:$0xff]   ;;  %v1855_v39 = vld [vmem:[%s2386_s19 + $0x3e4] ss:$16 sps:$4 sm:$0xff]   ;;  %v1910_v21 = vld [vmem:[%s2386_s19 + $0x2c8] ss:$16 sps:$4 sm:$0xff]  }
  0x6f   : > { %1353 = vmatprep.subr.bf16.mxu1 %v1831_v23  ;;  %v1857_v40 = vld [vmem:[%s2386_s19 + $0x1e0] ss:$16 sps:$4 sm:$0xff]   ;;  %v1859_v42 = vld [vmem:[%s2386_s19 + $0x1c4] ss:$16 sps:$4 sm:$0xff]   ;;  %v1918_v23 = vld [vmem:[%s2386_s19 + $0x2ac] ss:$16 sps:$4 sm:$0xff]  }
  0x70   : > { %1311 = vmatpush1.bf16.msra.mxu0 %v1833_v24  ;;  %v1858_v41 = vld [vmem:[%s2386_s19 + $0x3e0] ss:$16 sps:$4 sm:$0xff]   ;;  %v1861_v43 = vld [vmem:[%s2386_s19 + $0x3c4] ss:$16 sps:$4 sm:$0xff]   ;;  %v1913_v24 = vld [vmem:[%s2386_s19 + $0xa8] ss:$16 sps:$4 sm:$0xff]  }
  0x71   : > { %1312 = vmatprep.subr.bf16.mxu0 %v1835_v26  ;;  %v1863_v44 = vld [vmem:[%s2386_s19 + $0x1c0] ss:$16 sps:$4 sm:$0xff]   ;;  %v1865_v46 = vld [vmem:[%s2386_s19 + $0x1a4] ss:$16 sps:$4 sm:$0xff]   ;;  %v1921_v26 = vld [vmem:[%s2386_s19 + $0x8c] ss:$16 sps:$4 sm:$0xff]  }
  0x72   : > { %1354 = vmatpush1.bf16.msra.mxu1 %v1834_v25  ;;  %v1864_v45 = vld [vmem:[%s2386_s19 + $0x3c0] ss:$16 sps:$4 sm:$0xff]   ;;  %v1867_v47 = vld [vmem:[%s2386_s19 + $0x3a4] ss:$16 sps:$4 sm:$0xff]   ;;  %v1916_v25 = vld [vmem:[%s2386_s19 + $0x2a8] ss:$16 sps:$4 sm:$0xff]  }
  0x73   : > { %1355 = vmatprep.subr.bf16.mxu1 %v1837_v27  ;;  %v1869_v48 = vld [vmem:[%s2386_s19 + $0x1a0] ss:$16 sps:$4 sm:$0xff]   ;;  %v1871_v50 = vld [vmem:[%s2386_s19 + $0x184] ss:$16 sps:$4 sm:$0xff]   ;;  %v1924_v27 = vld [vmem:[%s2386_s19 + $0x28c] ss:$16 sps:$4 sm:$0xff]  }
  0x74   : > { %1313 = vmatpush1.bf16.msra.mxu0 %v1839_v28  ;;  %v1870_v49 = vld [vmem:[%s2386_s19 + $0x3a0] ss:$16 sps:$4 sm:$0xff]   ;;  %v1873_v51 = vld [vmem:[%s2386_s19 + $0x384] ss:$16 sps:$4 sm:$0xff]   ;;  %v1919_v28 = vld [vmem:[%s2386_s19 + $0x88] ss:$16 sps:$4 sm:$0xff]  }
  0x75   : > { %1314 = vmatprep.subr.bf16.mxu0 %v1841_v30  ;;  %v1875_v52 = vld [vmem:[%s2386_s19 + $0x180] ss:$16 sps:$4 sm:$0xff]   ;;  %v1877_v54 = vld [vmem:[%s2386_s19 + $0x164] ss:$16 sps:$4 sm:$0xff]   ;;  %v1925_v30 = vld [vmem:[%s2386_s19 + $0x68] ss:$16 sps:$4 sm:$0xff]  }
  0x76   : > { %1356 = vmatpush1.bf16.msra.mxu1 %v1840_v29  ;;  %v1876_v53 = vld [vmem:[%s2386_s19 + $0x380] ss:$16 sps:$4 sm:$0xff]   ;;  %v1879_v55 = vld [vmem:[%s2386_s19 + $0x364] ss:$16 sps:$4 sm:$0xff]   ;;  %v1922_v29 = vld [vmem:[%s2386_s19 + $0x288] ss:$16 sps:$4 sm:$0xff]  }
  0x77   : > { %1357 = vmatprep.subr.bf16.mxu1 %v1843_v31  ;;  %v1881_v56 = vld [vmem:[%s2386_s19 + $0x160] ss:$16 sps:$4 sm:$0xff]   ;;  %v1883_v58 = vld [vmem:[%s2386_s19 + $0x144] ss:$16 sps:$4 sm:$0xff]   ;;  %v1928_v31 = vld [vmem:[%s2386_s19 + $0x268] ss:$16 sps:$4 sm:$0xff]  }
  0x78   : > { %1315 = vmatpush1.bf16.msra.mxu0 %v1845_v32  ;;  %v1882_v57 = vld [vmem:[%s2386_s19 + $0x360] ss:$16 sps:$4 sm:$0xff]   ;;  %v1885_v59 = vld [vmem:[%s2386_s19 + $0x344] ss:$16 sps:$4 sm:$0xff]   ;;  %v1933_v32 = vld [vmem:[%s2386_s19 + $0x4c] ss:$16 sps:$4 sm:$0xff]  }
  0x79   : > { %1316 = vmatprep.subr.bf16.mxu0 %v1847_v34  ;;  %v1887_v60 = vld [vmem:[%s2386_s19 + $0x140] ss:$16 sps:$4 sm:$0xff]   ;;  %v1889_v62 = vld [vmem:[%s2386_s19 + $0x124] ss:$16 sps:$4 sm:$0xff]   ;;  %v1931_v34 = vld [vmem:[%s2386_s19 + $0x48] ss:$16 sps:$4 sm:$0xff]  }
  0x7a   : > { %1358 = vmatpush1.bf16.msra.mxu1 %v1846_v33  ;;  %v1888_v61 = vld [vmem:[%s2386_s19 + $0x340] ss:$16 sps:$4 sm:$0xff]   ;;  %v1891_v63 = vld [vmem:[%s2386_s19 + $0x324] ss:$16 sps:$4 sm:$0xff]   ;;  %v1936_v33 = vld [vmem:[%s2386_s19 + $0x24c] ss:$16 sps:$4 sm:$0xff]  }
  0x7b   : > { %1359 = vmatprep.subr.bf16.mxu1 %v1849_v35  ;;  %v1893_v0 = vld [vmem:[%s2386_s19 + $0x120] ss:$16 sps:$4 sm:$0xff]   ;;  %v1895_v2 = vld [vmem:[%s2386_s19 + $0x104] ss:$16 sps:$4 sm:$0xff]   ;;  %v1934_v35 = vld [vmem:[%s2386_s19 + $0x248] ss:$16 sps:$4 sm:$0xff]  }
  0x7c   : > { %1317 = vmatpush1.bf16.msra.mxu0 %v1851_v36  ;;  %v1894_v1 = vld [vmem:[%s2386_s19 + $0x320] ss:$16 sps:$4 sm:$0xff]   ;;  %v1897_v4 = vld [vmem:[%s2386_s19 + $0x304] ss:$16 sps:$4 sm:$0xff]   ;;  %v1939_v36 = vld [vmem:[%s2386_s19 + $0x2c] ss:$16 sps:$4 sm:$0xff]  }
  0x7d   : > { %1318 = vmatprep.subr.bf16.mxu0 %v1853_v38  ;;  %v500_v6 = vld [vmem:[%s2585_s0] sm:$0xff]  ;;  %v502_v8 = vld [vmem:[%s2585_s0 + $0x10] sm:$0xff]  ;;  %v1937_v38 = vld [vmem:[%s2386_s19 + $0x28] ss:$16 sps:$4 sm:$0xff]  }
  0x7e   : > { %1360 = vmatpush1.bf16.msra.mxu1 %v1852_v37  ;;  %v504_v7 = vld [vmem:[%s2585_s0 + $0x20] sm:$0xff]  ;;  %v506_v9 = vld [vmem:[%s2585_s0 + $0x30] sm:$0xff]  ;;  %v1942_v37 = vld [vmem:[%s2386_s19 + $0x22c] ss:$16 sps:$4 sm:$0xff]  }
  0x7f   : > { %1361 = vmatprep.subr.bf16.mxu1 %v1855_v39  ;;  %v1899_v10 = vld [vmem:[%s2386_s19 + $0x100] ss:$16 sps:$4 sm:$0xff]   ;;  %v2468_v14 = vpack.c.bf16 %v504_v7, %v500_v6  ;;  %v2470_v15 = vpack.c.bf16 %v506_v9, %v502_v8  ;;  %v1940_v39 = vld [vmem:[%s2386_s19 + $0x228] ss:$16 sps:$4 sm:$0xff]   ;;  %v1987_v6 = vld [vmem:[%s2386_s19 + $0x12c] ss:$16 sps:$4 sm:$0xff]  }
  0x80   : > { %1319 = vmatpush2.bf16.msra.mxu0 %v1857_v40  ;;  %v1900_v11 = vld [vmem:[%s2386_s19 + $0x300] ss:$16 sps:$4 sm:$0xff]   ;;  %v1945_v40 = vld [vmem:[%s2386_s19 + $0xc] ss:$16 sps:$4 sm:$0xff]   ;;  %v1985_v8 = vld [vmem:[%s2386_s19 + $0x128] ss:$16 sps:$4 sm:$0xff]  }
  0x81   : > { %1320 = vmatprep.subr.bf16.mxu0 %v1859_v42  ;;  %v1943_v42 = vld [vmem:[%s2386_s19 + $0x8] ss:$16 sps:$4 sm:$0xff]   ;;  %v1990_v7 = vld [vmem:[%s2386_s19 + $0x32c] ss:$16 sps:$4 sm:$0xff]  }
  0x82   : > { %1362 = vmatpush2.bf16.msra.mxu1 %v1858_v41  ;;  %v1948_v41 = vld [vmem:[%s2386_s19 + $0x20c] ss:$16 sps:$4 sm:$0xff]   ;;  %v1988_v9 = vld [vmem:[%s2386_s19 + $0x328] ss:$16 sps:$4 sm:$0xff]  }
  0x83   : > { %1363 = vmatprep.subr.bf16.mxu1 %v1861_v43  ;;  %v1946_v43 = vld [vmem:[%s2386_s19 + $0x208] ss:$16 sps:$4 sm:$0xff]  }
  0x84   : > { %1321 = vmatpush2.bf16.msra.mxu0 %v1863_v44  ;;  %v1951_v44 = vld [vmem:[%s2386_s19 + $0x1ec] ss:$16 sps:$4 sm:$0xff]  }
  0x85   : > { %1322 = vmatprep.subr.bf16.mxu0 %v1865_v46  ;;  %v1949_v46 = vld [vmem:[%s2386_s19 + $0x1e8] ss:$16 sps:$4 sm:$0xff]  }
  0x86   : > { %1364 = vmatpush2.bf16.msra.mxu1 %v1864_v45  ;;  %v1954_v45 = vld [vmem:[%s2386_s19 + $0x3ec] ss:$16 sps:$4 sm:$0xff]  }
  0x87   : > { %1365 = vmatprep.subr.bf16.mxu1 %v1867_v47  ;;  %v1952_v47 = vld [vmem:[%s2386_s19 + $0x3e8] ss:$16 sps:$4 sm:$0xff]  }
  0x88   : > { %1323 = vmatpush2.bf16.msra.mxu0 %v1869_v48  ;;  %v1957_v48 = vld [vmem:[%s2386_s19 + $0x1cc] ss:$16 sps:$4 sm:$0xff]  }
  0x89   : > { %1324 = vmatprep.subr.bf16.mxu0 %v1871_v50  ;;  %v1955_v50 = vld [vmem:[%s2386_s19 + $0x1c8] ss:$16 sps:$4 sm:$0xff]  }
  0x8a   : > { %1366 = vmatpush2.bf16.msra.mxu1 %v1870_v49  ;;  %v1960_v49 = vld [vmem:[%s2386_s19 + $0x3cc] ss:$16 sps:$4 sm:$0xff]  }
  0x8b   : > { %1367 = vmatprep.subr.bf16.mxu1 %v1873_v51  ;;  %v1958_v51 = vld [vmem:[%s2386_s19 + $0x3c8] ss:$16 sps:$4 sm:$0xff]  }
  0x8c   : > { %1325 = vmatpush2.bf16.msra.mxu0 %v1875_v52  ;;  %v1963_v52 = vld [vmem:[%s2386_s19 + $0x1ac] ss:$16 sps:$4 sm:$0xff]  }
  0x8d   : > { %1326 = vmatprep.subr.bf16.mxu0 %v1877_v54  ;;  %v1961_v54 = vld [vmem:[%s2386_s19 + $0x1a8] ss:$16 sps:$4 sm:$0xff]  }
  0x8e   : > { %1368 = vmatpush2.bf16.msra.mxu1 %v1876_v53  ;;  %v1966_v53 = vld [vmem:[%s2386_s19 + $0x3ac] ss:$16 sps:$4 sm:$0xff]  }
  0x8f   : > { %1369 = vmatprep.subr.bf16.mxu1 %v1879_v55  ;;  %v1964_v55 = vld [vmem:[%s2386_s19 + $0x3a8] ss:$16 sps:$4 sm:$0xff]  }
  0x90   : > { %1327 = vmatpush2.bf16.msra.mxu0 %v1881_v56  ;;  %v1969_v56 = vld [vmem:[%s2386_s19 + $0x18c] ss:$16 sps:$4 sm:$0xff]  }
  0x91   : > { %1328 = vmatprep.subr.bf16.mxu0 %v1883_v58  ;;  %v1967_v58 = vld [vmem:[%s2386_s19 + $0x188] ss:$16 sps:$4 sm:$0xff]  }
  0x92   : > { %1370 = vmatpush2.bf16.msra.mxu1 %v1882_v57  ;;  %v1972_v57 = vld [vmem:[%s2386_s19 + $0x38c] ss:$16 sps:$4 sm:$0xff]  }
  0x93   : > { %1371 = vmatprep.subr.bf16.mxu1 %v1885_v59  ;;  %v1970_v59 = vld [vmem:[%s2386_s19 + $0x388] ss:$16 sps:$4 sm:$0xff]  }
  0x94   : > { %1329 = vmatpush2.bf16.msra.mxu0 %v1887_v60  ;;  %v1975_v60 = vld [vmem:[%s2386_s19 + $0x16c] ss:$16 sps:$4 sm:$0xff]  }
  0x95   : > { %1330 = vmatprep.subr.bf16.mxu0 %v1889_v62  ;;  %v1973_v62 = vld [vmem:[%s2386_s19 + $0x168] ss:$16 sps:$4 sm:$0xff]  }
  0x96   : > { %1372 = vmatpush2.bf16.msra.mxu1 %v1888_v61  ;;  %v1978_v61 = vld [vmem:[%s2386_s19 + $0x36c] ss:$16 sps:$4 sm:$0xff]  }
  0x97   : > { %1373 = vmatprep.subr.bf16.mxu1 %v1891_v63  ;;  %v1976_v63 = vld [vmem:[%s2386_s19 + $0x368] ss:$16 sps:$4 sm:$0xff]  }
  0x98   : > { %1331 = vmatpush2.bf16.msra.mxu0 %v1893_v0  ;;  %v1981_v0 = vld [vmem:[%s2386_s19 + $0x14c] ss:$16 sps:$4 sm:$0xff]  }
  0x99   : > { %1332 = vmatprep.subr.bf16.mxu0 %v1895_v2  ;;  %v1979_v2 = vld [vmem:[%s2386_s19 + $0x148] ss:$16 sps:$4 sm:$0xff]  }
  0x9a   : > { %1374 = vmatpush2.bf16.msra.mxu1 %v1894_v1  ;;  %v1984_v1 = vld [vmem:[%s2386_s19 + $0x34c] ss:$16 sps:$4 sm:$0xff]  }
  0x9b   : > { %1375 = vmatprep.subr.bf16.mxu1 %v1897_v4  ;;  %v1982_v4 = vld [vmem:[%s2386_s19 + $0x348] ss:$16 sps:$4 sm:$0xff]  }
  0x9c   : > { %1333 = vmatpush2.bf16.msra.mxu0 %v1899_v10  ;;  %v1993_v10 = vld [vmem:[%s2386_s19 + $0x10c] ss:$16 sps:$4 sm:$0xff]  }
  0x9d   : > { %1388 = vmatprep.subr.bf16.mxu0 %v1903_v12  ;;  %v1991_v12 = vld [vmem:[%s2386_s19 + $0x108] ss:$16 sps:$4 sm:$0xff]  }
  0x9e   : > { %1376 = vmatpush2.bf16.msra.mxu1 %v1900_v11  ;;  %v1996_v11 = vld [vmem:[%s2386_s19 + $0x30c] ss:$16 sps:$4 sm:$0xff]  }
  0x9f   : > { %1431 = vmatprep.subr.bf16.mxu1 %v1906_v13  ;;  %1335 = vmatmul.mubr.bf16.vlgmr.msra.gmra.mxu0 %v2468_v14  ;;  %v1994_v13 = vld [vmem:[%s2386_s19 + $0x308] ss:$16 sps:$4 sm:$0xff]  }
  0xa0   : > { %1389 = vmatpush1.bf16.msra.mxu0 %v1901_v16  ;;  %1420 = vmatprep.mubr.bf16.mxu0 %v2379_v3  ;;  %v1927_v3 = vld [vmem:[%s2386_s19 + $0x6c] ss:$16 sps:$4 sm:$0xff]   ;;  %v642_v16 = vlaneseq }
  0xa1   : > { %1378 = vmatmul.mubr.bf16.vlgmr.msra.gmra.mxu1 %v2470_v15  ;;  %1390 = vmatprep.subr.bf16.mxu0 %v1909_v18 }
  0xa2   : > { %1432 = vmatpush1.bf16.msra.mxu1 %v1904_v17  ;;  %1463 = vmatprep.mubr.bf16.mxu1 %v2384_v5  ;;  %v1930_v5 = vld [vmem:[%s2386_s19 + $0x26c] ss:$16 sps:$4 sm:$0xff]   ;;  %v643_v17 = vshrl.u32 %v642_v16, 7 }
  0xa3   : > { %1433 = vmatprep.subr.bf16.mxu1 %v1912_v19  ;;  %v640_v19 = vld [vmem:[%s496_s7] sm:$0xf] }
  0xa4   : > { %1391 = vmatpush1.bf16.msra.mxu0 %v1907_v20  ;;  %v644_v18 = vsub.s32 0, %v643_v17  ;;  %v648_v20 = vsub.s32 1, %v643_v17 }
  0xa5   : > { %1392 = vmatprep.subr.bf16.mxu0 %v1915_v22 }
  0xa6   : > { %1434 = vmatpush1.bf16.msra.mxu1 %v1910_v21  ;;  %v645_v21 = vrot.slane %v640_v19, %v644_v18  ;;  %v649_v22 = vrot.slane %v640_v19, %v648_v20 }
  0xa7   : > { %1435 = vmatprep.subr.bf16.mxu1 %v1918_v23 }
  0xa8   : > { %1393 = vmatpush1.bf16.msra.mxu0 %v1913_v24 }
  0xa9   : > { %1394 = vmatprep.subr.bf16.mxu0 %v1921_v26 }
  0xaa   : > { %1436 = vmatpush1.bf16.msra.mxu1 %v1916_v25 }
  0xab   : > { %1437 = vmatprep.subr.bf16.mxu1 %v1924_v27 }
  0xac   : > { %1395 = vmatpush1.bf16.msra.mxu0 %v1919_v28 }
  0xad   : > { %1396 = vmatprep.subr.bf16.mxu0 %v1927_v3 }
  0xae   : > { %1438 = vmatpush1.bf16.msra.mxu1 %v1922_v29 }
  0xaf   : > { %1439 = vmatprep.subr.bf16.mxu1 %v1930_v5 }
  0xb0   : > { %1397 = vmatpush1.bf16.msra.mxu0 %v1925_v30 }
  0xb1   : > { %1398 = vmatprep.subr.bf16.mxu0 %v1933_v32 }
  0xb2   : > { %1440 = vmatpush1.bf16.msra.mxu1 %v1928_v31 }
  0xb3   : > { %1441 = vmatprep.subr.bf16.mxu1 %v1936_v33 }
  0xb4   : > { %1399 = vmatpush1.bf16.msra.mxu0 %v1931_v34 }
  0xb5   : > { %1400 = vmatprep.subr.bf16.mxu0 %v1939_v36  ;;  %v656_v36 = vsub.s32 3, %v643_v17 }
  0xb6   : > { %1442 = vmatpush1.bf16.msra.mxu1 %v1934_v35  ;;  %v652_v35 = vsub.s32 2, %v643_v17 }
  0xb7   : > { %1443 = vmatprep.subr.bf16.mxu1 %v1942_v37 }
  0xb8   : > { %1401 = vmatpush1.bf16.msra.mxu0 %v1937_v38  ;;  %v653_v37 = vrot.slane %v640_v19, %v652_v35  ;;  %v657_v38 = vrot.slane %v640_v19, %v656_v36 }
  0xb9   : > { %1402 = vmatprep.subr.bf16.mxu0 %v1945_v40 }
  0xba   : > { %1444 = vmatpush1.bf16.msra.mxu1 %v1940_v39 }
  0xbb   : > { %1445 = vmatprep.subr.bf16.mxu1 %v1948_v41 }
  0xbc   : > { %1403 = vmatpush1.bf16.msra.mxu0 %v1943_v42 }
  0xbd   : > { %1404 = vmatprep.subr.bf16.mxu0 %v1951_v44 }
  0xbe   : > { %1446 = vmatpush1.bf16.msra.mxu1 %v1946_v43 }
  0xbf   : > { %1447 = vmatprep.subr.bf16.mxu1 %v1954_v45 }
  0xc0   : > { %1405 = vmatpush2.bf16.msra.mxu0 %v1949_v46 }
  0xc1   : > { %1406 = vmatprep.subr.bf16.mxu0 %v1957_v48 }
  0xc2   : > { %1448 = vmatpush2.bf16.msra.mxu1 %v1952_v47 }
  0xc3   : > { %1449 = vmatprep.subr.bf16.mxu1 %v1960_v49 }
  0xc4   : > { %1407 = vmatpush2.bf16.msra.mxu0 %v1955_v50 }
  0xc5   : > { %1408 = vmatprep.subr.bf16.mxu0 %v1963_v52 }
  0xc6   : > { %1450 = vmatpush2.bf16.msra.mxu1 %v1958_v51 }
  0xc7   : > { %1451 = vmatprep.subr.bf16.mxu1 %v1966_v53 }
  0xc8   : > { %1409 = vmatpush2.bf16.msra.mxu0 %v1961_v54 }
  0xc9   : > { %1410 = vmatprep.subr.bf16.mxu0 %v1969_v56 }
  0xca   : > { %1452 = vmatpush2.bf16.msra.mxu1 %v1964_v55 }
  0xcb   : > { %1453 = vmatprep.subr.bf16.mxu1 %v1972_v57 }
  0xcc   : > { %1411 = vmatpush2.bf16.msra.mxu0 %v1967_v58 }
  0xcd   : > { %1412 = vmatprep.subr.bf16.mxu0 %v1975_v60 }
  0xce   : > { %1454 = vmatpush2.bf16.msra.mxu1 %v1970_v59 }
  0xcf   : > { %1455 = vmatprep.subr.bf16.mxu1 %v1978_v61 }
  0xd0   : > { %1413 = vmatpush2.bf16.msra.mxu0 %v1973_v62 }
  0xd1   : > { %1414 = vmatprep.subr.bf16.mxu0 %v1981_v0 }
  0xd2   : > { %1456 = vmatpush2.bf16.msra.mxu1 %v1976_v63 }
  0xd3   : > { %1457 = vmatprep.subr.bf16.mxu1 %v1984_v1 }
  0xd4   : > { %1415 = vmatpush2.bf16.msra.mxu0 %v1979_v2 }
  0xd5   : > { %1416 = vmatprep.subr.bf16.mxu0 %v1987_v6 }
  0xd6   : > { %1458 = vmatpush2.bf16.msra.mxu1 %v1982_v4 }
  0xd7   : > { %1459 = vmatprep.subr.bf16.mxu1 %v1990_v7 }
  0xd8   : > { %1417 = vmatpush2.bf16.msra.mxu0 %v1985_v8 }
  0xd9   : > { %1418 = vmatprep.subr.bf16.mxu0 %v1993_v10 }
  0xda   : > { %1460 = vmatpush2.bf16.msra.mxu1 %v1988_v9 }
  0xdb   : > { %1461 = vmatprep.subr.bf16.mxu1 %v1996_v11 }
  0xdc   : > { %1419 = vmatpush2.bf16.msra.mxu0 %v1991_v12 }
  0xde   : > { %1462 = vmatpush2.bf16.msra.mxu1 %v1994_v13 }
  0xdf   : > { %1421 = vmatmul.mubr.bf16.vlgmr.msra.gmra.mxu0 %v2468_v14 }
  0xe1   : > { %1464 = vmatmul.mubr.bf16.vlgmr.msra.gmra.mxu1 %v2470_v15 }
 0x15f   : > { %v1336_v23 = vpop.f32.mrf.mxu0 }
 0x160   : > { %v1337_v24 = vadd.f32 %v1336_v23, %v645_v21 }
 0x161   : > { %v1379_v14 = vpop.f32.mrf.mxu1  ;;  %v1338_v15 = vpop.f32.mrf.mxu0 }
 0x162   : > { %v1380_v26 = vadd.f32 %v1379_v14, %v1337_v24  ;;  %v1339_v27 = vadd.f32 %v1338_v15, %v649_v22 }
 0x163   : > { %v1381_v25 = vpop.f32.mrf.mxu1  ;;  %v1340_v28 = vpop.f32.mrf.mxu0 }
 0x164   : > { %1474 = vst [vmem:[%s2546_s9] sm:$0xff] %v1380_v26  ;;  %v1382_v3 = vadd.f32 %v1381_v25, %v1339_v27  ;;  %v1341_v5 = vadd.f32 %v1340_v28, %v645_v21 }
 0x165   : > { %v1383_v29 = vpop.f32.mrf.mxu1  ;;  %v1342_v30 = vpop.f32.mrf.mxu0 }
 0x166   : > { %1475 = vst [vmem:[%s2546_s9 + $0x8] sm:$0xff] %v1382_v3  ;;  %v1384_v31 = vadd.f32 %v1383_v29, %v1341_v5  ;;  %v1343_v32 = vadd.f32 %v1342_v30, %v649_v22 }
 0x167   : > { %v1385_v33 = vpop.f32.mrf.mxu1 }
 0x168   : > { %1478 = vst [vmem:[%s2546_s9 + $0x20] sm:$0xff] %v1384_v31  ;;  %v1386_v34 = vadd.f32 %v1385_v33, %v1343_v32 }
 0x16a   : > { %1479 = vst [vmem:[%s2546_s9 + $0x28] sm:$0xff] %v1386_v34 }
 0x16b   : > { %v1507_v55 = vld [vmem:[%s2546_s9] sm:$0xff] (%p2092_p6) }
 0x16c   : > { %1508 = vst [vmem:[%s1494_s11] sm:$0xff] (%p2092_p6), %v1507_v55 }
 0x16d   : > { %v1509_v56 = vld [vmem:[%s2546_s9 + $0x8] sm:$0xff] (%p2092_p6) }
 0x16e   : > { %1510 = vst [vmem:[%s1494_s11 + $0x8] sm:$0xff] (%p2092_p6), %v1509_v56 }
 0x16f   : > { %v1515_v59 = vld [vmem:[%s2546_s9 + $0x20] sm:$0xff] (%p2092_p6) }
 0x170   : > { %1516 = vst [vmem:[%s1494_s11 + $0x40] sm:$0xff] (%p2092_p6), %v1515_v59 }
 0x171   : > { %v1517_v60 = vld [vmem:[%s2546_s9 + $0x28] sm:$0xff] (%p2092_p6) }
 0x172   : > { %1518 = vst [vmem:[%s1494_s11 + $0x48] sm:$0xff] (%p2092_p6), %v1517_v60 }
 0x19f   : > { %v1422_v39 = vpop.f32.mrf.mxu0 }
 0x1a0   : > { %v1423_v41 = vadd.f32 %v1422_v39, %v653_v37 }
 0x1a1   : > { %v1465_v40 = vpop.f32.mrf.mxu1  ;;  %v1424_v42 = vpop.f32.mrf.mxu0 }
 0x1a2   : > { %v1466_v44 = vadd.f32 %v1465_v40, %v1423_v41  ;;  %v1425_v45 = vadd.f32 %v1424_v42, %v657_v38 }
 0x1a3   : > { %v1467_v43 = vpop.f32.mrf.mxu1  ;;  %v1426_v46 = vpop.f32.mrf.mxu0 }
 0x1a4   : > { %1476 = vst [vmem:[%s2546_s9 + $0x10] sm:$0xff] %v1466_v44  ;;  %v1468_v48 = vadd.f32 %v1467_v43, %v1425_v45  ;;  %v1427_v49 = vadd.f32 %v1426_v46, %v653_v37 }
 0x1a5   : > { %v1469_v47 = vpop.f32.mrf.mxu1  ;;  %v1428_v50 = vpop.f32.mrf.mxu0 }
 0x1a6   : > { %1477 = vst [vmem:[%s2546_s9 + $0x18] sm:$0xff] %v1468_v48  ;;  %v1470_v51 = vadd.f32 %v1469_v47, %v1427_v49  ;;  %v1429_v52 = vadd.f32 %v1428_v50, %v657_v38  ;;  %1488 = sbr.rel (!%p2092_p6) target bundleno = 435 (0x1b3), region = 59 }
 0x1a7   : > { %v1471_v53 = vpop.f32.mrf.mxu1 }
 0x1a8   : > { %1480 = vst [vmem:[%s2546_s9 + $0x30] sm:$0xff] %v1470_v51  ;;  %v1472_v54 = vadd.f32 %v1471_v53, %v1429_v52 }
 0x1aa   : > { %1481 = vst [vmem:[%s2546_s9 + $0x38] sm:$0xff] %v1472_v54 }
 0x1ab   : > { %v1511_v57 = vld [vmem:[%s2546_s9 + $0x10] sm:$0xff] }
 0x1ac   : > { %1512 = vst [vmem:[%s1494_s11 + $0x10] sm:$0xff] %v1511_v57 }
 0x1ad   : > { %v1513_v58 = vld [vmem:[%s2546_s9 + $0x18] sm:$0xff] }
 0x1ae   : > { %1514 = vst [vmem:[%s1494_s11 + $0x18] sm:$0xff] %v1513_v58 }
 0x1af   : > { %v1519_v61 = vld [vmem:[%s2546_s9 + $0x30] sm:$0xff] }
 0x1b0   : > { %1520 = vst [vmem:[%s1494_s11 + $0x50] sm:$0xff] %v1519_v61 }
 0x1b1   : > { %v1521_v62 = vld [vmem:[%s2546_s9 + $0x38] sm:$0xff] }
 0x1b2   : > { %1522 = vst [vmem:[%s1494_s11 + $0x58] sm:$0xff] %v1521_v62 }
 0x1b3 PF: > { %s13_s16 = sadd.s32 1, %s2035_s16   ;;  %s2590_s12 = smov %s2023_s13 }
 0x1b4   : > { %p10_p12 = scmp.ge.s32.totalorder %s13_s16, 4   ;;  %s2591_s13 = smov %s2097_s22 }
 0x1b5   : > { %s2592_s14 = smov %s2031_s15  ;;  %s2593_s15 = smov %s2595_s17 }
 0x1b6   :  { %12 = sbr.rel (!%p10_p12) target bundleno = 3 (0x3), region = 119 }

// kernel: mt_forward.66
= control target key start
LH: loop header
LB: loop body
LE: loop exit
PB: predicated region body
PF: predicated region fallthrough
CT: control target
= control target key end

     0   :  { %s13163_s1 = inlined_call_operand.vmem [shape: bf16[512,2048], index: 1, kind: input, shape index: {}]   ;;  %s13164_s0 = inlined_call_operand.vmem [shape: f32[16,512], index: 0, kind: input, shape index: {}]   ;;  %s13165_s2 = inlined_call_operand.vmem [shape: f32[1,2048], index: 2, kind: input, shape index: {}]   ;;  %s13166_s3 = inlined_call_operand.vmem [shape: bf16[2048,512], index: 3, kind: input, shape index: {}]   ;;  %s13167_s4 = inlined_call_operand.vmem [shape: f32[1,512], index: 4, kind: input, shape index: {}]   ;;  %s13168_s5 = inlined_call_operand.vmem [shape: f32[1,512], index: 5, kind: input, shape index: {}]   ;;  %s13169_s6 = inlined_call_operand.vmem [shape: f32[1,512], index: 6, kind: input, shape index: {}]   ;;  %s13170_s7 = inlined_call_operand.vmem [shape: f32[16,512], index: 7, kind: output, shape index: {}]  }
   0x1   :  { %v150_v0 = vld [vmem:[%s13163_s1 + $0x380] sm:$0xff]  ;;  %v27_v54 = vld [vmem:[%s13164_s0 + $0x8] sm:$0xff]  ;;  %v29_v59 = vld [vmem:[%s13164_s0 + $0x18] sm:$0xff] }
   0x2   :  { %v158_v1 = vld [vmem:[%s13163_s1 + $0x3c0] sm:$0xff]  ;;  %v31_v55 = vld [vmem:[%s13164_s0 + $0x28] sm:$0xff]  ;;  %v33_v60 = vld [vmem:[%s13164_s0 + $0x38] sm:$0xff] }
   0x3   :  { %v406_v2 = vld [vmem:[%s13163_s1 + $0xb80] sm:$0xff]  ;;  %v7958_v3 = vcombine.high %v150_v0, %v158_v1  ;;  %v7957_v5 = vcombine.low %v150_v0, %v158_v1  ;;  %v9788_v58 = vpack.c.bf16 %v31_v55, %v27_v54  ;;  %v9802_v63 = vpack.c.bf16 %v33_v60, %v29_v59 }
   0x4   :  { %v414_v4 = vld [vmem:[%s13163_s1 + $0xbc0] sm:$0xff] }
   0x5   :  { %v134_v6 = vld [vmem:[%s13163_s1 + $0x300] sm:$0xff]  ;;  %v8214_v8 = vcombine.high %v406_v2, %v414_v4  ;;  %v8213_v9 = vcombine.low %v406_v2, %v414_v4  ;;  %3194 = vmatprep.subr.bf16.mxu0 %v7958_v3  ;;  %3226 = vmatprep.mubr.bf16.mxu0 %v9788_v58 }
   0x6   :  { %v142_v7 = vld [vmem:[%s13163_s1 + $0x340] sm:$0xff]  ;;  %3195 = vmatpush1.bf16.msra.mxu0 %v7957_v5  ;;  %3269 = vmatprep.mubr.bf16.mxu1 %v9802_v63 }
   0x7   :  { %v7942_v10 = vcombine.high %v134_v6, %v142_v7  ;;  %v390_v11 = vld [vmem:[%s13163_s1 + $0xb00] sm:$0xff]  ;;  %3237 = vmatprep.subr.bf16.mxu1 %v8214_v8  ;;  %v7941_v18 = vcombine.low %v134_v6, %v142_v7 }
   0x8   :  { %v398_v12 = vld [vmem:[%s13163_s1 + $0xb40] sm:$0xff]  ;;  %3238 = vmatpush1.bf16.msra.mxu1 %v8213_v9 }
   0x9   :  { %v118_v13 = vld [vmem:[%s13163_s1 + $0x280] sm:$0xff]  ;;  %v8198_v14 = vcombine.high %v390_v11, %v398_v12  ;;  %3196 = vmatprep.subr.bf16.mxu0 %v7942_v10  ;;  %v8197_v19 = vcombine.low %v390_v11, %v398_v12 }
   0xa   :  { %v126_v15 = vld [vmem:[%s13163_s1 + $0x2c0] sm:$0xff]  ;;  %3197 = vmatpush1.bf16.msra.mxu0 %v7941_v18 }
   0xb   :  { %v374_v16 = vld [vmem:[%s13163_s1 + $0xa80] sm:$0xff]  ;;  %v7926_v20 = vcombine.high %v118_v13, %v126_v15  ;;  %3239 = vmatprep.subr.bf16.mxu1 %v8198_v14  ;;  %v7925_v26 = vcombine.low %v118_v13, %v126_v15 }
   0xc   :  { %v382_v17 = vld [vmem:[%s13163_s1 + $0xac0] sm:$0xff]  ;;  %3240 = vmatpush1.bf16.msra.mxu1 %v8197_v19 }
   0xd   :  { %v8182_v21 = vcombine.high %v374_v16, %v382_v17  ;;  %v102_v22 = vld [vmem:[%s13163_s1 + $0x200] sm:$0xff]  ;;  %3198 = vmatprep.subr.bf16.mxu0 %v7926_v20  ;;  %v8181_v27 = vcombine.low %v374_v16, %v382_v17 }
   0xe   :  { %v110_v23 = vld [vmem:[%s13163_s1 + $0x240] sm:$0xff]  ;;  %3199 = vmatpush1.bf16.msra.mxu0 %v7925_v26 }
   0xf   :  { %v358_v24 = vld [vmem:[%s13163_s1 + $0xa00] sm:$0xff]  ;;  %v7910_v28 = vcombine.high %v102_v22, %v110_v23  ;;  %3241 = vmatprep.subr.bf16.mxu1 %v8182_v21  ;;  %v7909_v34 = vcombine.low %v102_v22, %v110_v23 }
  0x10   :  { %v366_v25 = vld [vmem:[%s13163_s1 + $0xa40] sm:$0xff]  ;;  %3242 = vmatpush1.bf16.msra.mxu1 %v8181_v27 }
  0x11   :  { %v8166_v29 = vcombine.high %v358_v24, %v366_v25  ;;  %v86_v30 = vld [vmem:[%s13163_s1 + $0x180] sm:$0xff]  ;;  %3200 = vmatprep.subr.bf16.mxu0 %v7910_v28  ;;  %v8165_v35 = vcombine.low %v358_v24, %v366_v25 }
  0x12   :  { %v94_v31 = vld [vmem:[%s13163_s1 + $0x1c0] sm:$0xff]  ;;  %3201 = vmatpush1.bf16.msra.mxu0 %v7909_v34 }
  0x13   :  { %v342_v32 = vld [vmem:[%s13163_s1 + $0x980] sm:$0xff]  ;;  %v7894_v36 = vcombine.high %v86_v30, %v94_v31  ;;  %3243 = vmatprep.subr.bf16.mxu1 %v8166_v29  ;;  %v7893_v42 = vcombine.low %v86_v30, %v94_v31 }
  0x14   :  { %v350_v33 = vld [vmem:[%s13163_s1 + $0x9c0] sm:$0xff]  ;;  %3244 = vmatpush1.bf16.msra.mxu1 %v8165_v35 }
  0x15   :  { %v8150_v37 = vcombine.high %v342_v32, %v350_v33  ;;  %v70_v38 = vld [vmem:[%s13163_s1 + $0x100] sm:$0xff]  ;;  %3202 = vmatprep.subr.bf16.mxu0 %v7894_v36  ;;  %v8149_v43 = vcombine.low %v342_v32, %v350_v33 }
  0x16   :  { %v78_v39 = vld [vmem:[%s13163_s1 + $0x140] sm:$0xff]  ;;  %3203 = vmatpush1.bf16.msra.mxu0 %v7893_v42 }
  0x17   :  { %v326_v40 = vld [vmem:[%s13163_s1 + $0x900] sm:$0xff]  ;;  %v7878_v44 = vcombine.high %v70_v38, %v78_v39  ;;  %3245 = vmatprep.subr.bf16.mxu1 %v8150_v37  ;;  %v7877_v50 = vcombine.low %v70_v38, %v78_v39 }
  0x18   :  { %v334_v41 = vld [vmem:[%s13163_s1 + $0x940] sm:$0xff]  ;;  %3246 = vmatpush1.bf16.msra.mxu1 %v8149_v43 }
  0x19   :  { %v8134_v45 = vcombine.high %v326_v40, %v334_v41  ;;  %v54_v46 = vld [vmem:[%s13163_s1 + $0x80] sm:$0xff]  ;;  %3204 = vmatprep.subr.bf16.mxu0 %v7878_v44  ;;  %v8133_v51 = vcombine.low %v326_v40, %v334_v41 }
  0x1a   :  { %v62_v47 = vld [vmem:[%s13163_s1 + $0xc0] sm:$0xff]  ;;  %3205 = vmatpush1.bf16.msra.mxu0 %v7877_v50 }
  0x1b   :  { %v310_v48 = vld [vmem:[%s13163_s1 + $0x880] sm:$0xff]  ;;  %v7862_v52 = vcombine.high %v54_v46, %v62_v47  ;;  %3247 = vmatprep.subr.bf16.mxu1 %v8134_v45  ;;  %v7861_v0 = vcombine.low %v54_v46, %v62_v47 }
  0x1c   :  { %v318_v49 = vld [vmem:[%s13163_s1 + $0x8c0] sm:$0xff]  ;;  %3248 = vmatpush1.bf16.msra.mxu1 %v8133_v51 }
  0x1d   :  { %v38_v53 = vld [vmem:[%s13163_s1] sm:$0xff]  ;;  %v8118_v56 = vcombine.high %v310_v48, %v318_v49  ;;  %3206 = vmatprep.subr.bf16.mxu0 %v7862_v52  ;;  %v8117_v1 = vcombine.low %v310_v48, %v318_v49 }
  0x1e   :  { %v46_v57 = vld [vmem:[%s13163_s1 + $0x40] sm:$0xff]  ;;  %3207 = vmatpush1.bf16.msra.mxu0 %v7861_v0 }
  0x1f   :  { %v294_v61 = vld [vmem:[%s13163_s1 + $0x800] sm:$0xff]  ;;  %v7846_v2 = vcombine.high %v38_v53, %v46_v57  ;;  %3249 = vmatprep.subr.bf16.mxu1 %v8118_v56  ;;  %v7845_v8 = vcombine.low %v38_v53, %v46_v57 }
  0x20   :  { %v302_v62 = vld [vmem:[%s13163_s1 + $0x840] sm:$0xff]  ;;  %3250 = vmatpush1.bf16.msra.mxu1 %v8117_v1 }
  0x21   :  { %v8102_v3 = vcombine.high %v294_v61, %v302_v62  ;;  %v278_v4 = vld [vmem:[%s13163_s1 + $0x780] sm:$0xff]  ;;  %3208 = vmatprep.subr.bf16.mxu0 %v7846_v2  ;;  %v8101_v9 = vcombine.low %v294_v61, %v302_v62 }
  0x22   :  { %v286_v5 = vld [vmem:[%s13163_s1 + $0x7c0] sm:$0xff]  ;;  %3209 = vmatpush1.bf16.msra.mxu0 %v7845_v8  ;;  %v407_v8 = vld [vmem:[%s13163_s1 + $0xb88] sm:$0xff] }
  0x23   :  { %v534_v6 = vld [vmem:[%s13163_s1 + $0xf80] sm:$0xff]  ;;  %v8086_v10 = vcombine.high %v278_v4, %v286_v5  ;;  %3251 = vmatprep.subr.bf16.mxu1 %v8102_v3  ;;  %v8085_v16 = vcombine.low %v278_v4, %v286_v5 }
  0x24   :  { %v542_v7 = vld [vmem:[%s13163_s1 + $0xfc0] sm:$0xff]  ;;  %3252 = vmatpush1.bf16.msra.mxu1 %v8101_v9  ;;  %v415_v9 = vld [vmem:[%s13163_s1 + $0xbc8] sm:$0xff] }
  0x25   :  { %v8342_v11 = vcombine.high %v534_v6, %v542_v7  ;;  %v262_v12 = vld [vmem:[%s13163_s1 + $0x700] sm:$0xff]  ;;  %3210 = vmatprep.subr.bf16.mxu0 %v8086_v10  ;;  %v8341_v17 = vcombine.low %v534_v6, %v542_v7  ;;  %v151_v6 = vld [vmem:[%s13163_s1 + $0x388] sm:$0xff] }
  0x26   :  { %v270_v13 = vld [vmem:[%s13163_s1 + $0x740] sm:$0xff]  ;;  %3211 = vmatpush2.bf16.msra.mxu0 %v8085_v16  ;;  %v159_v7 = vld [vmem:[%s13163_s1 + $0x3c8] sm:$0xff] }
  0x27   :  { %v518_v14 = vld [vmem:[%s13163_s1 + $0xf00] sm:$0xff]  ;;  %v8070_v18 = vcombine.high %v262_v12, %v270_v13  ;;  %3253 = vmatprep.subr.bf16.mxu1 %v8342_v11  ;;  %v8069_v24 = vcombine.low %v262_v12, %v270_v13  ;;  %v7960_v16 = vcombine.high %v151_v6, %v159_v7 }
  0x28   :  { %v526_v15 = vld [vmem:[%s13163_s1 + $0xf40] sm:$0xff]  ;;  %3254 = vmatpush2.bf16.msra.mxu1 %v8341_v17  ;;  %v8216_v17 = vcombine.high %v407_v8, %v415_v9 }
  0x29   :  { %v8326_v19 = vcombine.high %v518_v14, %v526_v15  ;;  %v246_v20 = vld [vmem:[%s13163_s1 + $0x680] sm:$0xff]  ;;  %3212 = vmatprep.subr.bf16.mxu0 %v8070_v18  ;;  %v8325_v25 = vcombine.low %v518_v14, %v526_v15  ;;  %v28_v14 = vld [vmem:[%s13164_s0 + $0x10] sm:$0xff]  ;;  %v135_v18 = vld [vmem:[%s13163_s1 + $0x308] sm:$0xff] }
  0x2a   :  { %v254_v21 = vld [vmem:[%s13163_s1 + $0x6c0] sm:$0xff]  ;;  %3213 = vmatpush2.bf16.msra.mxu0 %v8069_v24  ;;  %v32_v15 = vld [vmem:[%s13164_s0 + $0x30] sm:$0xff]  ;;  %v7959_v24 = vcombine.low %v151_v6, %v159_v7  ;;  %v39_v6 = vld [vmem:[%s13163_s1 + $0x8] sm:$0xff] }
  0x2b   :  { %v502_v22 = vld [vmem:[%s13163_s1 + $0xe80] sm:$0xff]  ;;  %v8054_v26 = vcombine.high %v246_v20, %v254_v21  ;;  %3255 = vmatprep.subr.bf16.mxu1 %v8326_v19  ;;  %v8053_v32 = vcombine.low %v246_v20, %v254_v21  ;;  %v143_v19 = vld [vmem:[%s13163_s1 + $0x348] sm:$0xff] }
  0x2c   :  { %v510_v23 = vld [vmem:[%s13163_s1 + $0xec0] sm:$0xff]  ;;  %3256 = vmatpush2.bf16.msra.mxu1 %v8325_v25  ;;  %v391_v21 = vld [vmem:[%s13163_s1 + $0xb08] sm:$0xff]  ;;  %v8215_v25 = vcombine.low %v407_v8, %v415_v9 }
  0x2d   :  { %v8310_v27 = vcombine.high %v502_v22, %v510_v23  ;;  %v230_v28 = vld [vmem:[%s13163_s1 + $0x600] sm:$0xff]  ;;  %3214 = vmatprep.subr.bf16.mxu0 %v8054_v26  ;;  %v8309_v33 = vcombine.low %v502_v22, %v510_v23  ;;  %v399_v22 = vld [vmem:[%s13163_s1 + $0xb48] sm:$0xff]  ;;  %v9940_v23 = vpack.c.bf16 %v32_v15, %v28_v14  ;;  %v7944_v26 = vcombine.high %v135_v18, %v143_v19 }
  0x2e   :  { %v238_v29 = vld [vmem:[%s13163_s1 + $0x640] sm:$0xff]  ;;  %3215 = vmatpush2.bf16.msra.mxu0 %v8053_v32  ;;  %v7943_v32 = vcombine.low %v135_v18, %v143_v19  ;;  %v47_v7 = vld [vmem:[%s13163_s1 + $0x48] sm:$0xff] }
  0x2f   :  { %v486_v30 = vld [vmem:[%s13163_s1 + $0xe00] sm:$0xff]  ;;  %v8038_v34 = vcombine.high %v230_v28, %v238_v29  ;;  %3257 = vmatprep.subr.bf16.mxu1 %v8310_v27  ;;  %v8037_v40 = vcombine.low %v230_v28, %v238_v29  ;;  %v8200_v27 = vcombine.high %v391_v21, %v399_v22  ;;  %v119_v28 = vld [vmem:[%s13163_s1 + $0x288] sm:$0xff]  ;;  %v7847_v18 = vcombine.low %v39_v6, %v47_v7 }
  0x30   :  { %v494_v31 = vld [vmem:[%s13163_s1 + $0xe40] sm:$0xff]  ;;  %3258 = vmatpush2.bf16.msra.mxu1 %v8309_v33  ;;  %v127_v29 = vld [vmem:[%s13163_s1 + $0x2c8] sm:$0xff]  ;;  %v8199_v33 = vcombine.low %v391_v21, %v399_v22 }
  0x31   :  { %v8294_v35 = vcombine.high %v486_v30, %v494_v31  ;;  %v214_v36 = vld [vmem:[%s13163_s1 + $0x580] sm:$0xff]  ;;  %3216 = vmatprep.subr.bf16.mxu0 %v8038_v34  ;;  %v8293_v41 = vcombine.low %v486_v30, %v494_v31  ;;  %v375_v30 = vld [vmem:[%s13163_s1 + $0xa88] sm:$0xff]  ;;  %v7928_v34 = vcombine.high %v119_v28, %v127_v29 }
  0x32   :  { %v222_v37 = vld [vmem:[%s13163_s1 + $0x5c0] sm:$0xff]  ;;  %3217 = vmatpush2.bf16.msra.mxu0 %v8037_v40  ;;  %v383_v31 = vld [vmem:[%s13163_s1 + $0xac8] sm:$0xff]  ;;  %v7927_v40 = vcombine.low %v119_v28, %v127_v29 }
  0x33   :  { %v470_v38 = vld [vmem:[%s13163_s1 + $0xd80] sm:$0xff]  ;;  %v8022_v42 = vcombine.high %v214_v36, %v222_v37  ;;  %3259 = vmatprep.subr.bf16.mxu1 %v8294_v35  ;;  %v8021_v48 = vcombine.low %v214_v36, %v222_v37  ;;  %v8184_v35 = vcombine.high %v375_v30, %v383_v31  ;;  %v103_v36 = vld [vmem:[%s13163_s1 + $0x208] sm:$0xff] }
  0x34   :  { %v478_v39 = vld [vmem:[%s13163_s1 + $0xdc0] sm:$0xff]  ;;  %3260 = vmatpush2.bf16.msra.mxu1 %v8293_v41  ;;  %v111_v37 = vld [vmem:[%s13163_s1 + $0x248] sm:$0xff]  ;;  %v8183_v41 = vcombine.low %v375_v30, %v383_v31 }
  0x35   :  { %v8278_v43 = vcombine.high %v470_v38, %v478_v39  ;;  %v198_v44 = vld [vmem:[%s13163_s1 + $0x500] sm:$0xff]  ;;  %3218 = vmatprep.subr.bf16.mxu0 %v8022_v42  ;;  %v8277_v49 = vcombine.low %v470_v38, %v478_v39  ;;  %v359_v38 = vld [vmem:[%s13163_s1 + $0xa08] sm:$0xff]  ;;  %v7912_v42 = vcombine.high %v103_v36, %v111_v37 }
  0x36   :  { %v206_v45 = vld [vmem:[%s13163_s1 + $0x540] sm:$0xff]  ;;  %3219 = vmatpush2.bf16.msra.mxu0 %v8021_v48  ;;  %v367_v39 = vld [vmem:[%s13163_s1 + $0xa48] sm:$0xff]  ;;  %v7911_v48 = vcombine.low %v103_v36, %v111_v37 }
  0x37   :  { %v454_v46 = vld [vmem:[%s13163_s1 + $0xd00] sm:$0xff]  ;;  %v8006_v50 = vcombine.high %v198_v44, %v206_v45  ;;  %3261 = vmatprep.subr.bf16.mxu1 %v8278_v43  ;;  %v8005_v56 = vcombine.low %v198_v44, %v206_v45  ;;  %v8168_v43 = vcombine.high %v359_v38, %v367_v39  ;;  %v87_v44 = vld [vmem:[%s13163_s1 + $0x188] sm:$0xff] }
  0x38   :  { %v462_v47 = vld [vmem:[%s13163_s1 + $0xd40] sm:$0xff]  ;;  %3262 = vmatpush2.bf16.msra.mxu1 %v8277_v49  ;;  %v95_v45 = vld [vmem:[%s13163_s1 + $0x1c8] sm:$0xff]  ;;  %v8167_v49 = vcombine.low %v359_v38, %v367_v39 }
  0x39   :  { %v8262_v51 = vcombine.high %v454_v46, %v462_v47  ;;  %v182_v52 = vld [vmem:[%s13163_s1 + $0x480] sm:$0xff]  ;;  %3220 = vmatprep.subr.bf16.mxu0 %v8006_v50  ;;  %v8261_v57 = vcombine.low %v454_v46, %v462_v47  ;;  %v343_v46 = vld [vmem:[%s13163_s1 + $0x988] sm:$0xff]  ;;  %v7896_v50 = vcombine.high %v87_v44, %v95_v45 }
  0x3a   :  { %v190_v53 = vld [vmem:[%s13163_s1 + $0x4c0] sm:$0xff]  ;;  %3221 = vmatpush2.bf16.msra.mxu0 %v8005_v56  ;;  %v351_v47 = vld [vmem:[%s13163_s1 + $0x9c8] sm:$0xff]  ;;  %v7895_v56 = vcombine.low %v87_v44, %v95_v45 }
  0x3b   :  { %v438_v54 = vld [vmem:[%s13163_s1 + $0xc80] sm:$0xff]  ;;  %v7990_v59 = vcombine.high %v182_v52, %v190_v53  ;;  %3263 = vmatprep.subr.bf16.mxu1 %v8262_v51  ;;  %v7989_v2 = vcombine.low %v182_v52, %v190_v53  ;;  %v8152_v51 = vcombine.high %v343_v46, %v351_v47  ;;  %v71_v52 = vld [vmem:[%s13163_s1 + $0x108] sm:$0xff] }
  0x3c   :  { %v446_v55 = vld [vmem:[%s13163_s1 + $0xcc0] sm:$0xff]  ;;  %3264 = vmatpush2.bf16.msra.mxu1 %v8261_v57  ;;  %v79_v53 = vld [vmem:[%s13163_s1 + $0x148] sm:$0xff]  ;;  %v8151_v57 = vcombine.low %v343_v46, %v351_v47 }
  0x3d   :  { %v8246_v60 = vcombine.high %v438_v54, %v446_v55  ;;  %v166_v61 = vld [vmem:[%s13163_s1 + $0x400] sm:$0xff]  ;;  %3222 = vmatprep.subr.bf16.mxu0 %v7990_v59  ;;  %v8245_v3 = vcombine.low %v438_v54, %v446_v55  ;;  %v327_v54 = vld [vmem:[%s13163_s1 + $0x908] sm:$0xff]  ;;  %v7880_v59 = vcombine.high %v71_v52, %v79_v53 }
  0x3e   :  { %v174_v62 = vld [vmem:[%s13163_s1 + $0x440] sm:$0xff]  ;;  %3223 = vmatpush2.bf16.msra.mxu0 %v7989_v2  ;;  %v335_v55 = vld [vmem:[%s13163_s1 + $0x948] sm:$0xff]  ;;  %v7879_v2 = vcombine.low %v71_v52, %v79_v53 }
  0x3f   :  { %v422_v0 = vld [vmem:[%s13163_s1 + $0xc00] sm:$0xff]  ;;  %v7974_v4 = vcombine.high %v166_v61, %v174_v62  ;;  %3265 = vmatprep.subr.bf16.mxu1 %v8246_v60  ;;  %v7973_v10 = vcombine.low %v166_v61, %v174_v62  ;;  %v8136_v60 = vcombine.high %v327_v54, %v335_v55  ;;  %v55_v61 = vld [vmem:[%s13163_s1 + $0x88] sm:$0xff] }
  0x40   :  { %v430_v1 = vld [vmem:[%s13163_s1 + $0xc40] sm:$0xff]  ;;  %3266 = vmatpush2.bf16.msra.mxu1 %v8245_v3  ;;  %v63_v62 = vld [vmem:[%s13163_s1 + $0xc8] sm:$0xff]  ;;  %v8135_v3 = vcombine.low %v327_v54, %v335_v55 }
  0x41   :  { %v8230_v5 = vcombine.high %v422_v0, %v430_v1  ;;  %v26_v11 = vld [vmem:[%s13164_s0] sm:$0xff]  ;;  %3224 = vmatprep.subr.bf16.mxu0 %v7974_v4  ;;  %v8229_v13 = vcombine.low %v422_v0, %v430_v1  ;;  %v311_v0 = vld [vmem:[%s13163_s1 + $0x888] sm:$0xff]  ;;  %v7864_v4 = vcombine.high %v55_v61, %v63_v62 }
  0x42   :  { %v30_v12 = vld [vmem:[%s13164_s0 + $0x20] sm:$0xff]  ;;  %3225 = vmatpush2.bf16.msra.mxu0 %v7973_v10  ;;  %v319_v1 = vld [vmem:[%s13163_s1 + $0x8c8] sm:$0xff]  ;;  %v7863_v10 = vcombine.low %v55_v61, %v63_v62 }
  0x43   :  { %3267 = vmatprep.subr.bf16.mxu1 %v8230_v5  ;;  %v9932_v20 = vpack.c.bf16 %v30_v12, %v26_v11  ;;  %3280 = vmatprep.subr.bf16.mxu0 %v7960_v16  ;;  %v8120_v5 = vcombine.high %v311_v0, %v319_v1  ;;  %v295_v8 = vld [vmem:[%s13163_s1 + $0x808] sm:$0xff]  ;;  %v8119_v11 = vcombine.low %v311_v0, %v319_v1 }
  0x44   :  { %3268 = vmatpush2.bf16.msra.mxu1 %v8229_v13  ;;  %v303_v9 = vld [vmem:[%s13163_s1 + $0x848] sm:$0xff]  ;;  %v7848_v12 = vcombine.high %v39_v6, %v47_v7 }
  0x45   :  { %3323 = vmatprep.subr.bf16.mxu1 %v8216_v17  ;;  %3227 = vmatmul.mubr.bf16.vlgmr.msra.gmra.mxu0 %v9932_v20  ;;  %v8104_v13 = vcombine.high %v295_v8, %v303_v9  ;;  %v279_v14 = vld [vmem:[%s13163_s1 + $0x788] sm:$0xff]  ;;  %v8103_v19 = vcombine.low %v295_v8, %v303_v9 }
  0x46   :  { %3281 = vmatpush1.bf16.msra.mxu0 %v7959_v24  ;;  %3312 = vmatprep.mubr.bf16.mxu0 %v9788_v58  ;;  %v287_v15 = vld [vmem:[%s13163_s1 + $0x7c8] sm:$0xff] }
  0x47   :  { %3270 = vmatmul.mubr.bf16.vlgmr.msra.gmra.mxu1 %v9940_v23  ;;  %3282 = vmatprep.subr.bf16.mxu0 %v7944_v26  ;;  %v535_v16 = vld [vmem:[%s13163_s1 + $0xf88] sm:$0xff]  ;;  %v8088_v21 = vcombine.high %v279_v14, %v287_v15  ;;  %v8087_v28 = vcombine.low %v279_v14, %v287_v15 }
  0x48   :  { %3324 = vmatpush1.bf16.msra.mxu1 %v8215_v25  ;;  %3355 = vmatprep.mubr.bf16.mxu1 %v9802_v63  ;;  %v543_v17 = vld [vmem:[%s13163_s1 + $0xfc8] sm:$0xff] }
  0x49   :  { %3325 = vmatprep.subr.bf16.mxu1 %v8200_v27  ;;  %v8344_v22 = vcombine.high %v535_v16, %v543_v17  ;;  %v263_v24 = vld [vmem:[%s13163_s1 + $0x708] sm:$0xff]  ;;  %v8343_v29 = vcombine.low %v535_v16, %v543_v17 }
  0x4a   :  { %3283 = vmatpush1.bf16.msra.mxu0 %v7943_v32  ;;  %v271_v25 = vld [vmem:[%s13163_s1 + $0x748] sm:$0xff] }
  0x4b   :  { %3284 = vmatprep.subr.bf16.mxu0 %v7928_v34  ;;  %v519_v26 = vld [vmem:[%s13163_s1 + $0xf08] sm:$0xff]  ;;  %v8072_v30 = vcombine.high %v263_v24, %v271_v25  ;;  %v8071_v36 = vcombine.low %v263_v24, %v271_v25 }
  0x4c   :  { %3326 = vmatpush1.bf16.msra.mxu1 %v8199_v33  ;;  %v527_v27 = vld [vmem:[%s13163_s1 + $0xf48] sm:$0xff] }
  0x4d   :  { %3327 = vmatprep.subr.bf16.mxu1 %v8184_v35  ;;  %v8328_v31 = vcombine.high %v519_v26, %v527_v27  ;;  %v247_v32 = vld [vmem:[%s13163_s1 + $0x688] sm:$0xff]  ;;  %v8327_v37 = vcombine.low %v519_v26, %v527_v27 }
  0x4e   :  { %3285 = vmatpush1.bf16.msra.mxu0 %v7927_v40  ;;  %v255_v33 = vld [vmem:[%s13163_s1 + $0x6c8] sm:$0xff] }
  0x4f   :  { %3286 = vmatprep.subr.bf16.mxu0 %v7912_v42  ;;  %v503_v34 = vld [vmem:[%s13163_s1 + $0xe88] sm:$0xff]  ;;  %v8056_v38 = vcombine.high %v247_v32, %v255_v33  ;;  %v8055_v44 = vcombine.low %v247_v32, %v255_v33 }
  0x50   :  { %3328 = vmatpush1.bf16.msra.mxu1 %v8183_v41  ;;  %v511_v35 = vld [vmem:[%s13163_s1 + $0xec8] sm:$0xff] }
  0x51   :  { %3329 = vmatprep.subr.bf16.mxu1 %v8168_v43  ;;  %v8312_v39 = vcombine.high %v503_v34, %v511_v35  ;;  %v231_v40 = vld [vmem:[%s13163_s1 + $0x608] sm:$0xff]  ;;  %v8311_v45 = vcombine.low %v503_v34, %v511_v35 }
  0x52   :  { %3287 = vmatpush1.bf16.msra.mxu0 %v7911_v48  ;;  %v239_v41 = vld [vmem:[%s13163_s1 + $0x648] sm:$0xff] }
  0x53   :  { %3288 = vmatprep.subr.bf16.mxu0 %v7896_v50  ;;  %v487_v42 = vld [vmem:[%s13163_s1 + $0xe08] sm:$0xff]  ;;  %v8040_v46 = vcombine.high %v231_v40, %v239_v41  ;;  %v8039_v52 = vcombine.low %v231_v40, %v239_v41 }
  0x54   :  { %3330 = vmatpush1.bf16.msra.mxu1 %v8167_v49  ;;  %v495_v43 = vld [vmem:[%s13163_s1 + $0xe48] sm:$0xff] }
  0x55   :  { %3331 = vmatprep.subr.bf16.mxu1 %v8152_v51  ;;  %v8296_v47 = vcombine.high %v487_v42, %v495_v43  ;;  %v215_v48 = vld [vmem:[%s13163_s1 + $0x588] sm:$0xff]  ;;  %v8295_v53 = vcombine.low %v487_v42, %v495_v43 }
  0x56   :  { %3289 = vmatpush1.bf16.msra.mxu0 %v7895_v56  ;;  %v223_v49 = vld [vmem:[%s13163_s1 + $0x5c8] sm:$0xff] }
  0x57   :  { %3290 = vmatprep.subr.bf16.mxu0 %v7880_v59  ;;  %v471_v50 = vld [vmem:[%s13163_s1 + $0xd88] sm:$0xff]  ;;  %v8024_v54 = vcombine.high %v215_v48, %v223_v49  ;;  %v8023_v61 = vcombine.low %v215_v48, %v223_v49 }
  0x58   :  { %3332 = vmatpush1.bf16.msra.mxu1 %v8151_v57  ;;  %v479_v51 = vld [vmem:[%s13163_s1 + $0xdc8] sm:$0xff] }
  0x59   :  { %3333 = vmatprep.subr.bf16.mxu1 %v8136_v60  ;;  %v8280_v55 = vcombine.high %v471_v50, %v479_v51  ;;  %v199_v56 = vld [vmem:[%s13163_s1 + $0x508] sm:$0xff]  ;;  %v8279_v62 = vcombine.low %v471_v50, %v479_v51 }
  0x5a   :  { %3291 = vmatpush1.bf16.msra.mxu0 %v7879_v2  ;;  %v207_v57 = vld [vmem:[%s13163_s1 + $0x548] sm:$0xff] }
  0x5b   :  { %3292 = vmatprep.subr.bf16.mxu0 %v7864_v4  ;;  %v455_v59 = vld [vmem:[%s13163_s1 + $0xd08] sm:$0xff]  ;;  %v8008_v0 = vcombine.high %v199_v56, %v207_v57  ;;  %v8007_v6 = vcombine.low %v199_v56, %v207_v57 }
  0x5c   :  { %3334 = vmatpush1.bf16.msra.mxu1 %v8135_v3  ;;  %v463_v60 = vld [vmem:[%s13163_s1 + $0xd48] sm:$0xff] }
  0x5d   :  { %3335 = vmatprep.subr.bf16.mxu1 %v8120_v5  ;;  %v8264_v1 = vcombine.high %v455_v59, %v463_v60  ;;  %v183_v2 = vld [vmem:[%s13163_s1 + $0x488] sm:$0xff]  ;;  %v8263_v7 = vcombine.low %v455_v59, %v463_v60 }
  0x5e   :  { %3293 = vmatpush1.bf16.msra.mxu0 %v7863_v10  ;;  %v191_v3 = vld [vmem:[%s13163_s1 + $0x4c8] sm:$0xff] }
  0x5f   :  { %3294 = vmatprep.subr.bf16.mxu0 %v7848_v12  ;;  %v439_v4 = vld [vmem:[%s13163_s1 + $0xc88] sm:$0xff]  ;;  %v7992_v8 = vcombine.high %v183_v2, %v191_v3  ;;  %v7991_v14 = vcombine.low %v183_v2, %v191_v3 }
  0x60   :  { %3336 = vmatpush1.bf16.msra.mxu1 %v8119_v11  ;;  %v447_v5 = vld [vmem:[%s13163_s1 + $0xcc8] sm:$0xff] }
  0x61   :  { %3337 = vmatprep.subr.bf16.mxu1 %v8104_v13  ;;  %v8248_v9 = vcombine.high %v439_v4, %v447_v5  ;;  %v167_v10 = vld [vmem:[%s13163_s1 + $0x408] sm:$0xff]  ;;  %v8247_v15 = vcombine.low %v439_v4, %v447_v5 }
  0x62   :  { %3295 = vmatpush1.bf16.msra.mxu0 %v7847_v18  ;;  %v175_v11 = vld [vmem:[%s13163_s1 + $0x448] sm:$0xff]  ;;  %v152_v18 = vld [vmem:[%s13163_s1 + $0x390] sm:$0xff] }
  0x63   :  { %3296 = vmatprep.subr.bf16.mxu0 %v8088_v21  ;;  %v423_v12 = vld [vmem:[%s13163_s1 + $0xc08] sm:$0xff]  ;;  %v7976_v16 = vcombine.high %v167_v10, %v175_v11  ;;  %v408_v21 = vld [vmem:[%s13163_s1 + $0xb90] sm:$0xff]  ;;  %v7975_v24 = vcombine.low %v167_v10, %v175_v11 }
  0x64   :  { %3338 = vmatpush1.bf16.msra.mxu1 %v8103_v19  ;;  %v431_v13 = vld [vmem:[%s13163_s1 + $0xc48] sm:$0xff]  ;;  %v160_v19 = vld [vmem:[%s13163_s1 + $0x3d0] sm:$0xff] }
  0x65   :  { %3339 = vmatprep.subr.bf16.mxu1 %v8344_v22  ;;  %v8232_v17 = vcombine.high %v423_v12, %v431_v13  ;;  %v416_v22 = vld [vmem:[%s13163_s1 + $0xbd0] sm:$0xff]  ;;  %v8231_v25 = vcombine.low %v423_v12, %v431_v13  ;;  %v7962_v26 = vcombine.high %v152_v18, %v160_v19  ;;  %v7961_v32 = vcombine.low %v152_v18, %v160_v19 }
  0x66   :  { %3297 = vmatpush2.bf16.msra.mxu0 %v8087_v28  ;;  %v8218_v27 = vcombine.high %v408_v21, %v416_v22  ;;  %v136_v28 = vld [vmem:[%s13163_s1 + $0x310] sm:$0xff]  ;;  %v8217_v33 = vcombine.low %v408_v21, %v416_v22 }
  0x67   :  { %3298 = vmatprep.subr.bf16.mxu0 %v8072_v30  ;;  %v392_v30 = vld [vmem:[%s13163_s1 + $0xb10] sm:$0xff] }
  0x68   :  { %3340 = vmatpush2.bf16.msra.mxu1 %v8343_v29  ;;  %v144_v29 = vld [vmem:[%s13163_s1 + $0x350] sm:$0xff] }
  0x69   :  { %3341 = vmatprep.subr.bf16.mxu1 %v8328_v31  ;;  %v400_v31 = vld [vmem:[%s13163_s1 + $0xb50] sm:$0xff]  ;;  %v7946_v34 = vcombine.high %v136_v28, %v144_v29  ;;  %v7945_v40 = vcombine.low %v136_v28, %v144_v29 }
  0x6a   :  { %3299 = vmatpush2.bf16.msra.mxu0 %v8071_v36  ;;  %v8202_v35 = vcombine.high %v392_v30, %v400_v31  ;;  %v120_v36 = vld [vmem:[%s13163_s1 + $0x290] sm:$0xff]  ;;  %v8201_v41 = vcombine.low %v392_v30, %v400_v31 }
  0x6b   :  { %3300 = vmatprep.subr.bf16.mxu0 %v8056_v38  ;;  %v376_v38 = vld [vmem:[%s13163_s1 + $0xa90] sm:$0xff] }
  0x6c   :  { %3342 = vmatpush2.bf16.msra.mxu1 %v8327_v37  ;;  %v128_v37 = vld [vmem:[%s13163_s1 + $0x2d0] sm:$0xff] }
  0x6d   :  { %3343 = vmatprep.subr.bf16.mxu1 %v8312_v39  ;;  %v384_v39 = vld [vmem:[%s13163_s1 + $0xad0] sm:$0xff]  ;;  %v7930_v42 = vcombine.high %v120_v36, %v128_v37  ;;  %v7929_v48 = vcombine.low %v120_v36, %v128_v37 }
  0x6e   :  { %3301 = vmatpush2.bf16.msra.mxu0 %v8055_v44  ;;  %v8186_v43 = vcombine.high %v376_v38, %v384_v39  ;;  %v104_v44 = vld [vmem:[%s13163_s1 + $0x210] sm:$0xff]  ;;  %v8185_v49 = vcombine.low %v376_v38, %v384_v39 }
  0x6f   :  { %3302 = vmatprep.subr.bf16.mxu0 %v8040_v46  ;;  %v360_v46 = vld [vmem:[%s13163_s1 + $0xa10] sm:$0xff] }
  0x70   :  { %3344 = vmatpush2.bf16.msra.mxu1 %v8311_v45  ;;  %v112_v45 = vld [vmem:[%s13163_s1 + $0x250] sm:$0xff] }
  0x71   :  { %3345 = vmatprep.subr.bf16.mxu1 %v8296_v47  ;;  %v368_v47 = vld [vmem:[%s13163_s1 + $0xa50] sm:$0xff]  ;;  %v7914_v50 = vcombine.high %v104_v44, %v112_v45  ;;  %v7913_v56 = vcombine.low %v104_v44, %v112_v45 }
  0x72   :  { %3303 = vmatpush2.bf16.msra.mxu0 %v8039_v52  ;;  %v8170_v51 = vcombine.high %v360_v46, %v368_v47  ;;  %v88_v52 = vld [vmem:[%s13163_s1 + $0x190] sm:$0xff]  ;;  %v8169_v57 = vcombine.low %v360_v46, %v368_v47 }
  0x73   :  { %3304 = vmatprep.subr.bf16.mxu0 %v8024_v54  ;;  %v344_v54 = vld [vmem:[%s13163_s1 + $0x990] sm:$0xff] }
  0x74   :  { %3346 = vmatpush2.bf16.msra.mxu1 %v8295_v53  ;;  %v96_v53 = vld [vmem:[%s13163_s1 + $0x1d0] sm:$0xff] }
  0x75   :  { %3347 = vmatprep.subr.bf16.mxu1 %v8280_v55  ;;  %v352_v55 = vld [vmem:[%s13163_s1 + $0x9d0] sm:$0xff]  ;;  %v7898_v59 = vcombine.high %v88_v52, %v96_v53  ;;  %v7897_v2 = vcombine.low %v88_v52, %v96_v53 }
  0x76   :  { %3305 = vmatpush2.bf16.msra.mxu0 %v8023_v61  ;;  %v8154_v60 = vcombine.high %v344_v54, %v352_v55  ;;  %v72_v61 = vld [vmem:[%s13163_s1 + $0x110] sm:$0xff]  ;;  %v8153_v3 = vcombine.low %v344_v54, %v352_v55 }
  0x77   :  { %3306 = vmatprep.subr.bf16.mxu0 %v8008_v0  ;;  %v328_v0 = vld [vmem:[%s13163_s1 + $0x910] sm:$0xff] }
  0x78   :  { %3348 = vmatpush2.bf16.msra.mxu1 %v8279_v62  ;;  %v80_v62 = vld [vmem:[%s13163_s1 + $0x150] sm:$0xff] }
  0x79   :  { %3349 = vmatprep.subr.bf16.mxu1 %v8264_v1  ;;  %v336_v1 = vld [vmem:[%s13163_s1 + $0x950] sm:$0xff]  ;;  %v7882_v4 = vcombine.high %v72_v61, %v80_v62  ;;  %v7881_v10 = vcombine.low %v72_v61, %v80_v62 }
  0x7a   :  { %3307 = vmatpush2.bf16.msra.mxu0 %v8007_v6  ;;  %v8138_v5 = vcombine.high %v328_v0, %v336_v1  ;;  %v56_v6 = vld [vmem:[%s13163_s1 + $0x90] sm:$0xff]  ;;  %v8137_v11 = vcombine.low %v328_v0, %v336_v1 }
  0x7b   :  { %3308 = vmatprep.subr.bf16.mxu0 %v7992_v8  ;;  %v312_v8 = vld [vmem:[%s13163_s1 + $0x890] sm:$0xff] }
  0x7c   :  { %3350 = vmatpush2.bf16.msra.mxu1 %v8263_v7  ;;  %v64_v7 = vld [vmem:[%s13163_s1 + $0xd0] sm:$0xff] }
  0x7d   :  { %3351 = vmatprep.subr.bf16.mxu1 %v8248_v9  ;;  %v320_v9 = vld [vmem:[%s13163_s1 + $0x8d0] sm:$0xff]  ;;  %v7866_v12 = vcombine.high %v56_v6, %v64_v7  ;;  %v7865_v18 = vcombine.low %v56_v6, %v64_v7 }
  0x7e   :  { %3309 = vmatpush2.bf16.msra.mxu0 %v7991_v14  ;;  %v8122_v13 = vcombine.high %v312_v8, %v320_v9  ;;  %v40_v14 = vld [vmem:[%s13163_s1 + $0x10] sm:$0xff]  ;;  %v8121_v19 = vcombine.low %v312_v8, %v320_v9 }
  0x7f   :  { %3310 = vmatprep.subr.bf16.mxu0 %v7976_v16  ;;  %v296_v16 = vld [vmem:[%s13163_s1 + $0x810] sm:$0xff] }
  0x80   :  { %3352 = vmatpush2.bf16.msra.mxu1 %v8247_v15  ;;  %v48_v15 = vld [vmem:[%s13163_s1 + $0x50] sm:$0xff] }
  0x81   :  { %3353 = vmatprep.subr.bf16.mxu1 %v8232_v17  ;;  %v304_v17 = vld [vmem:[%s13163_s1 + $0x850] sm:$0xff]  ;;  %v7850_v21 = vcombine.high %v40_v14, %v48_v15  ;;  %v7849_v28 = vcombine.low %v40_v14, %v48_v15 }
  0x82   :  { %3311 = vmatpush2.bf16.msra.mxu0 %v7975_v24  ;;  %v8106_v22 = vcombine.high %v296_v16, %v304_v17  ;;  %v280_v24 = vld [vmem:[%s13163_s1 + $0x790] sm:$0xff]  ;;  %v8105_v29 = vcombine.low %v296_v16, %v304_v17 }
  0x83   :  { %3366 = vmatprep.subr.bf16.mxu0 %v7962_v26  ;;  %v536_v26 = vld [vmem:[%s13163_s1 + $0xf90] sm:$0xff] }
  0x84   :  { %3354 = vmatpush2.bf16.msra.mxu1 %v8231_v25  ;;  %v288_v25 = vld [vmem:[%s13163_s1 + $0x7d0] sm:$0xff] }
  0x85   :  { %3409 = vmatprep.subr.bf16.mxu1 %v8218_v27  ;;  %3313 = vmatmul.mubr.bf16.vlgmr.msra.gmra.mxu0 %v9932_v20  ;;  %v544_v27 = vld [vmem:[%s13163_s1 + $0xfd0] sm:$0xff]  ;;  %v8090_v30 = vcombine.high %v280_v24, %v288_v25  ;;  %v8089_v36 = vcombine.low %v280_v24, %v288_v25 }
  0x86   :  { %3367 = vmatpush1.bf16.msra.mxu0 %v7961_v32  ;;  %3398 = vmatprep.mubr.bf16.mxu0 %v9788_v58  ;;  %v8346_v31 = vcombine.high %v536_v26, %v544_v27  ;;  %v264_v32 = vld [vmem:[%s13163_s1 + $0x710] sm:$0xff]  ;;  %v8345_v37 = vcombine.low %v536_v26, %v544_v27 }
  0x87   :  { %3356 = vmatmul.mubr.bf16.vlgmr.msra.gmra.mxu1 %v9940_v23  ;;  %3368 = vmatprep.subr.bf16.mxu0 %v7946_v34  ;;  %v520_v34 = vld [vmem:[%s13163_s1 + $0xf10] sm:$0xff] }
  0x88   :  { %3410 = vmatpush1.bf16.msra.mxu1 %v8217_v33  ;;  %3441 = vmatprep.mubr.bf16.mxu1 %v9802_v63  ;;  %v272_v33 = vld [vmem:[%s13163_s1 + $0x750] sm:$0xff] }
  0x89   :  { %3411 = vmatprep.subr.bf16.mxu1 %v8202_v35  ;;  %v528_v35 = vld [vmem:[%s13163_s1 + $0xf50] sm:$0xff]  ;;  %v8074_v38 = vcombine.high %v264_v32, %v272_v33  ;;  %v8073_v44 = vcombine.low %v264_v32, %v272_v33 }
  0x8a   :  { %3369 = vmatpush1.bf16.msra.mxu0 %v7945_v40  ;;  %v8330_v39 = vcombine.high %v520_v34, %v528_v35  ;;  %v248_v40 = vld [vmem:[%s13163_s1 + $0x690] sm:$0xff]  ;;  %v8329_v45 = vcombine.low %v520_v34, %v528_v35 }
  0x8b   :  { %3370 = vmatprep.subr.bf16.mxu0 %v7930_v42  ;;  %v504_v42 = vld [vmem:[%s13163_s1 + $0xe90] sm:$0xff] }
  0x8c   :  { %3412 = vmatpush1.bf16.msra.mxu1 %v8201_v41  ;;  %v256_v41 = vld [vmem:[%s13163_s1 + $0x6d0] sm:$0xff] }
  0x8d   :  { %3413 = vmatprep.subr.bf16.mxu1 %v8186_v43  ;;  %v512_v43 = vld [vmem:[%s13163_s1 + $0xed0] sm:$0xff]  ;;  %v8058_v46 = vcombine.high %v248_v40, %v256_v41  ;;  %v8057_v52 = vcombine.low %v248_v40, %v256_v41 }
  0x8e   :  { %3371 = vmatpush1.bf16.msra.mxu0 %v7929_v48  ;;  %v8314_v47 = vcombine.high %v504_v42, %v512_v43  ;;  %v232_v48 = vld [vmem:[%s13163_s1 + $0x610] sm:$0xff]  ;;  %v8313_v53 = vcombine.low %v504_v42, %v512_v43 }
  0x8f   :  { %3372 = vmatprep.subr.bf16.mxu0 %v7914_v50  ;;  %v488_v50 = vld [vmem:[%s13163_s1 + $0xe10] sm:$0xff] }
  0x90   :  { %3414 = vmatpush1.bf16.msra.mxu1 %v8185_v49  ;;  %v240_v49 = vld [vmem:[%s13163_s1 + $0x650] sm:$0xff] }
  0x91   :  { %3415 = vmatprep.subr.bf16.mxu1 %v8170_v51  ;;  %v496_v51 = vld [vmem:[%s13163_s1 + $0xe50] sm:$0xff]  ;;  %v8042_v54 = vcombine.high %v232_v48, %v240_v49  ;;  %v8041_v61 = vcombine.low %v232_v48, %v240_v49 }
  0x92   :  { %3373 = vmatpush1.bf16.msra.mxu0 %v7913_v56  ;;  %v8298_v55 = vcombine.high %v488_v50, %v496_v51  ;;  %v216_v56 = vld [vmem:[%s13163_s1 + $0x590] sm:$0xff]  ;;  %v8297_v62 = vcombine.low %v488_v50, %v496_v51 }
  0x93   :  { %3374 = vmatprep.subr.bf16.mxu0 %v7898_v59  ;;  %v472_v59 = vld [vmem:[%s13163_s1 + $0xd90] sm:$0xff] }
  0x94   :  { %3416 = vmatpush1.bf16.msra.mxu1 %v8169_v57  ;;  %v224_v57 = vld [vmem:[%s13163_s1 + $0x5d0] sm:$0xff] }
  0x95   :  { %3417 = vmatprep.subr.bf16.mxu1 %v8154_v60  ;;  %v480_v60 = vld [vmem:[%s13163_s1 + $0xdd0] sm:$0xff]  ;;  %v8026_v0 = vcombine.high %v216_v56, %v224_v57  ;;  %v8025_v6 = vcombine.low %v216_v56, %v224_v57 }
  0x96   :  { %3375 = vmatpush1.bf16.msra.mxu0 %v7897_v2  ;;  %v8282_v1 = vcombine.high %v472_v59, %v480_v60  ;;  %v200_v2 = vld [vmem:[%s13163_s1 + $0x510] sm:$0xff]  ;;  %v8281_v7 = vcombine.low %v472_v59, %v480_v60 }
  0x97   :  { %3376 = vmatprep.subr.bf16.mxu0 %v7882_v4  ;;  %v456_v4 = vld [vmem:[%s13163_s1 + $0xd10] sm:$0xff] }
  0x98   :  { %3418 = vmatpush1.bf16.msra.mxu1 %v8153_v3  ;;  %v208_v3 = vld [vmem:[%s13163_s1 + $0x550] sm:$0xff] }
  0x99   :  { %3419 = vmatprep.subr.bf16.mxu1 %v8138_v5  ;;  %v464_v5 = vld [vmem:[%s13163_s1 + $0xd50] sm:$0xff]  ;;  %v8010_v8 = vcombine.high %v200_v2, %v208_v3  ;;  %v8009_v14 = vcombine.low %v200_v2, %v208_v3 }
  0x9a   :  { %3377 = vmatpush1.bf16.msra.mxu0 %v7881_v10  ;;  %v8266_v9 = vcombine.high %v456_v4, %v464_v5  ;;  %v184_v10 = vld [vmem:[%s13163_s1 + $0x490] sm:$0xff]  ;;  %v8265_v15 = vcombine.low %v456_v4, %v464_v5 }
  0x9b   :  { %3378 = vmatprep.subr.bf16.mxu0 %v7866_v12  ;;  %v440_v12 = vld [vmem:[%s13163_s1 + $0xc90] sm:$0xff] }
  0x9c   :  { %3420 = vmatpush1.bf16.msra.mxu1 %v8137_v11  ;;  %v192_v11 = vld [vmem:[%s13163_s1 + $0x4d0] sm:$0xff] }
  0x9d   :  { %3421 = vmatprep.subr.bf16.mxu1 %v8122_v13  ;;  %v448_v13 = vld [vmem:[%s13163_s1 + $0xcd0] sm:$0xff]  ;;  %v7994_v16 = vcombine.high %v184_v10, %v192_v11  ;;  %v7993_v24 = vcombine.low %v184_v10, %v192_v11 }
  0x9e   :  { %3379 = vmatpush1.bf16.msra.mxu0 %v7865_v18  ;;  %v8250_v17 = vcombine.high %v440_v12, %v448_v13  ;;  %v168_v18 = vld [vmem:[%s13163_s1 + $0x410] sm:$0xff]  ;;  %v8249_v25 = vcombine.low %v440_v12, %v448_v13 }
  0x9f   :  { %3380 = vmatprep.subr.bf16.mxu0 %v7850_v21  ;;  %v424_v21 = vld [vmem:[%s13163_s1 + $0xc10] sm:$0xff] }
  0xa0   :  { %3422 = vmatpush1.bf16.msra.mxu1 %v8121_v19  ;;  %v176_v19 = vld [vmem:[%s13163_s1 + $0x450] sm:$0xff] }
  0xa1   :  { %3423 = vmatprep.subr.bf16.mxu1 %v8106_v22  ;;  %v432_v22 = vld [vmem:[%s13163_s1 + $0xc50] sm:$0xff]  ;;  %v7978_v26 = vcombine.high %v168_v18, %v176_v19  ;;  %v7977_v32 = vcombine.low %v168_v18, %v176_v19 }
  0xa2   :  { %3381 = vmatpush1.bf16.msra.mxu0 %v7849_v28  ;;  %v8234_v27 = vcombine.high %v424_v21, %v432_v22  ;;  %v153_v28 = vld [vmem:[%s13163_s1 + $0x398] sm:$0xff]  ;;  %v8233_v33 = vcombine.low %v424_v21, %v432_v22 }
  0xa3   :  { %3382 = vmatprep.subr.bf16.mxu0 %v8090_v30  ;;  %v409_v30 = vld [vmem:[%s13163_s1 + $0xb98] sm:$0xff] }
  0xa4   :  { %3424 = vmatpush1.bf16.msra.mxu1 %v8105_v29  ;;  %v161_v29 = vld [vmem:[%s13163_s1 + $0x3d8] sm:$0xff] }
  0xa5   :  { %3425 = vmatprep.subr.bf16.mxu1 %v8346_v31  ;;  %v417_v31 = vld [vmem:[%s13163_s1 + $0xbd8] sm:$0xff]  ;;  %v7964_v34 = vcombine.high %v153_v28, %v161_v29  ;;  %v7963_v40 = vcombine.low %v153_v28, %v161_v29 }
  0xa6   :  { %3383 = vmatpush2.bf16.msra.mxu0 %v8089_v36  ;;  %v8220_v35 = vcombine.high %v409_v30, %v417_v31  ;;  %v137_v36 = vld [vmem:[%s13163_s1 + $0x318] sm:$0xff]  ;;  %v8219_v41 = vcombine.low %v409_v30, %v417_v31 }
  0xa7   :  { %3384 = vmatprep.subr.bf16.mxu0 %v8074_v38  ;;  %v393_v38 = vld [vmem:[%s13163_s1 + $0xb18] sm:$0xff] }
  0xa8   :  { %3426 = vmatpush2.bf16.msra.mxu1 %v8345_v37  ;;  %v145_v37 = vld [vmem:[%s13163_s1 + $0x358] sm:$0xff] }
  0xa9   :  { %3427 = vmatprep.subr.bf16.mxu1 %v8330_v39  ;;  %v401_v39 = vld [vmem:[%s13163_s1 + $0xb58] sm:$0xff]  ;;  %v7948_v42 = vcombine.high %v137_v36, %v145_v37  ;;  %v7947_v48 = vcombine.low %v137_v36, %v145_v37 }
  0xaa   :  { %3385 = vmatpush2.bf16.msra.mxu0 %v8073_v44  ;;  %v8204_v43 = vcombine.high %v393_v38, %v401_v39  ;;  %v121_v44 = vld [vmem:[%s13163_s1 + $0x298] sm:$0xff]  ;;  %v8203_v49 = vcombine.low %v393_v38, %v401_v39 }
  0xab   :  { %3386 = vmatprep.subr.bf16.mxu0 %v8058_v46  ;;  %v377_v46 = vld [vmem:[%s13163_s1 + $0xa98] sm:$0xff] }
  0xac   :  { %3428 = vmatpush2.bf16.msra.mxu1 %v8329_v45  ;;  %v129_v45 = vld [vmem:[%s13163_s1 + $0x2d8] sm:$0xff] }
  0xad   :  { %3429 = vmatprep.subr.bf16.mxu1 %v8314_v47  ;;  %v385_v47 = vld [vmem:[%s13163_s1 + $0xad8] sm:$0xff]  ;;  %v7932_v50 = vcombine.high %v121_v44, %v129_v45  ;;  %v7931_v56 = vcombine.low %v121_v44, %v129_v45 }
  0xae   :  { %3387 = vmatpush2.bf16.msra.mxu0 %v8057_v52  ;;  %v8188_v51 = vcombine.high %v377_v46, %v385_v47  ;;  %v105_v52 = vld [vmem:[%s13163_s1 + $0x218] sm:$0xff]  ;;  %v8187_v57 = vcombine.low %v377_v46, %v385_v47 }
  0xaf   :  { %3388 = vmatprep.subr.bf16.mxu0 %v8042_v54  ;;  %v361_v54 = vld [vmem:[%s13163_s1 + $0xa18] sm:$0xff] }
  0xb0   :  { %3430 = vmatpush2.bf16.msra.mxu1 %v8313_v53  ;;  %v113_v53 = vld [vmem:[%s13163_s1 + $0x258] sm:$0xff] }
  0xb1   :  { %3431 = vmatprep.subr.bf16.mxu1 %v8298_v55  ;;  %v369_v55 = vld [vmem:[%s13163_s1 + $0xa58] sm:$0xff]  ;;  %v7916_v59 = vcombine.high %v105_v52, %v113_v53  ;;  %v7915_v2 = vcombine.low %v105_v52, %v113_v53 }
  0xb2   :  { %3389 = vmatpush2.bf16.msra.mxu0 %v8041_v61  ;;  %v8172_v60 = vcombine.high %v361_v54, %v369_v55  ;;  %v89_v61 = vld [vmem:[%s13163_s1 + $0x198] sm:$0xff]  ;;  %v8171_v3 = vcombine.low %v361_v54, %v369_v55 }
  0xb3   :  { %3390 = vmatprep.subr.bf16.mxu0 %v8026_v0  ;;  %v345_v0 = vld [vmem:[%s13163_s1 + $0x998] sm:$0xff] }
  0xb4   :  { %3432 = vmatpush2.bf16.msra.mxu1 %v8297_v62  ;;  %v97_v62 = vld [vmem:[%s13163_s1 + $0x1d8] sm:$0xff] }
  0xb5   :  { %3433 = vmatprep.subr.bf16.mxu1 %v8282_v1  ;;  %v353_v1 = vld [vmem:[%s13163_s1 + $0x9d8] sm:$0xff]  ;;  %v7900_v4 = vcombine.high %v89_v61, %v97_v62  ;;  %v7899_v10 = vcombine.low %v89_v61, %v97_v62 }
  0xb6   :  { %3391 = vmatpush2.bf16.msra.mxu0 %v8025_v6  ;;  %v8156_v5 = vcombine.high %v345_v0, %v353_v1  ;;  %v73_v6 = vld [vmem:[%s13163_s1 + $0x118] sm:$0xff]  ;;  %v8155_v11 = vcombine.low %v345_v0, %v353_v1 }
  0xb7   :  { %3392 = vmatprep.subr.bf16.mxu0 %v8010_v8  ;;  %v329_v8 = vld [vmem:[%s13163_s1 + $0x918] sm:$0xff] }
  0xb8   :  { %3434 = vmatpush2.bf16.msra.mxu1 %v8281_v7  ;;  %v81_v7 = vld [vmem:[%s13163_s1 + $0x158] sm:$0xff] }
  0xb9   :  { %3435 = vmatprep.subr.bf16.mxu1 %v8266_v9  ;;  %v337_v9 = vld [vmem:[%s13163_s1 + $0x958] sm:$0xff]  ;;  %v7884_v12 = vcombine.high %v73_v6, %v81_v7  ;;  %v7883_v18 = vcombine.low %v73_v6, %v81_v7 }
  0xba   :  { %3393 = vmatpush2.bf16.msra.mxu0 %v8009_v14  ;;  %v8140_v13 = vcombine.high %v329_v8, %v337_v9  ;;  %v57_v14 = vld [vmem:[%s13163_s1 + $0x98] sm:$0xff]  ;;  %v8139_v19 = vcombine.low %v329_v8, %v337_v9 }
  0xbb   :  { %3394 = vmatprep.subr.bf16.mxu0 %v7994_v16  ;;  %v313_v16 = vld [vmem:[%s13163_s1 + $0x898] sm:$0xff] }
  0xbc   :  { %3436 = vmatpush2.bf16.msra.mxu1 %v8265_v15  ;;  %v65_v15 = vld [vmem:[%s13163_s1 + $0xd8] sm:$0xff] }
  0xbd   :  { %3437 = vmatprep.subr.bf16.mxu1 %v8250_v17  ;;  %v321_v17 = vld [vmem:[%s13163_s1 + $0x8d8] sm:$0xff]  ;;  %v7868_v21 = vcombine.high %v57_v14, %v65_v15  ;;  %v7867_v28 = vcombine.low %v57_v14, %v65_v15 }
  0xbe   :  { %3395 = vmatpush2.bf16.msra.mxu0 %v7993_v24  ;;  %v8124_v22 = vcombine.high %v313_v16, %v321_v17  ;;  %v41_v24 = vld [vmem:[%s13163_s1 + $0x18] sm:$0xff]  ;;  %v8123_v29 = vcombine.low %v313_v16, %v321_v17 }
  0xbf   :  { %3396 = vmatprep.subr.bf16.mxu0 %v7978_v26  ;;  %v297_v26 = vld [vmem:[%s13163_s1 + $0x818] sm:$0xff] }
  0xc0   :  { %3438 = vmatpush2.bf16.msra.mxu1 %v8249_v25  ;;  %v49_v25 = vld [vmem:[%s13163_s1 + $0x58] sm:$0xff] }
  0xc1   :  { %3439 = vmatprep.subr.bf16.mxu1 %v8234_v27  ;;  %v305_v27 = vld [vmem:[%s13163_s1 + $0x858] sm:$0xff]  ;;  %v7852_v30 = vcombine.high %v41_v24, %v49_v25  ;;  %v7851_v36 = vcombine.low %v41_v24, %v49_v25  ;;  %v554_v25 = vlaneseq }
  0xc2   :  { %3397 = vmatpush2.bf16.msra.mxu0 %v7977_v32  ;;  %v8108_v31 = vcombine.high %v297_v26, %v305_v27  ;;  %v281_v32 = vld [vmem:[%s13163_s1 + $0x798] sm:$0xff]  ;;  %v8107_v37 = vcombine.low %v297_v26, %v305_v27 }
  0xc3   :  { %3452 = vmatprep.subr.bf16.mxu0 %v7964_v34  ;;  %v537_v34 = vld [vmem:[%s13163_s1 + $0xf98] sm:$0xff] }
  0xc4   :  { %3440 = vmatpush2.bf16.msra.mxu1 %v8233_v33  ;;  %v289_v33 = vld [vmem:[%s13163_s1 + $0x7d8] sm:$0xff] }
  0xc5   :  { %3495 = vmatprep.subr.bf16.mxu1 %v8220_v35  ;;  %3399 = vmatmul.mubr.bf16.vlgmr.msra.gmra.mxu0 %v9932_v20  ;;  %v545_v35 = vld [vmem:[%s13163_s1 + $0xfd8] sm:$0xff]  ;;  %v8092_v38 = vcombine.high %v281_v32, %v289_v33  ;;  %v8091_v44 = vcombine.low %v281_v32, %v289_v33 }
  0xc6   :  { %3453 = vmatpush1.bf16.msra.mxu0 %v7963_v40  ;;  %3484 = vmatprep.mubr.bf16.mxu0 %v9788_v58  ;;  %v8348_v39 = vcombine.high %v537_v34, %v545_v35  ;;  %v265_v40 = vld [vmem:[%s13163_s1 + $0x718] sm:$0xff]  ;;  %v8347_v45 = vcombine.low %v537_v34, %v545_v35  ;;  %v10506_v34 = vshrl.u32 %v554_v25, 7  ;;  %v346_v25 = vld [vmem:[%s13163_s1 + $0x9a0] sm:$0xff] }
  0xc7   :  { %3442 = vmatmul.mubr.bf16.vlgmr.msra.gmra.mxu1 %v9940_v23  ;;  %3454 = vmatprep.subr.bf16.mxu0 %v7948_v42  ;;  %v521_v42 = vld [vmem:[%s13163_s1 + $0xf18] sm:$0xff] }
  0xc8   :  { %3496 = vmatpush1.bf16.msra.mxu1 %v8219_v41  ;;  %3527 = vmatprep.mubr.bf16.mxu1 %v9802_v63  ;;  %v273_v41 = vld [vmem:[%s13163_s1 + $0x758] sm:$0xff] }
  0xc9   :  { %3497 = vmatprep.subr.bf16.mxu1 %v8204_v43  ;;  %v529_v43 = vld [vmem:[%s13163_s1 + $0xf58] sm:$0xff]  ;;  %v8076_v46 = vcombine.high %v265_v40, %v273_v41  ;;  %v8075_v52 = vcombine.low %v265_v40, %v273_v41  ;;  %v410_v40 = vld [vmem:[%s13163_s1 + $0xba0] sm:$0xff] }
  0xca   :  { %3455 = vmatpush1.bf16.msra.mxu0 %v7947_v48  ;;  %v8332_v47 = vcombine.high %v521_v42, %v529_v43  ;;  %v249_v48 = vld [vmem:[%s13163_s1 + $0x698] sm:$0xff]  ;;  %v8331_v53 = vcombine.low %v521_v42, %v529_v43  ;;  %v418_v41 = vld [vmem:[%s13163_s1 + $0xbe0] sm:$0xff]  ;;  %v10521_v43 = vsub.s32 0, %v10506_v34 }
  0xcb   :  { %3456 = vmatprep.subr.bf16.mxu0 %v7932_v50  ;;  %v505_v50 = vld [vmem:[%s13163_s1 + $0xe98] sm:$0xff] }
  0xcc   :  { %3498 = vmatpush1.bf16.msra.mxu1 %v8203_v49  ;;  %v257_v49 = vld [vmem:[%s13163_s1 + $0x6d8] sm:$0xff]  ;;  %13175 = vst [vmem:[#allocation2_spill] sm:$0xff] %v10521_v43 }
  0xcd   :  { %3499 = vmatprep.subr.bf16.mxu1 %v8188_v51  ;;  %v513_v51 = vld [vmem:[%s13163_s1 + $0xed8] sm:$0xff]  ;;  %v8060_v54 = vcombine.high %v249_v48, %v257_v49  ;;  %v8059_v61 = vcombine.low %v249_v48, %v257_v49  ;;  %v138_v48 = vld [vmem:[%s13163_s1 + $0x320] sm:$0xff] }
  0xce   :  { %3457 = vmatpush1.bf16.msra.mxu0 %v7931_v56  ;;  %v8316_v55 = vcombine.high %v505_v50, %v513_v51  ;;  %v233_v56 = vld [vmem:[%s13163_s1 + $0x618] sm:$0xff]  ;;  %v8315_v62 = vcombine.low %v505_v50, %v513_v51  ;;  %v146_v49 = vld [vmem:[%s13163_s1 + $0x360] sm:$0xff] }
  0xcf   :  { %3458 = vmatprep.subr.bf16.mxu0 %v7916_v59  ;;  %v489_v59 = vld [vmem:[%s13163_s1 + $0xe18] sm:$0xff]  ;;  %v394_v50 = vld [vmem:[%s13163_s1 + $0xb20] sm:$0xff] }
  0xd0   :  { %3500 = vmatpush1.bf16.msra.mxu1 %v8187_v57  ;;  %v241_v57 = vld [vmem:[%s13163_s1 + $0x658] sm:$0xff]  ;;  %v402_v51 = vld [vmem:[%s13163_s1 + $0xb60] sm:$0xff] }
  0xd1   :  { %3501 = vmatprep.subr.bf16.mxu1 %v8172_v60  ;;  %v497_v60 = vld [vmem:[%s13163_s1 + $0xe58] sm:$0xff]  ;;  %v8044_v0 = vcombine.high %v233_v56, %v241_v57  ;;  %v8043_v6 = vcombine.low %v233_v56, %v241_v57  ;;  %v8206_v56 = vcombine.high %v394_v50, %v402_v51  ;;  %v122_v57 = vld [vmem:[%s13163_s1 + $0x2a0] sm:$0xff] }
  0xd2   :  { %3459 = vmatpush1.bf16.msra.mxu0 %v7915_v2  ;;  %v8300_v1 = vcombine.high %v489_v59, %v497_v60  ;;  %v217_v2 = vld [vmem:[%s13163_s1 + $0x598] sm:$0xff]  ;;  %v8299_v7 = vcombine.low %v489_v59, %v497_v60  ;;  %v130_v59 = vld [vmem:[%s13163_s1 + $0x2e0] sm:$0xff] }
  0xd3   :  { %3460 = vmatprep.subr.bf16.mxu0 %v7900_v4  ;;  %v473_v4 = vld [vmem:[%s13163_s1 + $0xd98] sm:$0xff] }
  0xd4   :  { %3502 = vmatpush1.bf16.msra.mxu1 %v8171_v3  ;;  %v225_v3 = vld [vmem:[%s13163_s1 + $0x5d8] sm:$0xff] }
  0xd5   :  { %3503 = vmatprep.subr.bf16.mxu1 %v8156_v5  ;;  %v481_v5 = vld [vmem:[%s13163_s1 + $0xdd8] sm:$0xff]  ;;  %v8028_v8 = vcombine.high %v217_v2, %v225_v3  ;;  %v8027_v14 = vcombine.low %v217_v2, %v225_v3  ;;  %v7949_v2 = vcombine.low %v138_v48, %v146_v49 }
  0xd6   :  { %3461 = vmatpush1.bf16.msra.mxu0 %v7899_v10  ;;  %v8284_v9 = vcombine.high %v473_v4, %v481_v5  ;;  %v201_v10 = vld [vmem:[%s13163_s1 + $0x518] sm:$0xff]  ;;  %v8283_v15 = vcombine.low %v473_v4, %v481_v5  ;;  %v8205_v4 = vcombine.low %v394_v50, %v402_v51  ;;  %v7934_v5 = vcombine.high %v122_v57, %v130_v59 }
  0xd7   :  { %3462 = vmatprep.subr.bf16.mxu0 %v7884_v12  ;;  %v457_v12 = vld [vmem:[%s13163_s1 + $0xd18] sm:$0xff] }
  0xd8   :  { %3504 = vmatpush1.bf16.msra.mxu1 %v8155_v11  ;;  %v209_v11 = vld [vmem:[%s13163_s1 + $0x558] sm:$0xff] }
  0xd9   :  { %3505 = vmatprep.subr.bf16.mxu1 %v8140_v13  ;;  %v465_v13 = vld [vmem:[%s13163_s1 + $0xd58] sm:$0xff]  ;;  %v8012_v16 = vcombine.high %v201_v10, %v209_v11  ;;  %v8011_v24 = vcombine.low %v201_v10, %v209_v11  ;;  %v114_v10 = vld [vmem:[%s13163_s1 + $0x260] sm:$0xff] }
  0xda   :  { %3463 = vmatpush1.bf16.msra.mxu0 %v7883_v18  ;;  %v8268_v17 = vcombine.high %v457_v12, %v465_v13  ;;  %v185_v18 = vld [vmem:[%s13163_s1 + $0x498] sm:$0xff]  ;;  %v8267_v26 = vcombine.low %v457_v12, %v465_v13  ;;  %v362_v12 = vld [vmem:[%s13163_s1 + $0xa20] sm:$0xff] }
  0xdb   :  { %3464 = vmatprep.subr.bf16.mxu0 %v7868_v21  ;;  %v441_v21 = vld [vmem:[%s13163_s1 + $0xc98] sm:$0xff]  ;;  %v370_v13 = vld [vmem:[%s13163_s1 + $0xa60] sm:$0xff] }
  0xdc   :  { %3506 = vmatpush1.bf16.msra.mxu1 %v8139_v19  ;;  %v193_v19 = vld [vmem:[%s13163_s1 + $0x4d8] sm:$0xff] }
  0xdd   :  { %3507 = vmatprep.subr.bf16.mxu1 %v8124_v22  ;;  %v449_v22 = vld [vmem:[%s13163_s1 + $0xcd8] sm:$0xff]  ;;  %v7996_v27 = vcombine.high %v185_v18, %v193_v19  ;;  %v7995_v33 = vcombine.low %v185_v18, %v193_v19 }
  0xde   :  { %3465 = vmatpush1.bf16.msra.mxu0 %v7867_v28  ;;  %v8252_v28 = vcombine.high %v441_v21, %v449_v22  ;;  %v433_v32 = vld [vmem:[%s13163_s1 + $0xc58] sm:$0xff]  ;;  %v8251_v35 = vcombine.low %v441_v21, %v449_v22  ;;  %v8174_v21 = vcombine.high %v362_v12, %v370_v13  ;;  %v90_v22 = vld [vmem:[%s13163_s1 + $0x1a0] sm:$0xff] }
  0xdf   :  { %3466 = vmatprep.subr.bf16.mxu0 %v7852_v30  ;;  %v177_v30 = vld [vmem:[%s13163_s1 + $0x458] sm:$0xff] }
  0xe0   :  { %3508 = vmatpush1.bf16.msra.mxu1 %v8123_v29  ;;  %v169_v29 = vld [vmem:[%s13163_s1 + $0x418] sm:$0xff] }
  0xe1   :  { %3509 = vmatprep.subr.bf16.mxu1 %v8108_v31  ;;  %v425_v31 = vld [vmem:[%s13163_s1 + $0xc18] sm:$0xff]  ;;  %v7979_v42 = vcombine.low %v169_v29, %v177_v30 }
  0xe2   :  { %3467 = vmatpush1.bf16.msra.mxu0 %v7851_v36  ;;  %v7980_v36 = vcombine.high %v169_v29, %v177_v30  ;;  %v8173_v30 = vcombine.low %v362_v12, %v370_v13  ;;  %v530_v12 = vld [vmem:[%s13163_s1 + $0xf60] sm:$0xff] }
  0xe3   :  { %3468 = vmatprep.subr.bf16.mxu0 %v8092_v38  ;;  %v154_v38 = vld [vmem:[%s13163_s1 + $0x3a0] sm:$0xff] }
  0xe4   :  { %3510 = vmatpush1.bf16.msra.mxu1 %v8107_v37  ;;  %v8236_v37 = vcombine.high %v425_v31, %v433_v32 }
  0xe5   :  { %3511 = vmatprep.subr.bf16.mxu1 %v8348_v39  ;;  %v162_v39 = vld [vmem:[%s13163_s1 + $0x3e0] sm:$0xff] }
  0xe6   :  { %3469 = vmatpush2.bf16.msra.mxu0 %v8091_v44  ;;  %v8235_v44 = vcombine.low %v425_v31, %v433_v32 }
  0xe7   :  { %3470 = vmatprep.subr.bf16.mxu0 %v8076_v46  ;;  %v7966_v46 = vcombine.high %v154_v38, %v162_v39 }
  0xe8   :  { %3512 = vmatpush2.bf16.msra.mxu1 %v8347_v45  ;;  %v10526_v45 = vld [vmem:[%s13165_s2] sm:$0xff] }
  0xe9   :  { %3513 = vmatprep.subr.bf16.mxu1 %v8332_v47  ;;  %v8222_v47 = vcombine.high %v410_v40, %v418_v41 }
  0xea   :  { %3471 = vmatpush2.bf16.msra.mxu0 %v8075_v52  ;;  %v557_v52 = vrot.slane %v10526_v45, %v10521_v43 }
  0xeb   :  { %3472 = vmatprep.subr.bf16.mxu0 %v8060_v54  ;;  %v8221_v54 = vcombine.low %v410_v40, %v418_v41 }
  0xec   :  { %3514 = vmatpush2.bf16.msra.mxu1 %v8331_v53  ;;  %v7965_v53 = vcombine.low %v154_v38, %v162_v39  ;;  %v338_v38 = vld [vmem:[%s13163_s1 + $0x960] sm:$0xff] }
  0xed   :  { %3515 = vmatprep.subr.bf16.mxu1 %v8316_v55  ;;  %v7950_v55 = vcombine.high %v138_v48, %v146_v49  ;;  %v322_v48 = vld [vmem:[%s13163_s1 + $0x8e0] sm:$0xff] }
  0xee   :  { %3473 = vmatpush2.bf16.msra.mxu0 %v8059_v61  ;;  %v378_v61 = vld [vmem:[%s13163_s1 + $0xaa0] sm:$0xff] }
  0xef   :  { %3474 = vmatprep.subr.bf16.mxu0 %v8044_v0 }
  0xf0   :  { %3516 = vmatpush2.bf16.msra.mxu1 %v8315_v62  ;;  %v386_v62 = vld [vmem:[%s13163_s1 + $0xae0] sm:$0xff] }
  0xf1   :  { %3517 = vmatprep.subr.bf16.mxu1 %v8300_v1 }
  0xf2   :  { %3475 = vmatpush2.bf16.msra.mxu0 %v8043_v6 }
  0xf3   :  { %3476 = vmatprep.subr.bf16.mxu0 %v8028_v8  ;;  %v8190_v8 = vcombine.high %v378_v61, %v386_v62 }
  0xf4   :  { %3518 = vmatpush2.bf16.msra.mxu1 %v8299_v7 }
  0xf5   :  { %3519 = vmatprep.subr.bf16.mxu1 %v8284_v9  ;;  %v106_v9 = vld [vmem:[%s13163_s1 + $0x220] sm:$0xff] }
  0xf6   :  { %3477 = vmatpush2.bf16.msra.mxu0 %v8027_v14  ;;  %v7918_v18 = vcombine.high %v106_v9, %v114_v10  ;;  %v7917_v29 = vcombine.low %v106_v9, %v114_v10  ;;  %v266_v9 = vld [vmem:[%s13163_s1 + $0x720] sm:$0xff] }
  0xf7   :  { %3478 = vmatprep.subr.bf16.mxu0 %v8012_v16  ;;  %v274_v10 = vld [vmem:[%s13163_s1 + $0x760] sm:$0xff] }
  0xf8   :  { %3520 = vmatpush2.bf16.msra.mxu1 %v8283_v15  ;;  %v7933_v15 = vcombine.low %v122_v57, %v130_v59 }
  0xf9   :  { %3521 = vmatprep.subr.bf16.mxu1 %v8268_v17  ;;  %v8189_v17 = vcombine.low %v378_v61, %v386_v62  ;;  %v282_v62 = vld [vmem:[%s13163_s1 + $0x7a0] sm:$0xff] }
  0xfa   :  { %3479 = vmatpush2.bf16.msra.mxu0 %v8011_v24  ;;  %v98_v24 = vld [vmem:[%s13163_s1 + $0x1e0] sm:$0xff] }
  0xfb   :  { %3480 = vmatprep.subr.bf16.mxu0 %v7996_v27  ;;  %v7902_v31 = vcombine.high %v90_v22, %v98_v24  ;;  %v7901_v39 = vcombine.low %v90_v22, %v98_v24  ;;  %v8077_v22 = vcombine.low %v266_v9, %v274_v10 }
  0xfc   :  { %3522 = vmatpush2.bf16.msra.mxu1 %v8267_v26  ;;  %v354_v26 = vld [vmem:[%s13163_s1 + $0x9e0] sm:$0xff] }
  0xfd   :  { %3523 = vmatprep.subr.bf16.mxu1 %v8252_v28  ;;  %v8157_v40 = vcombine.low %v346_v25, %v354_v26 }
  0xfe   :  { %3481 = vmatpush2.bf16.msra.mxu0 %v7995_v33  ;;  %v8158_v33 = vcombine.high %v346_v25, %v354_v26 }
  0xff   :  { %3482 = vmatprep.subr.bf16.mxu0 %v7980_v36  ;;  %v82_v36 = vld [vmem:[%s13163_s1 + $0x160] sm:$0xff] }
 0x100   :  { %3524 = vmatpush2.bf16.msra.mxu1 %v8251_v35  ;;  %v74_v35 = vld [vmem:[%s13163_s1 + $0x120] sm:$0xff] }
 0x101   :  { %3525 = vmatprep.subr.bf16.mxu1 %v8236_v37  ;;  %v330_v37 = vld [vmem:[%s13163_s1 + $0x920] sm:$0xff]  ;;  %v7886_v41 = vcombine.high %v74_v35, %v82_v36  ;;  %v7885_v49 = vcombine.low %v74_v35, %v82_v36 }
 0x102   :  { %3483 = vmatpush2.bf16.msra.mxu0 %v7979_v42  ;;  %v8142_v42 = vcombine.high %v330_v37, %v338_v38  ;;  %v8141_v50 = vcombine.low %v330_v37, %v338_v38  ;;  %v218_v37 = vld [vmem:[%s13163_s1 + $0x5a0] sm:$0xff] }
 0x103   :  { %3538 = vmatprep.subr.bf16.mxu0 %v7966_v46  ;;  %v66_v46 = vld [vmem:[%s13163_s1 + $0xe0] sm:$0xff] }
 0x104   :  { %3526 = vmatpush2.bf16.msra.mxu1 %v8235_v44  ;;  %v58_v44 = vld [vmem:[%s13163_s1 + $0xa0] sm:$0xff] }
 0x105   :  { %3581 = vmatprep.subr.bf16.mxu1 %v8222_v47  ;;  %v3228_v60 = vpop.f32.mrf.mxu0  ;;  %3485 = vmatmul.mubr.bf16.vlgmr.msra.gmra.mxu0 %v9932_v20  ;;  %v314_v47 = vld [vmem:[%s13163_s1 + $0x8a0] sm:$0xff]  ;;  %v7870_v51 = vcombine.high %v58_v44, %v66_v46  ;;  %v7869_v57 = vcombine.low %v58_v44, %v66_v46 }
 0x106   :  { %v3229_v0 = vadd.f32 %v3228_v60, %v557_v52  ;;  %3539 = vmatpush1.bf16.msra.mxu0 %v7965_v53  ;;  %3570 = vmatprep.mubr.bf16.mxu0 %v9788_v58  ;;  %v42_v53 = vld [vmem:[%s13163_s1 + $0x20] sm:$0xff]  ;;  %v8125_v59 = vcombine.low %v314_v47, %v322_v48 }
 0x107   :  { %v3271_v1 = vpop.f32.mrf.mxu1  ;;  %3528 = vmatmul.mubr.bf16.vlgmr.msra.gmra.mxu1 %v9940_v23  ;;  %v10556_v3 = vpop.f32.mrf.mxu0  ;;  %3540 = vmatprep.subr.bf16.mxu0 %v7950_v55  ;;  %v298_v55 = vld [vmem:[%s13163_s1 + $0x820] sm:$0xff] }
 0x108   :  { %3582 = vmatpush1.bf16.msra.mxu1 %v8221_v54  ;;  %v3272_v6 = vadd.f32 %v3271_v1, %v3229_v0  ;;  %3613 = vmatprep.mubr.bf16.mxu1 %v9802_v63  ;;  %v50_v54 = vld [vmem:[%s13163_s1 + $0x60] sm:$0xff] }
 0x109   :  { %v10558_v7 = vpop.f32.mrf.mxu1  ;;  %3583 = vmatprep.subr.bf16.mxu1 %v8206_v56  ;;  %v3232_v11 = vpop.f32.mrf.mxu0  ;;  %v306_v56 = vld [vmem:[%s13163_s1 + $0x860] sm:$0xff]  ;;  %v7854_v60 = vcombine.high %v42_v53, %v50_v54 }
 0x10a   :  { %v3233_v14 = vadd.f32 %v3232_v11, %v557_v52  ;;  %3541 = vmatpush1.bf16.msra.mxu0 %v7949_v2  ;;  %v3882_v27 = vmax.f32 %v3272_v6, 0.0  ;;  %v8126_v52 = vcombine.high %v314_v47, %v322_v48  ;;  %v8110_v61 = vcombine.high %v298_v55, %v306_v56  ;;  %v290_v0 = vld [vmem:[%s13163_s1 + $0x7e0] sm:$0xff] }
 0x10b   :  { %v3275_v16 = vpop.f32.mrf.mxu1  ;;  %3542 = vmatprep.subr.bf16.mxu0 %v7934_v5  ;;  %v538_v1 = vld [vmem:[%s13163_s1 + $0xfa0] sm:$0xff]  ;;  %v8109_v5 = vcombine.low %v298_v55, %v306_v56  ;;  %v8094_v6 = vcombine.high %v282_v62, %v290_v0  ;;  %v8093_v13 = vcombine.low %v282_v62, %v290_v0 }
 0x10c   :  { %3584 = vmatpush1.bf16.msra.mxu1 %v8205_v4  ;;  %v3276_v19 = vadd.f32 %v3275_v16, %v3233_v14  ;;  %v546_v2 = vld [vmem:[%s13163_s1 + $0xfe0] sm:$0xff]  ;;  %v7853_v4 = vcombine.low %v42_v53, %v50_v54 }
 0x10d   :  { %3585 = vmatprep.subr.bf16.mxu1 %v8190_v8  ;;  %v8350_v8 = vcombine.high %v538_v1, %v546_v2  ;;  %v522_v11 = vld [vmem:[%s13163_s1 + $0xf20] sm:$0xff]  ;;  %v8349_v14 = vcombine.low %v538_v1, %v546_v2 }
 0x10e   :  { %v3898_v28 = vmax.f32 %v3276_v19, 0.0  ;;  %3543 = vmatpush1.bf16.msra.mxu0 %v7933_v15  ;;  %v8078_v15 = vcombine.high %v266_v9, %v274_v10  ;;  %v8334_v16 = vcombine.high %v522_v11, %v530_v12  ;;  %v506_v19 = vld [vmem:[%s13163_s1 + $0xea0] sm:$0xff]  ;;  %v8333_v24 = vcombine.low %v522_v11, %v530_v12  ;;  %v155_v11 = vld [vmem:[%s13163_s1 + $0x3a8] sm:$0xff] }
 0x10f   :  { %3544 = vmatprep.subr.bf16.mxu0 %v7918_v18  ;;  %v258_v18 = vld [vmem:[%s13163_s1 + $0x6e0] sm:$0xff]  ;;  %v163_v12 = vld [vmem:[%s13163_s1 + $0x3e8] sm:$0xff] }
 0x110   :  { %3586 = vmatpush1.bf16.msra.mxu1 %v8189_v17  ;;  %v10586_v32 = vpack.c.bf16 %v3898_v28, %v3882_v27  ;;  %v250_v17 = vld [vmem:[%s13163_s1 + $0x6a0] sm:$0xff] }
 0x111   :  { %3587 = vmatprep.subr.bf16.mxu1 %v8174_v21  ;;  %v514_v21 = vld [vmem:[%s13163_s1 + $0xee0] sm:$0xff]  ;;  %v8062_v25 = vcombine.high %v250_v17, %v258_v18 }
 0x112   :  { %3545 = vmatpush1.bf16.msra.mxu0 %v7917_v29  ;;  %v8318_v26 = vcombine.high %v506_v19, %v514_v21  ;;  %v234_v27 = vld [vmem:[%s13163_s1 + $0x620] sm:$0xff] }
 0x113   :  { %3546 = vmatprep.subr.bf16.mxu0 %v7902_v31  ;;  %v242_v28 = vld [vmem:[%s13163_s1 + $0x660] sm:$0xff]  ;;  %v8061_v31 = vcombine.low %v250_v17, %v258_v18  ;;  %v7968_v18 = vcombine.high %v155_v11, %v163_v12 }
 0x114   :  { %3588 = vmatpush1.bf16.msra.mxu1 %v8173_v30  ;;  %v490_v29 = vld [vmem:[%s13163_s1 + $0xe20] sm:$0xff]  ;;  %v8046_v35 = vcombine.high %v234_v27, %v242_v28 }
 0x115   :  { %3589 = vmatprep.subr.bf16.mxu1 %v8158_v33  ;;  %v498_v30 = vld [vmem:[%s13163_s1 + $0xe60] sm:$0xff]  ;;  %v8317_v33 = vcombine.low %v506_v19, %v514_v21  ;;  %v139_v21 = vld [vmem:[%s13163_s1 + $0x328] sm:$0xff] }
 0x116   :  { %3547 = vmatpush1.bf16.msra.mxu0 %v7901_v39  ;;  %v8302_v36 = vcombine.high %v490_v29, %v498_v30  ;;  %v226_v38 = vld [vmem:[%s13163_s1 + $0x5e0] sm:$0xff] }
 0x117   :  { %3548 = vmatprep.subr.bf16.mxu0 %v7886_v41  ;;  %v474_v39 = vld [vmem:[%s13163_s1 + $0xda0] sm:$0xff]  ;;  %v8045_v41 = vcombine.low %v234_v27, %v242_v28  ;;  %v8030_v44 = vcombine.high %v218_v37, %v226_v38  ;;  %v7967_v27 = vcombine.low %v155_v11, %v163_v12  ;;  %v10749_v28 = vpop.f32.mrf.mxu0 }
 0x118   :  { %3590 = vmatpush1.bf16.msra.mxu1 %v8157_v40  ;;  %v482_v40 = vld [vmem:[%s13163_s1 + $0xde0] sm:$0xff] }
 0x119   :  { %3591 = vmatprep.subr.bf16.mxu1 %v8142_v42  ;;  %v8301_v42 = vcombine.low %v490_v29, %v498_v30  ;;  %v8286_v46 = vcombine.high %v474_v39, %v482_v40  ;;  %v202_v47 = vld [vmem:[%s13163_s1 + $0x520] sm:$0xff] }
 0x11a   :  { %3549 = vmatpush1.bf16.msra.mxu0 %v7885_v49  ;;  %v210_v48 = vld [vmem:[%s13163_s1 + $0x560] sm:$0xff] }
 0x11b   :  { %3550 = vmatprep.subr.bf16.mxu0 %v7870_v51  ;;  %v458_v49 = vld [vmem:[%s13163_s1 + $0xd20] sm:$0xff]  ;;  %v8029_v51 = vcombine.low %v218_v37, %v226_v38  ;;  %v8014_v53 = vcombine.high %v202_v47, %v210_v48  ;;  %v379_v38 = vld [vmem:[%s13163_s1 + $0xaa8] sm:$0xff] }
 0x11c   :  { %3592 = vmatpush1.bf16.msra.mxu1 %v8141_v50  ;;  %v466_v50 = vld [vmem:[%s13163_s1 + $0xd60] sm:$0xff] }
 0x11d   :  { %3593 = vmatprep.subr.bf16.mxu1 %v8126_v52  ;;  %v8285_v52 = vcombine.low %v474_v39, %v482_v40  ;;  %v8270_v54 = vcombine.high %v458_v49, %v466_v50  ;;  %v186_v55 = vld [vmem:[%s13163_s1 + $0x4a0] sm:$0xff]  ;;  %v387_v39 = vld [vmem:[%s13163_s1 + $0xae8] sm:$0xff] }
 0x11e   :  { %3551 = vmatpush1.bf16.msra.mxu0 %v7869_v57  ;;  %v194_v56 = vld [vmem:[%s13163_s1 + $0x4e0] sm:$0xff] }
 0x11f   :  { %3552 = vmatprep.subr.bf16.mxu0 %v7854_v60  ;;  %v442_v57 = vld [vmem:[%s13163_s1 + $0xca0] sm:$0xff]  ;;  %v8013_v60 = vcombine.low %v202_v47, %v210_v48  ;;  %v7998_v62 = vcombine.high %v186_v55, %v194_v56 }
 0x120   :  { %3594 = vmatpush1.bf16.msra.mxu1 %v8125_v59  ;;  %v450_v59 = vld [vmem:[%s13163_s1 + $0xce0] sm:$0xff] }
 0x121   :  { %3595 = vmatprep.subr.bf16.mxu1 %v8110_v61  ;;  %v8269_v61 = vcombine.low %v458_v49, %v466_v50  ;;  %v8254_v0 = vcombine.high %v442_v57, %v450_v59  ;;  %v170_v1 = vld [vmem:[%s13163_s1 + $0x420] sm:$0xff]  ;;  %v8192_v50 = vcombine.high %v379_v38, %v387_v39 }
 0x122   :  { %3553 = vmatpush1.bf16.msra.mxu0 %v7853_v4  ;;  %v178_v2 = vld [vmem:[%s13163_s1 + $0x460] sm:$0xff] }
 0x123   :  { %3554 = vmatprep.subr.bf16.mxu0 %v8094_v6  ;;  %v426_v4 = vld [vmem:[%s13163_s1 + $0xc20] sm:$0xff]  ;;  %v7997_v6 = vcombine.low %v186_v55, %v194_v56  ;;  %v7982_v9 = vcombine.high %v170_v1, %v178_v2  ;;  %v371_v55 = vld [vmem:[%s13163_s1 + $0xa68] sm:$0xff] }
 0x124   :  { %3596 = vmatpush1.bf16.msra.mxu1 %v8109_v5  ;;  %v434_v5 = vld [vmem:[%s13163_s1 + $0xc60] sm:$0xff] }
 0x125   :  { %3597 = vmatprep.subr.bf16.mxu1 %v8350_v8  ;;  %v8253_v8 = vcombine.low %v442_v57, %v450_v59  ;;  %v8238_v10 = vcombine.high %v426_v4, %v434_v5  ;;  %v8237_v17 = vcombine.low %v426_v4, %v434_v5  ;;  %v347_v4 = vld [vmem:[%s13163_s1 + $0x9a8] sm:$0xff] }
 0x126   :  { %3555 = vmatpush2.bf16.msra.mxu0 %v8093_v13  ;;  %v411_v13 = vld [vmem:[%s13163_s1 + $0xba8] sm:$0xff] }
 0x127   :  { %3556 = vmatprep.subr.bf16.mxu0 %v8078_v15  ;;  %v7981_v15 = vcombine.low %v170_v1, %v178_v2  ;;  %v91_v1 = vld [vmem:[%s13163_s1 + $0x1a8] sm:$0xff] }
 0x128   :  { %3598 = vmatpush2.bf16.msra.mxu1 %v8349_v14  ;;  %v419_v14 = vld [vmem:[%s13163_s1 + $0xbe8] sm:$0xff] }
 0x129   :  { %3599 = vmatprep.subr.bf16.mxu1 %v8334_v16  ;;  %v10733_v16 = vsub.s32 2, %v10506_v34  ;;  %v8224_v19 = vcombine.high %v411_v13, %v419_v14  ;;  %v8223_v29 = vcombine.low %v411_v13, %v419_v14  ;;  %v99_v2 = vld [vmem:[%s13163_s1 + $0x1e8] sm:$0xff] }
 0x12a   :  { %3557 = vmatpush2.bf16.msra.mxu0 %v8077_v22  ;;  %v147_v22 = vld [vmem:[%s13163_s1 + $0x368] sm:$0xff]  ;;  %v7904_v11 = vcombine.high %v91_v1, %v99_v2 }
 0x12b   :  { %3558 = vmatprep.subr.bf16.mxu0 %v8062_v25  ;;  %v403_v25 = vld [vmem:[%s13163_s1 + $0xb68] sm:$0xff]  ;;  %v7952_v30 = vcombine.high %v139_v21, %v147_v22 }
 0x12c   :  { %3600 = vmatpush2.bf16.msra.mxu1 %v8333_v24  ;;  %v395_v24 = vld [vmem:[%s13163_s1 + $0xb28] sm:$0xff] }
 0x12d   :  { %3601 = vmatprep.subr.bf16.mxu1 %v8318_v26  ;;  %v565_v26 = vrot.slane %v10526_v45, %v10733_v16  ;;  %v355_v5 = vld [vmem:[%s13163_s1 + $0x9e8] sm:$0xff] }
 0x12e   :  { %3559 = vmatpush2.bf16.msra.mxu0 %v8061_v31  ;;  %v10751_v31 = vpop.f32.mrf.mxu1  ;;  %v8160_v13 = vcombine.high %v347_v4, %v355_v5  ;;  %v75_v14 = vld [vmem:[%s13163_s1 + $0x128] sm:$0xff] }
 0x12f   :  { %3560 = vmatprep.subr.bf16.mxu0 %v8046_v35  ;;  %v123_v35 = vld [vmem:[%s13163_s1 + $0x2a8] sm:$0xff] }
 0x130   :  { %3602 = vmatpush2.bf16.msra.mxu1 %v8317_v33  ;;  %v8208_v33 = vcombine.high %v395_v24, %v403_v25 }
 0x131   :  { %3603 = vmatprep.subr.bf16.mxu1 %v8302_v36  ;;  %v131_v36 = vld [vmem:[%s13163_s1 + $0x2e8] sm:$0xff] }
 0x132   :  { %3561 = vmatpush2.bf16.msra.mxu0 %v8045_v41  ;;  %v7936_v47 = vcombine.high %v123_v35, %v131_v36  ;;  %v7935_v57 = vcombine.low %v123_v35, %v131_v36 }
 0x133   :  { %3562 = vmatprep.subr.bf16.mxu0 %v8030_v44 }
 0x134   :  { %3604 = vmatpush2.bf16.msra.mxu1 %v8301_v42  ;;  %v7951_v42 = vcombine.low %v139_v21, %v147_v22  ;;  %v8159_v21 = vcombine.low %v347_v4, %v355_v5  ;;  %v251_v4 = vld [vmem:[%s13163_s1 + $0x6a8] sm:$0xff] }
 0x135   :  { %3605 = vmatprep.subr.bf16.mxu1 %v8286_v46  ;;  %v8207_v46 = vcombine.low %v395_v24, %v403_v25  ;;  %v59_v25 = vld [vmem:[%s13163_s1 + $0xa8] sm:$0xff] }
 0x136   :  { %3563 = vmatpush2.bf16.msra.mxu0 %v8029_v51  ;;  %v107_v51 = vld [vmem:[%s13163_s1 + $0x228] sm:$0xff] }
 0x137   :  { %3564 = vmatprep.subr.bf16.mxu0 %v8014_v53  ;;  %v259_v5 = vld [vmem:[%s13163_s1 + $0x6e8] sm:$0xff] }
 0x138   :  { %3606 = vmatpush2.bf16.msra.mxu1 %v8285_v52  ;;  %v115_v52 = vld [vmem:[%s13163_s1 + $0x268] sm:$0xff] }
 0x139   :  { %3607 = vmatprep.subr.bf16.mxu1 %v8270_v54  ;;  %v363_v54 = vld [vmem:[%s13163_s1 + $0xa28] sm:$0xff] }
 0x13a   :  { %3565 = vmatpush2.bf16.msra.mxu0 %v8013_v60  ;;  %v8191_v60 = vcombine.low %v379_v38, %v387_v39  ;;  %v51_v38 = vld [vmem:[%s13163_s1 + $0x68] sm:$0xff] }
 0x13b   :  { %3566 = vmatprep.subr.bf16.mxu0 %v7998_v62  ;;  %v299_v39 = vld [vmem:[%s13163_s1 + $0x828] sm:$0xff] }
 0x13c   :  { %3608 = vmatpush2.bf16.msra.mxu1 %v8269_v61  ;;  %v7920_v61 = vcombine.high %v107_v51, %v115_v52 }
 0x13d   :  { %3609 = vmatprep.subr.bf16.mxu1 %v8254_v0  ;;  %v8176_v0 = vcombine.high %v363_v54, %v371_v55 }
 0x13e   :  { %3567 = vmatpush2.bf16.msra.mxu0 %v7997_v6 }
 0x13f   :  { %3568 = vmatprep.subr.bf16.mxu0 %v7982_v9  ;;  %v7919_v9 = vcombine.low %v107_v51, %v115_v52  ;;  %v539_v51 = vld [vmem:[%s13163_s1 + $0xfa8] sm:$0xff] }
 0x140   :  { %3610 = vmatpush2.bf16.msra.mxu1 %v8253_v8  ;;  %v547_v52 = vld [vmem:[%s13163_s1 + $0xfe8] sm:$0xff] }
 0x141   :  { %3611 = vmatprep.subr.bf16.mxu1 %v8238_v10  ;;  %v8175_v10 = vcombine.low %v363_v54, %v371_v55 }
 0x142   :  { %3569 = vmatpush2.bf16.msra.mxu0 %v7981_v15  ;;  %v83_v15 = vld [vmem:[%s13163_s1 + $0x168] sm:$0xff] }
 0x143   :  { %3624 = vmatprep.subr.bf16.mxu0 %v7968_v18  ;;  %v339_v18 = vld [vmem:[%s13163_s1 + $0x968] sm:$0xff]  ;;  %v7888_v22 = vcombine.high %v75_v14, %v83_v15 }
 0x144   :  { %3612 = vmatpush2.bf16.msra.mxu1 %v8237_v17  ;;  %v331_v17 = vld [vmem:[%s13163_s1 + $0x928] sm:$0xff] }
 0x145   :  { %3667 = vmatprep.subr.bf16.mxu1 %v8224_v19  ;;  %v3314_v37 = vpop.f32.mrf.mxu0  ;;  %3571 = vmatmul.mubr.bf16.vlgmr.msra.gmra.mxu0 %v9932_v20  ;;  %v7903_v19 = vcombine.low %v91_v1, %v99_v2  ;;  %v8144_v24 = vcombine.high %v331_v17, %v339_v18 }
 0x146   :  { %v3315_v40 = vadd.f32 %v3314_v37, %v565_v26  ;;  %3625 = vmatpush1.bf16.msra.mxu0 %v7967_v27  ;;  %3656 = vmatprep.mubr.bf16.mxu0 %v9788_v58  ;;  %v315_v27 = vld [vmem:[%s13163_s1 + $0x8a8] sm:$0xff] }
 0x147   :  { %v3357_v41 = vpop.f32.mrf.mxu1  ;;  %3614 = vmatmul.mubr.bf16.vlgmr.msra.gmra.mxu1 %v9940_v23  ;;  %v10767_v44 = vpop.f32.mrf.mxu0  ;;  %3626 = vmatprep.subr.bf16.mxu0 %v7952_v30  ;;  %v7887_v30 = vcombine.low %v75_v14, %v83_v15  ;;  %v43_v37 = vld [vmem:[%s13163_s1 + $0x28] sm:$0xff] }
 0x148   :  { %3668 = vmatpush1.bf16.msra.mxu1 %v8223_v29  ;;  %v3358_v48 = vadd.f32 %v3357_v41, %v3315_v40  ;;  %3699 = vmatprep.mubr.bf16.mxu1 %v9802_v63  ;;  %v323_v29 = vld [vmem:[%s13163_s1 + $0x8e8] sm:$0xff] }
 0x149   :  { %v10769_v49 = vpop.f32.mrf.mxu1  ;;  %3669 = vmatprep.subr.bf16.mxu1 %v8208_v33  ;;  %v3318_v53 = vpop.f32.mrf.mxu0  ;;  %v8143_v33 = vcombine.low %v331_v17, %v339_v18  ;;  %v8128_v36 = vcombine.high %v315_v27, %v323_v29  ;;  %v307_v40 = vld [vmem:[%s13163_s1 + $0x868] sm:$0xff] }
 0x14a   :  { %v3319_v56 = vadd.f32 %v3318_v53, %v565_v26  ;;  %3627 = vmatpush1.bf16.msra.mxu0 %v7951_v42  ;;  %v3884_v6 = vmax.f32 %v3358_v48, 0.0  ;;  %v67_v26 = vld [vmem:[%s13163_s1 + $0xe8] sm:$0xff]  ;;  %v8127_v42 = vcombine.low %v315_v27, %v323_v29  ;;  %v7855_v53 = vcombine.low %v43_v37, %v51_v38 }
 0x14b   :  { %v3361_v59 = vpop.f32.mrf.mxu1  ;;  %3628 = vmatprep.subr.bf16.mxu0 %v7936_v47  ;;  %v7872_v35 = vcombine.high %v59_v25, %v67_v26  ;;  %v7871_v41 = vcombine.low %v59_v25, %v67_v26  ;;  %v8112_v47 = vcombine.high %v299_v39, %v307_v40  ;;  %v283_v48 = vld [vmem:[%s13163_s1 + $0x7a8] sm:$0xff]  ;;  %v8111_v54 = vcombine.low %v299_v39, %v307_v40 }
 0x14c   :  { %3670 = vmatpush1.bf16.msra.mxu1 %v8207_v46  ;;  %v3362_v62 = vadd.f32 %v3361_v59, %v3319_v56  ;;  %v7856_v46 = vcombine.high %v43_v37, %v51_v38  ;;  %v8352_v56 = vcombine.high %v539_v51, %v547_v52  ;;  %v275_v59 = vld [vmem:[%s13163_s1 + $0x768] sm:$0xff] }
 0x14d   :  { %3671 = vmatprep.subr.bf16.mxu1 %v8192_v50  ;;  %v291_v50 = vld [vmem:[%s13163_s1 + $0x7e8] sm:$0xff] }
 0x14e   :  { %v3900_v8 = vmax.f32 %v3362_v62, 0.0  ;;  %3629 = vmatpush1.bf16.msra.mxu0 %v7935_v57  ;;  %v8096_v55 = vcombine.high %v283_v48, %v291_v50  ;;  %v267_v57 = vld [vmem:[%s13163_s1 + $0x728] sm:$0xff]  ;;  %v8095_v62 = vcombine.low %v283_v48, %v291_v50 }
 0x14f   :  { %3630 = vmatprep.subr.bf16.mxu0 %v7920_v61  ;;  %v531_v61 = vld [vmem:[%s13163_s1 + $0xf68] sm:$0xff]  ;;  %v8080_v1 = vcombine.high %v267_v57, %v275_v59 }
 0x150   :  { %3672 = vmatpush1.bf16.msra.mxu1 %v8191_v60  ;;  %v10797_v12 = vpack.c.bf16 %v3900_v8, %v3884_v6  ;;  %v523_v60 = vld [vmem:[%s13163_s1 + $0xf28] sm:$0xff] }
 0x151   :  { %3673 = vmatprep.subr.bf16.mxu1 %v8176_v0  ;;  %v8351_v0 = vcombine.low %v539_v51, %v547_v52  ;;  %v8336_v2 = vcombine.high %v523_v60, %v531_v61  ;;  %v507_v6 = vld [vmem:[%s13163_s1 + $0xea8] sm:$0xff] }
 0x152   :  { %3631 = vmatpush1.bf16.msra.mxu0 %v7919_v9  ;;  %v515_v8 = vld [vmem:[%s13163_s1 + $0xee8] sm:$0xff]  ;;  %v8079_v9 = vcombine.low %v267_v57, %v275_v59 }
 0x153   :  { %3632 = vmatprep.subr.bf16.mxu0 %v7904_v11  ;;  %v8064_v11 = vcombine.high %v251_v4, %v259_v5  ;;  %v235_v14 = vld [vmem:[%s13163_s1 + $0x628] sm:$0xff] }
 0x154   :  { %3674 = vmatpush1.bf16.msra.mxu1 %v8175_v10  ;;  %v8335_v10 = vcombine.low %v523_v60, %v531_v61  ;;  %v243_v15 = vld [vmem:[%s13163_s1 + $0x668] sm:$0xff] }
 0x155   :  { %3675 = vmatprep.subr.bf16.mxu1 %v8160_v13  ;;  %v8320_v13 = vcombine.high %v507_v6, %v515_v8  ;;  %v491_v17 = vld [vmem:[%s13163_s1 + $0xe28] sm:$0xff] }
 0x156   :  { %3633 = vmatpush1.bf16.msra.mxu0 %v7903_v19  ;;  %v499_v18 = vld [vmem:[%s13163_s1 + $0xe68] sm:$0xff]  ;;  %v8063_v19 = vcombine.low %v251_v4, %v259_v5  ;;  %v156_v4 = vld [vmem:[%s13163_s1 + $0x3b0] sm:$0xff] }
 0x157   :  { %3634 = vmatprep.subr.bf16.mxu0 %v7888_v22  ;;  %v8048_v22 = vcombine.high %v235_v14, %v243_v15  ;;  %v219_v25 = vld [vmem:[%s13163_s1 + $0x5a8] sm:$0xff]  ;;  %v164_v5 = vld [vmem:[%s13163_s1 + $0x3f0] sm:$0xff] }
 0x158   :  { %3676 = vmatpush1.bf16.msra.mxu1 %v8159_v21  ;;  %v8319_v21 = vcombine.low %v507_v6, %v515_v8  ;;  %v227_v26 = vld [vmem:[%s13163_s1 + $0x5e8] sm:$0xff]  ;;  %v412_v6 = vld [vmem:[%s13163_s1 + $0xbb0] sm:$0xff] }
 0x159   :  { %3677 = vmatprep.subr.bf16.mxu1 %v8144_v24  ;;  %v8304_v24 = vcombine.high %v491_v17, %v499_v18  ;;  %v475_v27 = vld [vmem:[%s13163_s1 + $0xda8] sm:$0xff]  ;;  %v420_v8 = vld [vmem:[%s13163_s1 + $0xbf0] sm:$0xff] }
 0x15a   :  { %3635 = vmatpush1.bf16.msra.mxu0 %v7887_v30  ;;  %v483_v29 = vld [vmem:[%s13163_s1 + $0xde8] sm:$0xff]  ;;  %v8047_v30 = vcombine.low %v235_v14, %v243_v15  ;;  %v8226_v14 = vcombine.high %v412_v6, %v420_v8  ;;  %v140_v15 = vld [vmem:[%s13163_s1 + $0x330] sm:$0xff] }
 0x15b   :  { %3636 = vmatprep.subr.bf16.mxu0 %v7872_v35  ;;  %v8032_v35 = vcombine.high %v219_v25, %v227_v26  ;;  %v203_v37 = vld [vmem:[%s13163_s1 + $0x528] sm:$0xff] }
 0x15c   :  { %3678 = vmatpush1.bf16.msra.mxu1 %v8143_v33  ;;  %v8303_v33 = vcombine.low %v491_v17, %v499_v18  ;;  %v211_v38 = vld [vmem:[%s13163_s1 + $0x568] sm:$0xff]  ;;  %v148_v17 = vld [vmem:[%s13163_s1 + $0x370] sm:$0xff] }
 0x15d   :  { %3679 = vmatprep.subr.bf16.mxu1 %v8128_v36  ;;  %v8288_v36 = vcombine.high %v475_v27, %v483_v29  ;;  %v459_v39 = vld [vmem:[%s13163_s1 + $0xd28] sm:$0xff]  ;;  %v396_v18 = vld [vmem:[%s13163_s1 + $0xb30] sm:$0xff] }
 0x15e   :  { %3637 = vmatpush1.bf16.msra.mxu0 %v7871_v41  ;;  %v467_v40 = vld [vmem:[%s13163_s1 + $0xd68] sm:$0xff]  ;;  %v8031_v41 = vcombine.low %v219_v25, %v227_v26  ;;  %v8225_v25 = vcombine.low %v412_v6, %v420_v8  ;;  %v7954_v26 = vcombine.high %v140_v15, %v148_v17 }
 0x15f   :  { %3638 = vmatprep.subr.bf16.mxu0 %v7856_v46  ;;  %v8016_v46 = vcombine.high %v203_v37, %v211_v38  ;;  %v187_v48 = vld [vmem:[%s13163_s1 + $0x4a8] sm:$0xff] }
 0x160   :  { %3680 = vmatpush1.bf16.msra.mxu1 %v8127_v42  ;;  %v8287_v42 = vcombine.low %v475_v27, %v483_v29  ;;  %v195_v50 = vld [vmem:[%s13163_s1 + $0x4e8] sm:$0xff]  ;;  %v124_v27 = vld [vmem:[%s13163_s1 + $0x2b0] sm:$0xff] }
 0x161   :  { %3681 = vmatprep.subr.bf16.mxu1 %v8112_v47  ;;  %v8272_v47 = vcombine.high %v459_v39, %v467_v40  ;;  %v443_v51 = vld [vmem:[%s13163_s1 + $0xca8] sm:$0xff]  ;;  %v132_v29 = vld [vmem:[%s13163_s1 + $0x2f0] sm:$0xff] }
 0x162   :  { %3639 = vmatpush1.bf16.msra.mxu0 %v7855_v53  ;;  %v451_v52 = vld [vmem:[%s13163_s1 + $0xce8] sm:$0xff]  ;;  %v8015_v53 = vcombine.low %v203_v37, %v211_v38 }
 0x163   :  { %3640 = vmatprep.subr.bf16.mxu0 %v8096_v55  ;;  %v8000_v55 = vcombine.high %v187_v48, %v195_v50  ;;  %v171_v57 = vld [vmem:[%s13163_s1 + $0x428] sm:$0xff] }
 0x164   :  { %3682 = vmatpush1.bf16.msra.mxu1 %v8111_v54  ;;  %v8271_v54 = vcombine.low %v459_v39, %v467_v40  ;;  %v179_v59 = vld [vmem:[%s13163_s1 + $0x468] sm:$0xff]  ;;  %v7953_v39 = vcombine.low %v140_v15, %v148_v17  ;;  %v108_v40 = vld [vmem:[%s13163_s1 + $0x230] sm:$0xff] }
 0x165   :  { %3683 = vmatprep.subr.bf16.mxu1 %v8352_v56  ;;  %v8256_v56 = vcombine.high %v443_v51, %v451_v52  ;;  %v427_v60 = vld [vmem:[%s13163_s1 + $0xc28] sm:$0xff] }
 0x166   :  { %3641 = vmatpush2.bf16.msra.mxu0 %v8095_v62  ;;  %v435_v61 = vld [vmem:[%s13163_s1 + $0xc68] sm:$0xff]  ;;  %v7999_v62 = vcombine.low %v187_v48, %v195_v50 }
 0x167   :  { %3642 = vmatprep.subr.bf16.mxu0 %v8080_v1  ;;  %v7984_v1 = vcombine.high %v171_v57, %v179_v59 }
 0x168   :  { %3684 = vmatpush2.bf16.msra.mxu1 %v8351_v0  ;;  %v8255_v0 = vcombine.low %v443_v51, %v451_v52 }
 0x169   :  { %3685 = vmatprep.subr.bf16.mxu1 %v8336_v2  ;;  %v8240_v2 = vcombine.high %v427_v60, %v435_v61 }
 0x16a   :  { %3643 = vmatpush2.bf16.msra.mxu0 %v8079_v9  ;;  %v7983_v9 = vcombine.low %v171_v57, %v179_v59  ;;  %v92_v57 = vld [vmem:[%s13163_s1 + $0x1b0] sm:$0xff] }
 0x16b   :  { %3644 = vmatprep.subr.bf16.mxu0 %v8064_v11  ;;  %v8239_v11 = vcombine.low %v427_v60, %v435_v61  ;;  %v100_v59 = vld [vmem:[%s13163_s1 + $0x1f0] sm:$0xff] }
 0x16c   :  { %3686 = vmatpush2.bf16.msra.mxu1 %v8335_v10  ;;  %v572_v10 = vsub.s32 4, %v10506_v34 }
 0x16d   :  { %3687 = vmatprep.subr.bf16.mxu1 %v8320_v13  ;;  %v7970_v13 = vcombine.high %v156_v4, %v164_v5 }
 0x16e   :  { %3645 = vmatpush2.bf16.msra.mxu0 %v8063_v19  ;;  %v404_v19 = vld [vmem:[%s13163_s1 + $0xb70] sm:$0xff] }
 0x16f   :  { %3646 = vmatprep.subr.bf16.mxu0 %v8048_v22  ;;  %v7969_v22 = vcombine.low %v156_v4, %v164_v5  ;;  %v356_v4 = vld [vmem:[%s13163_s1 + $0x9f0] sm:$0xff] }
 0x170   :  { %3688 = vmatpush2.bf16.msra.mxu1 %v8319_v21  ;;  %v573_v21 = vrot.slane %v10526_v45, %v572_v10  ;;  %v380_v45 = vld [vmem:[%s13163_s1 + $0xab0] sm:$0xff] }
 0x171   :  { %3689 = vmatprep.subr.bf16.mxu1 %v8304_v24  ;;  %v10959_v24 = vpop.f32.mrf.mxu0 }
 0x172   :  { %3647 = vmatpush2.bf16.msra.mxu0 %v8047_v30  ;;  %v10967_v30 = vpop.f32.mrf.mxu1 }
 0x173   :  { %3648 = vmatprep.subr.bf16.mxu0 %v8032_v35 }
 0x174   :  { %3690 = vmatpush2.bf16.msra.mxu1 %v8303_v33  ;;  %v8210_v33 = vcombine.high %v396_v18, %v404_v19 }
 0x175   :  { %3691 = vmatprep.subr.bf16.mxu1 %v8288_v36  ;;  %v388_v36 = vld [vmem:[%s13163_s1 + $0xaf0] sm:$0xff] }
 0x176   :  { %3649 = vmatpush2.bf16.msra.mxu0 %v8031_v41  ;;  %v116_v41 = vld [vmem:[%s13163_s1 + $0x270] sm:$0xff]  ;;  %v8194_v51 = vcombine.high %v380_v45, %v388_v36  ;;  %v8193_v61 = vcombine.low %v380_v45, %v388_v36 }
 0x177   :  { %3650 = vmatprep.subr.bf16.mxu0 %v8016_v46  ;;  %v8209_v46 = vcombine.low %v396_v18, %v404_v19  ;;  %v7921_v8 = vcombine.low %v108_v40, %v116_v41  ;;  %v332_v18 = vld [vmem:[%s13163_s1 + $0x930] sm:$0xff] }
 0x178   :  { %3692 = vmatpush2.bf16.msra.mxu1 %v8287_v42  ;;  %v340_v19 = vld [vmem:[%s13163_s1 + $0x970] sm:$0xff] }
 0x179   :  { %3693 = vmatprep.subr.bf16.mxu1 %v8272_v47  ;;  %v7938_v47 = vcombine.high %v124_v27, %v132_v29  ;;  %v324_v45 = vld [vmem:[%s13163_s1 + $0x8f0] sm:$0xff]  ;;  %v8145_v36 = vcombine.low %v332_v18, %v340_v19 }
 0x17a   :  { %3651 = vmatpush2.bf16.msra.mxu0 %v8015_v53  ;;  %v364_v53 = vld [vmem:[%s13163_s1 + $0xa30] sm:$0xff] }
 0x17b   :  { %3652 = vmatprep.subr.bf16.mxu0 %v8000_v55 }
 0x17c   :  { %3694 = vmatpush2.bf16.msra.mxu1 %v8271_v54  ;;  %v372_v54 = vld [vmem:[%s13163_s1 + $0xa70] sm:$0xff] }
 0x17d   :  { %3695 = vmatprep.subr.bf16.mxu1 %v8256_v56  ;;  %v7937_v56 = vcombine.low %v124_v27, %v132_v29  ;;  %v68_v27 = vld [vmem:[%s13163_s1 + $0xf0] sm:$0xff] }
 0x17e   :  { %3653 = vmatpush2.bf16.msra.mxu0 %v7999_v62  ;;  %v7922_v62 = vcombine.high %v108_v40, %v116_v41  ;;  %v316_v29 = vld [vmem:[%s13163_s1 + $0x8b0] sm:$0xff] }
 0x17f   :  { %3654 = vmatprep.subr.bf16.mxu0 %v7984_v1  ;;  %v8178_v1 = vcombine.high %v364_v53, %v372_v54  ;;  %v300_v40 = vld [vmem:[%s13163_s1 + $0x830] sm:$0xff]  ;;  %v8130_v41 = vcombine.high %v316_v29, %v324_v45 }
 0x180   :  { %3696 = vmatpush2.bf16.msra.mxu1 %v8255_v0 }
 0x181   :  { %3697 = vmatprep.subr.bf16.mxu1 %v8240_v2  ;;  %v348_v2 = vld [vmem:[%s13163_s1 + $0x9b0] sm:$0xff] }
 0x182   :  { %3655 = vmatpush2.bf16.msra.mxu0 %v7983_v9  ;;  %v76_v9 = vld [vmem:[%s13163_s1 + $0x130] sm:$0xff]  ;;  %v8162_v17 = vcombine.high %v348_v2, %v356_v4 }
 0x183   :  { %3710 = vmatprep.subr.bf16.mxu0 %v7970_v13  ;;  %v8177_v13 = vcombine.low %v364_v53, %v372_v54  ;;  %v292_v53 = vld [vmem:[%s13163_s1 + $0x7f0] sm:$0xff] }
 0x184   :  { %3698 = vmatpush2.bf16.msra.mxu1 %v8239_v11  ;;  %v84_v11 = vld [vmem:[%s13163_s1 + $0x170] sm:$0xff] }
 0x185   :  { %3753 = vmatprep.subr.bf16.mxu1 %v8226_v14  ;;  %v3400_v35 = vpop.f32.mrf.mxu0  ;;  %3657 = vmatmul.mubr.bf16.vlgmr.msra.gmra.mxu0 %v9932_v20  ;;  %v7906_v14 = vcombine.high %v92_v57, %v100_v59  ;;  %v540_v54 = vld [vmem:[%s13163_s1 + $0xfb0] sm:$0xff] }
 0x186   :  { %v3401_v37 = vadd.f32 %v3400_v35, %v573_v21  ;;  %3711 = vmatpush1.bf16.msra.mxu0 %v7969_v22  ;;  %3742 = vmatprep.mubr.bf16.mxu0 %v9788_v58  ;;  %v8161_v22 = vcombine.low %v348_v2, %v356_v4  ;;  %v7889_v35 = vcombine.low %v76_v9, %v84_v11  ;;  %v532_v2 = vld [vmem:[%s13163_s1 + $0xf70] sm:$0xff] }
 0x187   :  { %v3443_v38 = vpop.f32.mrf.mxu1  ;;  %3700 = vmatmul.mubr.bf16.vlgmr.msra.gmra.mxu1 %v9940_v23  ;;  %v10983_v42 = vpop.f32.mrf.mxu0  ;;  %3712 = vmatprep.subr.bf16.mxu0 %v7954_v26  ;;  %v60_v26 = vld [vmem:[%s13163_s1 + $0xb0] sm:$0xff] }
 0x188   :  { %3754 = vmatpush1.bf16.msra.mxu1 %v8225_v25  ;;  %v3444_v48 = vadd.f32 %v3443_v38, %v3401_v37  ;;  %3785 = vmatprep.mubr.bf16.mxu1 %v9802_v63  ;;  %v7890_v25 = vcombine.high %v76_v9, %v84_v11  ;;  %v7874_v37 = vcombine.high %v60_v26, %v68_v27  ;;  %v44_v38 = vld [vmem:[%s13163_s1 + $0x30] sm:$0xff] }
 0x189   :  { %v10985_v50 = vpop.f32.mrf.mxu1  ;;  %3755 = vmatprep.subr.bf16.mxu1 %v8210_v33  ;;  %v3404_v52 = vpop.f32.mrf.mxu0  ;;  %v8146_v33 = vcombine.high %v332_v18, %v340_v19  ;;  %v260_v9 = vld [vmem:[%s13163_s1 + $0x6f0] sm:$0xff] }
 0x18a   :  { %v3405_v55 = vadd.f32 %v3404_v52, %v573_v21  ;;  %3713 = vmatpush1.bf16.msra.mxu0 %v7953_v39  ;;  %v3886_v5 = vmax.f32 %v3444_v48, 0.0  ;;  %v7905_v21 = vcombine.low %v92_v57, %v100_v59  ;;  %v52_v39 = vld [vmem:[%s13163_s1 + $0x70] sm:$0xff]  ;;  %v8129_v48 = vcombine.low %v316_v29, %v324_v45 }
 0x18b   :  { %v3447_v60 = vpop.f32.mrf.mxu1  ;;  %3714 = vmatprep.subr.bf16.mxu0 %v7938_v47  ;;  %v7873_v47 = vcombine.low %v60_v26, %v68_v27  ;;  %v284_v52 = vld [vmem:[%s13163_s1 + $0x7b0] sm:$0xff]  ;;  %v7857_v57 = vcombine.low %v44_v38, %v52_v39 }
 0x18c   :  { %3756 = vmatpush1.bf16.msra.mxu1 %v8209_v46  ;;  %v3448_v0 = vadd.f32 %v3447_v60, %v3405_v55  ;;  %v308_v46 = vld [vmem:[%s13163_s1 + $0x870] sm:$0xff]  ;;  %v8098_v60 = vcombine.high %v284_v52, %v292_v53  ;;  %v8097_v4 = vcombine.low %v284_v52, %v292_v53 }
 0x18d   :  { %3757 = vmatprep.subr.bf16.mxu1 %v8194_v51  ;;  %v7858_v51 = vcombine.high %v44_v38, %v52_v39  ;;  %v8114_v55 = vcombine.high %v300_v40, %v308_v46  ;;  %v8113_v59 = vcombine.low %v300_v40, %v308_v46  ;;  %v508_v11 = vld [vmem:[%s13163_s1 + $0xeb0] sm:$0xff] }
 0x18e   :  { %v3902_v6 = vmax.f32 %v3448_v0, 0.0  ;;  %3715 = vmatpush1.bf16.msra.mxu0 %v7937_v56  ;;  %v548_v56 = vld [vmem:[%s13163_s1 + $0xff0] sm:$0xff] }
 0x18f   :  { %3716 = vmatprep.subr.bf16.mxu0 %v7922_v62  ;;  %v276_v62 = vld [vmem:[%s13163_s1 + $0x770] sm:$0xff] }
 0x190   :  { %3758 = vmatpush1.bf16.msra.mxu1 %v8193_v61  ;;  %v11013_v15 = vpack.c.bf16 %v3902_v6, %v3886_v5  ;;  %v268_v61 = vld [vmem:[%s13163_s1 + $0x730] sm:$0xff]  ;;  %v8353_v5 = vcombine.low %v540_v54, %v548_v56 }
 0x191   :  { %3759 = vmatprep.subr.bf16.mxu1 %v8178_v1  ;;  %v524_v0 = vld [vmem:[%s13163_s1 + $0xf30] sm:$0xff]  ;;  %v8354_v1 = vcombine.high %v540_v54, %v548_v56  ;;  %v8082_v6 = vcombine.high %v268_v61, %v276_v62 }
 0x192   :  { %3717 = vmatpush1.bf16.msra.mxu0 %v7921_v8  ;;  %v252_v8 = vld [vmem:[%s13163_s1 + $0x6b0] sm:$0xff]  ;;  %v8337_v18 = vcombine.low %v524_v0, %v532_v2 }
 0x193   :  { %3718 = vmatprep.subr.bf16.mxu0 %v7906_v14  ;;  %v516_v14 = vld [vmem:[%s13163_s1 + $0xef0] sm:$0xff]  ;;  %v8066_v19 = vcombine.high %v252_v8, %v260_v9  ;;  %v8065_v29 = vcombine.low %v252_v8, %v260_v9 }
 0x194   :  { %3760 = vmatpush1.bf16.msra.mxu1 %v8177_v13  ;;  %v8338_v13 = vcombine.high %v524_v0, %v532_v2  ;;  %v8322_v26 = vcombine.high %v508_v11, %v516_v14  ;;  %v500_v27 = vld [vmem:[%s13163_s1 + $0xe70] sm:$0xff] }
 0x195   :  { %3761 = vmatprep.subr.bf16.mxu1 %v8162_v17  ;;  %v8081_v17 = vcombine.low %v268_v61, %v276_v62  ;;  %v484_v39 = vld [vmem:[%s13163_s1 + $0xdf0] sm:$0xff] }
 0x196   :  { %3719 = vmatpush1.bf16.msra.mxu0 %v7905_v21  ;;  %v236_v21 = vld [vmem:[%s13163_s1 + $0x630] sm:$0xff] }
 0x197   :  { %3720 = vmatprep.subr.bf16.mxu0 %v7890_v25  ;;  %v492_v25 = vld [vmem:[%s13163_s1 + $0xe30] sm:$0xff] }
 0x198   :  { %3762 = vmatpush1.bf16.msra.mxu1 %v8161_v22  ;;  %v244_v22 = vld [vmem:[%s13163_s1 + $0x670] sm:$0xff]  ;;  %v8306_v38 = vcombine.high %v492_v25, %v500_v27 }
 0x199   :  { %3763 = vmatprep.subr.bf16.mxu1 %v8146_v33  ;;  %v8321_v33 = vcombine.low %v508_v11, %v516_v14  ;;  %v8050_v45 = vcombine.high %v236_v21, %v244_v22  ;;  %v8049_v40 = vcombine.low %v236_v21, %v244_v22  ;;  %v468_v53 = vld [vmem:[%s13163_s1 + $0xd70] sm:$0xff]  ;;  %v421_v22 = vld [vmem:[%s13163_s1 + $0xbf8] sm:$0xff] }
 0x19a   :  { %3721 = vmatpush1.bf16.msra.mxu0 %v7889_v35  ;;  %v220_v35 = vld [vmem:[%s13163_s1 + $0x5b0] sm:$0xff] }
 0x19b   :  { %3722 = vmatprep.subr.bf16.mxu0 %v7874_v37  ;;  %v476_v37 = vld [vmem:[%s13163_s1 + $0xdb0] sm:$0xff] }
 0x19c   :  { %3764 = vmatpush1.bf16.msra.mxu1 %v8145_v36  ;;  %v228_v36 = vld [vmem:[%s13163_s1 + $0x5f0] sm:$0xff]  ;;  %v8290_v52 = vcombine.high %v476_v37, %v484_v39 }
 0x19d   :  { %3765 = vmatprep.subr.bf16.mxu1 %v8130_v41  ;;  %v8305_v41 = vcombine.low %v492_v25, %v500_v27  ;;  %v8034_v46 = vcombine.high %v220_v35, %v228_v36  ;;  %v8033_v54 = vcombine.low %v220_v35, %v228_v36  ;;  %v452_v62 = vld [vmem:[%s13163_s1 + $0xcf0] sm:$0xff]  ;;  %v397_v35 = vld [vmem:[%s13163_s1 + $0xb38] sm:$0xff] }
 0x19e   :  { %3723 = vmatpush1.bf16.msra.mxu0 %v7873_v47  ;;  %v204_v47 = vld [vmem:[%s13163_s1 + $0x530] sm:$0xff] }
 0x19f   :  { %3724 = vmatprep.subr.bf16.mxu0 %v7858_v51  ;;  %v460_v51 = vld [vmem:[%s13163_s1 + $0xd30] sm:$0xff] }
 0x1a0   :  { %3766 = vmatpush1.bf16.msra.mxu1 %v8129_v48  ;;  %v212_v48 = vld [vmem:[%s13163_s1 + $0x570] sm:$0xff]  ;;  %v8274_v61 = vcombine.high %v460_v51, %v468_v53 }
 0x1a1   :  { %3767 = vmatprep.subr.bf16.mxu1 %v8114_v55  ;;  %v8289_v55 = vcombine.low %v476_v37, %v484_v39  ;;  %v8018_v56 = vcombine.high %v204_v47, %v212_v48  ;;  %v8017_v0 = vcombine.low %v204_v47, %v212_v48  ;;  %v436_v9 = vld [vmem:[%s13163_s1 + $0xc70] sm:$0xff]  ;;  %v405_v37 = vld [vmem:[%s13163_s1 + $0xb78] sm:$0xff]  ;;  %v11180_v47 = vpop.f32.mrf.mxu0 }
 0x1a2   :  { %3725 = vmatpush1.bf16.msra.mxu0 %v7857_v57  ;;  %v188_v57 = vld [vmem:[%s13163_s1 + $0x4b0] sm:$0xff] }
 0x1a3   :  { %3726 = vmatprep.subr.bf16.mxu0 %v8098_v60  ;;  %v444_v60 = vld [vmem:[%s13163_s1 + $0xcb0] sm:$0xff] }
 0x1a4   :  { %3768 = vmatpush1.bf16.msra.mxu1 %v8113_v59  ;;  %v196_v59 = vld [vmem:[%s13163_s1 + $0x4f0] sm:$0xff]  ;;  %v8258_v8 = vcombine.high %v444_v60, %v452_v62 }
 0x1a5   :  { %3769 = vmatprep.subr.bf16.mxu1 %v8354_v1  ;;  %v8273_v1 = vcombine.low %v460_v51, %v468_v53  ;;  %v8002_v2 = vcombine.high %v188_v57, %v196_v59  ;;  %v8001_v11 = vcombine.low %v188_v57, %v196_v59  ;;  %v8212_v53 = vcombine.high %v397_v35, %v405_v37 }
 0x1a6   :  { %3727 = vmatpush2.bf16.msra.mxu0 %v8097_v4  ;;  %v172_v4 = vld [vmem:[%s13163_s1 + $0x430] sm:$0xff] }
 0x1a7   :  { %3728 = vmatprep.subr.bf16.mxu0 %v8082_v6  ;;  %v428_v6 = vld [vmem:[%s13163_s1 + $0xc30] sm:$0xff] }
 0x1a8   :  { %3770 = vmatpush2.bf16.msra.mxu1 %v8353_v5  ;;  %v180_v5 = vld [vmem:[%s13163_s1 + $0x470] sm:$0xff]  ;;  %v8242_v21 = vcombine.high %v428_v6, %v436_v9  ;;  %v8241_v27 = vcombine.low %v428_v6, %v436_v9  ;;  %v365_v9 = vld [vmem:[%s13163_s1 + $0xa38] sm:$0xff] }
 0x1a9   :  { %3771 = vmatprep.subr.bf16.mxu1 %v8338_v13  ;;  %v8257_v13 = vcombine.low %v444_v60, %v452_v62  ;;  %v7986_v14 = vcombine.high %v172_v4, %v180_v5  ;;  %v7985_v25 = vcombine.low %v172_v4, %v180_v5  ;;  %v117_v62 = vld [vmem:[%s13163_s1 + $0x278] sm:$0xff] }
 0x1aa   :  { %3729 = vmatpush2.bf16.msra.mxu0 %v8081_v17  ;;  %v157_v17 = vld [vmem:[%s13163_s1 + $0x3b8] sm:$0xff] }
 0x1ab   :  { %3730 = vmatprep.subr.bf16.mxu0 %v8066_v19  ;;  %v413_v19 = vld [vmem:[%s13163_s1 + $0xbb8] sm:$0xff] }
 0x1ac   :  { %3772 = vmatpush2.bf16.msra.mxu1 %v8337_v18  ;;  %v165_v18 = vld [vmem:[%s13163_s1 + $0x3f8] sm:$0xff]  ;;  %v8228_v36 = vcombine.high %v413_v19, %v421_v22  ;;  %v8227_v48 = vcombine.low %v413_v19, %v421_v22 }
 0x1ad   :  { %3773 = vmatprep.subr.bf16.mxu1 %v8322_v26  ;;  %v580_v26 = vsub.s32 6, %v10506_v34 }
 0x1ae   :  { %3731 = vmatpush2.bf16.msra.mxu0 %v8065_v29  ;;  %v7972_v29 = vcombine.high %v157_v17, %v165_v18 }
 0x1af   :  { %3732 = vmatprep.subr.bf16.mxu0 %v8050_v45  ;;  %v149_v45 = vld [vmem:[%s13163_s1 + $0x378] sm:$0xff] }
 0x1b0   :  { %3774 = vmatpush2.bf16.msra.mxu1 %v8321_v33  ;;  %v141_v33 = vld [vmem:[%s13163_s1 + $0x338] sm:$0xff] }
 0x1b1   :  { %3775 = vmatprep.subr.bf16.mxu1 %v8306_v38  ;;  %v11169_v38 = vld [vmem:[%s13165_s2] sm:$0xff]  ;;  %v7956_v51 = vcombine.high %v141_v33, %v149_v45  ;;  %v7955_v60 = vcombine.low %v141_v33, %v149_v45 }
 0x1b2   :  { %3733 = vmatpush2.bf16.msra.mxu0 %v8049_v40  ;;  %v581_v39 = vrot.slane %v11169_v38, %v580_v26  ;;  %v7971_v40 = vcombine.low %v157_v17, %v165_v18  ;;  %v93_v17 = vld [vmem:[%s13163_s1 + $0x1b8] sm:$0xff] }
 0x1b3   :  { %3734 = vmatprep.subr.bf16.mxu0 %v8034_v46  ;;  %v133_v46 = vld [vmem:[%s13163_s1 + $0x2f8] sm:$0xff] }
 0x1b4   :  { %3776 = vmatpush2.bf16.msra.mxu1 %v8305_v41  ;;  %v125_v41 = vld [vmem:[%s13163_s1 + $0x2b8] sm:$0xff] }
 0x1b5   :  { %3777 = vmatprep.subr.bf16.mxu1 %v8290_v52  ;;  %v11182_v52 = vpop.f32.mrf.mxu1 }
 0x1b6   :  { %3735 = vmatpush2.bf16.msra.mxu0 %v8033_v54 }
 0x1b7   :  { %3736 = vmatprep.subr.bf16.mxu0 %v8018_v56  ;;  %v389_v56 = vld [vmem:[%s13163_s1 + $0xaf8] sm:$0xff] }
 0x1b8   :  { %3778 = vmatpush2.bf16.msra.mxu1 %v8289_v55  ;;  %v381_v55 = vld [vmem:[%s13163_s1 + $0xab8] sm:$0xff] }
 0x1b9   :  { %3779 = vmatprep.subr.bf16.mxu1 %v8274_v61  ;;  %v109_v61 = vld [vmem:[%s13163_s1 + $0x238] sm:$0xff]  ;;  %v8196_v6 = vcombine.high %v381_v55, %v389_v56  ;;  %v8195_v19 = vcombine.low %v381_v55, %v389_v56 }
 0x1ba   :  { %3737 = vmatpush2.bf16.msra.mxu0 %v8017_v0  ;;  %v7923_v45 = vcombine.low %v109_v61, %v117_v62  ;;  %v61_v55 = vld [vmem:[%s13163_s1 + $0xb8] sm:$0xff] }
 0x1bb   :  { %3738 = vmatprep.subr.bf16.mxu0 %v8002_v2  ;;  %v7940_v2 = vcombine.high %v125_v41, %v133_v46  ;;  %v69_v56 = vld [vmem:[%s13163_s1 + $0xf8] sm:$0xff] }
 0x1bc   :  { %3780 = vmatpush2.bf16.msra.mxu1 %v8273_v1  ;;  %v8211_v1 = vcombine.low %v397_v35, %v405_v37  ;;  %v77_v35 = vld [vmem:[%s13163_s1 + $0x138] sm:$0xff] }
 0x1bd   :  { %3781 = vmatprep.subr.bf16.mxu1 %v8258_v8 }
 0x1be   :  { %3739 = vmatpush2.bf16.msra.mxu0 %v8001_v11  ;;  %v373_v11 = vld [vmem:[%s13163_s1 + $0xa78] sm:$0xff] }
 0x1bf   :  { %3740 = vmatprep.subr.bf16.mxu0 %v7986_v14  ;;  %v7939_v14 = vcombine.low %v125_v41, %v133_v46  ;;  %v8179_v37 = vcombine.low %v365_v9, %v373_v11  ;;  %v333_v46 = vld [vmem:[%s13163_s1 + $0x938] sm:$0xff] }
 0x1c0   :  { %3782 = vmatpush2.bf16.msra.mxu1 %v8257_v13 }
 0x1c1   :  { %3783 = vmatprep.subr.bf16.mxu1 %v8242_v21  ;;  %v7924_v21 = vcombine.high %v109_v61, %v117_v62 }
 0x1c2   :  { %3741 = vmatpush2.bf16.msra.mxu0 %v7985_v25  ;;  %v8180_v25 = vcombine.high %v365_v9, %v373_v11  ;;  %v309_v9 = vld [vmem:[%s13163_s1 + $0x878] sm:$0xff]  ;;  %v7875_v11 = vcombine.low %v61_v55, %v69_v56 }
 0x1c3   :  { %3796 = vmatprep.subr.bf16.mxu0 %v7972_v29 }
 0x1c4   :  { %3784 = vmatpush2.bf16.msra.mxu1 %v8241_v27  ;;  %v357_v27 = vld [vmem:[%s13163_s1 + $0x9f8] sm:$0xff] }
 0x1c5   :  { %3839 = vmatprep.subr.bf16.mxu1 %v8228_v36  ;;  %v3486_v54 = vpop.f32.mrf.mxu0  ;;  %3743 = vmatmul.mubr.bf16.vlgmr.msra.gmra.mxu0 %v9932_v20  ;;  %v85_v36 = vld [vmem:[%s13163_s1 + $0x178] sm:$0xff] }
 0x1c6   :  { %v3487_v57 = vadd.f32 %v3486_v54, %v581_v39  ;;  %3797 = vmatpush1.bf16.msra.mxu0 %v7971_v40  ;;  %3828 = vmatprep.mubr.bf16.mxu0 %v9788_v58  ;;  %v101_v58 = vld [vmem:[%s13163_s1 + $0x1f8] sm:$0xff]  ;;  %v7892_v54 = vcombine.high %v77_v35, %v85_v36  ;;  %v7891_v61 = vcombine.low %v77_v35, %v85_v36 }
 0x1c7   :  { %v3529_v59 = vpop.f32.mrf.mxu1  ;;  %3786 = vmatmul.mubr.bf16.vlgmr.msra.gmra.mxu1 %v9940_v23  ;;  %v11198_v0 = vpop.f32.mrf.mxu0  ;;  %3798 = vmatprep.subr.bf16.mxu0 %v7956_v51  ;;  %v7907_v51 = vcombine.low %v93_v17, %v101_v58  ;;  %v533_v35 = vld [vmem:[%s13163_s1 + $0xf78] sm:$0xff] }
 0x1c8   :  { %3840 = vmatpush1.bf16.msra.mxu1 %v8227_v48  ;;  %v3530_v4 = vadd.f32 %v3529_v59, %v3487_v57  ;;  %3871 = vmatprep.mubr.bf16.mxu1 %v9802_v63  ;;  %v349_v63 = vld [vmem:[%s13163_s1 + $0x9b8] sm:$0xff] }
 0x1c9   :  { %v11200_v5 = vpop.f32.mrf.mxu1  ;;  %3841 = vmatprep.subr.bf16.mxu1 %v8212_v53  ;;  %v3490_v8 = vpop.f32.mrf.mxu0  ;;  %v8164_v41 = vcombine.high %v349_v63, %v357_v27  ;;  %v341_v48 = vld [vmem:[%s13163_s1 + $0x978] sm:$0xff]  ;;  %v8163_v53 = vcombine.low %v349_v63, %v357_v27 }
 0x1ca   :  { %v3491_v13 = vadd.f32 %v3490_v8, %v581_v39  ;;  %3799 = vmatpush1.bf16.msra.mxu0 %v7955_v60  ;;  %v3888_v29 = vmax.f32 %v3530_v4, 0.0  ;;  %v7908_v39 = vcombine.high %v93_v17, %v101_v58  ;;  %v317_v57 = vld [vmem:[%s13163_s1 + $0x8b8] sm:$0xff]  ;;  %v8148_v59 = vcombine.high %v333_v46, %v341_v48 }
 0x1cb   :  { %v3533_v18 = vpop.f32.mrf.mxu1  ;;  %3800 = vmatprep.subr.bf16.mxu0 %v7940_v2  ;;  %v325_v60 = vld [vmem:[%s13163_s1 + $0x8f8] sm:$0xff]  ;;  %v8147_v62 = vcombine.low %v333_v46, %v341_v48 }
 0x1cc   :  { %3842 = vmatpush1.bf16.msra.mxu1 %v8211_v1  ;;  %v3534_v22 = vadd.f32 %v3533_v18, %v3491_v13  ;;  %v7876_v1 = vcombine.high %v61_v55, %v69_v56  ;;  %v45_v2 = vld [vmem:[%s13163_s1 + $0x38] sm:$0xff]  ;;  %v8132_v8 = vcombine.high %v317_v57, %v325_v60  ;;  %v8131_v13 = vcombine.low %v317_v57, %v325_v60 }
 0x1cd   :  { %3843 = vmatprep.subr.bf16.mxu1 %v8196_v6  ;;  %v53_v4 = vld [vmem:[%s13163_s1 + $0x78] sm:$0xff] }
 0x1ce   :  { %v3904_v33 = vmax.f32 %v3534_v22, 0.0  ;;  %3801 = vmatpush1.bf16.msra.mxu0 %v7939_v14  ;;  %v301_v6 = vld [vmem:[%s13163_s1 + $0x838] sm:$0xff]  ;;  %v7860_v14 = vcombine.high %v45_v2, %v53_v4  ;;  %v7859_v22 = vcombine.low %v45_v2, %v53_v4 }
 0x1cf   :  { %3802 = vmatprep.subr.bf16.mxu0 %v7924_v21  ;;  %v285_v17 = vld [vmem:[%s13163_s1 + $0x7b8] sm:$0xff] }
 0x1d0   :  { %3844 = vmatpush1.bf16.msra.mxu1 %v8195_v19  ;;  %v11228_v40 = vpack.c.bf16 %v3904_v33, %v3888_v29  ;;  %v293_v58 = vld [vmem:[%s13163_s1 + $0x7f8] sm:$0xff]  ;;  %v8116_v19 = vcombine.high %v301_v6, %v309_v9 }
 0x1d1   :  { %3845 = vmatprep.subr.bf16.mxu1 %v8180_v25  ;;  %v541_v18 = vld [vmem:[%s13163_s1 + $0xfb8] sm:$0xff]  ;;  %v8115_v25 = vcombine.low %v301_v6, %v309_v9  ;;  %v8100_v63 = vcombine.high %v285_v17, %v293_v58  ;;  %v8099_v36 = vcombine.low %v285_v17, %v293_v58 }
 0x1d2   :  { %3803 = vmatpush1.bf16.msra.mxu0 %v7923_v45  ;;  %v549_v21 = vld [vmem:[%s13163_s1 + $0xff8] sm:$0xff] }
 0x1d3   :  { %3804 = vmatprep.subr.bf16.mxu0 %v7908_v39  ;;  %v269_v27 = vld [vmem:[%s13163_s1 + $0x738] sm:$0xff]  ;;  %v8356_v45 = vcombine.high %v541_v18, %v549_v21 }
 0x1d4   :  { %3846 = vmatpush1.bf16.msra.mxu1 %v8179_v37  ;;  %v277_v29 = vld [vmem:[%s13163_s1 + $0x778] sm:$0xff]  ;;  %v8355_v37 = vcombine.low %v541_v18, %v549_v21 }
 0x1d5   :  { %3847 = vmatprep.subr.bf16.mxu1 %v8164_v41  ;;  %v525_v33 = vld [vmem:[%s13163_s1 + $0xf38] sm:$0xff]  ;;  %v8084_v39 = vcombine.high %v269_v27, %v277_v29 }
 0x1d6   :  { %3805 = vmatpush1.bf16.msra.mxu0 %v7907_v51  ;;  %v253_v41 = vld [vmem:[%s13163_s1 + $0x6b8] sm:$0xff]  ;;  %v8340_v51 = vcombine.high %v525_v33, %v533_v35  ;;  %v8339_v55 = vcombine.low %v525_v33, %v533_v35 }
 0x1d7   :  { %3806 = vmatprep.subr.bf16.mxu0 %v7892_v54  ;;  %v261_v46 = vld [vmem:[%s13163_s1 + $0x6f8] sm:$0xff]  ;;  %v8083_v54 = vcombine.low %v269_v27, %v277_v29  ;;  %v11333_v27 = vsub.s32 1, %v10506_v34 }
 0x1d8   :  { %3848 = vmatpush1.bf16.msra.mxu1 %v8163_v53  ;;  %v509_v48 = vld [vmem:[%s13163_s1 + $0xeb8] sm:$0xff]  ;;  %v8068_v56 = vcombine.high %v253_v41, %v261_v46 }
 0x1d9   :  { %3849 = vmatprep.subr.bf16.mxu1 %v8148_v59  ;;  %v517_v53 = vld [vmem:[%s13163_s1 + $0xef8] sm:$0xff]  ;;  %13176 = vst [vmem:[#allocation3_spill] sm:$0xff] %v11333_v27 }
 0x1da   :  { %3807 = vmatpush1.bf16.msra.mxu0 %v7891_v61  ;;  %v237_v57 = vld [vmem:[%s13163_s1 + $0x638] sm:$0xff]  ;;  %v8324_v61 = vcombine.high %v509_v48, %v517_v53  ;;  %v8323_v2 = vcombine.low %v509_v48, %v517_v53  ;;  %v561_v48 = vrot.slane %v11169_v38, %v11333_v27 }
 0x1db   :  { %3808 = vmatprep.subr.bf16.mxu0 %v7876_v1  ;;  %v245_v59 = vld [vmem:[%s13163_s1 + $0x678] sm:$0xff]  ;;  %v8067_v1 = vcombine.low %v253_v41, %v261_v46 }
 0x1dc   :  { %3850 = vmatpush1.bf16.msra.mxu1 %v8147_v62  ;;  %v493_v60 = vld [vmem:[%s13163_s1 + $0xe38] sm:$0xff]  ;;  %v8052_v4 = vcombine.high %v237_v57, %v245_v59 }
 0x1dd   :  { %3851 = vmatprep.subr.bf16.mxu1 %v8132_v8  ;;  %v501_v62 = vld [vmem:[%s13163_s1 + $0xe78] sm:$0xff] }
 0x1de   :  { %3809 = vmatpush1.bf16.msra.mxu0 %v7875_v11  ;;  %v221_v6 = vld [vmem:[%s13163_s1 + $0x5b8] sm:$0xff]  ;;  %v8308_v11 = vcombine.high %v493_v60, %v501_v62  ;;  %v8307_v17 = vcombine.low %v493_v60, %v501_v62 }
 0x1df   :  { %3810 = vmatprep.subr.bf16.mxu0 %v7860_v14  ;;  %v229_v8 = vld [vmem:[%s13163_s1 + $0x5f8] sm:$0xff]  ;;  %v8051_v14 = vcombine.low %v237_v57, %v245_v59 }
 0x1e0   :  { %3852 = vmatpush1.bf16.msra.mxu1 %v8131_v13  ;;  %v477_v9 = vld [vmem:[%s13163_s1 + $0xdb8] sm:$0xff]  ;;  %v8036_v58 = vcombine.high %v221_v6, %v229_v8 }
 0x1e1   :  { %3853 = vmatprep.subr.bf16.mxu1 %v8116_v19  ;;  %v485_v13 = vld [vmem:[%s13163_s1 + $0xdf8] sm:$0xff] }
 0x1e2   :  { %3811 = vmatpush1.bf16.msra.mxu0 %v7859_v22  ;;  %v205_v18 = vld [vmem:[%s13163_s1 + $0x538] sm:$0xff]  ;;  %v8292_v22 = vcombine.high %v477_v9, %v485_v13  ;;  %v8291_v29 = vcombine.low %v477_v9, %v485_v13 }
 0x1e3   :  { %3812 = vmatprep.subr.bf16.mxu0 %v8100_v63  ;;  %v213_v19 = vld [vmem:[%s13163_s1 + $0x578] sm:$0xff]  ;;  %v8035_v63 = vcombine.low %v221_v6, %v229_v8 }
 0x1e4   :  { %3854 = vmatpush1.bf16.msra.mxu1 %v8115_v25  ;;  %v461_v21 = vld [vmem:[%s13163_s1 + $0xd38] sm:$0xff]  ;;  %v8020_v33 = vcombine.high %v205_v18, %v213_v19  ;;  %v8019_v46 = vcombine.low %v205_v18, %v213_v19 }
 0x1e5   :  { %3855 = vmatprep.subr.bf16.mxu1 %v8356_v45  ;;  %v469_v25 = vld [vmem:[%s13163_s1 + $0xd78] sm:$0xff] }
 0x1e6   :  { %3813 = vmatpush2.bf16.msra.mxu0 %v8099_v36  ;;  %v189_v45 = vld [vmem:[%s13163_s1 + $0x4b8] sm:$0xff] }
 0x1e7   :  { %3814 = vmatprep.subr.bf16.mxu0 %v8084_v39  ;;  %v197_v35 = vld [vmem:[%s13163_s1 + $0x4f8] sm:$0xff]  ;;  %v8276_v39 = vcombine.high %v461_v21, %v469_v25 }
 0x1e8   :  { %3856 = vmatpush2.bf16.msra.mxu1 %v8355_v37  ;;  %v445_v36 = vld [vmem:[%s13163_s1 + $0xcb8] sm:$0xff]  ;;  %v11345_v37 = vsub.s32 3, %v10506_v34  ;;  %v8004_v53 = vcombine.high %v189_v45, %v197_v35 }
 0x1e9   :  { %3857 = vmatprep.subr.bf16.mxu1 %v8340_v51  ;;  %v453_v41 = vld [vmem:[%s13163_s1 + $0xcf8] sm:$0xff]  ;;  %v8275_v51 = vcombine.low %v461_v21, %v469_v25  ;;  %v11396_v21 = vpop.f32.mrf.mxu0 }
 0x1ea   :  { %3815 = vmatpush2.bf16.msra.mxu0 %v8083_v54  ;;  %v173_v54 = vld [vmem:[%s13163_s1 + $0x438] sm:$0xff]  ;;  %v569_v57 = vrot.slane %v11169_v38, %v11345_v37  ;;  %v8260_v59 = vcombine.high %v445_v36, %v453_v41 }
 0x1eb   :  { %3816 = vmatprep.subr.bf16.mxu0 %v8068_v56  ;;  %v429_v56 = vld [vmem:[%s13163_s1 + $0xc38] sm:$0xff] }
 0x1ec   :  { %3858 = vmatpush2.bf16.msra.mxu1 %v8339_v55  ;;  %v181_v55 = vld [vmem:[%s13163_s1 + $0x478] sm:$0xff]  ;;  %v3321_v62 = vadd.f32 %v10959_v24, %v569_v57  ;;  %v3317_v38 = vadd.f32 %v10767_v44, %v569_v57  ;;  %v8871_v44 = vld [vmem:[%s13166_s3 + $0xe4] ss:$16 sps:$4 sm:$0xff]  }
 0x1ed   :  { %3859 = vmatprep.subr.bf16.mxu1 %v8324_v61  ;;  %v437_v60 = vld [vmem:[%s13163_s1 + $0xc78] sm:$0xff]  ;;  %v3235_v61 = vadd.f32 %v10749_v28, %v561_v48  ;;  %v7988_v6 = vcombine.high %v173_v54, %v181_v55  ;;  %v7987_v28 = vcombine.low %v173_v54, %v181_v55  ;;  %v8881_v54 = vld [vmem:[%s13166_s3 + $0xa0] ss:$16 sps:$4 sm:$0xff]   ;;  %v8889_v57 = vld [vmem:[%s13166_s3 + $0x84] ss:$16 sps:$4 sm:$0xff]  }
 0x1ee   :  { %3817 = vmatpush2.bf16.msra.mxu0 %v8067_v1  ;;  %v8003_v1 = vcombine.low %v189_v45, %v197_v35  ;;  %v8244_v8 = vcombine.high %v429_v56, %v437_v60  ;;  %v8243_v13 = vcombine.low %v429_v56, %v437_v60  ;;  %v8875_v45 = vld [vmem:[%s13166_s3 + $0xc0] ss:$16 sps:$4 sm:$0xff]  }
 0x1ef   :  { %3818 = vmatprep.subr.bf16.mxu0 %v8052_v4  ;;  %v8259_v4 = vcombine.low %v445_v36, %v453_v41  ;;  %v3278_v9 = vadd.f32 %v10751_v31, %v3235_v61  ;;  %v3360_v31 = vadd.f32 %v10769_v49, %v3317_v38  ;;  %v8877_v49 = vld [vmem:[%s13166_s3 + $0xc4] ss:$16 sps:$4 sm:$0xff]   ;;  %v8878_v35 = vld [vmem:[%s13166_s3 + $0x2c0] ss:$16 sps:$4 sm:$0xff]  }
 0x1f0   :  { %3860 = vmatpush2.bf16.msra.mxu1 %v8323_v2  ;;  %v3231_v2 = vadd.f32 %v10556_v3, %v561_v48  ;;  %v11376_v3 = vld [vmem:[%s13165_s2 + $0x8] sm:$0xff]  ;;  %v8884_v55 = vld [vmem:[%s13166_s3 + $0x2a0] ss:$16 sps:$4 sm:$0xff]   ;;  %v8898_v38 = vld [vmem:[%s13166_s3 + $0x264] ss:$16 sps:$4 sm:$0xff]  }
 0x1f1   :  { %3861 = vmatprep.subr.bf16.mxu1 %v8308_v11  ;;  %v3364_v11 = vadd.f32 %v10967_v30, %v3321_v62  ;;  %v8869_v30 = vld [vmem:[%s13166_s3 + $0xe0] ss:$16 sps:$4 sm:$0xff]   ;;  %v589_v18 = vrot.slane %v11376_v3, %v10521_v43  ;;  %v3885_v25 = vmax.f32 %v3360_v31, 0.0  ;;  %v8907_v31 = vld [vmem:[%s13166_s3 + $0x24] ss:$16 sps:$4 sm:$0xff]  }
 0x1f2   :  { %3819 = vmatpush2.bf16.msra.mxu0 %v8051_v14  ;;  %v3274_v24 = vadd.f32 %v10558_v7, %v3231_v2  ;;  %v8874_v7 = vld [vmem:[%s13166_s3 + $0x2e4] ss:$16 sps:$4 sm:$0xff]   ;;  %v3899_v14 = vmax.f32 %v3278_v9, 0.0  ;;  %v8887_v62 = vld [vmem:[%s13166_s3 + $0x80] ss:$16 sps:$4 sm:$0xff]  }
 0x1f3   :  { %3820 = vmatprep.subr.bf16.mxu0 %v8036_v58  ;;  %v3901_v58 = vmax.f32 %v3364_v11, 0.0  ;;  %v8895_v2 = vld [vmem:[%s13166_s3 + $0x64] ss:$16 sps:$4 sm:$0xff]   ;;  %v8893_v9 = vld [vmem:[%s13166_s3 + $0x60] ss:$16 sps:$4 sm:$0xff]  }
 0x1f4   :  { %3862 = vmatpush2.bf16.msra.mxu1 %v8307_v17  ;;  %v8872_v17 = vld [vmem:[%s13166_s3 + $0x2e0] ss:$16 sps:$4 sm:$0xff]   ;;  %v3883_v19 = vmax.f32 %v3274_v24, 0.0 }
 0x1f5   :  { %3863 = vmatprep.subr.bf16.mxu1 %v8292_v22  ;;  %v8880_v22 = vld [vmem:[%s13166_s3 + $0x2c4] ss:$16 sps:$4 sm:$0xff]   ;;  %v11412_v36 = vpack.c.bf16 %v3901_v58, %v3885_v25  ;;  %v8896_v11 = vld [vmem:[%s13166_s3 + $0x260] ss:$16 sps:$4 sm:$0xff]  }
 0x1f6   :  { %3821 = vmatpush2.bf16.msra.mxu0 %v8035_v63  ;;  %v11401_v63 = vpop.f32.mrf.mxu1  ;;  %v8899_v24 = vld [vmem:[%s13166_s3 + $0x40] ss:$16 sps:$4 sm:$0xff]   ;;  %v8922_v25 = vld [vmem:[%s13166_s3 + $0x3e4] ss:$16 sps:$4 sm:$0xff]  }
 0x1f7   :  { %3822 = vmatprep.subr.bf16.mxu0 %v8020_v33  ;;  %v8911_v58 = vld [vmem:[%s13166_s3] ss:$16 sps:$4 sm:$0xff]  }
 0x1f8   :  { %3864 = vmatpush2.bf16.msra.mxu1 %v8291_v29  ;;  %v11403_v29 = vpack.c.bf16 %v3899_v14, %v3883_v19  ;;  %v8908_v14 = vld [vmem:[%s13166_s3 + $0x220] ss:$16 sps:$4 sm:$0xff]   ;;  %v8919_v19 = vld [vmem:[%s13166_s3 + $0x1e4] ss:$16 sps:$4 sm:$0xff]  }
 0x1f9   :  { %3865 = vmatprep.subr.bf16.mxu1 %v8276_v39 }
 0x1fa   :  { %3823 = vmatpush2.bf16.msra.mxu0 %v8019_v46  ;;  %v8883_v46 = vld [vmem:[%s13166_s3 + $0xa4] ss:$16 sps:$4 sm:$0xff]  }
 0x1fb   :  { %3824 = vmatprep.subr.bf16.mxu0 %v8004_v53 }
 0x1fc   :  { %3866 = vmatpush2.bf16.msra.mxu1 %v8275_v51 }
 0x1fd   :  { %3867 = vmatprep.subr.bf16.mxu1 %v8260_v59  ;;  %v8892_v59 = vld [vmem:[%s13166_s3 + $0x284] ss:$16 sps:$4 sm:$0xff]  }
 0x1fe   :  { %3825 = vmatpush2.bf16.msra.mxu0 %v8003_v1  ;;  %v8890_v1 = vld [vmem:[%s13166_s3 + $0x280] ss:$16 sps:$4 sm:$0xff]  }
 0x1ff   :  { %3826 = vmatprep.subr.bf16.mxu0 %v7988_v6 }
 0x200   :  { %3868 = vmatpush2.bf16.msra.mxu1 %v8259_v4 }
 0x201   :  { %3869 = vmatprep.subr.bf16.mxu1 %v8244_v8 }
 0x202   :  { %3827 = vmatpush2.bf16.msra.mxu0 %v7987_v28  ;;  %v8901_v28 = vld [vmem:[%s13166_s3 + $0x44] ss:$16 sps:$4 sm:$0xff]  }
 0x203   :  { %7024 = vmatprep.subr.bf16.mxu0 %v8871_v44  ;;  %v8902_v44 = vld [vmem:[%s13166_s3 + $0x240] ss:$16 sps:$4 sm:$0xff]  }
 0x204   :  { %3870 = vmatpush2.bf16.msra.mxu1 %v8243_v13  ;;  %v8904_v13 = vld [vmem:[%s13166_s3 + $0x244] ss:$16 sps:$4 sm:$0xff]  }
 0x205   :  { %7067 = vmatprep.subr.bf16.mxu1 %v8874_v7  ;;  %v3572_v33 = vpop.f32.mrf.mxu0  ;;  %3829 = vmatmul.mubr.bf16.vlgmr.msra.gmra.mxu0 %v9932_v20  ;;  %v8886_v20 = vld [vmem:[%s13166_s3 + $0x2a4] ss:$16 sps:$4 sm:$0xff]  }
 0x206   :  { %v3573_v39 = vadd.f32 %v3572_v33, %v589_v18  ;;  %7025 = vmatpush1.bf16.msra.mxu0 %v8869_v30  ;;  %7056 = vmatprep.mubr.bf16.mxu0 %v11403_v29  ;;  %v8905_v30 = vld [vmem:[%s13166_s3 + $0x20] ss:$16 sps:$4 sm:$0xff]   ;;  %v8910_v7 = vld [vmem:[%s13166_s3 + $0x224] ss:$16 sps:$4 sm:$0xff]  }
 0x207   :  { %v3615_v41 = vpop.f32.mrf.mxu1  ;;  %3872 = vmatmul.mubr.bf16.vlgmr.msra.gmra.mxu1 %v9940_v23  ;;  %v11422_v48 = vpop.f32.mrf.mxu0  ;;  %7026 = vmatprep.subr.bf16.mxu0 %v8877_v49  ;;  %v8914_v49 = vld [vmem:[%s13166_s3 + $0x200] ss:$16 sps:$4 sm:$0xff]  }
 0x208   :  { %7068 = vmatpush1.bf16.msra.mxu1 %v8872_v17  ;;  %v3616_v51 = vadd.f32 %v3615_v41, %v3573_v39  ;;  %7099 = vmatprep.mubr.bf16.mxu1 %v11412_v36  ;;  %v8913_v17 = vld [vmem:[%s13166_s3 + $0x4] ss:$16 sps:$4 sm:$0xff]   ;;  %v8920_v33 = vld [vmem:[%s13166_s3 + $0x3e0] ss:$16 sps:$4 sm:$0xff]  }
 0x209   :  { %v11425_v53 = vpop.f32.mrf.mxu1  ;;  %v3576_v23 = vpop.f32.mrf.mxu0  ;;  %7069 = vmatprep.subr.bf16.mxu1 %v8880_v22  ;;  %v8917_v22 = vld [vmem:[%s13166_s3 + $0x1e0] ss:$16 sps:$4 sm:$0xff]   ;;  %v8928_v39 = vld [vmem:[%s13166_s3 + $0x3c4] ss:$16 sps:$4 sm:$0xff]  }
 0x20a   :  { %v3577_v56 = vadd.f32 %v3576_v23, %v589_v18  ;;  %7027 = vmatpush1.bf16.msra.mxu0 %v8875_v45  ;;  %v3890_v4 = vmax.f32 %v3616_v51, 0.0  ;;  %v8916_v18 = vld [vmem:[%s13166_s3 + $0x204] ss:$16 sps:$4 sm:$0xff]   ;;  %v8926_v41 = vld [vmem:[%s13166_s3 + $0x3c0] ss:$16 sps:$4 sm:$0xff]  }
 0x20b   :  { %v3619_v60 = vpop.f32.mrf.mxu1  ;;  %7028 = vmatprep.subr.bf16.mxu0 %v8883_v46  ;;  %v8925_v45 = vld [vmem:[%s13166_s3 + $0x1c4] ss:$16 sps:$4 sm:$0xff]   ;;  %v8932_v23 = vld [vmem:[%s13166_s3 + $0x3a0] ss:$16 sps:$4 sm:$0xff]  }
 0x20c   :  { %7070 = vmatpush1.bf16.msra.mxu1 %v8878_v35  ;;  %v3620_v61 = vadd.f32 %v3619_v60, %v3577_v56  ;;  %v8923_v35 = vld [vmem:[%s13166_s3 + $0x1c0] ss:$16 sps:$4 sm:$0xff]   ;;  %v8931_v46 = vld [vmem:[%s13166_s3 + $0x1a4] ss:$16 sps:$4 sm:$0xff]  }
 0x20d   :  { %7071 = vmatprep.subr.bf16.mxu1 %v8886_v20  ;;  %v8929_v20 = vld [vmem:[%s13166_s3 + $0x1a0] ss:$16 sps:$4 sm:$0xff]   ;;  %v8934_v51 = vld [vmem:[%s13166_s3 + $0x3a4] ss:$16 sps:$4 sm:$0xff]  }
 0x20e   :  { %v3906_v6 = vmax.f32 %v3620_v61, 0.0  ;;  %7029 = vmatpush1.bf16.msra.mxu0 %v8881_v54  ;;  %v8937_v54 = vld [vmem:[%s13166_s3 + $0x184] ss:$16 sps:$4 sm:$0xff]   ;;  %v8941_v60 = vld [vmem:[%s13166_s3 + $0x160] ss:$16 sps:$4 sm:$0xff]  }
 0x20f   :  { %7030 = vmatprep.subr.bf16.mxu0 %v8889_v57  ;;  %v8940_v56 = vld [vmem:[%s13166_s3 + $0x384] ss:$16 sps:$4 sm:$0xff]   ;;  %v8938_v57 = vld [vmem:[%s13166_s3 + $0x380] ss:$16 sps:$4 sm:$0xff]  }
 0x210   :  { %7072 = vmatpush1.bf16.msra.mxu1 %v8884_v55  ;;  %v11451_v8 = vpack.c.bf16 %v3906_v6, %v3890_v4  ;;  %v8935_v55 = vld [vmem:[%s13166_s3 + $0x180] ss:$16 sps:$4 sm:$0xff]   ;;  %v8946_v61 = vld [vmem:[%s13166_s3 + $0x364] ss:$16 sps:$4 sm:$0xff]   ;;  %v584_v4 = vsub.s32 7, %v10506_v34 }
 0x211   :  { %7073 = vmatprep.subr.bf16.mxu1 %v8892_v59  ;;  %v8943_v59 = vld [vmem:[%s13166_s3 + $0x164] ss:$16 sps:$4 sm:$0xff]   ;;  %v8947_v6 = vld [vmem:[%s13166_s3 + $0x140] ss:$16 sps:$4 sm:$0xff]  }
 0x212   :  { %7031 = vmatpush1.bf16.msra.mxu0 %v8887_v62  ;;  %v576_v62 = vsub.s32 5, %v10506_v34  ;;  %v9246_v34 = vld [vmem:[%s13166_s3 + $0xf24] ss:$16 sps:$4 sm:$0xff]  }
 0x213   :  { %7032 = vmatprep.subr.bf16.mxu0 %v8895_v2  ;;  %v8949_v2 = vld [vmem:[%s13166_s3 + $0x144] ss:$16 sps:$4 sm:$0xff]  }
 0x214   :  { %7074 = vmatpush1.bf16.msra.mxu1 %v8890_v1  ;;  %v8944_v1 = vld [vmem:[%s13166_s3 + $0x360] ss:$16 sps:$4 sm:$0xff]  }
 0x215   :  { %7075 = vmatprep.subr.bf16.mxu1 %v8898_v38  ;;  %v8952_v38 = vld [vmem:[%s13166_s3 + $0x344] ss:$16 sps:$4 sm:$0xff]  }
 0x216   :  { %7033 = vmatpush1.bf16.msra.mxu0 %v8893_v9  ;;  %v9642_v9 = vld [vmem:[%s13165_s2] sm:$0xff] }
 0x217   :  { %7034 = vmatprep.subr.bf16.mxu0 %v8901_v28  ;;  %v8950_v28 = vld [vmem:[%s13166_s3 + $0x340] ss:$16 sps:$4 sm:$0xff]  }
 0x218   :  { %7076 = vmatpush1.bf16.msra.mxu1 %v8896_v11  ;;  %v577_v11 = vrot.slane %v9642_v9, %v576_v62 }
 0x219   :  { %7077 = vmatprep.subr.bf16.mxu1 %v8904_v13  ;;  %v585_v13 = vrot.slane %v9642_v9, %v584_v4  ;;  %v8977_v9 = vld [vmem:[%s13166_s3 + $0x4a0] ss:$16 sps:$4 sm:$0xff]  }
 0x21a   :  { %7035 = vmatpush1.bf16.msra.mxu0 %v8899_v24  ;;  %v8955_v24 = vld [vmem:[%s13166_s3 + $0x124] ss:$16 sps:$4 sm:$0xff]  }
 0x21b   :  { %7036 = vmatprep.subr.bf16.mxu0 %v8907_v31  ;;  %v8958_v31 = vld [vmem:[%s13166_s3 + $0x324] ss:$16 sps:$4 sm:$0xff]  }
 0x21c   :  { %7078 = vmatpush1.bf16.msra.mxu1 %v8902_v44  ;;  %v8953_v44 = vld [vmem:[%s13166_s3 + $0x120] ss:$16 sps:$4 sm:$0xff]  }
 0x21d   :  { %7079 = vmatprep.subr.bf16.mxu1 %v8910_v7  ;;  %v3493_v7 = vadd.f32 %v11396_v21, %v585_v13 }
 0x21e   :  { %7037 = vmatpush1.bf16.msra.mxu0 %v8905_v30  ;;  %v3407_v30 = vadd.f32 %v11180_v47, %v577_v11  ;;  %v8959_v47 = vld [vmem:[%s13166_s3 + $0x100] ss:$16 sps:$4 sm:$0xff]  }
 0x21f   :  { %7038 = vmatprep.subr.bf16.mxu0 %v8913_v17  ;;  %v8956_v17 = vld [vmem:[%s13166_s3 + $0x320] ss:$16 sps:$4 sm:$0xff]  }
 0x220   :  { %7080 = vmatpush1.bf16.msra.mxu1 %v8908_v14  ;;  %v3403_v14 = vadd.f32 %v10983_v42, %v577_v11  ;;  %v8964_v42 = vld [vmem:[%s13166_s3 + $0x304] ss:$16 sps:$4 sm:$0xff]   ;;  %v3450_v21 = vadd.f32 %v11182_v52, %v3407_v30  ;;  %v8980_v11 = vld [vmem:[%s13166_s3 + $0x6a0] ss:$16 sps:$4 sm:$0xff]  }
 0x221   :  { %7081 = vmatprep.subr.bf16.mxu1 %v8916_v18  ;;  %v3489_v18 = vadd.f32 %v11198_v0, %v585_v13  ;;  %v8962_v0 = vld [vmem:[%s13166_s3 + $0x300] ss:$16 sps:$4 sm:$0xff]   ;;  %v8988_v13 = vld [vmem:[%s13166_s3 + $0x684] ss:$16 sps:$4 sm:$0xff]  }
 0x222   :  { %7039 = vmatpush1.bf16.msra.mxu0 %v8911_v58  ;;  %v8961_v58 = vld [vmem:[%s13166_s3 + $0x104] ss:$16 sps:$4 sm:$0xff]   ;;  %v8983_v30 = vld [vmem:[%s13166_s3 + $0x480] ss:$16 sps:$4 sm:$0xff]  }
 0x223   :  { %7040 = vmatprep.subr.bf16.mxu0 %v8919_v19  ;;  %v3446_v19 = vadd.f32 %v10985_v50, %v3403_v14  ;;  %v3532_v52 = vadd.f32 %v11200_v5, %v3489_v18  ;;  %v8965_v50 = vld [vmem:[%s13166_s3 + $0x4e0] ss:$16 sps:$4 sm:$0xff]   ;;  %v8991_v14 = vld [vmem:[%s13166_s3 + $0x464] ss:$16 sps:$4 sm:$0xff]  }
 0x224   :  { %7082 = vmatpush1.bf16.msra.mxu1 %v8914_v49  ;;  %v3536_v49 = vadd.f32 %v11401_v63, %v3493_v7  ;;  %v3903_v63 = vmax.f32 %v3450_v21, 0.0  ;;  %v8986_v7 = vld [vmem:[%s13166_s3 + $0x680] ss:$16 sps:$4 sm:$0xff]   ;;  %v8994_v18 = vld [vmem:[%s13166_s3 + $0x664] ss:$16 sps:$4 sm:$0xff]  }
 0x225   :  { %7083 = vmatprep.subr.bf16.mxu1 %v8922_v25  ;;  %v8970_v25 = vld [vmem:[%s13166_s3 + $0x6e4] ss:$16 sps:$4 sm:$0xff]   ;;  %v3887_v5 = vmax.f32 %v3446_v19, 0.0  ;;  %v8992_v21 = vld [vmem:[%s13166_s3 + $0x660] ss:$16 sps:$4 sm:$0xff]  }
 0x226   :  { %7041 = vmatpush2.bf16.msra.mxu0 %v8917_v22  ;;  %v8967_v22 = vld [vmem:[%s13166_s3 + $0x4e4] ss:$16 sps:$4 sm:$0xff]  }
 0x227   :  { %7042 = vmatprep.subr.bf16.mxu0 %v8925_v45  ;;  %v3905_v45 = vmax.f32 %v3536_v49, 0.0  ;;  %v8997_v49 = vld [vmem:[%s13166_s3 + $0x444] ss:$16 sps:$4 sm:$0xff]  }
 0x228   :  { %7084 = vmatpush2.bf16.msra.mxu1 %v8920_v33  ;;  %v8968_v33 = vld [vmem:[%s13166_s3 + $0x6e0] ss:$16 sps:$4 sm:$0xff]   ;;  %v9000_v19 = vld [vmem:[%s13166_s3 + $0x644] ss:$16 sps:$4 sm:$0xff]  }
 0x229   :  { %7085 = vmatprep.subr.bf16.mxu1 %v8928_v39  ;;  %v8973_v39 = vld [vmem:[%s13166_s3 + $0x4c4] ss:$16 sps:$4 sm:$0xff]  }
 0x22a   :  { %7043 = vmatpush2.bf16.msra.mxu0 %v8923_v35  ;;  %v597_v35 = vrot.slane %v11376_v3, %v10733_v16 }
 0x22b   :  { %7044 = vmatprep.subr.bf16.mxu0 %v8931_v46  ;;  %v8976_v46 = vld [vmem:[%s13166_s3 + $0x6c4] ss:$16 sps:$4 sm:$0xff]  }
 0x22c   :  { %7086 = vmatpush2.bf16.msra.mxu1 %v8926_v41  ;;  %v11625_v41 = vpop.f32.mrf.mxu0 }
 0x22d   :  { %7087 = vmatprep.subr.bf16.mxu1 %v8934_v51  ;;  %v11630_v51 = vpop.f32.mrf.mxu1 }
 0x22e   :  { %7045 = vmatpush2.bf16.msra.mxu0 %v8929_v20  ;;  %v3889_v20 = vmax.f32 %v3532_v52, 0.0  ;;  %v9001_v52 = vld [vmem:[%s13166_s3 + $0x420] ss:$16 sps:$4 sm:$0xff]  }
 0x22f   :  { %7046 = vmatprep.subr.bf16.mxu0 %v8937_v54  ;;  %v8971_v54 = vld [vmem:[%s13166_s3 + $0x4c0] ss:$16 sps:$4 sm:$0xff]  }
 0x230   :  { %7088 = vmatpush2.bf16.msra.mxu1 %v8932_v23  ;;  %v11632_v23 = vpack.c.bf16 %v3903_v63, %v3887_v5  ;;  %v9004_v63 = vld [vmem:[%s13166_s3 + $0x620] ss:$16 sps:$4 sm:$0xff]   ;;  %v9015_v5 = vld [vmem:[%s13166_s3 + $0x5e4] ss:$16 sps:$4 sm:$0xff]  }
 0x231   :  { %7089 = vmatprep.subr.bf16.mxu1 %v8940_v56  ;;  %v11641_v56 = vpack.c.bf16 %v3905_v45, %v3889_v20  ;;  %v9007_v45 = vld [vmem:[%s13166_s3 + $0x400] ss:$16 sps:$4 sm:$0xff]   ;;  %v9018_v20 = vld [vmem:[%s13166_s3 + $0x7e4] ss:$16 sps:$4 sm:$0xff]  }
 0x232   :  { %7047 = vmatpush2.bf16.msra.mxu0 %v8935_v55  ;;  %v8974_v55 = vld [vmem:[%s13166_s3 + $0x6c0] ss:$16 sps:$4 sm:$0xff]  }
 0x233   :  { %7048 = vmatprep.subr.bf16.mxu0 %v8943_v59 }
 0x234   :  { %7090 = vmatpush2.bf16.msra.mxu1 %v8938_v57 }
 0x235   :  { %7091 = vmatprep.subr.bf16.mxu1 %v8946_v61  ;;  %v8982_v61 = vld [vmem:[%s13166_s3 + $0x6a4] ss:$16 sps:$4 sm:$0xff]  }
 0x236   :  { %7049 = vmatpush2.bf16.msra.mxu0 %v8941_v60  ;;  %v8979_v60 = vld [vmem:[%s13166_s3 + $0x4a4] ss:$16 sps:$4 sm:$0xff]  }
 0x237   :  { %7050 = vmatprep.subr.bf16.mxu0 %v8949_v2 }
 0x238   :  { %7092 = vmatpush2.bf16.msra.mxu1 %v8944_v1 }
 0x239   :  { %7093 = vmatprep.subr.bf16.mxu1 %v8952_v38 }
 0x23a   :  { %7051 = vmatpush2.bf16.msra.mxu0 %v8947_v6 }
 0x23b   :  { %7052 = vmatprep.subr.bf16.mxu0 %v8955_v24  ;;  %v8985_v24 = vld [vmem:[%s13166_s3 + $0x484] ss:$16 sps:$4 sm:$0xff]  }
 0x23c   :  { %7094 = vmatpush2.bf16.msra.mxu1 %v8950_v28 }
 0x23d   :  { %7095 = vmatprep.subr.bf16.mxu1 %v8958_v31 }
 0x23e   :  { %7053 = vmatpush2.bf16.msra.mxu0 %v8953_v44 }
 0x23f   :  { %7054 = vmatprep.subr.bf16.mxu0 %v8961_v58 }
 0x240   :  { %7096 = vmatpush2.bf16.msra.mxu1 %v8956_v17 }
 0x241   :  { %7097 = vmatprep.subr.bf16.mxu1 %v8964_v42  ;;  %v8989_v42 = vld [vmem:[%s13166_s3 + $0x460] ss:$16 sps:$4 sm:$0xff]  }
 0x242   :  { %7055 = vmatpush2.bf16.msra.mxu0 %v8959_v47 }
 0x243   :  { %7110 = vmatprep.subr.bf16.mxu0 %v8967_v22  ;;  %v8998_v22 = vld [vmem:[%s13166_s3 + $0x640] ss:$16 sps:$4 sm:$0xff]  }
 0x244   :  { %7098 = vmatpush2.bf16.msra.mxu1 %v8962_v0  ;;  %v8995_v0 = vld [vmem:[%s13166_s3 + $0x440] ss:$16 sps:$4 sm:$0xff]  }
 0x245   :  { %7153 = vmatprep.subr.bf16.mxu1 %v8970_v25  ;;  %v3658_v3 = vpop.f32.mrf.mxu0  ;;  %7057 = vmatmul.mubr.bf16.vlgmr.msra.gmra.mxu0 %v10586_v32  ;;  %v9003_v25 = vld [vmem:[%s13166_s3 + $0x424] ss:$16 sps:$4 sm:$0xff]  }
 0x246   :  { %v3659_v57 = vadd.f32 %v3658_v3, %v597_v35  ;;  %7111 = vmatpush1.bf16.msra.mxu0 %v8965_v50  ;;  %7142 = vmatprep.mubr.bf16.mxu0 %v11632_v23  ;;  %v9006_v50 = vld [vmem:[%s13166_s3 + $0x624] ss:$16 sps:$4 sm:$0xff]   ;;  %v9016_v3 = vld [vmem:[%s13166_s3 + $0x7e0] ss:$16 sps:$4 sm:$0xff]  }
 0x247   :  { %v3701_v59 = vpop.f32.mrf.mxu1  ;;  %7100 = vmatmul.mubr.bf16.vlgmr.msra.gmra.mxu1 %v10797_v12  ;;  %v11651_v1 = vpop.f32.mrf.mxu0  ;;  %7112 = vmatprep.subr.bf16.mxu0 %v8973_v39  ;;  %v9010_v39 = vld [vmem:[%s13166_s3 + $0x600] ss:$16 sps:$4 sm:$0xff]  }
 0x248   :  { %7154 = vmatpush1.bf16.msra.mxu1 %v8968_v33  ;;  %v3702_v2 = vadd.f32 %v3701_v59, %v3659_v57  ;;  %7185 = vmatprep.mubr.bf16.mxu1 %v11641_v56  ;;  %v9009_v33 = vld [vmem:[%s13166_s3 + $0x404] ss:$16 sps:$4 sm:$0xff]   ;;  %v9022_v59 = vld [vmem:[%s13166_s3 + $0x7c0] ss:$16 sps:$4 sm:$0xff]  }
 0x249   :  { %v11654_v6 = vpop.f32.mrf.mxu1  ;;  %v3662_v38 = vpop.f32.mrf.mxu0  ;;  %7155 = vmatprep.subr.bf16.mxu1 %v8976_v46  ;;  %v9013_v46 = vld [vmem:[%s13166_s3 + $0x5e0] ss:$16 sps:$4 sm:$0xff]   ;;  %v9024_v57 = vld [vmem:[%s13166_s3 + $0x7c4] ss:$16 sps:$4 sm:$0xff]  }
 0x24a   :  { %v3663_v28 = vadd.f32 %v3662_v38, %v597_v35  ;;  %7113 = vmatpush1.bf16.msra.mxu0 %v8971_v54  ;;  %v3892_v17 = vmax.f32 %v3702_v2, 0.0  ;;  %v9012_v35 = vld [vmem:[%s13166_s3 + $0x604] ss:$16 sps:$4 sm:$0xff]   ;;  %v9028_v38 = vld [vmem:[%s13166_s3 + $0x7a0] ss:$16 sps:$4 sm:$0xff]  }
 0x24b   :  { %v3705_v44 = vpop.f32.mrf.mxu1  ;;  %7114 = vmatprep.subr.bf16.mxu0 %v8979_v60  ;;  %v9021_v54 = vld [vmem:[%s13166_s3 + $0x5c4] ss:$16 sps:$4 sm:$0xff]  }
 0x24c   :  { %7156 = vmatpush1.bf16.msra.mxu1 %v8974_v55  ;;  %v3706_v31 = vadd.f32 %v3705_v44, %v3663_v28  ;;  %v9019_v55 = vld [vmem:[%s13166_s3 + $0x5c0] ss:$16 sps:$4 sm:$0xff]   ;;  %v9027_v60 = vld [vmem:[%s13166_s3 + $0x5a4] ss:$16 sps:$4 sm:$0xff]  }
 0x24d   :  { %7157 = vmatprep.subr.bf16.mxu1 %v8982_v61  ;;  %v9025_v61 = vld [vmem:[%s13166_s3 + $0x5a0] ss:$16 sps:$4 sm:$0xff]   ;;  %v9030_v2 = vld [vmem:[%s13166_s3 + $0x7a4] ss:$16 sps:$4 sm:$0xff]  }
 0x24e   :  { %v3908_v58 = vmax.f32 %v3706_v31, 0.0  ;;  %7115 = vmatpush1.bf16.msra.mxu0 %v8977_v9  ;;  %v9033_v9 = vld [vmem:[%s13166_s3 + $0x584] ss:$16 sps:$4 sm:$0xff]   ;;  %v9037_v44 = vld [vmem:[%s13166_s3 + $0x560] ss:$16 sps:$4 sm:$0xff]  }
 0x24f   :  { %7116 = vmatprep.subr.bf16.mxu0 %v8985_v24  ;;  %v9036_v28 = vld [vmem:[%s13166_s3 + $0x784] ss:$16 sps:$4 sm:$0xff]   ;;  %v9034_v24 = vld [vmem:[%s13166_s3 + $0x780] ss:$16 sps:$4 sm:$0xff]  }
 0x250   :  { %7158 = vmatpush1.bf16.msra.mxu1 %v8980_v11  ;;  %v11680_v47 = vpack.c.bf16 %v3908_v58, %v3892_v17  ;;  %v9031_v11 = vld [vmem:[%s13166_s3 + $0x580] ss:$16 sps:$4 sm:$0xff]   ;;  %v9042_v31 = vld [vmem:[%s13166_s3 + $0x764] ss:$16 sps:$4 sm:$0xff]   ;;  %v11796_v58 = vld [vmem:[%s13165_s2 + $0x8] sm:$0xff] }
 0x251   :  { %7159 = vmatprep.subr.bf16.mxu1 %v8988_v13  ;;  %v9039_v13 = vld [vmem:[%s13166_s3 + $0x564] ss:$16 sps:$4 sm:$0xff]  }
 0x252   :  { %7117 = vmatpush1.bf16.msra.mxu0 %v8983_v30  ;;  %v9040_v30 = vld [vmem:[%s13166_s3 + $0x760] ss:$16 sps:$4 sm:$0xff]   ;;  %v9048_v17 = vld [vmem:[%s13166_s3 + $0x744] ss:$16 sps:$4 sm:$0xff]  }
 0x253   :  { %7118 = vmatprep.subr.bf16.mxu0 %v8991_v14  ;;  %v9043_v14 = vld [vmem:[%s13166_s3 + $0x540] ss:$16 sps:$4 sm:$0xff]  }
 0x254   :  { %7160 = vmatpush1.bf16.msra.mxu1 %v8986_v7  ;;  %v9045_v7 = vld [vmem:[%s13166_s3 + $0x544] ss:$16 sps:$4 sm:$0xff]  }
 0x255   :  { %7161 = vmatprep.subr.bf16.mxu1 %v8994_v18  ;;  %v593_v18 = vrot.slane %v11796_v58, %v11333_v27 }
 0x256   :  { %7119 = vmatpush1.bf16.msra.mxu0 %v8989_v42  ;;  %v3664_v42 = vpop.f32.mrf.mxu0 }
 0x257   :  { %7120 = vmatprep.subr.bf16.mxu0 %v8997_v49  ;;  %v9051_v49 = vld [vmem:[%s13166_s3 + $0x524] ss:$16 sps:$4 sm:$0xff]  }
 0x258   :  { %7162 = vmatpush1.bf16.msra.mxu1 %v8992_v21  ;;  %v9046_v21 = vld [vmem:[%s13166_s3 + $0x740] ss:$16 sps:$4 sm:$0xff]  }
 0x259   :  { %7163 = vmatprep.subr.bf16.mxu1 %v9000_v19  ;;  %v601_v19 = vrot.slane %v11796_v58, %v11345_v37 }
 0x25a   :  { %7121 = vmatpush1.bf16.msra.mxu0 %v8995_v0  ;;  %v9049_v0 = vld [vmem:[%s13166_s3 + $0x520] ss:$16 sps:$4 sm:$0xff]  }
 0x25b   :  { %7122 = vmatprep.subr.bf16.mxu0 %v9003_v25  ;;  %v3579_v25 = vadd.f32 %v11625_v41, %v593_v18  ;;  %v9055_v41 = vld [vmem:[%s13166_s3 + $0x500] ss:$16 sps:$4 sm:$0xff]  }
 0x25c   :  { %7164 = vmatpush1.bf16.msra.mxu1 %v8998_v22  ;;  %v9054_v22 = vld [vmem:[%s13166_s3 + $0x724] ss:$16 sps:$4 sm:$0xff]  }
 0x25d   :  { %7165 = vmatprep.subr.bf16.mxu1 %v9006_v50  ;;  %v3575_v50 = vadd.f32 %v11422_v48, %v593_v18  ;;  %v9060_v48 = vld [vmem:[%s13166_s3 + $0x704] ss:$16 sps:$4 sm:$0xff]  }
 0x25e   :  { %7123 = vmatpush1.bf16.msra.mxu0 %v9001_v52  ;;  %v3665_v52 = vadd.f32 %v3664_v42, %v601_v19  ;;  %v9073_v42 = vld [vmem:[%s13166_s3 + $0x8a0] ss:$16 sps:$4 sm:$0xff]  }
 0x25f   :  { %7124 = vmatprep.subr.bf16.mxu0 %v9009_v33  ;;  %v9057_v33 = vld [vmem:[%s13166_s3 + $0x504] ss:$16 sps:$4 sm:$0xff]  }
 0x260   :  { %7166 = vmatpush1.bf16.msra.mxu1 %v9004_v63  ;;  %v9052_v63 = vld [vmem:[%s13166_s3 + $0x720] ss:$16 sps:$4 sm:$0xff]  }
 0x261   :  { %7167 = vmatprep.subr.bf16.mxu1 %v9012_v35  ;;  %v3622_v35 = vadd.f32 %v11630_v51, %v3579_v25 }
 0x262   :  { %7125 = vmatpush1.bf16.msra.mxu0 %v9007_v45  ;;  %v3661_v45 = vadd.f32 %v11651_v1, %v601_v19  ;;  %v9058_v1 = vld [vmem:[%s13166_s3 + $0x700] ss:$16 sps:$4 sm:$0xff]   ;;  %v9081_v19 = vld [vmem:[%s13166_s3 + $0x884] ss:$16 sps:$4 sm:$0xff]  }
 0x263   :  { %7126 = vmatprep.subr.bf16.mxu0 %v9015_v5 }
 0x264   :  { %7168 = vmatpush1.bf16.msra.mxu1 %v9010_v39  ;;  %v3707_v39 = vpop.f32.mrf.mxu1  ;;  %v3704_v51 = vadd.f32 %v11654_v6, %v3661_v45 }
 0x265   :  { %7169 = vmatprep.subr.bf16.mxu1 %v9018_v20  ;;  %v3708_v5 = vadd.f32 %v3707_v39, %v3665_v52  ;;  %v9063_v20 = vld [vmem:[%s13166_s3 + $0x8e4] ss:$16 sps:$4 sm:$0xff]  }
 0x266   :  { %7127 = vmatpush2.bf16.msra.mxu0 %v9013_v46  ;;  %v3618_v46 = vadd.f32 %v11425_v53, %v3575_v50  ;;  %v9061_v53 = vld [vmem:[%s13166_s3 + $0x8e0] ss:$16 sps:$4 sm:$0xff]   ;;  %v3893_v6 = vmax.f32 %v3704_v51, 0.0  ;;  %v9093_v39 = vld [vmem:[%s13166_s3 + $0x844] ss:$16 sps:$4 sm:$0xff]  }
 0x267   :  { %7128 = vmatprep.subr.bf16.mxu0 %v9021_v54  ;;  %v3907_v54 = vmax.f32 %v3622_v35, 0.0  ;;  %v9079_v50 = vld [vmem:[%s13166_s3 + $0x880] ss:$16 sps:$4 sm:$0xff]  }
 0x268   :  { %7170 = vmatpush2.bf16.msra.mxu1 %v9016_v3  ;;  %v9066_v3 = vld [vmem:[%s13166_s3 + $0xae4] ss:$16 sps:$4 sm:$0xff]   ;;  %v9088_v35 = vld [vmem:[%s13166_s3 + $0xa60] ss:$16 sps:$4 sm:$0xff]  }
 0x269   :  { %7171 = vmatprep.subr.bf16.mxu1 %v9024_v57  ;;  %v3909_v57 = vmax.f32 %v3708_v5, 0.0  ;;  %v9096_v5 = vld [vmem:[%s13166_s3 + $0xa44] ss:$16 sps:$4 sm:$0xff]   ;;  %v9097_v51 = vld [vmem:[%s13166_s3 + $0x820] ss:$16 sps:$4 sm:$0xff]  }
 0x26a   :  { %7129 = vmatpush2.bf16.msra.mxu0 %v9019_v55  ;;  %v9064_v55 = vld [vmem:[%s13166_s3 + $0xae0] ss:$16 sps:$4 sm:$0xff]  }
 0x26b   :  { %7130 = vmatprep.subr.bf16.mxu0 %v9027_v60  ;;  %v3891_v60 = vmax.f32 %v3618_v46, 0.0  ;;  %v9091_v46 = vld [vmem:[%s13166_s3 + $0x840] ss:$16 sps:$4 sm:$0xff]  }
 0x26c   :  { %7172 = vmatpush2.bf16.msra.mxu1 %v9022_v59  ;;  %v605_v59 = vrot.slane %v11796_v58, %v572_v10 }
 0x26d   :  { %7173 = vmatprep.subr.bf16.mxu1 %v9030_v2  ;;  %v11853_v2 = vpack.c.bf16 %v3907_v54, %v3891_v60  ;;  %v9105_v54 = vld [vmem:[%s13166_s3 + $0x804] ss:$16 sps:$4 sm:$0xff]  }
 0x26e   :  { %7131 = vmatpush2.bf16.msra.mxu0 %v9025_v61  ;;  %v9069_v61 = vld [vmem:[%s13166_s3 + $0x8c4] ss:$16 sps:$4 sm:$0xff]  }
 0x26f   :  { %7132 = vmatprep.subr.bf16.mxu0 %v9033_v9  ;;  %v9072_v9 = vld [vmem:[%s13166_s3 + $0xac4] ss:$16 sps:$4 sm:$0xff]  }
 0x270   :  { %7174 = vmatpush2.bf16.msra.mxu1 %v9028_v38  ;;  %v9111_v60 = vld [vmem:[%s13166_s3 + $0x9e4] ss:$16 sps:$4 sm:$0xff]  }
 0x271   :  { %7175 = vmatprep.subr.bf16.mxu1 %v9036_v28 }
 0x272   :  { %7133 = vmatpush2.bf16.msra.mxu0 %v9031_v11  ;;  %v11859_v11 = vpack.c.bf16 %v3909_v57, %v3893_v6  ;;  %v9103_v57 = vld [vmem:[%s13166_s3 + $0x800] ss:$16 sps:$4 sm:$0xff]   ;;  %v9114_v6 = vld [vmem:[%s13166_s3 + $0xbe4] ss:$16 sps:$4 sm:$0xff]  }
 0x273   :  { %7134 = vmatprep.subr.bf16.mxu0 %v9039_v13 }
 0x274   :  { %7176 = vmatpush2.bf16.msra.mxu1 %v9034_v24  ;;  %v9067_v24 = vld [vmem:[%s13166_s3 + $0x8c0] ss:$16 sps:$4 sm:$0xff]  }
 0x275   :  { %7177 = vmatprep.subr.bf16.mxu1 %v9042_v31  ;;  %v9075_v31 = vld [vmem:[%s13166_s3 + $0x8a4] ss:$16 sps:$4 sm:$0xff]  }
 0x276   :  { %7135 = vmatpush2.bf16.msra.mxu0 %v9037_v44  ;;  %v9070_v44 = vld [vmem:[%s13166_s3 + $0xac0] ss:$16 sps:$4 sm:$0xff]  }
 0x277   :  { %7136 = vmatprep.subr.bf16.mxu0 %v9045_v7 }
 0x278   :  { %7178 = vmatpush2.bf16.msra.mxu1 %v9040_v30 }
 0x279   :  { %7179 = vmatprep.subr.bf16.mxu1 %v9048_v17 }
 0x27a   :  { %7137 = vmatpush2.bf16.msra.mxu0 %v9043_v14  ;;  %v9078_v14 = vld [vmem:[%s13166_s3 + $0xaa4] ss:$16 sps:$4 sm:$0xff]  }
 0x27b   :  { %7138 = vmatprep.subr.bf16.mxu0 %v9051_v49  ;;  %v9076_v49 = vld [vmem:[%s13166_s3 + $0xaa0] ss:$16 sps:$4 sm:$0xff]  }
 0x27c   :  { %7180 = vmatpush2.bf16.msra.mxu1 %v9046_v21 }
 0x27d   :  { %7181 = vmatprep.subr.bf16.mxu1 %v9054_v22  ;;  %v9084_v22 = vld [vmem:[%s13166_s3 + $0xa84] ss:$16 sps:$4 sm:$0xff]  }
 0x27e   :  { %7139 = vmatpush2.bf16.msra.mxu0 %v9049_v0 }
 0x27f   :  { %7140 = vmatprep.subr.bf16.mxu0 %v9057_v33  ;;  %v9087_v33 = vld [vmem:[%s13166_s3 + $0x864] ss:$16 sps:$4 sm:$0xff]  }
 0x280   :  { %7182 = vmatpush2.bf16.msra.mxu1 %v9052_v63  ;;  %v9082_v63 = vld [vmem:[%s13166_s3 + $0xa80] ss:$16 sps:$4 sm:$0xff]  }
 0x281   :  { %7183 = vmatprep.subr.bf16.mxu1 %v9060_v48  ;;  %v9085_v48 = vld [vmem:[%s13166_s3 + $0x860] ss:$16 sps:$4 sm:$0xff]  }
 0x282   :  { %7141 = vmatpush2.bf16.msra.mxu0 %v9055_v41  ;;  %v9090_v41 = vld [vmem:[%s13166_s3 + $0xa64] ss:$16 sps:$4 sm:$0xff]  }
 0x283   :  { %7196 = vmatprep.subr.bf16.mxu0 %v9063_v20  ;;  %v9099_v20 = vld [vmem:[%s13166_s3 + $0x824] ss:$16 sps:$4 sm:$0xff]  }
 0x284   :  { %7184 = vmatpush2.bf16.msra.mxu1 %v9058_v1  ;;  %v9094_v1 = vld [vmem:[%s13166_s3 + $0xa40] ss:$16 sps:$4 sm:$0xff]  }
 0x285   :  { %7239 = vmatprep.subr.bf16.mxu1 %v9066_v3  ;;  %v3744_v38 = vpop.f32.mrf.mxu0  ;;  %7143 = vmatmul.mubr.bf16.vlgmr.msra.gmra.mxu0 %v11013_v15  ;;  %v9102_v3 = vld [vmem:[%s13166_s3 + $0xa24] ss:$16 sps:$4 sm:$0xff]  }
 0x286   :  { %v3745_v10 = vadd.f32 %v3744_v38, %v605_v59  ;;  %7197 = vmatpush1.bf16.msra.mxu0 %v9061_v53  ;;  %7228 = vmatprep.mubr.bf16.mxu0 %v11853_v2  ;;  %v9100_v53 = vld [vmem:[%s13166_s3 + $0xa20] ss:$16 sps:$4 sm:$0xff]  }
 0x287   :  { %v3787_v28 = vpop.f32.mrf.mxu1  ;;  %7186 = vmatmul.mubr.bf16.vlgmr.msra.gmra.mxu1 %v11228_v40  ;;  %v11866_v13 = vpop.f32.mrf.mxu0  ;;  %7198 = vmatprep.subr.bf16.mxu0 %v9069_v61  ;;  %v9109_v61 = vld [vmem:[%s13166_s3 + $0x9e0] ss:$16 sps:$4 sm:$0xff]  }
 0x288   :  { %7240 = vmatpush1.bf16.msra.mxu1 %v9064_v55  ;;  %v3788_v30 = vadd.f32 %v3787_v28, %v3745_v10  ;;  %7271 = vmatprep.mubr.bf16.mxu1 %v11859_v11  ;;  %v9108_v55 = vld [vmem:[%s13166_s3 + $0xa04] ss:$16 sps:$4 sm:$0xff]   ;;  %v9112_v38 = vld [vmem:[%s13166_s3 + $0xbe0] ss:$16 sps:$4 sm:$0xff]  }
 0x289   :  { %v11875_v7 = vpop.f32.mrf.mxu1  ;;  %v3748_v17 = vpop.f32.mrf.mxu0  ;;  %7241 = vmatprep.subr.bf16.mxu1 %v9072_v9  ;;  %v9117_v9 = vld [vmem:[%s13166_s3 + $0x9c4] ss:$16 sps:$4 sm:$0xff]   ;;  %v9115_v28 = vld [vmem:[%s13166_s3 + $0x9c0] ss:$16 sps:$4 sm:$0xff]  }
 0x28a   :  { %v3749_v18 = vadd.f32 %v3748_v17, %v605_v59  ;;  %7199 = vmatpush1.bf16.msra.mxu0 %v9067_v24  ;;  %v3894_v25 = vmax.f32 %v3788_v30, 0.0  ;;  %v9106_v59 = vld [vmem:[%s13166_s3 + $0xa00] ss:$16 sps:$4 sm:$0xff]   ;;  %v9120_v10 = vld [vmem:[%s13166_s3 + $0xbc4] ss:$16 sps:$4 sm:$0xff]  }
 0x28b   :  { %v3791_v21 = vpop.f32.mrf.mxu1  ;;  %7200 = vmatprep.subr.bf16.mxu0 %v9075_v31  ;;  %v9118_v24 = vld [vmem:[%s13166_s3 + $0xbc0] ss:$16 sps:$4 sm:$0xff]   ;;  %v9126_v31 = vld [vmem:[%s13166_s3 + $0xba4] ss:$16 sps:$4 sm:$0xff]  }
 0x28c   :  { %7242 = vmatpush1.bf16.msra.mxu1 %v9070_v44  ;;  %v3792_v0 = vadd.f32 %v3791_v21, %v3749_v18  ;;  %v9123_v44 = vld [vmem:[%s13166_s3 + $0x9a4] ss:$16 sps:$4 sm:$0xff]   ;;  %v9121_v30 = vld [vmem:[%s13166_s3 + $0x9a0] ss:$16 sps:$4 sm:$0xff]  }
 0x28d   :  { %7243 = vmatprep.subr.bf16.mxu1 %v9078_v14  ;;  %v9124_v14 = vld [vmem:[%s13166_s3 + $0xba0] ss:$16 sps:$4 sm:$0xff]   ;;  %v9129_v17 = vld [vmem:[%s13166_s3 + $0x984] ss:$16 sps:$4 sm:$0xff]  }
 0x28e   :  { %v3910_v52 = vmax.f32 %v3792_v0, 0.0  ;;  %7201 = vmatpush1.bf16.msra.mxu0 %v9073_v42  ;;  %v9132_v18 = vld [vmem:[%s13166_s3 + $0xb84] ss:$16 sps:$4 sm:$0xff]   ;;  %v9127_v42 = vld [vmem:[%s13166_s3 + $0x980] ss:$16 sps:$4 sm:$0xff]  }
 0x28f   :  { %7202 = vmatprep.subr.bf16.mxu0 %v9081_v19  ;;  %v9130_v21 = vld [vmem:[%s13166_s3 + $0xb80] ss:$16 sps:$4 sm:$0xff]   ;;  %v9138_v19 = vld [vmem:[%s13166_s3 + $0xb64] ss:$16 sps:$4 sm:$0xff]  }
 0x290   :  { %7244 = vmatpush1.bf16.msra.mxu1 %v9076_v49  ;;  %v11901_v45 = vpack.c.bf16 %v3910_v52, %v3894_v25  ;;  %v9135_v49 = vld [vmem:[%s13166_s3 + $0x964] ss:$16 sps:$4 sm:$0xff]   ;;  %v9133_v0 = vld [vmem:[%s13166_s3 + $0x960] ss:$16 sps:$4 sm:$0xff]  }
 0x291   :  { %7245 = vmatprep.subr.bf16.mxu1 %v9084_v22  ;;  %v9136_v22 = vld [vmem:[%s13166_s3 + $0xb60] ss:$16 sps:$4 sm:$0xff]   ;;  %v9141_v25 = vld [vmem:[%s13166_s3 + $0x944] ss:$16 sps:$4 sm:$0xff]  }
 0x292   :  { %7203 = vmatpush1.bf16.msra.mxu0 %v9079_v50  ;;  %v9144_v52 = vld [vmem:[%s13166_s3 + $0xb44] ss:$16 sps:$4 sm:$0xff]   ;;  %v3750_v50 = vpop.f32.mrf.mxu0 }
 0x293   :  { %7204 = vmatprep.subr.bf16.mxu0 %v9087_v33  ;;  %v609_v33 = vrot.slane %v11796_v58, %v576_v62  ;;  %v9145_v62 = vld [vmem:[%s13166_s3 + $0x920] ss:$16 sps:$4 sm:$0xff]  }
 0x294   :  { %7246 = vmatpush1.bf16.msra.mxu1 %v9082_v63  ;;  %v9139_v63 = vld [vmem:[%s13166_s3 + $0x940] ss:$16 sps:$4 sm:$0xff]  }
 0x295   :  { %7247 = vmatprep.subr.bf16.mxu1 %v9090_v41  ;;  %v9142_v41 = vld [vmem:[%s13166_s3 + $0xb40] ss:$16 sps:$4 sm:$0xff]  }
 0x296   :  { %7205 = vmatpush1.bf16.msra.mxu0 %v9085_v48  ;;  %v9147_v48 = vld [vmem:[%s13166_s3 + $0x924] ss:$16 sps:$4 sm:$0xff]  }
 0x297   :  { %7206 = vmatprep.subr.bf16.mxu0 %v9093_v39  ;;  %v3751_v39 = vadd.f32 %v3750_v50, %v609_v33  ;;  %v9180_v50 = vld [vmem:[%s13166_s3 + $0xe84] ss:$16 sps:$4 sm:$0xff]  }
 0x298   :  { %7248 = vmatpush1.bf16.msra.mxu1 %v9088_v35  ;;  %v9150_v35 = vld [vmem:[%s13166_s3 + $0xb24] ss:$16 sps:$4 sm:$0xff]  }
 0x299   :  { %7249 = vmatprep.subr.bf16.mxu1 %v9096_v5  ;;  %v3747_v5 = vadd.f32 %v11866_v13, %v609_v33  ;;  %v9151_v13 = vld [vmem:[%s13166_s3 + $0x900] ss:$16 sps:$4 sm:$0xff]  }
 0x29a   :  { %7207 = vmatpush1.bf16.msra.mxu0 %v9091_v46  ;;  %v9148_v46 = vld [vmem:[%s13166_s3 + $0xb20] ss:$16 sps:$4 sm:$0xff]  }
 0x29b   :  { %7208 = vmatprep.subr.bf16.mxu0 %v9099_v20  ;;  %v3793_v20 = vpop.f32.mrf.mxu1 }
 0x29c   :  { %7250 = vmatpush1.bf16.msra.mxu1 %v9094_v1  ;;  %v9153_v1 = vld [vmem:[%s13166_s3 + $0x904] ss:$16 sps:$4 sm:$0xff]  }
 0x29d   :  { %7251 = vmatprep.subr.bf16.mxu1 %v9102_v3  ;;  %v9156_v3 = vld [vmem:[%s13166_s3 + $0xb04] ss:$16 sps:$4 sm:$0xff]  }
 0x29e   :  { %7209 = vmatpush1.bf16.msra.mxu0 %v9097_v51  ;;  %v3794_v51 = vadd.f32 %v3793_v20, %v3751_v39  ;;  %v9184_v20 = vld [vmem:[%s13166_s3 + $0xe60] ss:$16 sps:$4 sm:$0xff]  }
 0x29f   :  { %7210 = vmatprep.subr.bf16.mxu0 %v9105_v54  ;;  %v9154_v54 = vld [vmem:[%s13166_s3 + $0xb00] ss:$16 sps:$4 sm:$0xff]  }
 0x2a0   :  { %7252 = vmatpush1.bf16.msra.mxu1 %v9100_v53  ;;  %v3790_v53 = vadd.f32 %v11875_v7, %v3747_v5  ;;  %v9157_v7 = vld [vmem:[%s13166_s3 + $0xce0] ss:$16 sps:$4 sm:$0xff]   ;;  %v9186_v5 = vld [vmem:[%s13166_s3 + $0xe64] ss:$16 sps:$4 sm:$0xff]  }
 0x2a1   :  { %7253 = vmatprep.subr.bf16.mxu1 %v9108_v55  ;;  %v9159_v55 = vld [vmem:[%s13166_s3 + $0xce4] ss:$16 sps:$4 sm:$0xff]  }
 0x2a2   :  { %7211 = vmatpush1.bf16.msra.mxu0 %v9103_v57  ;;  %v9162_v57 = vld [vmem:[%s13166_s3 + $0xee4] ss:$16 sps:$4 sm:$0xff]  }
 0x2a3   :  { %7212 = vmatprep.subr.bf16.mxu0 %v9111_v60  ;;  %v3895_v60 = vmax.f32 %v3790_v53, 0.0  ;;  %v9190_v53 = vld [vmem:[%s13166_s3 + $0xe40] ss:$16 sps:$4 sm:$0xff]  }
 0x2a4   :  { %7254 = vmatpush1.bf16.msra.mxu1 %v9106_v59  ;;  %v3911_v59 = vmax.f32 %v3794_v51, 0.0  ;;  %v9192_v51 = vld [vmem:[%s13166_s3 + $0xe44] ss:$16 sps:$4 sm:$0xff]  }
 0x2a5   :  { %7255 = vmatprep.subr.bf16.mxu1 %v9114_v6  ;;  %v9160_v6 = vld [vmem:[%s13166_s3 + $0xee0] ss:$16 sps:$4 sm:$0xff]  }
 0x2a6   :  { %7213 = vmatpush2.bf16.msra.mxu0 %v9109_v61  ;;  %v617_v61 = vrot.slane %v11796_v58, %v584_v4  ;;  %v9163_v4 = vld [vmem:[%s13166_s3 + $0xcc0] ss:$16 sps:$4 sm:$0xff]  }
 0x2a7   :  { %7214 = vmatprep.subr.bf16.mxu0 %v9117_v9  ;;  %v9168_v9 = vld [vmem:[%s13166_s3 + $0xec4] ss:$16 sps:$4 sm:$0xff]  }
 0x2a8   :  { %7256 = vmatpush2.bf16.msra.mxu1 %v9112_v38  ;;  %v9165_v38 = vld [vmem:[%s13166_s3 + $0xcc4] ss:$16 sps:$4 sm:$0xff]  }
 0x2a9   :  { %7257 = vmatprep.subr.bf16.mxu1 %v9120_v10  ;;  %v12070_v10 = vpack.c.bf16 %v3911_v59, %v3895_v60  ;;  %v9196_v59 = vld [vmem:[%s13166_s3 + $0xe20] ss:$16 sps:$4 sm:$0xff]   ;;  %v9204_v60 = vld [vmem:[%s13166_s3 + $0xe04] ss:$16 sps:$4 sm:$0xff]  }
 0x2aa   :  { %7215 = vmatpush2.bf16.msra.mxu0 %v9115_v28 }
 0x2ab   :  { %7216 = vmatprep.subr.bf16.mxu0 %v9123_v44 }
 0x2ac   :  { %7258 = vmatpush2.bf16.msra.mxu1 %v9118_v24 }
 0x2ad   :  { %7259 = vmatprep.subr.bf16.mxu1 %v9126_v31  ;;  %v9166_v31 = vld [vmem:[%s13166_s3 + $0xec0] ss:$16 sps:$4 sm:$0xff]  }
 0x2ae   :  { %7217 = vmatpush2.bf16.msra.mxu0 %v9121_v30  ;;  %v9171_v30 = vld [vmem:[%s13166_s3 + $0xca4] ss:$16 sps:$4 sm:$0xff]  }
 0x2af   :  { %7218 = vmatprep.subr.bf16.mxu0 %v9129_v17 }
 0x2b0   :  { %7260 = vmatpush2.bf16.msra.mxu1 %v9124_v14 }
 0x2b1   :  { %7261 = vmatprep.subr.bf16.mxu1 %v9132_v18  ;;  %v9174_v18 = vld [vmem:[%s13166_s3 + $0xea4] ss:$16 sps:$4 sm:$0xff]  }
 0x2b2   :  { %7219 = vmatpush2.bf16.msra.mxu0 %v9127_v42 }
 0x2b3   :  { %7220 = vmatprep.subr.bf16.mxu0 %v9135_v49  ;;  %v9169_v49 = vld [vmem:[%s13166_s3 + $0xca0] ss:$16 sps:$4 sm:$0xff]  }
 0x2b4   :  { %7262 = vmatpush2.bf16.msra.mxu1 %v9130_v21 }
 0x2b5   :  { %7263 = vmatprep.subr.bf16.mxu1 %v9138_v19 }
 0x2b6   :  { %7221 = vmatpush2.bf16.msra.mxu0 %v9133_v0  ;;  %v9172_v0 = vld [vmem:[%s13166_s3 + $0xea0] ss:$16 sps:$4 sm:$0xff]  }
 0x2b7   :  { %7222 = vmatprep.subr.bf16.mxu0 %v9141_v25 }
 0x2b8   :  { %7264 = vmatpush2.bf16.msra.mxu1 %v9136_v22  ;;  %v9177_v22 = vld [vmem:[%s13166_s3 + $0xc84] ss:$16 sps:$4 sm:$0xff]  }
 0x2b9   :  { %7265 = vmatprep.subr.bf16.mxu1 %v9144_v52 }
 0x2ba   :  { %7223 = vmatpush2.bf16.msra.mxu0 %v9139_v63 }
 0x2bb   :  { %7224 = vmatprep.subr.bf16.mxu0 %v9147_v48  ;;  %v9178_v48 = vld [vmem:[%s13166_s3 + $0xe80] ss:$16 sps:$4 sm:$0xff]  }
 0x2bc   :  { %7266 = vmatpush2.bf16.msra.mxu1 %v9142_v41  ;;  %v9175_v41 = vld [vmem:[%s13166_s3 + $0xc80] ss:$16 sps:$4 sm:$0xff]  }
 0x2bd   :  { %7267 = vmatprep.subr.bf16.mxu1 %v9150_v35  ;;  %v9183_v35 = vld [vmem:[%s13166_s3 + $0xc64] ss:$16 sps:$4 sm:$0xff]  }
 0x2be   :  { %7225 = vmatpush2.bf16.msra.mxu0 %v9145_v62 }
 0x2bf   :  { %7226 = vmatprep.subr.bf16.mxu0 %v9153_v1  ;;  %v9181_v1 = vld [vmem:[%s13166_s3 + $0xc60] ss:$16 sps:$4 sm:$0xff]  }
 0x2c0   :  { %7268 = vmatpush2.bf16.msra.mxu1 %v9148_v46 }
 0x2c1   :  { %7269 = vmatprep.subr.bf16.mxu1 %v9156_v3  ;;  %v9189_v3 = vld [vmem:[%s13166_s3 + $0xc44] ss:$16 sps:$4 sm:$0xff]  }
 0x2c2   :  { %7227 = vmatpush2.bf16.msra.mxu0 %v9151_v13  ;;  %v9187_v13 = vld [vmem:[%s13166_s3 + $0xc40] ss:$16 sps:$4 sm:$0xff]  }
 0x2c3   :  { %7282 = vmatprep.subr.bf16.mxu0 %v9159_v55  ;;  %v9198_v55 = vld [vmem:[%s13166_s3 + $0xe24] ss:$16 sps:$4 sm:$0xff]  }
 0x2c4   :  { %7270 = vmatpush2.bf16.msra.mxu1 %v9154_v54  ;;  %v9195_v54 = vld [vmem:[%s13166_s3 + $0xc24] ss:$16 sps:$4 sm:$0xff]  }
 0x2c5   :  { %7325 = vmatprep.subr.bf16.mxu1 %v9162_v57  ;;  %v12072_v28 = vpop.f32.mrf.mxu0  ;;  %7229 = vmatmul.mubr.bf16.vlgmr.msra.gmra.mxu0 %v11451_v8  ;;  %v9193_v57 = vld [vmem:[%s13166_s3 + $0xc20] ss:$16 sps:$4 sm:$0xff]  }
 0x2c6   :  { %7283 = vmatpush1.bf16.msra.mxu0 %v9157_v7  ;;  %7314 = vmatprep.mubr.bf16.mxu0 %v12070_v10  ;;  %v9201_v7 = vld [vmem:[%s13166_s3 + $0xc04] ss:$16 sps:$4 sm:$0xff]  }
 0x2c7   :  { %v12075_v24 = vpop.f32.mrf.mxu1  ;;  %7272 = vmatmul.mubr.bf16.vlgmr.msra.gmra.mxu1 %v11680_v47  ;;  %v3832_v44 = vpop.f32.mrf.mxu0  ;;  %7284 = vmatprep.subr.bf16.mxu0 %v9165_v38  ;;  %v9207_v38 = vld [vmem:[%s13166_s3 + $0xde4] ss:$16 sps:$4 sm:$0xff]  }
 0x2c8   :  { %7326 = vmatpush1.bf16.msra.mxu1 %v9160_v6  ;;  %v3833_v14 = vadd.f32 %v3832_v44, %v617_v61  ;;  %v9199_v6 = vld [vmem:[%s13166_s3 + $0xc00] ss:$16 sps:$4 sm:$0xff]  }
 0x2c9   :  { %v3875_v17 = vpop.f32.mrf.mxu1  ;;  %7327 = vmatprep.subr.bf16.mxu1 %v9168_v9  ;;  %v12091_v42 = vpop.f32.mrf.mxu0  ;;  %v9210_v9 = vld [vmem:[%s13166_s3 + $0xfe4] ss:$16 sps:$4 sm:$0xff]   ;;  %v9208_v44 = vld [vmem:[%s13166_s3 + $0xfe0] ss:$16 sps:$4 sm:$0xff]  }
 0x2ca   :  { %7285 = vmatpush1.bf16.msra.mxu0 %v9163_v4  ;;  %v3876_v25 = vadd.f32 %v3875_v17, %v3833_v14  ;;  %v9205_v4 = vld [vmem:[%s13166_s3 + $0xde0] ss:$16 sps:$4 sm:$0xff]  }
 0x2cb   :  { %v12093_v21 = vpop.f32.mrf.mxu1  ;;  %v3836_v19 = vpop.f32.mrf.mxu0  ;;  %7286 = vmatprep.subr.bf16.mxu0 %v9171_v30  ;;  %v9216_v30 = vld [vmem:[%s13166_s3 + $0xfc4] ss:$16 sps:$4 sm:$0xff]   ;;  %v9211_v14 = vld [vmem:[%s13166_s3 + $0xdc0] ss:$16 sps:$4 sm:$0xff]  }
 0x2cc   :  { %7328 = vmatpush1.bf16.msra.mxu1 %v9166_v31  ;;  %v3837_v52 = vadd.f32 %v3836_v19, %v617_v61  ;;  %v3897_v39 = vmax.f32 %v3876_v25, 0.0  ;;  %v9202_v61 = vld [vmem:[%s13166_s3 + $0xe00] ss:$16 sps:$4 sm:$0xff]   ;;  %v9213_v31 = vld [vmem:[%s13166_s3 + $0xdc4] ss:$16 sps:$4 sm:$0xff]  }
 0x2cd   :  { %7329 = vmatprep.subr.bf16.mxu1 %v9174_v18  ;;  %v3879_v63 = vpop.f32.mrf.mxu1  ;;  %v9214_v17 = vld [vmem:[%s13166_s3 + $0xfc0] ss:$16 sps:$4 sm:$0xff]   ;;  %v9219_v18 = vld [vmem:[%s13166_s3 + $0xda4] ss:$16 sps:$4 sm:$0xff]  }
 0x2ce   :  { %v3880_v33 = vadd.f32 %v3879_v63, %v3837_v52  ;;  %7287 = vmatpush1.bf16.msra.mxu0 %v9169_v49  ;;  %v9222_v49 = vld [vmem:[%s13166_s3 + $0xfa4] ss:$16 sps:$4 sm:$0xff]   ;;  %v9217_v19 = vld [vmem:[%s13166_s3 + $0xda0] ss:$16 sps:$4 sm:$0xff]  }
 0x2cf   :  { %7288 = vmatprep.subr.bf16.mxu0 %v9177_v22  ;;  %v9225_v22 = vld [vmem:[%s13166_s3 + $0xd84] ss:$16 sps:$4 sm:$0xff]   ;;  %v9223_v52 = vld [vmem:[%s13166_s3 + $0xd80] ss:$16 sps:$4 sm:$0xff]  }
 0x2d0   :  { %7330 = vmatpush1.bf16.msra.mxu1 %v9172_v0  ;;  %v3913_v62 = vmax.f32 %v3880_v33, 0.0  ;;  %v9220_v0 = vld [vmem:[%s13166_s3 + $0xfa0] ss:$16 sps:$4 sm:$0xff]   ;;  %v9228_v25 = vld [vmem:[%s13166_s3 + $0xf84] ss:$16 sps:$4 sm:$0xff]  }
 0x2d1   :  { %7331 = vmatprep.subr.bf16.mxu1 %v9180_v50  ;;  %v9226_v50 = vld [vmem:[%s13166_s3 + $0xf80] ss:$16 sps:$4 sm:$0xff]   ;;  %v9231_v63 = vld [vmem:[%s13166_s3 + $0xd64] ss:$16 sps:$4 sm:$0xff]  }
 0x2d2   :  { %v12119_v46 = vpack.c.bf16 %v3913_v62, %v3897_v39  ;;  %7289 = vmatpush1.bf16.msra.mxu0 %v9175_v41  ;;  %v9234_v33 = vld [vmem:[%s13166_s3 + $0xf64] ss:$16 sps:$4 sm:$0xff]   ;;  %v9229_v41 = vld [vmem:[%s13166_s3 + $0xd60] ss:$16 sps:$4 sm:$0xff]   ;;  %v613_v62 = vrot.slane %v11796_v58, %v580_v26 }
 0x2d3   :  { %7290 = vmatprep.subr.bf16.mxu0 %v9183_v35  ;;  %v9237_v35 = vld [vmem:[%s13166_s3 + $0xd44] ss:$16 sps:$4 sm:$0xff]   ;;  %v9241_v58 = vld [vmem:[%s13166_s3 + $0xd20] ss:$16 sps:$4 sm:$0xff]  }
 0x2d4   :  { %7332 = vmatpush1.bf16.msra.mxu1 %v9178_v48  ;;  %7357 = vmatprep.mubr.bf16.mxu1 %v12119_v46  ;;  %v9232_v48 = vld [vmem:[%s13166_s3 + $0xf60] ss:$16 sps:$4 sm:$0xff]   ;;  %v9240_v39 = vld [vmem:[%s13166_s3 + $0xf44] ss:$16 sps:$4 sm:$0xff]   ;;  %v3831_v26 = vadd.f32 %v12072_v28, %v613_v62 }
 0x2d5   :  { %7333 = vmatprep.subr.bf16.mxu1 %v9186_v5  ;;  %v9235_v5 = vld [vmem:[%s13166_s3 + $0xd40] ss:$16 sps:$4 sm:$0xff]   ;;  %v9252_v28 = vld [vmem:[%s13166_s3 + $0xf04] ss:$16 sps:$4 sm:$0xff]  }
 0x2d6   :  { %7291 = vmatpush1.bf16.msra.mxu0 %v9181_v1  ;;  %v9238_v1 = vld [vmem:[%s13166_s3 + $0xf40] ss:$16 sps:$4 sm:$0xff]  }
 0x2d7   :  { %7292 = vmatprep.subr.bf16.mxu0 %v9189_v3  ;;  %v3835_v3 = vadd.f32 %v12091_v42, %v613_v62  ;;  %v9249_v42 = vld [vmem:[%s13166_s3 + $0xd04] ss:$16 sps:$4 sm:$0xff]   ;;  %v9300_v62 = vld [vmem:[%s13166_s3 + $0x20c] ss:$16 sps:$4 sm:$0xff]  }
 0x2d8   :  { %7334 = vmatpush1.bf16.msra.mxu1 %v9184_v20  ;;  %v9243_v20 = vld [vmem:[%s13166_s3 + $0xd24] ss:$16 sps:$4 sm:$0xff]  }
 0x2d9   :  { %7335 = vmatprep.subr.bf16.mxu1 %v9192_v51  ;;  %v9244_v51 = vld [vmem:[%s13166_s3 + $0xf20] ss:$16 sps:$4 sm:$0xff]  }
 0x2da   :  { %7293 = vmatpush1.bf16.msra.mxu0 %v9187_v13  ;;  %v3878_v13 = vadd.f32 %v12093_v21, %v3835_v3  ;;  %v9255_v21 = vld [vmem:[%s13166_s3 + $0xec] ss:$16 sps:$4 sm:$0xff]  }
 0x2db   :  { %7294 = vmatprep.subr.bf16.mxu0 %v9195_v54  ;;  %v9247_v54 = vld [vmem:[%s13166_s3 + $0xd00] ss:$16 sps:$4 sm:$0xff]   ;;  %v9306_v3 = vld [vmem:[%s13166_s3 + $0x3ec] ss:$16 sps:$4 sm:$0xff]  }
 0x2dc   :  { %7336 = vmatpush1.bf16.msra.mxu1 %v9190_v53  ;;  %v3874_v53 = vadd.f32 %v12075_v24, %v3831_v26  ;;  %v9258_v24 = vld [vmem:[%s13166_s3 + $0x2ec] ss:$16 sps:$4 sm:$0xff]   ;;  %v9304_v26 = vld [vmem:[%s13166_s3 + $0x3e8] ss:$16 sps:$4 sm:$0xff]  }
 0x2dd   :  { %7337 = vmatprep.subr.bf16.mxu1 %v9198_v55  ;;  %v9250_v55 = vld [vmem:[%s13166_s3 + $0xf00] ss:$16 sps:$4 sm:$0xff]  }
 0x2de   :  { %7295 = vmatpush1.bf16.msra.mxu0 %v9193_v57  ;;  %v3912_v57 = vmax.f32 %v3878_v13, 0.0  ;;  %v9310_v13 = vld [vmem:[%s13166_s3 + $0x3c8] ss:$16 sps:$4 sm:$0xff]  }
 0x2df   :  { %7296 = vmatprep.subr.bf16.mxu0 %v9201_v7  ;;  %v9253_v7 = vld [vmem:[%s13166_s3 + $0xe8] ss:$16 sps:$4 sm:$0xff]  }
 0x2e0   :  { %7338 = vmatpush1.bf16.msra.mxu1 %v9196_v59  ;;  %v3896_v59 = vmax.f32 %v3874_v53, 0.0  ;;  %v9318_v53 = vld [vmem:[%s13166_s3 + $0x3ac] ss:$16 sps:$4 sm:$0xff]  }
 0x2e1   :  { %7339 = vmatprep.subr.bf16.mxu1 %v9204_v60  ;;  %v9256_v60 = vld [vmem:[%s13166_s3 + $0x2e8] ss:$16 sps:$4 sm:$0xff]  }
 0x2e2   :  { %7297 = vmatpush1.bf16.msra.mxu0 %v9199_v6  ;;  %v12279_v6 = vpack.c.bf16 %v3912_v57, %v3896_v59  ;;  %v9324_v57 = vld [vmem:[%s13166_s3 + $0x38c] ss:$16 sps:$4 sm:$0xff]   ;;  %v9322_v59 = vld [vmem:[%s13166_s3 + $0x388] ss:$16 sps:$4 sm:$0xff]  }
 0x2e3   :  { %7298 = vmatprep.subr.bf16.mxu0 %v9207_v38  ;;  %v9264_v38 = vld [vmem:[%s13166_s3 + $0x2cc] ss:$16 sps:$4 sm:$0xff]  }
 0x2e4   :  { %7340 = vmatpush1.bf16.msra.mxu1 %v9202_v61  ;;  %v9261_v61 = vld [vmem:[%s13166_s3 + $0xcc] ss:$16 sps:$4 sm:$0xff]  }
 0x2e5   :  { %7341 = vmatprep.subr.bf16.mxu1 %v9210_v9  ;;  %v9259_v9 = vld [vmem:[%s13166_s3 + $0xc8] ss:$16 sps:$4 sm:$0xff]  }
 0x2e6   :  { %7299 = vmatpush2.bf16.msra.mxu0 %v9205_v4  ;;  %v9262_v4 = vld [vmem:[%s13166_s3 + $0x2c8] ss:$16 sps:$4 sm:$0xff]  }
 0x2e7   :  { %7300 = vmatprep.subr.bf16.mxu0 %v9213_v31  ;;  %v9270_v31 = vld [vmem:[%s13166_s3 + $0x2ac] ss:$16 sps:$4 sm:$0xff]  }
 0x2e8   :  { %7342 = vmatpush2.bf16.msra.mxu1 %v9208_v44  ;;  %v9267_v44 = vld [vmem:[%s13166_s3 + $0xac] ss:$16 sps:$4 sm:$0xff]  }
 0x2e9   :  { %7343 = vmatprep.subr.bf16.mxu1 %v9216_v30  ;;  %v9268_v30 = vld [vmem:[%s13166_s3 + $0x2a8] ss:$16 sps:$4 sm:$0xff]  }
 0x2ea   :  { %7301 = vmatpush2.bf16.msra.mxu0 %v9211_v14  ;;  %v9276_v14 = vld [vmem:[%s13166_s3 + $0x28c] ss:$16 sps:$4 sm:$0xff]  }
 0x2eb   :  { %7302 = vmatprep.subr.bf16.mxu0 %v9219_v18  ;;  %v9274_v18 = vld [vmem:[%s13166_s3 + $0x288] ss:$16 sps:$4 sm:$0xff]  }
 0x2ec   :  { %7344 = vmatpush2.bf16.msra.mxu1 %v9214_v17  ;;  %v9271_v17 = vld [vmem:[%s13166_s3 + $0x88] ss:$16 sps:$4 sm:$0xff]  }
 0x2ed   :  { %7345 = vmatprep.subr.bf16.mxu1 %v9222_v49  ;;  %v9279_v49 = vld [vmem:[%s13166_s3 + $0x6c] ss:$16 sps:$4 sm:$0xff]  }
 0x2ee   :  { %7303 = vmatpush2.bf16.msra.mxu0 %v9217_v19  ;;  %v9282_v19 = vld [vmem:[%s13166_s3 + $0x26c] ss:$16 sps:$4 sm:$0xff]  }
 0x2ef   :  { %7304 = vmatprep.subr.bf16.mxu0 %v9225_v22  ;;  %v9280_v22 = vld [vmem:[%s13166_s3 + $0x268] ss:$16 sps:$4 sm:$0xff]  }
 0x2f0   :  { %7346 = vmatpush2.bf16.msra.mxu1 %v9220_v0  ;;  %v9277_v0 = vld [vmem:[%s13166_s3 + $0x68] ss:$16 sps:$4 sm:$0xff]  }
 0x2f1   :  { %7347 = vmatprep.subr.bf16.mxu1 %v9228_v25  ;;  %v9285_v25 = vld [vmem:[%s13166_s3 + $0x4c] ss:$16 sps:$4 sm:$0xff]  }
 0x2f2   :  { %7305 = vmatpush2.bf16.msra.mxu0 %v9223_v52  ;;  %v9288_v52 = vld [vmem:[%s13166_s3 + $0x24c] ss:$16 sps:$4 sm:$0xff]  }
 0x2f3   :  { %7306 = vmatprep.subr.bf16.mxu0 %v9231_v63  ;;  %v9286_v63 = vld [vmem:[%s13166_s3 + $0x248] ss:$16 sps:$4 sm:$0xff]  }
 0x2f4   :  { %7348 = vmatpush2.bf16.msra.mxu1 %v9226_v50  ;;  %v9283_v50 = vld [vmem:[%s13166_s3 + $0x48] ss:$16 sps:$4 sm:$0xff]  }
 0x2f5   :  { %7349 = vmatprep.subr.bf16.mxu1 %v9234_v33  ;;  %v9291_v33 = vld [vmem:[%s13166_s3 + $0x2c] ss:$16 sps:$4 sm:$0xff]  }
 0x2f6   :  { %7307 = vmatpush2.bf16.msra.mxu0 %v9229_v41  ;;  %v9294_v41 = vld [vmem:[%s13166_s3 + $0x22c] ss:$16 sps:$4 sm:$0xff]  }
 0x2f7   :  { %7308 = vmatprep.subr.bf16.mxu0 %v9237_v35  ;;  %v9292_v35 = vld [vmem:[%s13166_s3 + $0x228] ss:$16 sps:$4 sm:$0xff]  }
 0x2f8   :  { %7350 = vmatpush2.bf16.msra.mxu1 %v9232_v48  ;;  %v9289_v48 = vld [vmem:[%s13166_s3 + $0x28] ss:$16 sps:$4 sm:$0xff]  }
 0x2f9   :  { %7351 = vmatprep.subr.bf16.mxu1 %v9240_v39  ;;  %v9297_v39 = vld [vmem:[%s13166_s3 + $0xc] ss:$16 sps:$4 sm:$0xff]  }
 0x2fa   :  { %7309 = vmatpush2.bf16.msra.mxu0 %v9235_v5  ;;  %v9295_v5 = vld [vmem:[%s13166_s3 + $0x8] ss:$16 sps:$4 sm:$0xff]  }
 0x2fb   :  { %7310 = vmatprep.subr.bf16.mxu0 %v9243_v20  ;;  %v9303_v20 = vld [vmem:[%s13166_s3 + $0x1ec] ss:$16 sps:$4 sm:$0xff]  }
 0x2fc   :  { %7352 = vmatpush2.bf16.msra.mxu1 %v9238_v1  ;;  %v9298_v1 = vld [vmem:[%s13166_s3 + $0x208] ss:$16 sps:$4 sm:$0xff]  }
 0x2fd   :  { %7353 = vmatprep.subr.bf16.mxu1 %v9246_v34  ;;  %v9301_v34 = vld [vmem:[%s13166_s3 + $0x1e8] ss:$16 sps:$4 sm:$0xff]  }
 0x2fe   :  { %7311 = vmatpush2.bf16.msra.mxu0 %v9241_v58  ;;  %v9309_v58 = vld [vmem:[%s13166_s3 + $0x1cc] ss:$16 sps:$4 sm:$0xff]  }
 0x2ff   :  { %7312 = vmatprep.subr.bf16.mxu0 %v9249_v42  ;;  %v9307_v42 = vld [vmem:[%s13166_s3 + $0x1c8] ss:$16 sps:$4 sm:$0xff]  }
 0x300   :  { %7354 = vmatpush2.bf16.msra.mxu1 %v9244_v51  ;;  %v9312_v51 = vld [vmem:[%s13166_s3 + $0x3cc] ss:$16 sps:$4 sm:$0xff]  }
 0x301   :  { %7355 = vmatprep.subr.bf16.mxu1 %v9252_v28  ;;  %v9315_v28 = vld [vmem:[%s13166_s3 + $0x1ac] ss:$16 sps:$4 sm:$0xff]  }
 0x302   :  { %7313 = vmatpush2.bf16.msra.mxu0 %v9247_v54  ;;  %v9313_v54 = vld [vmem:[%s13166_s3 + $0x1a8] ss:$16 sps:$4 sm:$0xff]  }
 0x303   :  { %7368 = vmatprep.subr.bf16.mxu0 %v9255_v21  ;;  %v9321_v21 = vld [vmem:[%s13166_s3 + $0x18c] ss:$16 sps:$4 sm:$0xff]  }
 0x304   :  { %7356 = vmatpush2.bf16.msra.mxu1 %v9250_v55  ;;  %v9316_v55 = vld [vmem:[%s13166_s3 + $0x3a8] ss:$16 sps:$4 sm:$0xff]  }
 0x305   :  { %7411 = vmatprep.subr.bf16.mxu1 %v9258_v24  ;;  %7315 = vmatmul.mubr.bf16.vlgmr.msra.gmra.mxu0 %v11901_v45  ;;  %v9319_v24 = vld [vmem:[%s13166_s3 + $0x188] ss:$16 sps:$4 sm:$0xff]  }
 0x306   :  { %7369 = vmatpush1.bf16.msra.mxu0 %v9253_v7  ;;  %7400 = vmatprep.mubr.bf16.mxu0 %v11403_v29  ;;  %v9265_v29 = vld [vmem:[%s13166_s3 + $0xa8] ss:$16 sps:$4 sm:$0xff]   ;;  %v9327_v7 = vld [vmem:[%s13166_s3 + $0x16c] ss:$16 sps:$4 sm:$0xff]  }
 0x307   :  { %7358 = vmatmul.mubr.bf16.vlgmr.msra.gmra.mxu1 %v12279_v6  ;;  %7370 = vmatprep.subr.bf16.mxu0 %v9261_v61  ;;  %v9325_v61 = vld [vmem:[%s13166_s3 + $0x168] ss:$16 sps:$4 sm:$0xff]  }
 0x308   :  { %7412 = vmatpush1.bf16.msra.mxu1 %v9256_v60  ;;  %7443 = vmatprep.mubr.bf16.mxu1 %v11412_v36  ;;  %v9273_v36 = vld [vmem:[%s13166_s3 + $0x8c] ss:$16 sps:$4 sm:$0xff]  }
 0x309   :  { %7413 = vmatprep.subr.bf16.mxu1 %v9264_v38  ;;  %v9330_v60 = vld [vmem:[%s13166_s3 + $0x36c] ss:$16 sps:$4 sm:$0xff]   ;;  %v9328_v38 = vld [vmem:[%s13166_s3 + $0x368] ss:$16 sps:$4 sm:$0xff]  }
 0x30a   :  { %7371 = vmatpush1.bf16.msra.mxu0 %v9259_v9  ;;  %v9333_v9 = vld [vmem:[%s13166_s3 + $0x14c] ss:$16 sps:$4 sm:$0xff]  }
 0x30b   :  { %7372 = vmatprep.subr.bf16.mxu0 %v9267_v44  ;;  %v9331_v44 = vld [vmem:[%s13166_s3 + $0x148] ss:$16 sps:$4 sm:$0xff]  }
 0x30c   :  { %7414 = vmatpush1.bf16.msra.mxu1 %v9262_v4  ;;  %v9336_v4 = vld [vmem:[%s13166_s3 + $0x34c] ss:$16 sps:$4 sm:$0xff]  }
 0x30d   :  { %7415 = vmatprep.subr.bf16.mxu1 %v9270_v31  ;;  %v9334_v31 = vld [vmem:[%s13166_s3 + $0x348] ss:$16 sps:$4 sm:$0xff]  }
 0x30e   :  { %7373 = vmatpush1.bf16.msra.mxu0 %v9265_v29  ;;  %v9339_v29 = vld [vmem:[%s13166_s3 + $0x12c] ss:$16 sps:$4 sm:$0xff]  }
 0x30f   :  { %7374 = vmatprep.subr.bf16.mxu0 %v9273_v36  ;;  %v9337_v36 = vld [vmem:[%s13166_s3 + $0x128] ss:$16 sps:$4 sm:$0xff]  }
 0x310   :  { %7416 = vmatpush1.bf16.msra.mxu1 %v9268_v30  ;;  %v9342_v30 = vld [vmem:[%s13166_s3 + $0x32c] ss:$16 sps:$4 sm:$0xff]  }
 0x311   :  { %7417 = vmatprep.subr.bf16.mxu1 %v9276_v14  ;;  %v9340_v14 = vld [vmem:[%s13166_s3 + $0x328] ss:$16 sps:$4 sm:$0xff]  }
 0x312   :  { %7375 = vmatpush1.bf16.msra.mxu0 %v9271_v17  ;;  %v9345_v17 = vld [vmem:[%s13166_s3 + $0x10c] ss:$16 sps:$4 sm:$0xff]  }
 0x313   :  { %7376 = vmatprep.subr.bf16.mxu0 %v9279_v49  ;;  %v9343_v49 = vld [vmem:[%s13166_s3 + $0x108] ss:$16 sps:$4 sm:$0xff]  }
 0x314   :  { %7418 = vmatpush1.bf16.msra.mxu1 %v9274_v18  ;;  %v9348_v18 = vld [vmem:[%s13166_s3 + $0x30c] ss:$16 sps:$4 sm:$0xff]  }
 0x315   :  { %7419 = vmatprep.subr.bf16.mxu1 %v9282_v19  ;;  %v9346_v19 = vld [vmem:[%s13166_s3 + $0x308] ss:$16 sps:$4 sm:$0xff]  }
 0x316   :  { %7377 = vmatpush1.bf16.msra.mxu0 %v9277_v0  ;;  %v9351_v0 = vld [vmem:[%s13166_s3 + $0x4ec] ss:$16 sps:$4 sm:$0xff]  }
 0x317   :  { %7378 = vmatprep.subr.bf16.mxu0 %v9285_v25  ;;  %v9349_v25 = vld [vmem:[%s13166_s3 + $0x4e8] ss:$16 sps:$4 sm:$0xff]  }
 0x318   :  { %7420 = vmatpush1.bf16.msra.mxu1 %v9280_v22  ;;  %v9354_v22 = vld [vmem:[%s13166_s3 + $0x6ec] ss:$16 sps:$4 sm:$0xff]  }
 0x319   :  { %7421 = vmatprep.subr.bf16.mxu1 %v9288_v52  ;;  %v9352_v52 = vld [vmem:[%s13166_s3 + $0x6e8] ss:$16 sps:$4 sm:$0xff]  }
 0x31a   :  { %7379 = vmatpush1.bf16.msra.mxu0 %v9283_v50  ;;  %v9357_v50 = vld [vmem:[%s13166_s3 + $0x4cc] ss:$16 sps:$4 sm:$0xff]  }
 0x31b   :  { %7380 = vmatprep.subr.bf16.mxu0 %v9291_v33  ;;  %v9355_v33 = vld [vmem:[%s13166_s3 + $0x4c8] ss:$16 sps:$4 sm:$0xff]  }
 0x31c   :  { %7422 = vmatpush1.bf16.msra.mxu1 %v9286_v63  ;;  %v9360_v63 = vld [vmem:[%s13166_s3 + $0x6cc] ss:$16 sps:$4 sm:$0xff]  }
 0x31d   :  { %7423 = vmatprep.subr.bf16.mxu1 %v9294_v41  ;;  %v9358_v41 = vld [vmem:[%s13166_s3 + $0x6c8] ss:$16 sps:$4 sm:$0xff]  }
 0x31e   :  { %7381 = vmatpush1.bf16.msra.mxu0 %v9289_v48  ;;  %v9364_v48 = vld [vmem:[%s13166_s3 + $0x6a8] ss:$16 sps:$4 sm:$0xff]  }
 0x31f   :  { %7382 = vmatprep.subr.bf16.mxu0 %v9297_v39  ;;  %v9367_v39 = vld [vmem:[%s13166_s3 + $0x488] ss:$16 sps:$4 sm:$0xff]  }
 0x320   :  { %7424 = vmatpush1.bf16.msra.mxu1 %v9292_v35  ;;  %v9372_v35 = vld [vmem:[%s13166_s3 + $0x68c] ss:$16 sps:$4 sm:$0xff]  }
 0x321   :  { %7425 = vmatprep.subr.bf16.mxu1 %v9300_v62  ;;  %v9370_v62 = vld [vmem:[%s13166_s3 + $0x688] ss:$16 sps:$4 sm:$0xff]  }
 0x322   :  { %7383 = vmatpush1.bf16.msra.mxu0 %v9295_v5  ;;  %v9375_v5 = vld [vmem:[%s13166_s3 + $0x46c] ss:$16 sps:$4 sm:$0xff]  }
 0x323   :  { %7384 = vmatprep.subr.bf16.mxu0 %v9303_v20  ;;  %v9373_v20 = vld [vmem:[%s13166_s3 + $0x468] ss:$16 sps:$4 sm:$0xff]  }
 0x324   :  { %7426 = vmatpush1.bf16.msra.mxu1 %v9298_v1  ;;  %v9378_v1 = vld [vmem:[%s13166_s3 + $0x66c] ss:$16 sps:$4 sm:$0xff]  }
 0x325   :  { %7427 = vmatprep.subr.bf16.mxu1 %v9306_v3  ;;  %v9376_v3 = vld [vmem:[%s13166_s3 + $0x668] ss:$16 sps:$4 sm:$0xff]  }
 0x326   :  { %7385 = vmatpush2.bf16.msra.mxu0 %v9301_v34  ;;  %v9381_v34 = vld [vmem:[%s13166_s3 + $0x44c] ss:$16 sps:$4 sm:$0xff]  }
 0x327   :  { %7386 = vmatprep.subr.bf16.mxu0 %v9309_v58  ;;  %v9379_v58 = vld [vmem:[%s13166_s3 + $0x448] ss:$16 sps:$4 sm:$0xff]  }
 0x328   :  { %7428 = vmatpush2.bf16.msra.mxu1 %v9304_v26  ;;  %v9384_v26 = vld [vmem:[%s13166_s3 + $0x64c] ss:$16 sps:$4 sm:$0xff]  }
 0x329   :  { %7429 = vmatprep.subr.bf16.mxu1 %v9312_v51  ;;  %v9382_v51 = vld [vmem:[%s13166_s3 + $0x648] ss:$16 sps:$4 sm:$0xff]  }
 0x32a   :  { %7387 = vmatpush2.bf16.msra.mxu0 %v9307_v42  ;;  %v9387_v42 = vld [vmem:[%s13166_s3 + $0x42c] ss:$16 sps:$4 sm:$0xff]  }
 0x32b   :  { %7388 = vmatprep.subr.bf16.mxu0 %v9315_v28  ;;  %v9385_v28 = vld [vmem:[%s13166_s3 + $0x428] ss:$16 sps:$4 sm:$0xff]  }
 0x32c   :  { %7430 = vmatpush2.bf16.msra.mxu1 %v9310_v13  ;;  %v9390_v13 = vld [vmem:[%s13166_s3 + $0x62c] ss:$16 sps:$4 sm:$0xff]  }
 0x32d   :  { %7431 = vmatprep.subr.bf16.mxu1 %v9318_v53  ;;  %v9388_v53 = vld [vmem:[%s13166_s3 + $0x628] ss:$16 sps:$4 sm:$0xff]  }
 0x32e   :  { %7389 = vmatpush2.bf16.msra.mxu0 %v9313_v54  ;;  %v9393_v54 = vld [vmem:[%s13166_s3 + $0x40c] ss:$16 sps:$4 sm:$0xff]  }
 0x32f   :  { %7390 = vmatprep.subr.bf16.mxu0 %v9321_v21  ;;  %v9391_v21 = vld [vmem:[%s13166_s3 + $0x408] ss:$16 sps:$4 sm:$0xff]  }
 0x330   :  { %7432 = vmatpush2.bf16.msra.mxu1 %v9316_v55  ;;  %v9396_v55 = vld [vmem:[%s13166_s3 + $0x60c] ss:$16 sps:$4 sm:$0xff]  }
 0x331   :  { %7433 = vmatprep.subr.bf16.mxu1 %v9324_v57  ;;  %v9394_v57 = vld [vmem:[%s13166_s3 + $0x608] ss:$16 sps:$4 sm:$0xff]  }
 0x332   :  { %7391 = vmatpush2.bf16.msra.mxu0 %v9319_v24  ;;  %v9399_v24 = vld [vmem:[%s13166_s3 + $0x5ec] ss:$16 sps:$4 sm:$0xff]  }
 0x333   :  { %7392 = vmatprep.subr.bf16.mxu0 %v9327_v7  ;;  %v9397_v7 = vld [vmem:[%s13166_s3 + $0x5e8] ss:$16 sps:$4 sm:$0xff]  }
 0x334   :  { %7434 = vmatpush2.bf16.msra.mxu1 %v9322_v59  ;;  %v9402_v59 = vld [vmem:[%s13166_s3 + $0x7ec] ss:$16 sps:$4 sm:$0xff]  }
 0x335   :  { %7435 = vmatprep.subr.bf16.mxu1 %v9330_v60  ;;  %v9400_v60 = vld [vmem:[%s13166_s3 + $0x7e8] ss:$16 sps:$4 sm:$0xff]  }
 0x336   :  { %7393 = vmatpush2.bf16.msra.mxu0 %v9325_v61  ;;  %v9405_v61 = vld [vmem:[%s13166_s3 + $0x5cc] ss:$16 sps:$4 sm:$0xff]  }
 0x337   :  { %7394 = vmatprep.subr.bf16.mxu0 %v9333_v9  ;;  %v9403_v9 = vld [vmem:[%s13166_s3 + $0x5c8] ss:$16 sps:$4 sm:$0xff]  }
 0x338   :  { %7436 = vmatpush2.bf16.msra.mxu1 %v9328_v38  ;;  %v9408_v38 = vld [vmem:[%s13166_s3 + $0x7cc] ss:$16 sps:$4 sm:$0xff]  }
 0x339   :  { %7437 = vmatprep.subr.bf16.mxu1 %v9336_v4  ;;  %v9406_v4 = vld [vmem:[%s13166_s3 + $0x7c8] ss:$16 sps:$4 sm:$0xff]  }
 0x33a   :  { %7395 = vmatpush2.bf16.msra.mxu0 %v9331_v44  ;;  %v9411_v44 = vld [vmem:[%s13166_s3 + $0x5ac] ss:$16 sps:$4 sm:$0xff]  }
 0x33b   :  { %7396 = vmatprep.subr.bf16.mxu0 %v9339_v29  ;;  %v9409_v29 = vld [vmem:[%s13166_s3 + $0x5a8] ss:$16 sps:$4 sm:$0xff]  }
 0x33c   :  { %7438 = vmatpush2.bf16.msra.mxu1 %v9334_v31  ;;  %v9414_v31 = vld [vmem:[%s13166_s3 + $0x7ac] ss:$16 sps:$4 sm:$0xff]  }
 0x33d   :  { %7439 = vmatprep.subr.bf16.mxu1 %v9342_v30  ;;  %v9412_v30 = vld [vmem:[%s13166_s3 + $0x7a8] ss:$16 sps:$4 sm:$0xff]  }
 0x33e   :  { %7397 = vmatpush2.bf16.msra.mxu0 %v9337_v36  ;;  %v9417_v36 = vld [vmem:[%s13166_s3 + $0x58c] ss:$16 sps:$4 sm:$0xff]  }
 0x33f   :  { %7398 = vmatprep.subr.bf16.mxu0 %v9345_v17  ;;  %v9415_v17 = vld [vmem:[%s13166_s3 + $0x588] ss:$16 sps:$4 sm:$0xff]  }
 0x340   :  { %7440 = vmatpush2.bf16.msra.mxu1 %v9340_v14  ;;  %v9420_v14 = vld [vmem:[%s13166_s3 + $0x78c] ss:$16 sps:$4 sm:$0xff]  }
 0x341   :  { %7441 = vmatprep.subr.bf16.mxu1 %v9348_v18  ;;  %v9418_v18 = vld [vmem:[%s13166_s3 + $0x788] ss:$16 sps:$4 sm:$0xff]  }
 0x342   :  { %7399 = vmatpush2.bf16.msra.mxu0 %v9343_v49  ;;  %v9423_v49 = vld [vmem:[%s13166_s3 + $0x56c] ss:$16 sps:$4 sm:$0xff]  }
 0x343   :  { %7454 = vmatprep.subr.bf16.mxu0 %v9351_v0  ;;  %v9421_v0 = vld [vmem:[%s13166_s3 + $0x568] ss:$16 sps:$4 sm:$0xff]  }
 0x344   :  { %7442 = vmatpush2.bf16.msra.mxu1 %v9346_v19  ;;  %v9426_v19 = vld [vmem:[%s13166_s3 + $0x76c] ss:$16 sps:$4 sm:$0xff]  }
 0x345   :  { %7497 = vmatprep.subr.bf16.mxu1 %v9354_v22  ;;  %7401 = vmatmul.mubr.bf16.vlgmr.msra.gmra.mxu0 %v10586_v32  ;;  %v9363_v32 = vld [vmem:[%s13166_s3 + $0x4ac] ss:$16 sps:$4 sm:$0xff]   ;;  %v9424_v22 = vld [vmem:[%s13166_s3 + $0x768] ss:$16 sps:$4 sm:$0xff]  }
 0x346   :  { %7455 = vmatpush1.bf16.msra.mxu0 %v9349_v25  ;;  %7486 = vmatprep.mubr.bf16.mxu0 %v11632_v23  ;;  %v9361_v23 = vld [vmem:[%s13166_s3 + $0x4a8] ss:$16 sps:$4 sm:$0xff]   ;;  %v9429_v25 = vld [vmem:[%s13166_s3 + $0x54c] ss:$16 sps:$4 sm:$0xff]  }
 0x347   :  { %7444 = vmatmul.mubr.bf16.vlgmr.msra.gmra.mxu1 %v10797_v12  ;;  %7456 = vmatprep.subr.bf16.mxu0 %v9357_v50  ;;  %v9366_v12 = vld [vmem:[%s13166_s3 + $0x6ac] ss:$16 sps:$4 sm:$0xff]   ;;  %v9427_v50 = vld [vmem:[%s13166_s3 + $0x548] ss:$16 sps:$4 sm:$0xff]  }
 0x348   :  { %7498 = vmatpush1.bf16.msra.mxu1 %v9352_v52  ;;  %7529 = vmatprep.mubr.bf16.mxu1 %v11641_v56  ;;  %v9369_v56 = vld [vmem:[%s13166_s3 + $0x48c] ss:$16 sps:$4 sm:$0xff]  }
 0x349   :  { %7499 = vmatprep.subr.bf16.mxu1 %v9360_v63  ;;  %v9432_v52 = vld [vmem:[%s13166_s3 + $0x74c] ss:$16 sps:$4 sm:$0xff]   ;;  %v9430_v63 = vld [vmem:[%s13166_s3 + $0x748] ss:$16 sps:$4 sm:$0xff]  }
 0x34a   :  { %7457 = vmatpush1.bf16.msra.mxu0 %v9355_v33  ;;  %v9435_v33 = vld [vmem:[%s13166_s3 + $0x52c] ss:$16 sps:$4 sm:$0xff]  }
 0x34b   :  { %7458 = vmatprep.subr.bf16.mxu0 %v9363_v32  ;;  %v9433_v32 = vld [vmem:[%s13166_s3 + $0x528] ss:$16 sps:$4 sm:$0xff]  }
 0x34c   :  { %7500 = vmatpush1.bf16.msra.mxu1 %v9358_v41  ;;  %v9438_v41 = vld [vmem:[%s13166_s3 + $0x72c] ss:$16 sps:$4 sm:$0xff]  }
 0x34d   :  { %7501 = vmatprep.subr.bf16.mxu1 %v9366_v12  ;;  %v9436_v12 = vld [vmem:[%s13166_s3 + $0x728] ss:$16 sps:$4 sm:$0xff]  }
 0x34e   :  { %7459 = vmatpush1.bf16.msra.mxu0 %v9361_v23  ;;  %v9441_v23 = vld [vmem:[%s13166_s3 + $0x50c] ss:$16 sps:$4 sm:$0xff]  }
 0x34f   :  { %7460 = vmatprep.subr.bf16.mxu0 %v9369_v56  ;;  %v9439_v56 = vld [vmem:[%s13166_s3 + $0x508] ss:$16 sps:$4 sm:$0xff]  }
 0x350   :  { %7502 = vmatpush1.bf16.msra.mxu1 %v9364_v48  ;;  %v9444_v48 = vld [vmem:[%s13166_s3 + $0x70c] ss:$16 sps:$4 sm:$0xff]  }
 0x351   :  { %7503 = vmatprep.subr.bf16.mxu1 %v9372_v35  ;;  %v9442_v35 = vld [vmem:[%s13166_s3 + $0x708] ss:$16 sps:$4 sm:$0xff]  }
 0x352   :  { %7461 = vmatpush1.bf16.msra.mxu0 %v9367_v39  ;;  %v9447_v39 = vld [vmem:[%s13166_s3 + $0x8ec] ss:$16 sps:$4 sm:$0xff]  }
 0x353   :  { %7462 = vmatprep.subr.bf16.mxu0 %v9375_v5  ;;  %v9445_v5 = vld [vmem:[%s13166_s3 + $0x8e8] ss:$16 sps:$4 sm:$0xff]  }
 0x354   :  { %7504 = vmatpush1.bf16.msra.mxu1 %v9370_v62  ;;  %v9450_v62 = vld [vmem:[%s13166_s3 + $0xaec] ss:$16 sps:$4 sm:$0xff]  }
 0x355   :  { %7505 = vmatprep.subr.bf16.mxu1 %v9378_v1  ;;  %v9448_v1 = vld [vmem:[%s13166_s3 + $0xae8] ss:$16 sps:$4 sm:$0xff]  }
 0x356   :  { %7463 = vmatpush1.bf16.msra.mxu0 %v9373_v20  ;;  %v9453_v20 = vld [vmem:[%s13166_s3 + $0x8cc] ss:$16 sps:$4 sm:$0xff]  }
 0x357   :  { %7464 = vmatprep.subr.bf16.mxu0 %v9381_v34  ;;  %v9451_v34 = vld [vmem:[%s13166_s3 + $0x8c8] ss:$16 sps:$4 sm:$0xff]  }
 0x358   :  { %7506 = vmatpush1.bf16.msra.mxu1 %v9376_v3  ;;  %v9456_v3 = vld [vmem:[%s13166_s3 + $0xacc] ss:$16 sps:$4 sm:$0xff]  }
 0x359   :  { %7507 = vmatprep.subr.bf16.mxu1 %v9384_v26  ;;  %v9454_v26 = vld [vmem:[%s13166_s3 + $0xac8] ss:$16 sps:$4 sm:$0xff]  }
 0x35a   :  { %7465 = vmatpush1.bf16.msra.mxu0 %v9379_v58  ;;  %v9460_v58 = vld [vmem:[%s13166_s3 + $0xaa8] ss:$16 sps:$4 sm:$0xff]  }
 0x35b   :  { %7466 = vmatprep.subr.bf16.mxu0 %v9387_v42  ;;  %v9463_v42 = vld [vmem:[%s13166_s3 + $0x888] ss:$16 sps:$4 sm:$0xff]  }
 0x35c   :  { %7508 = vmatpush1.bf16.msra.mxu1 %v9382_v51  ;;  %v9468_v51 = vld [vmem:[%s13166_s3 + $0xa8c] ss:$16 sps:$4 sm:$0xff]  }
 0x35d   :  { %7509 = vmatprep.subr.bf16.mxu1 %v9390_v13  ;;  %v9466_v13 = vld [vmem:[%s13166_s3 + $0xa88] ss:$16 sps:$4 sm:$0xff]  }
 0x35e   :  { %7467 = vmatpush1.bf16.msra.mxu0 %v9385_v28  ;;  %v9471_v28 = vld [vmem:[%s13166_s3 + $0x86c] ss:$16 sps:$4 sm:$0xff]  }
 0x35f   :  { %7468 = vmatprep.subr.bf16.mxu0 %v9393_v54  ;;  %v9469_v54 = vld [vmem:[%s13166_s3 + $0x868] ss:$16 sps:$4 sm:$0xff]  }
 0x360   :  { %7510 = vmatpush1.bf16.msra.mxu1 %v9388_v53  ;;  %v9474_v53 = vld [vmem:[%s13166_s3 + $0xa6c] ss:$16 sps:$4 sm:$0xff]  }
 0x361   :  { %7511 = vmatprep.subr.bf16.mxu1 %v9396_v55  ;;  %v9472_v55 = vld [vmem:[%s13166_s3 + $0xa68] ss:$16 sps:$4 sm:$0xff]  }
 0x362   :  { %7469 = vmatpush1.bf16.msra.mxu0 %v9391_v21  ;;  %v9477_v21 = vld [vmem:[%s13166_s3 + $0x84c] ss:$16 sps:$4 sm:$0xff]  }
 0x363   :  { %7470 = vmatprep.subr.bf16.mxu0 %v9399_v24  ;;  %v9475_v24 = vld [vmem:[%s13166_s3 + $0x848] ss:$16 sps:$4 sm:$0xff]  }
 0x364   :  { %7512 = vmatpush1.bf16.msra.mxu1 %v9394_v57  ;;  %v9480_v57 = vld [vmem:[%s13166_s3 + $0xa4c] ss:$16 sps:$4 sm:$0xff]  }
 0x365   :  { %7513 = vmatprep.subr.bf16.mxu1 %v9402_v59  ;;  %v9478_v59 = vld [vmem:[%s13166_s3 + $0xa48] ss:$16 sps:$4 sm:$0xff]  }
 0x366   :  { %7471 = vmatpush2.bf16.msra.mxu0 %v9397_v7  ;;  %v9483_v7 = vld [vmem:[%s13166_s3 + $0x82c] ss:$16 sps:$4 sm:$0xff]  }
 0x367   :  { %7472 = vmatprep.subr.bf16.mxu0 %v9405_v61  ;;  %v9481_v61 = vld [vmem:[%s13166_s3 + $0x828] ss:$16 sps:$4 sm:$0xff]  }
 0x368   :  { %7514 = vmatpush2.bf16.msra.mxu1 %v9400_v60  ;;  %v9486_v60 = vld [vmem:[%s13166_s3 + $0xa2c] ss:$16 sps:$4 sm:$0xff]  }
 0x369   :  { %7515 = vmatprep.subr.bf16.mxu1 %v9408_v38  ;;  %v9484_v38 = vld [vmem:[%s13166_s3 + $0xa28] ss:$16 sps:$4 sm:$0xff]  }
 0x36a   :  { %7473 = vmatpush2.bf16.msra.mxu0 %v9403_v9  ;;  %v9489_v9 = vld [vmem:[%s13166_s3 + $0x80c] ss:$16 sps:$4 sm:$0xff]  }
 0x36b   :  { %7474 = vmatprep.subr.bf16.mxu0 %v9411_v44  ;;  %v9487_v44 = vld [vmem:[%s13166_s3 + $0x808] ss:$16 sps:$4 sm:$0xff]  }
 0x36c   :  { %7516 = vmatpush2.bf16.msra.mxu1 %v9406_v4  ;;  %v9492_v4 = vld [vmem:[%s13166_s3 + $0xa0c] ss:$16 sps:$4 sm:$0xff]  }
 0x36d   :  { %7517 = vmatprep.subr.bf16.mxu1 %v9414_v31  ;;  %v9490_v31 = vld [vmem:[%s13166_s3 + $0xa08] ss:$16 sps:$4 sm:$0xff]  }
 0x36e   :  { %7475 = vmatpush2.bf16.msra.mxu0 %v9409_v29  ;;  %v9495_v29 = vld [vmem:[%s13166_s3 + $0x9ec] ss:$16 sps:$4 sm:$0xff]  }
 0x36f   :  { %7476 = vmatprep.subr.bf16.mxu0 %v9417_v36  ;;  %v9493_v36 = vld [vmem:[%s13166_s3 + $0x9e8] ss:$16 sps:$4 sm:$0xff]  }
 0x370   :  { %7518 = vmatpush2.bf16.msra.mxu1 %v9412_v30  ;;  %v9498_v30 = vld [vmem:[%s13166_s3 + $0xbec] ss:$16 sps:$4 sm:$0xff]  }
 0x371   :  { %7519 = vmatprep.subr.bf16.mxu1 %v9420_v14  ;;  %v9496_v14 = vld [vmem:[%s13166_s3 + $0xbe8] ss:$16 sps:$4 sm:$0xff]  }
 0x372   :  { %7477 = vmatpush2.bf16.msra.mxu0 %v9415_v17  ;;  %v9501_v17 = vld [vmem:[%s13166_s3 + $0x9cc] ss:$16 sps:$4 sm:$0xff]  }
 0x373   :  { %7478 = vmatprep.subr.bf16.mxu0 %v9423_v49  ;;  %v9499_v49 = vld [vmem:[%s13166_s3 + $0x9c8] ss:$16 sps:$4 sm:$0xff]  }
 0x374   :  { %7520 = vmatpush2.bf16.msra.mxu1 %v9418_v18  ;;  %v9504_v18 = vld [vmem:[%s13166_s3 + $0xbcc] ss:$16 sps:$4 sm:$0xff]  }
 0x375   :  { %7521 = vmatprep.subr.bf16.mxu1 %v9426_v19  ;;  %v9502_v19 = vld [vmem:[%s13166_s3 + $0xbc8] ss:$16 sps:$4 sm:$0xff]  }
 0x376   :  { %7479 = vmatpush2.bf16.msra.mxu0 %v9421_v0  ;;  %v9507_v0 = vld [vmem:[%s13166_s3 + $0x9ac] ss:$16 sps:$4 sm:$0xff]  }
 0x377   :  { %7480 = vmatprep.subr.bf16.mxu0 %v9429_v25  ;;  %v9505_v25 = vld [vmem:[%s13166_s3 + $0x9a8] ss:$16 sps:$4 sm:$0xff]  }
 0x378   :  { %7522 = vmatpush2.bf16.msra.mxu1 %v9424_v22  ;;  %v9510_v22 = vld [vmem:[%s13166_s3 + $0xbac] ss:$16 sps:$4 sm:$0xff]  }
 0x379   :  { %7523 = vmatprep.subr.bf16.mxu1 %v9432_v52  ;;  %v9508_v52 = vld [vmem:[%s13166_s3 + $0xba8] ss:$16 sps:$4 sm:$0xff]  }
 0x37a   :  { %7481 = vmatpush2.bf16.msra.mxu0 %v9427_v50  ;;  %v9513_v50 = vld [vmem:[%s13166_s3 + $0x98c] ss:$16 sps:$4 sm:$0xff]  }
 0x37b   :  { %7482 = vmatprep.subr.bf16.mxu0 %v9435_v33  ;;  %v9511_v33 = vld [vmem:[%s13166_s3 + $0x988] ss:$16 sps:$4 sm:$0xff]  }
 0x37c   :  { %7524 = vmatpush2.bf16.msra.mxu1 %v9430_v63  ;;  %v9516_v63 = vld [vmem:[%s13166_s3 + $0xb8c] ss:$16 sps:$4 sm:$0xff]  }
 0x37d   :  { %7525 = vmatprep.subr.bf16.mxu1 %v9438_v41  ;;  %v9514_v41 = vld [vmem:[%s13166_s3 + $0xb88] ss:$16 sps:$4 sm:$0xff]  }
 0x37e   :  { %7483 = vmatpush2.bf16.msra.mxu0 %v9433_v32  ;;  %v9519_v32 = vld [vmem:[%s13166_s3 + $0x96c] ss:$16 sps:$4 sm:$0xff]  }
 0x37f   :  { %7484 = vmatprep.subr.bf16.mxu0 %v9441_v23  ;;  %v9517_v23 = vld [vmem:[%s13166_s3 + $0x968] ss:$16 sps:$4 sm:$0xff]  }
 0x380   :  { %7526 = vmatpush2.bf16.msra.mxu1 %v9436_v12  ;;  %v9522_v12 = vld [vmem:[%s13166_s3 + $0xb6c] ss:$16 sps:$4 sm:$0xff]  }
 0x381   :  { %7527 = vmatprep.subr.bf16.mxu1 %v9444_v48  ;;  %v9520_v48 = vld [vmem:[%s13166_s3 + $0xb68] ss:$16 sps:$4 sm:$0xff]  }
 0x382   :  { %7485 = vmatpush2.bf16.msra.mxu0 %v9439_v56  ;;  %v9525_v56 = vld [vmem:[%s13166_s3 + $0x94c] ss:$16 sps:$4 sm:$0xff]  }
 0x383   :  { %7540 = vmatprep.subr.bf16.mxu0 %v9447_v39  ;;  %v9523_v39 = vld [vmem:[%s13166_s3 + $0x948] ss:$16 sps:$4 sm:$0xff]  }
 0x384   :  { %7528 = vmatpush2.bf16.msra.mxu1 %v9442_v35  ;;  %v9528_v35 = vld [vmem:[%s13166_s3 + $0xb4c] ss:$16 sps:$4 sm:$0xff]  }
 0x385   :  { %7583 = vmatprep.subr.bf16.mxu1 %v9450_v62  ;;  %7487 = vmatmul.mubr.bf16.vlgmr.msra.gmra.mxu0 %v11013_v15  ;;  %v9459_v15 = vld [vmem:[%s13166_s3 + $0x8ac] ss:$16 sps:$4 sm:$0xff]   ;;  %v9526_v62 = vld [vmem:[%s13166_s3 + $0xb48] ss:$16 sps:$4 sm:$0xff]  }
 0x386   :  { %7541 = vmatpush1.bf16.msra.mxu0 %v9445_v5  ;;  %7572 = vmatprep.mubr.bf16.mxu0 %v11853_v2  ;;  %v9457_v2 = vld [vmem:[%s13166_s3 + $0x8a8] ss:$16 sps:$4 sm:$0xff]   ;;  %v9531_v5 = vld [vmem:[%s13166_s3 + $0x92c] ss:$16 sps:$4 sm:$0xff]  }
 0x387   :  { %7530 = vmatmul.mubr.bf16.vlgmr.msra.gmra.mxu1 %v11228_v40  ;;  %7542 = vmatprep.subr.bf16.mxu0 %v9453_v20  ;;  %v9462_v40 = vld [vmem:[%s13166_s3 + $0xaac] ss:$16 sps:$4 sm:$0xff]   ;;  %v9529_v20 = vld [vmem:[%s13166_s3 + $0x928] ss:$16 sps:$4 sm:$0xff]  }
 0x388   :  { %7584 = vmatpush1.bf16.msra.mxu1 %v9448_v1  ;;  %7615 = vmatprep.mubr.bf16.mxu1 %v11859_v11  ;;  %v9465_v11 = vld [vmem:[%s13166_s3 + $0x88c] ss:$16 sps:$4 sm:$0xff]  }
 0x389   :  { %7585 = vmatprep.subr.bf16.mxu1 %v9456_v3  ;;  %v9534_v1 = vld [vmem:[%s13166_s3 + $0xb2c] ss:$16 sps:$4 sm:$0xff]   ;;  %v9532_v3 = vld [vmem:[%s13166_s3 + $0xb28] ss:$16 sps:$4 sm:$0xff]  }
 0x38a   :  { %7543 = vmatpush1.bf16.msra.mxu0 %v9451_v34  ;;  %v9537_v34 = vld [vmem:[%s13166_s3 + $0x90c] ss:$16 sps:$4 sm:$0xff]  }
 0x38b   :  { %7544 = vmatprep.subr.bf16.mxu0 %v9459_v15  ;;  %v9535_v15 = vld [vmem:[%s13166_s3 + $0x908] ss:$16 sps:$4 sm:$0xff]  }
 0x38c   :  { %7586 = vmatpush1.bf16.msra.mxu1 %v9454_v26  ;;  %v9540_v26 = vld [vmem:[%s13166_s3 + $0xb0c] ss:$16 sps:$4 sm:$0xff]  }
 0x38d   :  { %7587 = vmatprep.subr.bf16.mxu1 %v9462_v40  ;;  %v9538_v40 = vld [vmem:[%s13166_s3 + $0xb08] ss:$16 sps:$4 sm:$0xff]  }
 0x38e   :  { %7545 = vmatpush1.bf16.msra.mxu0 %v9457_v2  ;;  %v9543_v2 = vld [vmem:[%s13166_s3 + $0xcec] ss:$16 sps:$4 sm:$0xff]  }
 0x38f   :  { %7546 = vmatprep.subr.bf16.mxu0 %v9465_v11  ;;  %v9541_v11 = vld [vmem:[%s13166_s3 + $0xce8] ss:$16 sps:$4 sm:$0xff]  }
 0x390   :  { %7588 = vmatpush1.bf16.msra.mxu1 %v9460_v58  ;;  %v9546_v58 = vld [vmem:[%s13166_s3 + $0xeec] ss:$16 sps:$4 sm:$0xff]  }
 0x391   :  { %7589 = vmatprep.subr.bf16.mxu1 %v9468_v51  ;;  %v9544_v51 = vld [vmem:[%s13166_s3 + $0xee8] ss:$16 sps:$4 sm:$0xff]  }
 0x392   :  { %7547 = vmatpush1.bf16.msra.mxu0 %v9463_v42  ;;  %v9549_v42 = vld [vmem:[%s13166_s3 + $0xccc] ss:$16 sps:$4 sm:$0xff]  }
 0x393   :  { %7548 = vmatprep.subr.bf16.mxu0 %v9471_v28  ;;  %v9547_v28 = vld [vmem:[%s13166_s3 + $0xcc8] ss:$16 sps:$4 sm:$0xff]  }
 0x394   :  { %7590 = vmatpush1.bf16.msra.mxu1 %v9466_v13  ;;  %v9552_v13 = vld [vmem:[%s13166_s3 + $0xecc] ss:$16 sps:$4 sm:$0xff]  }
 0x395   :  { %7591 = vmatprep.subr.bf16.mxu1 %v9474_v53  ;;  %v9550_v53 = vld [vmem:[%s13166_s3 + $0xec8] ss:$16 sps:$4 sm:$0xff]  }
 0x396   :  { %7549 = vmatpush1.bf16.msra.mxu0 %v9469_v54  ;;  %v9556_v54 = vld [vmem:[%s13166_s3 + $0xea8] ss:$16 sps:$4 sm:$0xff]  }
 0x397   :  { %7550 = vmatprep.subr.bf16.mxu0 %v9477_v21  ;;  %v9559_v21 = vld [vmem:[%s13166_s3 + $0xc88] ss:$16 sps:$4 sm:$0xff]  }
 0x398   :  { %7592 = vmatpush1.bf16.msra.mxu1 %v9472_v55  ;;  %v9564_v55 = vld [vmem:[%s13166_s3 + $0xe8c] ss:$16 sps:$4 sm:$0xff]  }
 0x399   :  { %7593 = vmatprep.subr.bf16.mxu1 %v9480_v57  ;;  %v9562_v57 = vld [vmem:[%s13166_s3 + $0xe88] ss:$16 sps:$4 sm:$0xff]  }
 0x39a   :  { %7551 = vmatpush1.bf16.msra.mxu0 %v9475_v24  ;;  %v9567_v24 = vld [vmem:[%s13166_s3 + $0xc6c] ss:$16 sps:$4 sm:$0xff]  }
 0x39b   :  { %7552 = vmatprep.subr.bf16.mxu0 %v9483_v7  ;;  %v9565_v7 = vld [vmem:[%s13166_s3 + $0xc68] ss:$16 sps:$4 sm:$0xff]  }
 0x39c   :  { %7594 = vmatpush1.bf16.msra.mxu1 %v9478_v59  ;;  %v9570_v59 = vld [vmem:[%s13166_s3 + $0xe6c] ss:$16 sps:$4 sm:$0xff]  }
 0x39d   :  { %7595 = vmatprep.subr.bf16.mxu1 %v9486_v60  ;;  %v9568_v60 = vld [vmem:[%s13166_s3 + $0xe68] ss:$16 sps:$4 sm:$0xff]  }
 0x39e   :  { %7553 = vmatpush1.bf16.msra.mxu0 %v9481_v61  ;;  %v9573_v61 = vld [vmem:[%s13166_s3 + $0xc4c] ss:$16 sps:$4 sm:$0xff]  }
 0x39f   :  { %7554 = vmatprep.subr.bf16.mxu0 %v9489_v9  ;;  %v9571_v9 = vld [vmem:[%s13166_s3 + $0xc48] ss:$16 sps:$4 sm:$0xff]  }
 0x3a0   :  { %7596 = vmatpush1.bf16.msra.mxu1 %v9484_v38  ;;  %v9576_v38 = vld [vmem:[%s13166_s3 + $0xe4c] ss:$16 sps:$4 sm:$0xff]  }
 0x3a1   :  { %7597 = vmatprep.subr.bf16.mxu1 %v9492_v4  ;;  %v9574_v4 = vld [vmem:[%s13166_s3 + $0xe48] ss:$16 sps:$4 sm:$0xff]  }
 0x3a2   :  { %7555 = vmatpush1.bf16.msra.mxu0 %v9487_v44  ;;  %v9579_v44 = vld [vmem:[%s13166_s3 + $0xc2c] ss:$16 sps:$4 sm:$0xff]  }
 0x3a3   :  { %7556 = vmatprep.subr.bf16.mxu0 %v9495_v29  ;;  %v9577_v29 = vld [vmem:[%s13166_s3 + $0xc28] ss:$16 sps:$4 sm:$0xff]  }
 0x3a4   :  { %7598 = vmatpush1.bf16.msra.mxu1 %v9490_v31  ;;  %v9582_v31 = vld [vmem:[%s13166_s3 + $0xe2c] ss:$16 sps:$4 sm:$0xff]  }
 0x3a5   :  { %7599 = vmatprep.subr.bf16.mxu1 %v9498_v30  ;;  %v9580_v30 = vld [vmem:[%s13166_s3 + $0xe28] ss:$16 sps:$4 sm:$0xff]  }
 0x3a6   :  { %7557 = vmatpush2.bf16.msra.mxu0 %v9493_v36  ;;  %v9585_v36 = vld [vmem:[%s13166_s3 + $0xc0c] ss:$16 sps:$4 sm:$0xff]  }
 0x3a7   :  { %7558 = vmatprep.subr.bf16.mxu0 %v9501_v17  ;;  %v9583_v17 = vld [vmem:[%s13166_s3 + $0xc08] ss:$16 sps:$4 sm:$0xff]  }
 0x3a8   :  { %7600 = vmatpush2.bf16.msra.mxu1 %v9496_v14  ;;  %v9588_v14 = vld [vmem:[%s13166_s3 + $0xe0c] ss:$16 sps:$4 sm:$0xff]  }
 0x3a9   :  { %7601 = vmatprep.subr.bf16.mxu1 %v9504_v18  ;;  %v9586_v18 = vld [vmem:[%s13166_s3 + $0xe08] ss:$16 sps:$4 sm:$0xff]  }
 0x3aa   :  { %7559 = vmatpush2.bf16.msra.mxu0 %v9499_v49  ;;  %v9591_v49 = vld [vmem:[%s13166_s3 + $0xdec] ss:$16 sps:$4 sm:$0xff]  }
 0x3ab   :  { %7560 = vmatprep.subr.bf16.mxu0 %v9507_v0  ;;  %v9589_v0 = vld [vmem:[%s13166_s3 + $0xde8] ss:$16 sps:$4 sm:$0xff]  }
 0x3ac   :  { %7602 = vmatpush2.bf16.msra.mxu1 %v9502_v19  ;;  %v9594_v19 = vld [vmem:[%s13166_s3 + $0xfec] ss:$16 sps:$4 sm:$0xff]  }
 0x3ad   :  { %7603 = vmatprep.subr.bf16.mxu1 %v9510_v22  ;;  %v9592_v22 = vld [vmem:[%s13166_s3 + $0xfe8] ss:$16 sps:$4 sm:$0xff]  }
 0x3ae   :  { %7561 = vmatpush2.bf16.msra.mxu0 %v9505_v25  ;;  %v9597_v25 = vld [vmem:[%s13166_s3 + $0xdcc] ss:$16 sps:$4 sm:$0xff]  }
 0x3af   :  { %7562 = vmatprep.subr.bf16.mxu0 %v9513_v50  ;;  %v9595_v50 = vld [vmem:[%s13166_s3 + $0xdc8] ss:$16 sps:$4 sm:$0xff]  }
 0x3b0   :  { %7604 = vmatpush2.bf16.msra.mxu1 %v9508_v52  ;;  %v9600_v52 = vld [vmem:[%s13166_s3 + $0xfcc] ss:$16 sps:$4 sm:$0xff]  }
 0x3b1   :  { %7605 = vmatprep.subr.bf16.mxu1 %v9516_v63  ;;  %v9598_v63 = vld [vmem:[%s13166_s3 + $0xfc8] ss:$16 sps:$4 sm:$0xff]  }
 0x3b2   :  { %7563 = vmatpush2.bf16.msra.mxu0 %v9511_v33  ;;  %v9603_v33 = vld [vmem:[%s13166_s3 + $0xdac] ss:$16 sps:$4 sm:$0xff]  }
 0x3b3   :  { %7564 = vmatprep.subr.bf16.mxu0 %v9519_v32  ;;  %v9601_v32 = vld [vmem:[%s13166_s3 + $0xda8] ss:$16 sps:$4 sm:$0xff]  }
 0x3b4   :  { %7606 = vmatpush2.bf16.msra.mxu1 %v9514_v41  ;;  %v9606_v41 = vld [vmem:[%s13166_s3 + $0xfac] ss:$16 sps:$4 sm:$0xff]  }
 0x3b5   :  { %7607 = vmatprep.subr.bf16.mxu1 %v9522_v12  ;;  %v9604_v12 = vld [vmem:[%s13166_s3 + $0xfa8] ss:$16 sps:$4 sm:$0xff]  }
 0x3b6   :  { %7565 = vmatpush2.bf16.msra.mxu0 %v9517_v23  ;;  %v9609_v23 = vld [vmem:[%s13166_s3 + $0xd8c] ss:$16 sps:$4 sm:$0xff]  }
 0x3b7   :  { %7566 = vmatprep.subr.bf16.mxu0 %v9525_v56  ;;  %v9607_v56 = vld [vmem:[%s13166_s3 + $0xd88] ss:$16 sps:$4 sm:$0xff]  }
 0x3b8   :  { %7608 = vmatpush2.bf16.msra.mxu1 %v9520_v48  ;;  %v9612_v48 = vld [vmem:[%s13166_s3 + $0xf8c] ss:$16 sps:$4 sm:$0xff]  }
 0x3b9   :  { %7609 = vmatprep.subr.bf16.mxu1 %v9528_v35  ;;  %v9610_v35 = vld [vmem:[%s13166_s3 + $0xf88] ss:$16 sps:$4 sm:$0xff]  }
 0x3ba   :  { %7567 = vmatpush2.bf16.msra.mxu0 %v9523_v39  ;;  %v9615_v39 = vld [vmem:[%s13166_s3 + $0xd6c] ss:$16 sps:$4 sm:$0xff]  }
 0x3bb   :  { %7568 = vmatprep.subr.bf16.mxu0 %v9531_v5  ;;  %v9613_v5 = vld [vmem:[%s13166_s3 + $0xd68] ss:$16 sps:$4 sm:$0xff]  }
 0x3bc   :  { %7610 = vmatpush2.bf16.msra.mxu1 %v9526_v62  ;;  %v9618_v62 = vld [vmem:[%s13166_s3 + $0xf6c] ss:$16 sps:$4 sm:$0xff]  }
 0x3bd   :  { %7611 = vmatprep.subr.bf16.mxu1 %v9534_v1  ;;  %v9616_v1 = vld [vmem:[%s13166_s3 + $0xf68] ss:$16 sps:$4 sm:$0xff]  }
 0x3be   :  { %7569 = vmatpush2.bf16.msra.mxu0 %v9529_v20  ;;  %v9621_v20 = vld [vmem:[%s13166_s3 + $0xd4c] ss:$16 sps:$4 sm:$0xff]  }
 0x3bf   :  { %7570 = vmatprep.subr.bf16.mxu0 %v9537_v34  ;;  %v9619_v34 = vld [vmem:[%s13166_s3 + $0xd48] ss:$16 sps:$4 sm:$0xff]  }
 0x3c0   :  { %7612 = vmatpush2.bf16.msra.mxu1 %v9532_v3  ;;  %v9624_v3 = vld [vmem:[%s13166_s3 + $0xf4c] ss:$16 sps:$4 sm:$0xff]  }
 0x3c1   :  { %7613 = vmatprep.subr.bf16.mxu1 %v9540_v26  ;;  %v9622_v26 = vld [vmem:[%s13166_s3 + $0xf48] ss:$16 sps:$4 sm:$0xff]  }
 0x3c2   :  { %7571 = vmatpush2.bf16.msra.mxu0 %v9535_v15  ;;  %v9627_v15 = vld [vmem:[%s13166_s3 + $0xd2c] ss:$16 sps:$4 sm:$0xff]  }
 0x3c3   :  { %7626 = vmatprep.subr.bf16.mxu0 %v9543_v2  ;;  %v9625_v2 = vld [vmem:[%s13166_s3 + $0xd28] ss:$16 sps:$4 sm:$0xff]  }
 0x3c4   :  { %7614 = vmatpush2.bf16.msra.mxu1 %v9538_v40  ;;  %v9630_v40 = vld [vmem:[%s13166_s3 + $0xf2c] ss:$16 sps:$4 sm:$0xff]  }
 0x3c5   :  { %7669 = vmatprep.subr.bf16.mxu1 %v9546_v58  ;;  %7573 = vmatmul.mubr.bf16.vlgmr.msra.gmra.mxu0 %v11451_v8  ;;  %v9555_v8 = vld [vmem:[%s13166_s3 + $0xcac] ss:$16 sps:$4 sm:$0xff]   ;;  %v9628_v58 = vld [vmem:[%s13166_s3 + $0xf28] ss:$16 sps:$4 sm:$0xff]  }
 0x3c6   :  { %7627 = vmatpush1.bf16.msra.mxu0 %v9541_v11  ;;  %7658 = vmatprep.mubr.bf16.mxu0 %v12070_v10  ;;  %v9553_v10 = vld [vmem:[%s13166_s3 + $0xca8] ss:$16 sps:$4 sm:$0xff]   ;;  %v9633_v11 = vld [vmem:[%s13166_s3 + $0xd0c] ss:$16 sps:$4 sm:$0xff]  }
 0x3c7   :  { %7616 = vmatmul.mubr.bf16.vlgmr.msra.gmra.mxu1 %v11680_v47  ;;  %7628 = vmatprep.subr.bf16.mxu0 %v9549_v42  ;;  %v9558_v47 = vld [vmem:[%s13166_s3 + $0xeac] ss:$16 sps:$4 sm:$0xff]   ;;  %v9631_v42 = vld [vmem:[%s13166_s3 + $0xd08] ss:$16 sps:$4 sm:$0xff]  }
 0x3c8   :  { %7670 = vmatpush1.bf16.msra.mxu1 %v9544_v51  ;;  %7701 = vmatprep.mubr.bf16.mxu1 %v12119_v46  ;;  %v9561_v46 = vld [vmem:[%s13166_s3 + $0xc8c] ss:$16 sps:$4 sm:$0xff]  }
 0x3c9   :  { %7671 = vmatprep.subr.bf16.mxu1 %v9552_v13  ;;  %v9636_v51 = vld [vmem:[%s13166_s3 + $0xf0c] ss:$16 sps:$4 sm:$0xff]   ;;  %v9634_v13 = vld [vmem:[%s13166_s3 + $0xf08] ss:$16 sps:$4 sm:$0xff]  }
 0x3ca   :  { %7629 = vmatpush1.bf16.msra.mxu0 %v9547_v28  ;;  %v7058_v28 = vpop.f32.mrf.mxu0 }
 0x3cb   :  { %7630 = vmatprep.subr.bf16.mxu0 %v9555_v8 }
 0x3cc   :  { %7672 = vmatpush1.bf16.msra.mxu1 %v9550_v53  ;;  %v7101_v53 = vpop.f32.mrf.mxu1  ;;  %v7060_v8 = vpop.f32.mrf.mxu0 }
 0x3cd   :  { %7673 = vmatprep.subr.bf16.mxu1 %v9558_v47 }
 0x3ce   :  { %7631 = vmatpush1.bf16.msra.mxu0 %v9553_v10  ;;  %v7103_v47 = vpop.f32.mrf.mxu1  ;;  %v7062_v10 = vpop.f32.mrf.mxu0 }
 0x3cf   :  { %7632 = vmatprep.subr.bf16.mxu0 %v9561_v46 }
 0x3d0   :  { %7674 = vmatpush1.bf16.msra.mxu1 %v9556_v54  ;;  %v7105_v54 = vpop.f32.mrf.mxu1  ;;  %v7064_v46 = vpop.f32.mrf.mxu0 }
 0x3d1   :  { %7675 = vmatprep.subr.bf16.mxu1 %v9564_v55 }
 0x3d2   :  { %7633 = vmatpush1.bf16.msra.mxu0 %v9559_v21  ;;  %v7107_v55 = vpop.f32.mrf.mxu1  ;;  %v7144_v21 = vpop.f32.mrf.mxu0 }
 0x3d3   :  { %7634 = vmatprep.subr.bf16.mxu0 %v9567_v24 }
 0x3d4   :  { %7676 = vmatpush1.bf16.msra.mxu1 %v9562_v57  ;;  %v7187_v57 = vpop.f32.mrf.mxu1  ;;  %v7146_v24 = vpop.f32.mrf.mxu0 }
 0x3d5   :  { %7677 = vmatprep.subr.bf16.mxu1 %v9570_v59 }
 0x3d6   :  { %7635 = vmatpush1.bf16.msra.mxu0 %v9565_v7  ;;  %v7189_v59 = vpop.f32.mrf.mxu1  ;;  %v7148_v7 = vpop.f32.mrf.mxu0 }
 0x3d7   :  { %7636 = vmatprep.subr.bf16.mxu0 %v9573_v61 }
 0x3d8   :  { %7678 = vmatpush1.bf16.msra.mxu1 %v9568_v60  ;;  %v13055_v60 = vpop.f32.mrf.mxu1  ;;  %v7150_v61 = vpop.f32.mrf.mxu0 }
 0x3d9   :  { %7679 = vmatprep.subr.bf16.mxu1 %v9576_v38 }
 0x3da   :  { %7637 = vmatpush1.bf16.msra.mxu0 %v9571_v9  ;;  %v7193_v38 = vpop.f32.mrf.mxu1 }
 0x3db   :  { %7638 = vmatprep.subr.bf16.mxu0 %v9579_v44 }
 0x3dc   :  { %7680 = vmatpush1.bf16.msra.mxu1 %v9574_v4  ;;  %v13057_v9 = vpop.f32.mrf.mxu1 }
 0x3dd   :  { %7681 = vmatprep.subr.bf16.mxu1 %v9582_v31 }
 0x3de   :  { %7639 = vmatpush1.bf16.msra.mxu0 %v9577_v29  ;;  %v7275_v4 = vpop.f32.mrf.mxu1 }
 0x3df   :  { %7640 = vmatprep.subr.bf16.mxu0 %v9585_v36 }
 0x3e0   :  { %7682 = vmatpush1.bf16.msra.mxu1 %v9580_v30  ;;  %v13061_v31 = vpop.f32.mrf.mxu1 }
 0x3e1   :  { %7683 = vmatprep.subr.bf16.mxu1 %v9588_v14 }
 0x3e2   :  { %7641 = vmatpush1.bf16.msra.mxu0 %v9583_v17  ;;  %v13063_v30 = vpop.f32.mrf.mxu1 }
 0x3e3   :  { %7642 = vmatprep.subr.bf16.mxu0 %v9591_v49 }
 0x3e4   :  { %7684 = vmatpush1.bf16.msra.mxu1 %v9586_v18  ;;  %v13067_v14 = vpop.f32.mrf.mxu1 }
 0x3e5   :  { %7685 = vmatprep.subr.bf16.mxu1 %v9594_v19 }
 0x3e6   :  { %7643 = vmatpush2.bf16.msra.mxu0 %v9589_v0  ;;  %v13071_v18 = vpop.f32.mrf.mxu1 }
 0x3e7   :  { %7644 = vmatprep.subr.bf16.mxu0 %v9597_v25 }
 0x3e8   :  { %7686 = vmatpush2.bf16.msra.mxu1 %v9592_v22  ;;  %v13075_v19 = vpop.f32.mrf.mxu1 }
 0x3e9   :  { %7687 = vmatprep.subr.bf16.mxu1 %v9600_v52  ;;  %13178 = vst [vmem:[#allocation5_spill] sm:$0xff] %v13075_v19 }
 0x3ea   :  { %7645 = vmatpush2.bf16.msra.mxu0 %v9595_v50  ;;  %v13079_v22 = vpop.f32.mrf.mxu1 }
 0x3eb   :  { %7646 = vmatprep.subr.bf16.mxu0 %v9603_v33  ;;  %13179 = vst [vmem:[#allocation6_spill] sm:$0xff] %v13079_v22 }
 0x3ec   :  { %7688 = vmatpush2.bf16.msra.mxu1 %v9598_v63 }
 0x3ed   :  { %7689 = vmatprep.subr.bf16.mxu1 %v9606_v41 }
 0x3ee   :  { %7647 = vmatpush2.bf16.msra.mxu0 %v9601_v32  ;;  %v4442_v32 = vld [vmem:[%s13167_s4] sm:$0xf] }
 0x3ef   :  { %7648 = vmatprep.subr.bf16.mxu0 %v9609_v23 }
 0x3f0   :  { %7690 = vmatpush2.bf16.msra.mxu1 %v9604_v12  ;;  %v4451_v12 = vrot.slane %v4442_v32, %v11333_v27 }
 0x3f1   :  { %7691 = vmatprep.subr.bf16.mxu1 %v9612_v48 }
 0x3f2   :  { %7649 = vmatpush2.bf16.msra.mxu0 %v9607_v56  ;;  %v4447_v56 = vrot.slane %v4442_v32, %v10521_v43 }
 0x3f3   :  { %7650 = vmatprep.subr.bf16.mxu0 %v9615_v39 }
 0x3f4   :  { %7692 = vmatpush2.bf16.msra.mxu1 %v9610_v35 }
 0x3f5   :  { %7693 = vmatprep.subr.bf16.mxu1 %v9618_v62  ;;  %v7061_v62 = vadd.f32 %v7060_v8, %v4451_v12 }
 0x3f6   :  { %7651 = vmatpush2.bf16.msra.mxu0 %v9613_v5  ;;  %v7059_v5 = vadd.f32 %v7058_v28, %v4447_v56 }
 0x3f7   :  { %7652 = vmatprep.subr.bf16.mxu0 %v9621_v20 }
 0x3f8   :  { %7694 = vmatpush2.bf16.msra.mxu1 %v9616_v1 }
 0x3f9   :  { %7695 = vmatprep.subr.bf16.mxu1 %v9624_v3  ;;  %v7104_v3 = vadd.f32 %v7103_v47, %v7061_v62 }
 0x3fa   :  { %7653 = vmatpush2.bf16.msra.mxu0 %v9619_v34  ;;  %v7065_v34 = vadd.f32 %v7064_v46, %v4451_v12 }
 0x3fb   :  { %7654 = vmatprep.subr.bf16.mxu0 %v9627_v15  ;;  %v7102_v15 = vadd.f32 %v7101_v53, %v7059_v5 }
 0x3fc   :  { %7696 = vmatpush2.bf16.msra.mxu1 %v9622_v26  ;;  %v4455_v26 = vrot.slane %v4442_v32, %v10733_v16 }
 0x3fd   :  { %7697 = vmatprep.subr.bf16.mxu1 %v9630_v40  ;;  %v7063_v40 = vadd.f32 %v7062_v10, %v4447_v56 }
 0x3fe   :  { %7655 = vmatpush2.bf16.msra.mxu0 %v9625_v2  ;;  %v7147_v2 = vadd.f32 %v7146_v24, %v7104_v3 }
 0x3ff   :  { %7656 = vmatprep.subr.bf16.mxu0 %v9633_v11  ;;  %v4459_v11 = vrot.slane %v4442_v32, %v11345_v37  ;;  %v7106_v43 = vadd.f32 %v7105_v54, %v7063_v40 }
 0x400   :  { %7698 = vmatpush2.bf16.msra.mxu1 %v9628_v58  ;;  %v7190_v19 = vadd.f32 %v7189_v59, %v7147_v2 }
 0x401   :  { %7699 = vmatprep.subr.bf16.mxu1 %v9636_v51  ;;  %v7149_v46 = vadd.f32 %v7148_v7, %v7106_v43 }
 0x402   :  { %7657 = vmatpush2.bf16.msra.mxu0 %v9631_v42  ;;  %v7108_v42 = vadd.f32 %v7107_v55, %v7065_v34 }
 0x404   :  { %7700 = vmatpush2.bf16.msra.mxu1 %v9634_v13  ;;  %v7145_v13 = vadd.f32 %v7144_v21, %v7102_v15  ;;  %v7151_v8 = vadd.f32 %v7150_v61, %v7108_v42  ;;  %v7192_v21 = vadd.f32 %v13055_v60, %v7149_v46  ;;  %v9646_v46 = vld [vmem:[%s13164_s0 + $0x28] sm:$0xff] }
 0x405   :  { %7659 = vmatmul.mubr.bf16.vlgmr.msra.gmra.mxu0 %v11901_v45  ;;  %v7230_v45 = vpop.f32.mrf.mxu0 }
 0x406   :  { %v7188_v47 = vadd.f32 %v7187_v57, %v7145_v13  ;;  %v7194_v56 = vadd.f32 %v7193_v38, %v7151_v8 }
 0x407   :  { %7702 = vmatmul.mubr.bf16.vlgmr.msra.gmra.mxu1 %v12279_v6  ;;  %v7232_v6 = vpop.f32.mrf.mxu0  ;;  %v7445_v52 = vpop.f32.mrf.mxu1 }
 0x408   :  { %v7233_v12 = vadd.f32 %v7232_v6, %v7190_v19  ;;  %v7231_v5 = vadd.f32 %v7230_v45, %v7188_v47 }
 0x409   :  { %v13059_v44 = vpop.f32.mrf.mxu0  ;;  %v7447_v63 = vpop.f32.mrf.mxu1 }
 0x40a   :  { %v7276_v54 = vadd.f32 %v7275_v4, %v7233_v12  ;;  %v7274_v43 = vadd.f32 %v13057_v9, %v7231_v5  ;;  %v7235_v57 = vadd.f32 %v13059_v44, %v7192_v21 }
 0x40b   :  { %v7236_v29 = vpop.f32.mrf.mxu0  ;;  %v7449_v41 = vpop.f32.mrf.mxu1 }
 0x40c   :  { %v7237_v59 = vadd.f32 %v7236_v29, %v7194_v56 }
 0x40d   :  { %v13065_v36 = vpop.f32.mrf.mxu0  ;;  %v7451_v48 = vpop.f32.mrf.mxu1 }
 0x40e   :  { %v7280_v6 = vadd.f32 %v13063_v30, %v7237_v59  ;;  %v7317_v19 = vadd.f32 %v13065_v36, %v7274_v43 }
 0x40f   :  { %v13069_v17 = vpop.f32.mrf.mxu0 }
 0x411   :  { %v13073_v49 = vpop.f32.mrf.mxu0 }
 0x412   :  { %13177 = vst [vmem:[#allocation4_spill] sm:$0xff] %v13073_v49 }
 0x413   :  { %v13077_v0 = vpop.f32.mrf.mxu0 }
 0x414   :  { %v7323_v44 = vadd.f32 %v13077_v0, %v7280_v6  ;;  %v9651_v6 = vld [vmem:[%s13164_s0 + $0x38] sm:$0xff] }
 0x415   :  { %v7402_v25 = vpop.f32.mrf.mxu0 }
 0x416   :  { %v7403_v27 = vadd.f32 %v7402_v25, %v4455_v26 }
 0x417   :  { %v7404_v50 = vpop.f32.mrf.mxu0 }
 0x418   :  { %v7405_v22 = vadd.f32 %v7404_v50, %v4459_v11  ;;  %v7446_v53 = vadd.f32 %v7445_v52, %v7403_v27  ;;  %v7319_v27 = vadd.f32 %v13069_v17, %v7276_v54 }
 0x419   :  { %v7406_v33 = vpop.f32.mrf.mxu0 }
 0x41a   :  { %v7407_v10 = vadd.f32 %v7406_v33, %v4455_v26  ;;  %v7448_v32 = vadd.f32 %v7447_v63, %v7405_v22  ;;  %v7278_v63 = vadd.f32 %v13061_v31, %v7235_v57  ;;  %v7362_v9 = vadd.f32 %v13071_v18, %v7319_v27  ;;  %v13181_v26 = vld [vmem:[#allocation6_spill] sm:$0xff]  ;;  %v9650_v27 = vld [vmem:[%s13164_s0 + $0x30] sm:$0xff] }
 0x41b   :  { %v7408_v23 = vpop.f32.mrf.mxu0  ;;  %v7366_v18 = vadd.f32 %v13181_v26, %v7323_v44 }
 0x41c   :  { %v7409_v3 = vadd.f32 %v7408_v23, %v4459_v11  ;;  %v7450_v25 = vadd.f32 %v7449_v41, %v7407_v10  ;;  %v7360_v41 = vadd.f32 %v13067_v14, %v7317_v19  ;;  %v13180_v23 = vld [vmem:[#allocation4_spill] sm:$0xff]  ;;  %v9645_v14 = vld [vmem:[%s13164_s0] sm:$0xff]  ;;  %v13182_v11 = vld [vmem:[#allocation5_spill] sm:$0xff] }
 0x41d   :  { %v7717_v12 = vadd.f32 %v9646_v46, %v7366_v18  ;;  %v13183_v46 = vld [vmem:[#allocation2_spill] sm:$0xff] }
 0x41e   :  { %v7452_v7 = vadd.f32 %v7451_v48, %v7409_v3  ;;  %v7321_v48 = vadd.f32 %v13180_v23, %v7278_v63 }
 0x445   :  { %v7488_v35 = vpop.f32.mrf.mxu0 }
 0x446   :  { %v7489_v55 = vadd.f32 %v7488_v35, %v7446_v53 }
 0x447   :  { %v7531_v39 = vpop.f32.mrf.mxu1  ;;  %v7490_v1 = vpop.f32.mrf.mxu0 }
 0x448   :  { %v7491_v50 = vadd.f32 %v7490_v1, %v7448_v32  ;;  %v7532_v38 = vadd.f32 %v7531_v39, %v7489_v55  ;;  %v9648_v55 = vld [vmem:[%s13164_s0 + $0x20] sm:$0xff] }
 0x449   :  { %v7533_v20 = vpop.f32.mrf.mxu1  ;;  %v7492_v58 = vpop.f32.mrf.mxu0 }
 0x44a   :  { %v7493_v45 = vadd.f32 %v7492_v58, %v7450_v25  ;;  %v7534_v4 = vadd.f32 %v7533_v20, %v7491_v50  ;;  %v9644_v20 = vld [vmem:[%s13164_s0 + $0x8] sm:$0xff]  ;;  %v9649_v25 = vld [vmem:[%s13164_s0 + $0x18] sm:$0xff] }
 0x44b   :  { %v7535_v51 = vpop.f32.mrf.mxu1  ;;  %v7494_v28 = vpop.f32.mrf.mxu0  ;;  %v7713_v31 = vadd.f32 %v9644_v20, %v7362_v9 }
 0x44c   :  { %v7495_v29 = vadd.f32 %v7494_v28, %v7452_v7  ;;  %v7536_v33 = vadd.f32 %v7535_v51, %v7493_v45  ;;  %v7364_v51 = vadd.f32 %v13182_v11, %v7321_v48 }
 0x44d   :  { %v7537_v49 = vpop.f32.mrf.mxu1 }
 0x44e   :  { %v7538_v35 = vadd.f32 %v7537_v49, %v7495_v29  ;;  %v7712_v49 = vadd.f32 %v9645_v14, %v7360_v41  ;;  %v7716_v21 = vadd.f32 %v9648_v55, %v7364_v51 }
 0x450   :  { %v7722_v53 = vadd.f32 %v7713_v31, %v7712_v49  ;;  %v7727_v57 = vadd.f32 %v7717_v12, %v7716_v21 }
 0x485   :  { %v7574_v62 = vpop.f32.mrf.mxu0 }
 0x486   :  { %v7575_v22 = vadd.f32 %v7574_v62, %v7532_v38 }
 0x487   :  { %v7617_v24 = vpop.f32.mrf.mxu1  ;;  %v7576_v61 = vpop.f32.mrf.mxu0 }
 0x488   :  { %v7577_v17 = vadd.f32 %v7576_v61, %v7534_v4  ;;  %v7618_v36 = vadd.f32 %v7617_v24, %v7575_v22  ;;  %v9647_v24 = vld [vmem:[%s13164_s0 + $0x10] sm:$0xff] }
 0x489   :  { %v7619_v34 = vpop.f32.mrf.mxu1  ;;  %v7578_v60 = vpop.f32.mrf.mxu0 }
 0x48a   :  { %v7579_v39 = vadd.f32 %v7578_v60, %v7536_v33  ;;  %v7620_v0 = vadd.f32 %v7619_v34, %v7577_v17 }
 0x48b   :  { %v7621_v52 = vpop.f32.mrf.mxu1  ;;  %v7580_v30 = vpop.f32.mrf.mxu0 }
 0x48c   :  { %v7581_v40 = vadd.f32 %v7580_v30, %v7538_v35  ;;  %v7622_v13 = vadd.f32 %v7621_v52, %v7579_v39 }
 0x48d   :  { %v7623_v1 = vpop.f32.mrf.mxu1 }
 0x48e   :  { %v7624_v10 = vadd.f32 %v7623_v1, %v7581_v40 }
 0x4c5   :  { %v7660_v15 = vpop.f32.mrf.mxu0 }
 0x4c6   :  { %v7661_v2 = vadd.f32 %v7660_v15, %v7618_v36 }
 0x4c7   :  { %v7703_v58 = vpop.f32.mrf.mxu1  ;;  %v7662_v42 = vpop.f32.mrf.mxu0 }
 0x4c8   :  { %v7704_v8 = vadd.f32 %v7703_v58, %v7661_v2  ;;  %v7663_v28 = vadd.f32 %v7662_v42, %v7620_v0 }
 0x4c9   :  { %v7705_v47 = vpop.f32.mrf.mxu1  ;;  %v7664_v62 = vpop.f32.mrf.mxu0 }
 0x4ca   :  { %v7714_v56 = vadd.f32 %v9647_v24, %v7704_v8  ;;  %v7706_v5 = vadd.f32 %v7705_v47, %v7663_v28  ;;  %v7665_v32 = vadd.f32 %v7664_v62, %v7622_v13  ;;  %v7720_v28 = vld [vmem:[%s13168_s5] sm:$0xf]  ;;  %v13184_v62 = vld [vmem:[#allocation3_spill] sm:$0xff] }
 0x4cb   :  { %v7707_v3 = vpop.f32.mrf.mxu1  ;;  %v7666_v54 = vpop.f32.mrf.mxu0  ;;  %v7721_v47 = vld [vmem:[%s13169_s6] sm:$0xf]  ;;  %v7791_v24 = vrot.slane %v7720_v28, %v11345_v37 }
 0x4cc   :  { %v7708_v59 = vadd.f32 %v7707_v3, %v7665_v32  ;;  %v7667_v61 = vadd.f32 %v7666_v54, %v7624_v10  ;;  %v7715_v50 = vadd.f32 %v9649_v25, %v7706_v5  ;;  %v7723_v34 = vadd.f32 %v7722_v53, %v7714_v56 }
 0x4cd   :  { %v7709_v43 = vpop.f32.mrf.mxu1  ;;  %v7783_v53 = vrot.slane %v7720_v28, %v13184_v62  ;;  %v7787_v10 = vrot.slane %v7720_v28, %v10733_v16  ;;  %v7808_v5 = vrot.slane %v7721_v47, %v13183_v46  ;;  %v7812_v32 = vrot.slane %v7721_v47, %v13184_v62 }
 0x4ce   :  { %v7718_v7 = vadd.f32 %v9650_v27, %v7708_v59  ;;  %v7710_v38 = vadd.f32 %v7709_v43, %v7667_v61  ;;  %v7724_v45 = vadd.f32 %v7723_v34, %v7715_v50  ;;  %v7816_v3 = vrot.slane %v7721_v47, %v10733_v16 }
 0x4cf   :  { %v7820_v55 = vrot.slane %v7721_v47, %v11345_v37 }
 0x4d0   :  { %v7719_v19 = vadd.f32 %v9651_v6, %v7710_v38  ;;  %7725 = vadd.xlane.f32.xlu0 %v7724_v45  ;;  %v7728_v60 = vadd.f32 %v7727_v57, %v7718_v7 }
 0x4d2   :  { %v7729_v4 = vadd.f32 %v7728_v60, %v7719_v19 }
 0x4d4   :  { %7730 = vadd.xlane.f32.xlu0 %v7729_v4 }
 0x559   :  { %v7726_v29 = vpop.xlane.xlu0 %7725 }
 0x55a   :  { %v7733_v22 = vmul.f32 0.001953125, %v7726_v29 }
 0x55c   :  { %v7735_v52 = vsub.f32 %v7712_v49, %v7733_v22  ;;  %v7736_v63 = vsub.f32 %v7713_v31, %v7733_v22  ;;  %v7737_v9 = vsub.f32 %v7714_v56, %v7733_v22  ;;  %v7738_v33 = vsub.f32 %v7715_v50, %v7733_v22 }
 0x55d   :  { %v7731_v44 = vpop.xlane.xlu0 %7730 }
 0x55e   :  { %v7734_v17 = vmul.f32 0.001953125, %v7731_v44  ;;  %v7743_v41 = vmul.f32 %v7735_v52, %v7735_v52  ;;  %v7744_v23 = vmul.f32 %v7736_v63, %v7736_v63  ;;  %v7745_v48 = vmul.f32 %v7737_v9, %v7737_v9 }
 0x55f   :  { %v7746_v1 = vmul.f32 %v7738_v33, %v7738_v33 }
 0x560   :  { %v7739_v30 = vsub.f32 %v7716_v21, %v7734_v17  ;;  %v7740_v35 = vsub.f32 %v7717_v12, %v7734_v17  ;;  %v7751_v36 = vadd.f32 %v7744_v23, %v7743_v41  ;;  %v7741_v39 = vsub.f32 %v7718_v7, %v7734_v17 }
 0x561   :  { %v7742_v26 = vsub.f32 %v7719_v19, %v7734_v17  ;;  %v7779_v12 = vrot.slane %v7720_v28, %v13183_v46 }
 0x562   :  { %v7752_v20 = vadd.f32 %v7751_v36, %v7745_v48  ;;  %v7747_v18 = vmul.f32 %v7739_v30, %v7739_v30  ;;  %v7748_v15 = vmul.f32 %v7740_v35, %v7740_v35  ;;  %v7749_v40 = vmul.f32 %v7741_v39, %v7741_v39 }
 0x563   :  { %v7750_v31 = vmul.f32 %v7742_v26, %v7742_v26 }
 0x564   :  { %v7753_v0 = vadd.f32 %v7752_v20, %v7746_v1  ;;  %v7756_v2 = vadd.f32 %v7748_v15, %v7747_v18 }
 0x566   :  { %7754 = vadd.xlane.f32.xlu1 %v7753_v0  ;;  %v7757_v58 = vadd.f32 %v7756_v2, %v7749_v40 }
 0x568   :  { %v7758_v14 = vadd.f32 %v7757_v58, %v7750_v31 }
 0x56a   :  { %7759 = vadd.xlane.f32.xlu1 %v7758_v14 }
 0x5ef   :  { %v7755_v49 = vpop.xlane.xlu1 %7754 }
 0x5f0   :  { %v7761_v11 = vmul.f32 0.001953125, %v7755_v49 }
 0x5f2   :  { %v7763_v51 = vadd.f32 1e-05, %v7761_v11 }
 0x5f3   :  { %v7760_v42 = vpop.xlane.xlu1 %7759 }
 0x5f4   :  { %9637 = vrsqrt.f32 %v7763_v51  ;;  %v7762_v13 = vmul.f32 0.001953125, %v7760_v42 }
 0x5f6   :  { %v7764_v8 = vadd.f32 1e-05, %v7762_v13 }
 0x5f8   :  { %9639 = vrsqrt.f32 %v7764_v8 }
 0x601   :  { %v9638_v56 = vpop.eup %9637 }
 0x602   :  { %v7767_v21 = vmul.f32 %v9638_v56, %v7735_v52  ;;  %v7768_v54 = vmul.f32 %v9638_v56, %v7736_v63  ;;  %v7769_v59 = vmul.f32 %v9638_v56, %v7737_v9  ;;  %v7770_v61 = vmul.f32 %v9638_v56, %v7738_v33 }
 0x604   :  { %v7796_v25 = vmul.f32 %v7779_v12, %v7767_v21  ;;  %v7797_v50 = vmul.f32 %v7783_v53, %v7768_v54  ;;  %v7798_v34 = vmul.f32 %v7787_v10, %v7769_v59  ;;  %v7799_v43 = vmul.f32 %v7791_v24, %v7770_v61 }
 0x605   :  { %v9640_v57 = vpop.eup %9639 }
 0x606   :  { %v7825_v27 = vadd.f32 %v7808_v5, %v7796_v25  ;;  %v7826_v7 = vadd.f32 %v7812_v32, %v7797_v50  ;;  %v7827_v38 = vadd.f32 %v7816_v3, %v7798_v34  ;;  %v7828_v45 = vadd.f32 %v7820_v55, %v7799_v43 }
 0x607   :  { %v7771_v6 = vmul.f32 %v9640_v57, %v7739_v30  ;;  %v7772_v19 = vmul.f32 %v9640_v57, %v7740_v35  ;;  %v7773_v60 = vmul.f32 %v9640_v57, %v7741_v39  ;;  %v7774_v4 = vmul.f32 %v9640_v57, %v7742_v26 }
 0x608   :  { %7833 = vst [vmem:[%s13170_s7] sm:$0xff] %v7825_v27  ;;  %7834 = vst [vmem:[%s13170_s7 + $0x8] sm:$0xff] %v7826_v7 }
 0x609   :  { %7835 = vst [vmem:[%s13170_s7 + $0x10] sm:$0xff] %v7827_v38  ;;  %7836 = vst [vmem:[%s13170_s7 + $0x18] sm:$0xff] %v7828_v45  ;;  %v7800_v16 = vmul.f32 %v7779_v12, %v7771_v6  ;;  %v7801_v37 = vmul.f32 %v7783_v53, %v7772_v19  ;;  %v7802_v29 = vmul.f32 %v7787_v10, %v7773_v60 }
 0x60a   :  { %v7803_v22 = vmul.f32 %v7791_v24, %v7774_v4 }
 0x60b   :  { %v7829_v52 = vadd.f32 %v7808_v5, %v7800_v16  ;;  %v7830_v63 = vadd.f32 %v7812_v32, %v7801_v37  ;;  %v7831_v9 = vadd.f32 %v7816_v3, %v7802_v29 }
 0x60c   :  { %v7832_v44 = vadd.f32 %v7820_v55, %v7803_v22 }
 0x60d   :  { %7837 = vst [vmem:[%s13170_s7 + $0x20] sm:$0xff] %v7829_v52  ;;  %7838 = vst [vmem:[%s13170_s7 + $0x28] sm:$0xff] %v7830_v63 }
 0x60e   :  { %7839 = vst [vmem:[%s13170_s7 + $0x30] sm:$0xff] %v7831_v9  ;;  %7840 = vst [vmem:[%s13170_s7 + $0x38] sm:$0xff] %v7832_v44 }

</bundles_post_ra>
